<compile_context>
chip_gen: v7x
topology: tpu7x:2x2x1
jax: 0.10.0
libtpu: 0.0.40
codegen_flags: <defaults>
</compile_context>

<pallas_src>
import jax
import jax.numpy as jnp
from jax.experimental import pallas as pl
from jax.experimental.pallas import tpu as pltpu

LEAKY_SLOPE = 0.2
BN_EPS = 1e-5
PRECISION = jax.lax.Precision.HIGHEST        # reference only
_VMEM_LIMIT = 32 * 1024 * 1024               # fits every generation (v7x per-TC VMEM = 64 MiB)


# --------------------------------------------------------------------------------------
# Kernel 1: direct 3-D convolution over a spatially pre-padded input.
# One (batch, output-depth-slab) per grid step; taps accumulated in an f32 register acc.
# Also emits per-slab channel sums / sums-of-squares for the two-pass BatchNorm.
# --------------------------------------------------------------------------------------
def _direct_conv3d(xp, w_taps, bias, kdims, out_dhw, offsets, out_dtype):
    """xp:     (N, Dp, Hp, Wp, Cin)   padded activations (bf16)
       w_taps: (KD*KH*KW, Cin, Cout)  f32, tap-major (td, th, tw)
       bias:   (1, Cout)              f32
       out[n,d,h,w,co] = bias[co] +
           sum_{td,th,tw,ci} xp[n, d+od+td, h+oh+th, w+ow+tw, ci] * w_taps[(td,th,tw), ci, co]
       Returns: y     (N*Do, Ho*Wo, Cout)  out_dtype
                stats (N*Do, 2,     Cout)  f32   [row 0: sum, row 1: sum of squares]
    """
    N, Dp, Hp, Wp, Cin = xp.shape
    KD, KH, KW = kdims
    Do, Ho, Wo = out_dhw
    od, oh, ow = offsets
    Cout = w_taps.shape[-1]
    HW = Ho * Wo

    xp4 = xp.reshape(N * Dp, Hp, Wp, Cin)    # free reshape; 4-D arrays keep Mosaic happy

    def kernel(*refs):
        x_refs = refs[:KD]
        w_ref, b_ref, o_ref, s_ref = refs[KD:]
        acc = jnp.zeros((HW, Cout), jnp.float32)
        for td in range(KD):
            xv = x_refs[td][...].astype(jnp.float32)            # (Hp, Wp, Cin)
            for th in range(KH):
                for tw in range(KW):
                    patch = xv[oh + th:oh + th + Ho, ow + tw:ow + tw + Wo, :]
                    patch = patch.reshape(HW, Cin)
                    t = (td * KH + th) * KW + tw
                    acc = acc + jnp.dot(patch, w_ref[t, :, :],
                                        preferred_element_type=jnp.float32)
        acc = acc + b_ref[...]
        o_ref[...] = acc.astype(o_ref.dtype)
        s_ref[0:1, :] = jnp.sum(acc, axis=0, keepdims=True)
        s_ref[1:2, :] = jnp.sum(acc * acc, axis=0, keepdims=True)

    # KD depth-shifted views of the same padded array -> depth halo without im2col.
    x_specs = [
        pl.BlockSpec((None, Hp, Wp, Cin),
                     lambda n, d, _td=td: (n * Dp + d + od + _td, 0, 0, 0))
        for td in range(KD)
    ]
    w_spec = pl.BlockSpec((KD * KH * KW, Cin, Cout), lambda n, d: (0, 0, 0))
    b_spec = pl.BlockSpec((1, Cout), lambda n, d: (0, 0))
    out_specs = (
        pl.BlockSpec((None, HW, Cout), lambda n, d: (n * Do + d, 0, 0)),
        pl.BlockSpec((None, 2, Cout), lambda n, d: (n * Do + d, 0, 0)),
    )

    flops = 2 * N * Do * HW * KD * KH * KW * Cin * Cout
    bytes_accessed = (KD * N * Do * Hp * Wp * Cin * xp.dtype.itemsize
                      + KD * KH * KW * Cin * Cout * 4
                      + N * Do * HW * Cout * jnp.dtype(out_dtype).itemsize
                      + N * Do * 2 * Cout * 4)

    y, stats = pl.pallas_call(
        kernel,
        out_shape=(jax.ShapeDtypeStruct((N * Do, HW, Cout), out_dtype),
                   jax.ShapeDtypeStruct((N * Do, 2, Cout), jnp.float32)),
        grid=(N, Do),
        in_specs=x_specs + [w_spec, b_spec],
        out_specs=out_specs,
        compiler_params=pltpu.CompilerParams(
            dimension_semantics=("parallel", "parallel"),
            vmem_limit_bytes=_VMEM_LIMIT),
        cost_estimate=pl.CostEstimate(flops=flops, transcendentals=0,
                                      bytes_accessed=bytes_accessed),
    )(*([xp4] * KD + [w_taps, bias]))
    return y, stats


# --------------------------------------------------------------------------------------
# Kernel 2: lane-dense BatchNorm-apply + LeakyReLU(0.2) (pure elementwise, memory-bound).
# --------------------------------------------------------------------------------------
def _bn_act_kernel(y_ref, s_ref, b_ref, o_ref):
    z = y_ref[...].astype(jnp.float32) * s_ref[...] + b_ref[...]
    o_ref[...] = jnp.where(z > 0, z, LEAKY_SLOPE * z).astype(o_ref.dtype)


def _row_tile(rows):
    for t in (1024, 512, 256, 128, 64, 32, 16, 8):
        if rows % t == 0:
            return t
    return rows


def _bn_act_apply(y, scale, shift, out_dtype):
    """Applies y*scale + shift then LeakyReLU(0.2) with 128-lane-dense blocks when C | 128."""
    C = y.shape[-1]
    if C <= 128 and 128 % C == 0 and y.size % 128 == 0:
        L, rep = 128, 128 // C               # fold 128/C spatial positions into the lanes
    else:
        L, rep = C, 1                        # fallback: per-channel lanes
    y2 = y.reshape(-1, L)
    s2 = jnp.tile(scale.astype(jnp.float32), rep).reshape(1, L)
    b2 = jnp.tile(shift.astype(jnp.float32), rep).reshape(1, L)
    rows = y2.shape[0]
    tr = _row_tile(rows)
    out = pl.pallas_call(
        _bn_act_kernel,
        out_shape=jax.ShapeDtypeStruct((rows, L), out_dtype),
        grid=(rows // tr,),
        in_specs=[pl.BlockSpec((tr, L), lambda i: (i, 0)),
                  pl.BlockSpec((1, L), lambda i: (0, 0)),
                  pl.BlockSpec((1, L), lambda i: (0, 0))],
        out_specs=pl.BlockSpec((tr, L), lambda i: (i, 0)),
        compiler_params=pltpu.CompilerParams(
            dimension_semantics=("parallel",),
            vmem_limit_bytes=_VMEM_LIMIT),
    )(y2, s2, b2)
    return out.reshape(y.shape)


# --------------------------------------------------------------------------------------
# Layers
# --------------------------------------------------------------------------------------
def conv3d_bn_lrelu(x, w_torch, gamma, beta, out_dtype=jnp.bfloat16):
    # Conv3d(k=3, pad=1, bias=False) + BatchNorm3d (training batch stats) + LeakyReLU(0.2)
    N, D, H, W, Cin = x.shape
    Cout = w_torch.shape[0]
    xp = jnp.pad(x.astype(jnp.bfloat16), ((0, 0), (1, 1), (1, 1), (1, 1), (0, 0)))
    wt = jnp.transpose(w_torch, (2, 3, 4, 1, 0)).reshape(27, Cin, Cout).astype(jnp.float32)
    zero_bias = jnp.zeros((1, Cout), jnp.float32)

    y, stats = _direct_conv3d(xp, wt, zero_bias, (3, 3, 3), (D, H, W), (0, 0, 0),
                              jnp.bfloat16)

    s = stats.sum(axis=0)                                  # (2, Cout) tiny finalize reduction
    m = float(N * D * H * W)
    mean = s[0] / m
    var = s[1] / m - mean * mean                           # biased variance (training-mode BN)
    scale = gamma.astype(jnp.float32) * jax.lax.rsqrt(var + BN_EPS)
    shift = beta.astype(jnp.float32) - mean * scale

    act = _bn_act_apply(y, scale, shift, out_dtype)        # (N*D, H*W, Cout)
    return act.reshape(N, D, H, W, Cout)


def conv_transpose3d_up(x, w_torch, bias):
    # ConvTranspose3d(Cin, Cout, 4, stride=2, padding=1) decomposed into the 8 output-parity
    # 2x2x2 sub-convolutions over the un-dilated input:
    #   out[2m + p] = sum_{t in {0,1}} x_pad[m + p + t] * w[(3 - p) - 2t]   (per spatial dim)
    N, D, H, W, Cin = x.shape
    Cout = w_torch.shape[1]
    xp = jnp.pad(x.astype(jnp.bfloat16), ((0, 0), (1, 1), (1, 1), (1, 1), (0, 0)))
    w_all = jnp.transpose(w_torch, (2, 3, 4, 0, 1)).astype(jnp.float32)   # (4,4,4,Cin,Cout)
    bias2 = bias.reshape(1, Cout).astype(jnp.float32)

    subs = []
    for pd in range(2):
        for ph in range(2):
            for pw in range(2):
                wsub = w_all[3 - pd::-2, 3 - ph::-2, 3 - pw::-2]          # (2,2,2,Cin,Cout)
                wsub = wsub.reshape(8, Cin, Cout)
                y, _ = _direct_conv3d(xp, wsub, bias2, (2, 2, 2), (D, H, W),
                                      (pd, ph, pw), jnp.bfloat16)
                subs.append(y.reshape(N, D, H, W, Cout))

    up = jnp.stack(subs, axis=0).reshape(2, 2, 2, N, D, H, W, Cout)
    up = jnp.transpose(up, (3, 4, 0, 5, 1, 6, 2, 7)).reshape(N, 2 * D, 2 * H, 2 * W, Cout)
    return up


# --------------------------------------------------------------------------------------
# UNet_up_block forward (Pallas-backed).  Activations NDHWC (channels-last).
# --------------------------------------------------------------------------------------
def unet_up_block_forward(params, prev_feature_map, x, ID):
    if ID == 1:
        x = conv_transpose3d_up(x, params['up_w'], params['up_b'])
    x = jnp.concatenate([x.astype(jnp.bfloat16),
                         prev_feature_map.astype(jnp.bfloat16)], axis=-1)   # torch cat dim=1
    x = conv3d_bn_lrelu(x, params['w1'], params['g1'], params['b1'])
    x = conv3d_bn_lrelu(x, params['w2'], params['g2'], params['b2'])
    x = conv3d_bn_lrelu(x, params['w3'], params['g3'], params['b3'], out_dtype=jnp.float32)
    return x


# --------------------------------------------------------------------------------------
# Pure-JAX f32 reference (lax.conv_general_dilated, HIGHEST precision) for verification.
# --------------------------------------------------------------------------------------
def ref_forward(params, prev, x, ID):
    dn = ('NDHWC', 'DHWIO', 'NDHWC')
    if ID == 1:
        w = jnp.transpose(jnp.flip(params['up_w'], axis=(2, 3, 4)), (2, 3, 4, 0, 1))
        x = jax.lax.conv_general_dilated(x, w, (1, 1, 1),
                                         ((2, 2), (2, 2), (2, 2)),
                                         lhs_dilation=(2, 2, 2),
                                         dimension_numbers=dn, precision=PRECISION)
        x = x + params['up_b'].reshape(1, 1, 1, 1, -1)
    x = jnp.concatenate([x, prev], axis=-1)
    for i in (1, 2, 3):
        w = jnp.transpose(params[f'w{i}'], (2, 3, 4, 1, 0))
        x = jax.lax.conv_general_dilated(x, w, (1, 1, 1),
                                         ((1, 1), (1, 1), (1, 1)),
                                         dimension_numbers=dn, precision=PRECISION)
        mean = x.mean(axis=(0, 1, 2, 3), keepdims=True)
        var = jnp.square(x - mean).mean(axis=(0, 1, 2, 3), keepdims=True)
        x = (x - mean) * jax.lax.rsqrt(var + BN_EPS)
        x = x * params[f'g{i}'].reshape(1, 1, 1, 1, -1) + params[f'b{i}'].reshape(1, 1, 1, 1, -1)
        x = jnp.where(x > 0, x, LEAKY_SLOPE * x)
    return x


# --------------------------------------------------------------------------------------
if __name__ == "__main__":
    key = jax.random.PRNGKey(0)
    ks = jax.random.split(key, 13)

    prev_channel, input_channel, output_channel, ID = 4, 4, 8, 1
    N, D, H, W = 2, 4, 4, 4  # x spatial; prev_feature_map is at 2x resolution (post-upsample)

    x = jax.random.normal(ks[0], (N, D, H, W, input_channel), jnp.float32)
    prev_feature_map = jax.random.normal(
        ks[1], (N, 2 * D, 2 * H, 2 * W, prev_channel), jnp.float32)

    cat_ch = prev_channel + input_channel
    params = {
        # ConvTranspose3d(input_channel, input_channel, 4, stride=2, padding=1), torch layout
        'up_w': 0.1 * jax.random.normal(ks[2], (input_channel, input_channel, 4, 4, 4), jnp.float32),
        'up_b': 0.1 * jax.random.normal(ks[3], (input_channel,), jnp.float32),
        # Conv3d(cat_ch, out_ch, 3, padding=1, bias=False): torch layout (Cout, Cin, 3, 3, 3)
        'w1': 0.1 * jax.random.normal(ks[4], (output_channel, cat_ch, 3, 3, 3), jnp.float32),
        'g1': 1.0 + 0.1 * jax.random.normal(ks[5], (output_channel,), jnp.float32),
        'b1': 0.1 * jax.random.normal(ks[6], (output_channel,), jnp.float32),
        'w2': 0.1 * jax.random.normal(ks[7], (output_channel, output_channel, 3, 3, 3), jnp.float32),
        'g2': 1.0 + 0.1 * jax.random.normal(ks[8], (output_channel,), jnp.float32),
        'b2': 0.1 * jax.random.normal(ks[9], (output_channel,), jnp.float32),
        'w3': 0.1 * jax.random.normal(ks[10], (output_channel, output_channel, 3, 3, 3), jnp.float32),
        'g3': 1.0 + 0.1 * jax.random.normal(ks[11], (output_channel,), jnp.float32),
        'b3': 0.1 * jax.random.normal(ks[12], (output_channel,), jnp.float32),
    }

    fwd = jax.jit(lambda p, prev, xx: unet_up_block_forward(p, prev, xx, ID))
    ref_fn = jax.jit(lambda p, prev, xx: ref_forward(p, prev, xx, ID))

    out = jax.block_until_ready(fwd(params, prev_feature_map, x))
    ref = jax.block_until_ready(ref_fn(params, prev_feature_map, x))

    assert out.shape == (N, 2 * D, 2 * H, 2 * W, output_channel), out.shape
    err = jnp.abs(out.astype(jnp.float32) - ref)
    # bf16 activation storage / bf16-level MXU inputs with f32 accumulation -> sub-percent noise.
    assert float(err.max()) < 1.5e-1 and float(err.mean()) < 2e-2, \
        (float(err.max()), float(err.mean()))
    print("KERNEL_OK")
</pallas_src>

<mosaic_0001>
module attributes {stable_mosaic.version = 11 : i64} {
  func.func @kernel(%arg0: i32, %arg1: i32, %arg2: memref<1x6x6x4xbf16, #tpu.memory_space<vmem>>, %arg3: memref<1x6x6x4xbf16, #tpu.memory_space<vmem>>, %arg4: memref<8x4x4xf32, #tpu.memory_space<vmem>>, %arg5: memref<1x4xf32, #tpu.memory_space<vmem>>, %arg6: memref<1x16x4xbf16, #tpu.memory_space<vmem>>, %arg7: memref<1x2x4xf32, #tpu.memory_space<vmem>>) attributes {dimension_semantics = [#tpu.dimension_semantics<parallel>, #tpu.dimension_semantics<parallel>], iteration_bounds = array<i64: 2, 4>, scalar_prefetch = 0 : i64, scratch_operands = 0 : i64, tpu.core_type = #tpu.core_type<tc>, window_params = [{transform_indices = @transform_0, window_bounds = array<i64: 1, 6, 6, 4>}, {transform_indices = @transform_1, window_bounds = array<i64: 1, 6, 6, 4>}, {pipeline_mode = #tpu.pipeline_mode<synchronous>, transform_indices = @transform_2, window_bounds = array<i64: 8, 4, 4>}, {pipeline_mode = #tpu.pipeline_mode<synchronous>, transform_indices = @transform_3, window_bounds = array<i64: 1, 4>}, {transform_indices = @transform_4, window_bounds = array<i64: 1, 16, 4>}, {transform_indices = @transform_5, window_bounds = array<i64: 1, 2, 4>}]} {
    %cst = arith.constant 0.000000e+00 : f32
    %0 = vector.broadcast %cst : f32 to vector<16x4xf32>
    %c0 = arith.constant 0 : index
    %c0_0 = arith.constant 0 : index
    %c0_1 = arith.constant 0 : index
    %c0_2 = arith.constant 0 : index
    %1 = vector.load %arg2[%c0, %c0_0, %c0_1, %c0_2] : memref<1x6x6x4xbf16, #tpu.memory_space<vmem>>, vector<1x6x6x4xbf16>
    %2 = vector.shape_cast %1 : vector<1x6x6x4xbf16> to vector<6x6x4xbf16>
    %3 = arith.extf %2 : vector<6x6x4xbf16> to vector<6x6x4xf32>
    %4 = vector.extract_strided_slice %3 {offsets = [0, 0, 0], sizes = [4, 4, 4], strides = [1, 1, 1]} : vector<6x6x4xf32> to vector<4x4x4xf32>
    %5 = vector.shape_cast %4 : vector<4x4x4xf32> to vector<16x4xf32>
    %c0_3 = arith.constant 0 : index
    %c0_4 = arith.constant 0 : index
    %c0_5 = arith.constant 0 : index
    %6 = vector.load %arg4[%c0_3, %c0_4, %c0_5] : memref<8x4x4xf32, #tpu.memory_space<vmem>>, vector<1x4x4xf32>
    %7 = vector.shape_cast %6 : vector<1x4x4xf32> to vector<4x4xf32>
    %cst_6 = arith.constant dense<0.000000e+00> : vector<16x4xf32>
    %8 = tpu.matmul %5, %7, %cst_6 {dimension_numbers = #tpu.dot_dimension_numbers<[1], [0], [0], [1], [0, 0, 1, 1], [], []>} : vector<16x4xf32>, vector<4x4xf32>, vector<16x4xf32> -> vector<16x4xf32>
    %9 = arith.addf %0, %8 : vector<16x4xf32>
    %10 = vector.extract_strided_slice %3 {offsets = [0, 1, 0], sizes = [4, 4, 4], strides = [1, 1, 1]} : vector<6x6x4xf32> to vector<4x4x4xf32>
    %11 = vector.shape_cast %10 : vector<4x4x4xf32> to vector<16x4xf32>
    %c1 = arith.constant 1 : index
    %c0_7 = arith.constant 0 : index
    %c0_8 = arith.constant 0 : index
    %12 = vector.load %arg4[%c1, %c0_7, %c0_8] : memref<8x4x4xf32, #tpu.memory_space<vmem>>, vector<1x4x4xf32>
    %13 = vector.shape_cast %12 : vector<1x4x4xf32> to vector<4x4xf32>
    %cst_9 = arith.constant dense<0.000000e+00> : vector<16x4xf32>
    %14 = tpu.matmul %11, %13, %cst_9 {dimension_numbers = #tpu.dot_dimension_numbers<[1], [0], [0], [1], [0, 0, 1, 1], [], []>} : vector<16x4xf32>, vector<4x4xf32>, vector<16x4xf32> -> vector<16x4xf32>
    %15 = arith.addf %9, %14 : vector<16x4xf32>
    %16 = vector.extract_strided_slice %3 {offsets = [1, 0, 0], sizes = [4, 4, 4], strides = [1, 1, 1]} : vector<6x6x4xf32> to vector<4x4x4xf32>
    %17 = vector.shape_cast %16 : vector<4x4x4xf32> to vector<16x4xf32>
    %c2 = arith.constant 2 : index
    %c0_10 = arith.constant 0 : index
    %c0_11 = arith.constant 0 : index
    %18 = vector.load %arg4[%c2, %c0_10, %c0_11] : memref<8x4x4xf32, #tpu.memory_space<vmem>>, vector<1x4x4xf32>
    %19 = vector.shape_cast %18 : vector<1x4x4xf32> to vector<4x4xf32>
    %cst_12 = arith.constant dense<0.000000e+00> : vector<16x4xf32>
    %20 = tpu.matmul %17, %19, %cst_12 {dimension_numbers = #tpu.dot_dimension_numbers<[1], [0], [0], [1], [0, 0, 1, 1], [], []>} : vector<16x4xf32>, vector<4x4xf32>, vector<16x4xf32> -> vector<16x4xf32>
    %21 = arith.addf %15, %20 : vector<16x4xf32>
    %22 = vector.extract_strided_slice %3 {offsets = [1, 1, 0], sizes = [4, 4, 4], strides = [1, 1, 1]} : vector<6x6x4xf32> to vector<4x4x4xf32>
    %23 = vector.shape_cast %22 : vector<4x4x4xf32> to vector<16x4xf32>
    %c3 = arith.constant 3 : index
    %c0_13 = arith.constant 0 : index
    %c0_14 = arith.constant 0 : index
    %24 = vector.load %arg4[%c3, %c0_13, %c0_14] : memref<8x4x4xf32, #tpu.memory_space<vmem>>, vector<1x4x4xf32>
    %25 = vector.shape_cast %24 : vector<1x4x4xf32> to vector<4x4xf32>
    %cst_15 = arith.constant dense<0.000000e+00> : vector<16x4xf32>
    %26 = tpu.matmul %23, %25, %cst_15 {dimension_numbers = #tpu.dot_dimension_numbers<[1], [0], [0], [1], [0, 0, 1, 1], [], []>} : vector<16x4xf32>, vector<4x4xf32>, vector<16x4xf32> -> vector<16x4xf32>
    %27 = arith.addf %21, %26 : vector<16x4xf32>
    %c0_16 = arith.constant 0 : index
    %c0_17 = arith.constant 0 : index
    %c0_18 = arith.constant 0 : index
    %c0_19 = arith.constant 0 : index
    %28 = vector.load %arg3[%c0_16, %c0_17, %c0_18, %c0_19] : memref<1x6x6x4xbf16, #tpu.memory_space<vmem>>, vector<1x6x6x4xbf16>
    %29 = vector.shape_cast %28 : vector<1x6x6x4xbf16> to vector<6x6x4xbf16>
    %30 = arith.extf %29 : vector<6x6x4xbf16> to vector<6x6x4xf32>
    %31 = vector.extract_strided_slice %30 {offsets = [0, 0, 0], sizes = [4, 4, 4], strides = [1, 1, 1]} : vector<6x6x4xf32> to vector<4x4x4xf32>
    %32 = vector.shape_cast %31 : vector<4x4x4xf32> to vector<16x4xf32>
    %c4 = arith.constant 4 : index
    %c0_20 = arith.constant 0 : index
    %c0_21 = arith.constant 0 : index
    %33 = vector.load %arg4[%c4, %c0_20, %c0_21] : memref<8x4x4xf32, #tpu.memory_space<vmem>>, vector<1x4x4xf32>
    %34 = vector.shape_cast %33 : vector<1x4x4xf32> to vector<4x4xf32>
    %cst_22 = arith.constant dense<0.000000e+00> : vector<16x4xf32>
    %35 = tpu.matmul %32, %34, %cst_22 {dimension_numbers = #tpu.dot_dimension_numbers<[1], [0], [0], [1], [0, 0, 1, 1], [], []>} : vector<16x4xf32>, vector<4x4xf32>, vector<16x4xf32> -> vector<16x4xf32>
    %36 = arith.addf %27, %35 : vector<16x4xf32>
    %37 = vector.extract_strided_slice %30 {offsets = [0, 1, 0], sizes = [4, 4, 4], strides = [1, 1, 1]} : vector<6x6x4xf32> to vector<4x4x4xf32>
    %38 = vector.shape_cast %37 : vector<4x4x4xf32> to vector<16x4xf32>
    %c5 = arith.constant 5 : index
    %c0_23 = arith.constant 0 : index
    %c0_24 = arith.constant 0 : index
    %39 = vector.load %arg4[%c5, %c0_23, %c0_24] : memref<8x4x4xf32, #tpu.memory_space<vmem>>, vector<1x4x4xf32>
    %40 = vector.shape_cast %39 : vector<1x4x4xf32> to vector<4x4xf32>
    %cst_25 = arith.constant dense<0.000000e+00> : vector<16x4xf32>
    %41 = tpu.matmul %38, %40, %cst_25 {dimension_numbers = #tpu.dot_dimension_numbers<[1], [0], [0], [1], [0, 0, 1, 1], [], []>} : vector<16x4xf32>, vector<4x4xf32>, vector<16x4xf32> -> vector<16x4xf32>
    %42 = arith.addf %36, %41 : vector<16x4xf32>
    %43 = vector.extract_strided_slice %30 {offsets = [1, 0, 0], sizes = [4, 4, 4], strides = [1, 1, 1]} : vector<6x6x4xf32> to vector<4x4x4xf32>
    %44 = vector.shape_cast %43 : vector<4x4x4xf32> to vector<16x4xf32>
    %c6 = arith.constant 6 : index
    %c0_26 = arith.constant 0 : index
    %c0_27 = arith.constant 0 : index
    %45 = vector.load %arg4[%c6, %c0_26, %c0_27] : memref<8x4x4xf32, #tpu.memory_space<vmem>>, vector<1x4x4xf32>
    %46 = vector.shape_cast %45 : vector<1x4x4xf32> to vector<4x4xf32>
    %cst_28 = arith.constant dense<0.000000e+00> : vector<16x4xf32>
    %47 = tpu.matmul %44, %46, %cst_28 {dimension_numbers = #tpu.dot_dimension_numbers<[1], [0], [0], [1], [0, 0, 1, 1], [], []>} : vector<16x4xf32>, vector<4x4xf32>, vector<16x4xf32> -> vector<16x4xf32>
    %48 = arith.addf %42, %47 : vector<16x4xf32>
    %49 = vector.extract_strided_slice %30 {offsets = [1, 1, 0], sizes = [4, 4, 4], strides = [1, 1, 1]} : vector<6x6x4xf32> to vector<4x4x4xf32>
    %50 = vector.shape_cast %49 : vector<4x4x4xf32> to vector<16x4xf32>
    %c7 = arith.constant 7 : index
    %c0_29 = arith.constant 0 : index
    %c0_30 = arith.constant 0 : index
    %51 = vector.load %arg4[%c7, %c0_29, %c0_30] : memref<8x4x4xf32, #tpu.memory_space<vmem>>, vector<1x4x4xf32>
    %52 = vector.shape_cast %51 : vector<1x4x4xf32> to vector<4x4xf32>
    %cst_31 = arith.constant dense<0.000000e+00> : vector<16x4xf32>
    %53 = tpu.matmul %50, %52, %cst_31 {dimension_numbers = #tpu.dot_dimension_numbers<[1], [0], [0], [1], [0, 0, 1, 1], [], []>} : vector<16x4xf32>, vector<4x4xf32>, vector<16x4xf32> -> vector<16x4xf32>
    %54 = arith.addf %48, %53 : vector<16x4xf32>
    %c0_32 = arith.constant 0 : index
    %c0_33 = arith.constant 0 : index
    %55 = vector.load %arg5[%c0_32, %c0_33] : memref<1x4xf32, #tpu.memory_space<vmem>>, vector<1x4xf32>
    %56 = vector.broadcast %55 : vector<1x4xf32> to vector<16x4xf32>
    %57 = arith.addf %54, %56 : vector<16x4xf32>
    %58 = arith.truncf %57 : vector<16x4xf32> to vector<16x4xbf16>
    %c0_34 = arith.constant 0 : index
    %c0_35 = arith.constant 0 : index
    %c0_36 = arith.constant 0 : index
    %59 = vector.load %arg6[%c0_34, %c0_35, %c0_36] : memref<1x16x4xbf16, #tpu.memory_space<vmem>>, vector<1x16x4xbf16>
    %60 = vector.shape_cast %59 : vector<1x16x4xbf16> to vector<16x4xbf16>
    %61 = vector.shape_cast %58 : vector<16x4xbf16> to vector<1x16x4xbf16>
    tpu.vector_store %arg6[%c0_34, %c0_35, %c0_36], %61 {strides = array<i32>} : memref<1x16x4xbf16, #tpu.memory_space<vmem>>, vector<1x16x4xbf16>,
    %cst_37 = arith.constant dense<0.000000e+00> : vector<4xf32>
    %62 = vector.multi_reduction <add>, %57, %cst_37 [0] : vector<16x4xf32> to vector<4xf32>
    %63 = vector.shape_cast %62 : vector<4xf32> to vector<1x4xf32>
    %c0_38 = arith.constant 0 : index
    %c0_39 = arith.constant 0 : index
    %c0_40 = arith.constant 0 : index
    %64 = vector.load %arg7[%c0_38, %c0_39, %c0_40] : memref<1x2x4xf32, #tpu.memory_space<vmem>>, vector<1x1x4xf32>
    %65 = vector.shape_cast %64 : vector<1x1x4xf32> to vector<1x4xf32>
    %66 = vector.shape_cast %63 : vector<1x4xf32> to vector<1x1x4xf32>
    tpu.vector_store %arg7[%c0_38, %c0_39, %c0_40], %66 {strides = array<i32>} : memref<1x2x4xf32, #tpu.memory_space<vmem>>, vector<1x1x4xf32>,
    %67 = arith.mulf %57, %57 : vector<16x4xf32>
    %cst_41 = arith.constant dense<0.000000e+00> : vector<4xf32>
    %68 = vector.multi_reduction <add>, %67, %cst_41 [0] : vector<16x4xf32> to vector<4xf32>
    %69 = vector.shape_cast %68 : vector<4xf32> to vector<1x4xf32>
    %c0_42 = arith.constant 0 : index
    %c1_43 = arith.constant 1 : index
    %c0_44 = arith.constant 0 : index
    %70 = vector.load %arg7[%c0_42, %c1_43, %c0_44] : memref<1x2x4xf32, #tpu.memory_space<vmem>>, vector<1x1x4xf32>
    %71 = vector.shape_cast %70 : vector<1x1x4xf32> to vector<1x4xf32>
    %72 = vector.shape_cast %69 : vector<1x4xf32> to vector<1x1x4xf32>
    tpu.vector_store %arg7[%c0_42, %c1_43, %c0_44], %72 {strides = array<i32>} : memref<1x2x4xf32, #tpu.memory_space<vmem>>, vector<1x1x4xf32>,
    return
  }
  func.func @transform_0(%arg0: i32, %arg1: i32) -> (i32, i32, i32, i32) {
    %c6_i32 = arith.constant 6 : i32
    %0 = arith.muli %arg0, %c6_i32 : i32
    %1 = arith.addi %0, %arg1 : i32
    %c0_i32 = arith.constant 0 : i32
    %2 = arith.addi %1, %c0_i32 : i32
    %c0_i32_0 = arith.constant 0 : i32
    %3 = arith.addi %2, %c0_i32_0 : i32
    %c0_i32_1 = arith.constant 0 : i32
    %c0_i32_2 = arith.constant 0 : i32
    %c0_i32_3 = arith.constant 0 : i32
    %c0_i32_4 = arith.constant 0 : i32
    return %3, %c0_i32_1, %c0_i32_2, %c0_i32_3 : i32, i32, i32, i32
  }
  func.func @transform_1(%arg0: i32, %arg1: i32) -> (i32, i32, i32, i32) {
    %c6_i32 = arith.constant 6 : i32
    %0 = arith.muli %arg0, %c6_i32 : i32
    %1 = arith.addi %0, %arg1 : i32
    %c0_i32 = arith.constant 0 : i32
    %2 = arith.addi %1, %c0_i32 : i32
    %c1_i32 = arith.constant 1 : i32
    %3 = arith.addi %2, %c1_i32 : i32
    %c0_i32_0 = arith.constant 0 : i32
    %c0_i32_1 = arith.constant 0 : i32
    %c0_i32_2 = arith.constant 0 : i32
    %c0_i32_3 = arith.constant 0 : i32
    return %3, %c0_i32_0, %c0_i32_1, %c0_i32_2 : i32, i32, i32, i32
  }
  func.func @transform_2(%arg0: i32, %arg1: i32) -> (i32, i32, i32) {
    %c0_i32 = arith.constant 0 : i32
    %c0_i32_0 = arith.constant 0 : i32
    %c0_i32_1 = arith.constant 0 : i32
    %c0_i32_2 = arith.constant 0 : i32
    return %c0_i32, %c0_i32_0, %c0_i32_1 : i32, i32, i32
  }
  func.func @transform_3(%arg0: i32, %arg1: i32) -> (i32, i32) {
    %c0_i32 = arith.constant 0 : i32
    %c0_i32_0 = arith.constant 0 : i32
    %c0_i32_1 = arith.constant 0 : i32
    return %c0_i32, %c0_i32_0 : i32, i32
  }
  func.func @transform_4(%arg0: i32, %arg1: i32) -> (i32, i32, i32) {
    %c4_i32 = arith.constant 4 : i32
    %0 = arith.muli %arg0, %c4_i32 : i32
    %1 = arith.addi %0, %arg1 : i32
    %c0_i32 = arith.constant 0 : i32
    %c0_i32_0 = arith.constant 0 : i32
    %c0_i32_1 = arith.constant 0 : i32
    return %1, %c0_i32, %c0_i32_0 : i32, i32, i32
  }
  func.func @transform_5(%arg0: i32, %arg1: i32) -> (i32, i32, i32) {
    %c4_i32 = arith.constant 4 : i32
    %0 = arith.muli %arg0, %c4_i32 : i32
    %1 = arith.addi %0, %arg1 : i32
    %c0_i32 = arith.constant 0 : i32
    %c0_i32_0 = arith.constant 0 : i32
    %c0_i32_1 = arith.constant 0 : i32
    return %1, %c0_i32, %c0_i32_0 : i32, i32, i32
  }
}

module attributes {stable_mosaic.version = 11 : i64} {
  func.func @kernel(%arg0: i32, %arg1: i32, %arg2: memref<1x6x6x4xbf16, #tpu.memory_space<vmem>>, %arg3: memref<1x6x6x4xbf16, #tpu.memory_space<vmem>>, %arg4: memref<8x4x4xf32, #tpu.memory_space<vmem>>, %arg5: memref<1x4xf32, #tpu.memory_space<vmem>>, %arg6: memref<1x16x4xbf16, #tpu.memory_space<vmem>>, %arg7: memref<1x2x4xf32, #tpu.memory_space<vmem>>) attributes {dimension_semantics = [#tpu.dimension_semantics<parallel>, #tpu.dimension_semantics<parallel>], iteration_bounds = array<i64: 2, 4>, scalar_prefetch = 0 : i64, scratch_operands = 0 : i64, tpu.core_type = #tpu.core_type<tc>, window_params = [{transform_indices = @transform_0, window_bounds = array<i64: 1, 6, 6, 4>}, {transform_indices = @transform_1, window_bounds = array<i64: 1, 6, 6, 4>}, {pipeline_mode = #tpu.pipeline_mode<synchronous>, transform_indices = @transform_2, window_bounds = array<i64: 8, 4, 4>}, {pipeline_mode = #tpu.pipeline_mode<synchronous>, transform_indices = @transform_3, window_bounds = array<i64: 1, 4>}, {transform_indices = @transform_4, window_bounds = array<i64: 1, 16, 4>}, {transform_indices = @transform_5, window_bounds = array<i64: 1, 2, 4>}]} {
    %cst = arith.constant 0.000000e+00 : f32
    %0 = vector.broadcast %cst : f32 to vector<16x4xf32>
    %c0 = arith.constant 0 : index
    %c0_0 = arith.constant 0 : index
    %c0_1 = arith.constant 0 : index
    %c0_2 = arith.constant 0 : index
    %1 = vector.load %arg2[%c0, %c0_0, %c0_1, %c0_2] : memref<1x6x6x4xbf16, #tpu.memory_space<vmem>>, vector<1x6x6x4xbf16>
    %2 = vector.shape_cast %1 : vector<1x6x6x4xbf16> to vector<6x6x4xbf16>
    %3 = arith.extf %2 : vector<6x6x4xbf16> to vector<6x6x4xf32>
    %4 = vector.extract_strided_slice %3 {offsets = [0, 1, 0], sizes = [4, 4, 4], strides = [1, 1, 1]} : vector<6x6x4xf32> to vector<4x4x4xf32>
    %5 = vector.shape_cast %4 : vector<4x4x4xf32> to vector<16x4xf32>
    %c0_3 = arith.constant 0 : index
    %c0_4 = arith.constant 0 : index
    %c0_5 = arith.constant 0 : index
    %6 = vector.load %arg4[%c0_3, %c0_4, %c0_5] : memref<8x4x4xf32, #tpu.memory_space<vmem>>, vector<1x4x4xf32>
    %7 = vector.shape_cast %6 : vector<1x4x4xf32> to vector<4x4xf32>
    %cst_6 = arith.constant dense<0.000000e+00> : vector<16x4xf32>
    %8 = tpu.matmul %5, %7, %cst_6 {dimension_numbers = #tpu.dot_dimension_numbers<[1], [0], [0], [1], [0, 0, 1, 1], [], []>} : vector<16x4xf32>, vector<4x4xf32>, vector<16x4xf32> -> vector<16x4xf32>
    %9 = arith.addf %0, %8 : vector<16x4xf32>
    %10 = vector.extract_strided_slice %3 {offsets = [0, 2, 0], sizes = [4, 4, 4], strides = [1, 1, 1]} : vector<6x6x4xf32> to vector<4x4x4xf32>
    %11 = vector.shape_cast %10 : vector<4x4x4xf32> to vector<16x4xf32>
    %c1 = arith.constant 1 : index
    %c0_7 = arith.constant 0 : index
    %c0_8 = arith.constant 0 : index
    %12 = vector.load %arg4[%c1, %c0_7, %c0_8] : memref<8x4x4xf32, #tpu.memory_space<vmem>>, vector<1x4x4xf32>
    %13 = vector.shape_cast %12 : vector<1x4x4xf32> to vector<4x4xf32>
    %cst_9 = arith.constant dense<0.000000e+00> : vector<16x4xf32>
    %14 = tpu.matmul %11, %13, %cst_9 {dimension_numbers = #tpu.dot_dimension_numbers<[1], [0], [0], [1], [0, 0, 1, 1], [], []>} : vector<16x4xf32>, vector<4x4xf32>, vector<16x4xf32> -> vector<16x4xf32>
    %15 = arith.addf %9, %14 : vector<16x4xf32>
    %16 = vector.extract_strided_slice %3 {offsets = [1, 1, 0], sizes = [4, 4, 4], strides = [1, 1, 1]} : vector<6x6x4xf32> to vector<4x4x4xf32>
    %17 = vector.shape_cast %16 : vector<4x4x4xf32> to vector<16x4xf32>
    %c2 = arith.constant 2 : index
    %c0_10 = arith.constant 0 : index
    %c0_11 = arith.constant 0 : index
    %18 = vector.load %arg4[%c2, %c0_10, %c0_11] : memref<8x4x4xf32, #tpu.memory_space<vmem>>, vector<1x4x4xf32>
    %19 = vector.shape_cast %18 : vector<1x4x4xf32> to vector<4x4xf32>
    %cst_12 = arith.constant dense<0.000000e+00> : vector<16x4xf32>
    %20 = tpu.matmul %17, %19, %cst_12 {dimension_numbers = #tpu.dot_dimension_numbers<[1], [0], [0], [1], [0, 0, 1, 1], [], []>} : vector<16x4xf32>, vector<4x4xf32>, vector<16x4xf32> -> vector<16x4xf32>
    %21 = arith.addf %15, %20 : vector<16x4xf32>
    %22 = vector.extract_strided_slice %3 {offsets = [1, 2, 0], sizes = [4, 4, 4], strides = [1, 1, 1]} : vector<6x6x4xf32> to vector<4x4x4xf32>
    %23 = vector.shape_cast %22 : vector<4x4x4xf32> to vector<16x4xf32>
    %c3 = arith.constant 3 : index
    %c0_13 = arith.constant 0 : index
    %c0_14 = arith.constant 0 : index
    %24 = vector.load %arg4[%c3, %c0_13, %c0_14] : memref<8x4x4xf32, #tpu.memory_space<vmem>>, vector<1x4x4xf32>
    %25 = vector.shape_cast %24 : vector<1x4x4xf32> to vector<4x4xf32>
    %cst_15 = arith.constant dense<0.000000e+00> : vector<16x4xf32>
    %26 = tpu.matmul %23, %25, %cst_15 {dimension_numbers = #tpu.dot_dimension_numbers<[1], [0], [0], [1], [0, 0, 1, 1], [], []>} : vector<16x4xf32>, vector<4x4xf32>, vector<16x4xf32> -> vector<16x4xf32>
    %27 = arith.addf %21, %26 : vector<16x4xf32>
    %c0_16 = arith.constant 0 : index
    %c0_17 = arith.constant 0 : index
    %c0_18 = arith.constant 0 : index
    %c0_19 = arith.constant 0 : index
    %28 = vector.load %arg3[%c0_16, %c0_17, %c0_18, %c0_19] : memref<1x6x6x4xbf16, #tpu.memory_space<vmem>>, vector<1x6x6x4xbf16>
    %29 = vector.shape_cast %28 : vector<1x6x6x4xbf16> to vector<6x6x4xbf16>
    %30 = arith.extf %29 : vector<6x6x4xbf16> to vector<6x6x4xf32>
    %31 = vector.extract_strided_slice %30 {offsets = [0, 1, 0], sizes = [4, 4, 4], strides = [1, 1, 1]} : vector<6x6x4xf32> to vector<4x4x4xf32>
    %32 = vector.shape_cast %31 : vector<4x4x4xf32> to vector<16x4xf32>
    %c4 = arith.constant 4 : index
    %c0_20 = arith.constant 0 : index
    %c0_21 = arith.constant 0 : index
    %33 = vector.load %arg4[%c4, %c0_20, %c0_21] : memref<8x4x4xf32, #tpu.memory_space<vmem>>, vector<1x4x4xf32>
    %34 = vector.shape_cast %33 : vector<1x4x4xf32> to vector<4x4xf32>
    %cst_22 = arith.constant dense<0.000000e+00> : vector<16x4xf32>
    %35 = tpu.matmul %32, %34, %cst_22 {dimension_numbers = #tpu.dot_dimension_numbers<[1], [0], [0], [1], [0, 0, 1, 1], [], []>} : vector<16x4xf32>, vector<4x4xf32>, vector<16x4xf32> -> vector<16x4xf32>
    %36 = arith.addf %27, %35 : vector<16x4xf32>
    %37 = vector.extract_strided_slice %30 {offsets = [0, 2, 0], sizes = [4, 4, 4], strides = [1, 1, 1]} : vector<6x6x4xf32> to vector<4x4x4xf32>
    %38 = vector.shape_cast %37 : vector<4x4x4xf32> to vector<16x4xf32>
    %c5 = arith.constant 5 : index
    %c0_23 = arith.constant 0 : index
    %c0_24 = arith.constant 0 : index
    %39 = vector.load %arg4[%c5, %c0_23, %c0_24] : memref<8x4x4xf32, #tpu.memory_space<vmem>>, vector<1x4x4xf32>
    %40 = vector.shape_cast %39 : vector<1x4x4xf32> to vector<4x4xf32>
    %cst_25 = arith.constant dense<0.000000e+00> : vector<16x4xf32>
    %41 = tpu.matmul %38, %40, %cst_25 {dimension_numbers = #tpu.dot_dimension_numbers<[1], [0], [0], [1], [0, 0, 1, 1], [], []>} : vector<16x4xf32>, vector<4x4xf32>, vector<16x4xf32> -> vector<16x4xf32>
    %42 = arith.addf %36, %41 : vector<16x4xf32>
    %43 = vector.extract_strided_slice %30 {offsets = [1, 1, 0], sizes = [4, 4, 4], strides = [1, 1, 1]} : vector<6x6x4xf32> to vector<4x4x4xf32>
    %44 = vector.shape_cast %43 : vector<4x4x4xf32> to vector<16x4xf32>
    %c6 = arith.constant 6 : index
    %c0_26 = arith.constant 0 : index
    %c0_27 = arith.constant 0 : index
    %45 = vector.load %arg4[%c6, %c0_26, %c0_27] : memref<8x4x4xf32, #tpu.memory_space<vmem>>, vector<1x4x4xf32>
    %46 = vector.shape_cast %45 : vector<1x4x4xf32> to vector<4x4xf32>
    %cst_28 = arith.constant dense<0.000000e+00> : vector<16x4xf32>
    %47 = tpu.matmul %44, %46, %cst_28 {dimension_numbers = #tpu.dot_dimension_numbers<[1], [0], [0], [1], [0, 0, 1, 1], [], []>} : vector<16x4xf32>, vector<4x4xf32>, vector<16x4xf32> -> vector<16x4xf32>
    %48 = arith.addf %42, %47 : vector<16x4xf32>
    %49 = vector.extract_strided_slice %30 {offsets = [1, 2, 0], sizes = [4, 4, 4], strides = [1, 1, 1]} : vector<6x6x4xf32> to vector<4x4x4xf32>
    %50 = vector.shape_cast %49 : vector<4x4x4xf32> to vector<16x4xf32>
    %c7 = arith.constant 7 : index
    %c0_29 = arith.constant 0 : index
    %c0_30 = arith.constant 0 : index
    %51 = vector.load %arg4[%c7, %c0_29, %c0_30] : memref<8x4x4xf32, #tpu.memory_space<vmem>>, vector<1x4x4xf32>
    %52 = vector.shape_cast %51 : vector<1x4x4xf32> to vector<4x4xf32>
    %cst_31 = arith.constant dense<0.000000e+00> : vector<16x4xf32>
    %53 = tpu.matmul %50, %52, %cst_31 {dimension_numbers = #tpu.dot_dimension_numbers<[1], [0], [0], [1], [0, 0, 1, 1], [], []>} : vector<16x4xf32>, vector<4x4xf32>, vector<16x4xf32> -> vector<16x4xf32>
    %54 = arith.addf %48, %53 : vector<16x4xf32>
    %c0_32 = arith.constant 0 : index
    %c0_33 = arith.constant 0 : index
    %55 = vector.load %arg5[%c0_32, %c0_33] : memref<1x4xf32, #tpu.memory_space<vmem>>, vector<1x4xf32>
    %56 = vector.broadcast %55 : vector<1x4xf32> to vector<16x4xf32>
    %57 = arith.addf %54, %56 : vector<16x4xf32>
    %58 = arith.truncf %57 : vector<16x4xf32> to vector<16x4xbf16>
    %c0_34 = arith.constant 0 : index
    %c0_35 = arith.constant 0 : index
    %c0_36 = arith.constant 0 : index
    %59 = vector.load %arg6[%c0_34, %c0_35, %c0_36] : memref<1x16x4xbf16, #tpu.memory_space<vmem>>, vector<1x16x4xbf16>
    %60 = vector.shape_cast %59 : vector<1x16x4xbf16> to vector<16x4xbf16>
    %61 = vector.shape_cast %58 : vector<16x4xbf16> to vector<1x16x4xbf16>
    tpu.vector_store %arg6[%c0_34, %c0_35, %c0_36], %61 {strides = array<i32>} : memref<1x16x4xbf16, #tpu.memory_space<vmem>>, vector<1x16x4xbf16>,
    %cst_37 = arith.constant dense<0.000000e+00> : vector<4xf32>
    %62 = vector.multi_reduction <add>, %57, %cst_37 [0] : vector<16x4xf32> to vector<4xf32>
    %63 = vector.shape_cast %62 : vector<4xf32> to vector<1x4xf32>
    %c0_38 = arith.constant 0 : index
    %c0_39 = arith.constant 0 : index
    %c0_40 = arith.constant 0 : index
    %64 = vector.load %arg7[%c0_38, %c0_39, %c0_40] : memref<1x2x4xf32, #tpu.memory_space<vmem>>, vector<1x1x4xf32>
    %65 = vector.shape_cast %64 : vector<1x1x4xf32> to vector<1x4xf32>
    %66 = vector.shape_cast %63 : vector<1x4xf32> to vector<1x1x4xf32>
    tpu.vector_store %arg7[%c0_38, %c0_39, %c0_40], %66 {strides = array<i32>} : memref<1x2x4xf32, #tpu.memory_space<vmem>>, vector<1x1x4xf32>,
    %67 = arith.mulf %57, %57 : vector<16x4xf32>
    %cst_41 = arith.constant dense<0.000000e+00> : vector<4xf32>
    %68 = vector.multi_reduction <add>, %67, %cst_41 [0] : vector<16x4xf32> to vector<4xf32>
    %69 = vector.shape_cast %68 : vector<4xf32> to vector<1x4xf32>
    %c0_42 = arith.constant 0 : index
    %c1_43 = arith.constant 1 : index
    %c0_44 = arith.constant 0 : index
    %70 = vector.load %arg7[%c0_42, %c1_43, %c0_44] : memref<1x2x4xf32, #tpu.memory_space<vmem>>, vector<1x1x4xf32>
    %71 = vector.shape_cast %70 : vector<1x1x4xf32> to vector<1x4xf32>
    %72 = vector.shape_cast %69 : vector<1x4xf32> to vector<1x1x4xf32>
    tpu.vector_store %arg7[%c0_42, %c1_43, %c0_44], %72 {strides = array<i32>} : memref<1x2x4xf32, #tpu.memory_space<vmem>>, vector<1x1x4xf32>,
    return
  }
  func.func @transform_0(%arg0: i32, %arg1: i32) -> (i32, i32, i32, i32) {
    %c6_i32 = arith.constant 6 : i32
    %0 = arith.muli %arg0, %c6_i32 : i32
    %1 = arith.addi %0, %arg1 : i32
    %c0_i32 = arith.constant 0 : i32
    %2 = arith.addi %1, %c0_i32 : i32
    %c0_i32_0 = arith.constant 0 : i32
    %3 = arith.addi %2, %c0_i32_0 : i32
    %c0_i32_1 = arith.constant 0 : i32
    %c0_i32_2 = arith.constant 0 : i32
    %c0_i32_3 = arith.constant 0 : i32
    %c0_i32_4 = arith.constant 0 : i32
    return %3, %c0_i32_1, %c0_i32_2, %c0_i32_3 : i32, i32, i32, i32
  }
  func.func @transform_1(%arg0: i32, %arg1: i32) -> (i32, i32, i32, i32) {
    %c6_i32 = arith.constant 6 : i32
    %0 = arith.muli %arg0, %c6_i32 : i32
    %1 = arith.addi %0, %arg1 : i32
    %c0_i32 = arith.constant 0 : i32
    %2 = arith.addi %1, %c0_i32 : i32
    %c1_i32 = arith.constant 1 : i32
    %3 = arith.addi %2, %c1_i32 : i32
    %c0_i32_0 = arith.constant 0 : i32
    %c0_i32_1 = arith.constant 0 : i32
    %c0_i32_2 = arith.constant 0 : i32
    %c0_i32_3 = arith.constant 0 : i32
    return %3, %c0_i32_0, %c0_i32_1, %c0_i32_2 : i32, i32, i32, i32
  }
  func.func @transform_2(%arg0: i32, %arg1: i32) -> (i32, i32, i32) {
    %c0_i32 = arith.constant 0 : i32
    %c0_i32_0 = arith.constant 0 : i32
    %c0_i32_1 = arith.constant 0 : i32
    %c0_i32_2 = arith.constant 0 : i32
    return %c0_i32, %c0_i32_0, %c0_i32_1 : i32, i32, i32
  }
  func.func @transform_3(%arg0: i32, %arg1: i32) -> (i32, i32) {
    %c0_i32 = arith.constant 0 : i32
    %c0_i32_0 = arith.constant 0 : i32
    %c0_i32_1 = arith.constant 0 : i32
    return %c0_i32, %c0_i32_0 : i32, i32
  }
  func.func @transform_4(%arg0: i32, %arg1: i32) -> (i32, i32, i32) {
    %c4_i32 = arith.constant 4 : i32
    %0 = arith.muli %arg0, %c4_i32 : i32
    %1 = arith.addi %0, %arg1 : i32
    %c0_i32 = arith.constant 0 : i32
    %c0_i32_0 = arith.constant 0 : i32
    %c0_i32_1 = arith.constant 0 : i32
    return %1, %c0_i32, %c0_i32_0 : i32, i32, i32
  }
  func.func @transform_5(%arg0: i32, %arg1: i32) -> (i32, i32, i32) {
    %c4_i32 = arith.constant 4 : i32
    %0 = arith.muli %arg0, %c4_i32 : i32
    %1 = arith.addi %0, %arg1 : i32
    %c0_i32 = arith.constant 0 : i32
    %c0_i32_0 = arith.constant 0 : i32
    %c0_i32_1 = arith.constant 0 : i32
    return %1, %c0_i32, %c0_i32_0 : i32, i32, i32
  }
}

module attributes {stable_mosaic.version = 11 : i64} {
  func.func @kernel(%arg0: i32, %arg1: i32, %arg2: memref<1x6x6x4xbf16, #tpu.memory_space<vmem>>, %arg3: memref<1x6x6x4xbf16, #tpu.memory_space<vmem>>, %arg4: memref<8x4x4xf32, #tpu.memory_space<vmem>>, %arg5: memref<1x4xf32, #tpu.memory_space<vmem>>, %arg6: memref<1x16x4xbf16, #tpu.memory_space<vmem>>, %arg7: memref<1x2x4xf32, #tpu.memory_space<vmem>>) attributes {dimension_semantics = [#tpu.dimension_semantics<parallel>, #tpu.dimension_semantics<parallel>], iteration_bounds = array<i64: 2, 4>, scalar_prefetch = 0 : i64, scratch_operands = 0 : i64, tpu.core_type = #tpu.core_type<tc>, window_params = [{transform_indices = @transform_0, window_bounds = array<i64: 1, 6, 6, 4>}, {transform_indices = @transform_1, window_bounds = array<i64: 1, 6, 6, 4>}, {pipeline_mode = #tpu.pipeline_mode<synchronous>, transform_indices = @transform_2, window_bounds = array<i64: 8, 4, 4>}, {pipeline_mode = #tpu.pipeline_mode<synchronous>, transform_indices = @transform_3, window_bounds = array<i64: 1, 4>}, {transform_indices = @transform_4, window_bounds = array<i64: 1, 16, 4>}, {transform_indices = @transform_5, window_bounds = array<i64: 1, 2, 4>}]} {
    %cst = arith.constant 0.000000e+00 : f32
    %0 = vector.broadcast %cst : f32 to vector<16x4xf32>
    %c0 = arith.constant 0 : index
    %c0_0 = arith.constant 0 : index
    %c0_1 = arith.constant 0 : index
    %c0_2 = arith.constant 0 : index
    %1 = vector.load %arg2[%c0, %c0_0, %c0_1, %c0_2] : memref<1x6x6x4xbf16, #tpu.memory_space<vmem>>, vector<1x6x6x4xbf16>
    %2 = vector.shape_cast %1 : vector<1x6x6x4xbf16> to vector<6x6x4xbf16>
    %3 = arith.extf %2 : vector<6x6x4xbf16> to vector<6x6x4xf32>
    %4 = vector.extract_strided_slice %3 {offsets = [1, 0, 0], sizes = [4, 4, 4], strides = [1, 1, 1]} : vector<6x6x4xf32> to vector<4x4x4xf32>
    %5 = vector.shape_cast %4 : vector<4x4x4xf32> to vector<16x4xf32>
    %c0_3 = arith.constant 0 : index
    %c0_4 = arith.constant 0 : index
    %c0_5 = arith.constant 0 : index
    %6 = vector.load %arg4[%c0_3, %c0_4, %c0_5] : memref<8x4x4xf32, #tpu.memory_space<vmem>>, vector<1x4x4xf32>
    %7 = vector.shape_cast %6 : vector<1x4x4xf32> to vector<4x4xf32>
    %cst_6 = arith.constant dense<0.000000e+00> : vector<16x4xf32>
    %8 = tpu.matmul %5, %7, %cst_6 {dimension_numbers = #tpu.dot_dimension_numbers<[1], [0], [0], [1], [0, 0, 1, 1], [], []>} : vector<16x4xf32>, vector<4x4xf32>, vector<16x4xf32> -> vector<16x4xf32>
    %9 = arith.addf %0, %8 : vector<16x4xf32>
    %10 = vector.extract_strided_slice %3 {offsets = [1, 1, 0], sizes = [4, 4, 4], strides = [1, 1, 1]} : vector<6x6x4xf32> to vector<4x4x4xf32>
    %11 = vector.shape_cast %10 : vector<4x4x4xf32> to vector<16x4xf32>
    %c1 = arith.constant 1 : index
    %c0_7 = arith.constant 0 : index
    %c0_8 = arith.constant 0 : index
    %12 = vector.load %arg4[%c1, %c0_7, %c0_8] : memref<8x4x4xf32, #tpu.memory_space<vmem>>, vector<1x4x4xf32>
    %13 = vector.shape_cast %12 : vector<1x4x4xf32> to vector<4x4xf32>
    %cst_9 = arith.constant dense<0.000000e+00> : vector<16x4xf32>
    %14 = tpu.matmul %11, %13, %cst_9 {dimension_numbers = #tpu.dot_dimension_numbers<[1], [0], [0], [1], [0, 0, 1, 1], [], []>} : vector<16x4xf32>, vector<4x4xf32>, vector<16x4xf32> -> vector<16x4xf32>
    %15 = arith.addf %9, %14 : vector<16x4xf32>
    %16 = vector.extract_strided_slice %3 {offsets = [2, 0, 0], sizes = [4, 4, 4], strides = [1, 1, 1]} : vector<6x6x4xf32> to vector<4x4x4xf32>
    %17 = vector.shape_cast %16 : vector<4x4x4xf32> to vector<16x4xf32>
    %c2 = arith.constant 2 : index
    %c0_10 = arith.constant 0 : index
    %c0_11 = arith.constant 0 : index
    %18 = vector.load %arg4[%c2, %c0_10, %c0_11] : memref<8x4x4xf32, #tpu.memory_space<vmem>>, vector<1x4x4xf32>
    %19 = vector.shape_cast %18 : vector<1x4x4xf32> to vector<4x4xf32>
    %cst_12 = arith.constant dense<0.000000e+00> : vector<16x4xf32>
    %20 = tpu.matmul %17, %19, %cst_12 {dimension_numbers = #tpu.dot_dimension_numbers<[1], [0], [0], [1], [0, 0, 1, 1], [], []>} : vector<16x4xf32>, vector<4x4xf32>, vector<16x4xf32> -> vector<16x4xf32>
    %21 = arith.addf %15, %20 : vector<16x4xf32>
    %22 = vector.extract_strided_slice %3 {offsets = [2, 1, 0], sizes = [4, 4, 4], strides = [1, 1, 1]} : vector<6x6x4xf32> to vector<4x4x4xf32>
    %23 = vector.shape_cast %22 : vector<4x4x4xf32> to vector<16x4xf32>
    %c3 = arith.constant 3 : index
    %c0_13 = arith.constant 0 : index
    %c0_14 = arith.constant 0 : index
    %24 = vector.load %arg4[%c3, %c0_13, %c0_14] : memref<8x4x4xf32, #tpu.memory_space<vmem>>, vector<1x4x4xf32>
    %25 = vector.shape_cast %24 : vector<1x4x4xf32> to vector<4x4xf32>
    %cst_15 = arith.constant dense<0.000000e+00> : vector<16x4xf32>
    %26 = tpu.matmul %23, %25, %cst_15 {dimension_numbers = #tpu.dot_dimension_numbers<[1], [0], [0], [1], [0, 0, 1, 1], [], []>} : vector<16x4xf32>, vector<4x4xf32>, vector<16x4xf32> -> vector<16x4xf32>
    %27 = arith.addf %21, %26 : vector<16x4xf32>
    %c0_16 = arith.constant 0 : index
    %c0_17 = arith.constant 0 : index
    %c0_18 = arith.constant 0 : index
    %c0_19 = arith.constant 0 : index
    %28 = vector.load %arg3[%c0_16, %c0_17, %c0_18, %c0_19] : memref<1x6x6x4xbf16, #tpu.memory_space<vmem>>, vector<1x6x6x4xbf16>
    %29 = vector.shape_cast %28 : vector<1x6x6x4xbf16> to vector<6x6x4xbf16>
    %30 = arith.extf %29 : vector<6x6x4xbf16> to vector<6x6x4xf32>
    %31 = vector.extract_strided_slice %30 {offsets = [1, 0, 0], sizes = [4, 4, 4], strides = [1, 1, 1]} : vector<6x6x4xf32> to vector<4x4x4xf32>
    %32 = vector.shape_cast %31 : vector<4x4x4xf32> to vector<16x4xf32>
    %c4 = arith.constant 4 : index
    %c0_20 = arith.constant 0 : index
    %c0_21 = arith.constant 0 : index
    %33 = vector.load %arg4[%c4, %c0_20, %c0_21] : memref<8x4x4xf32, #tpu.memory_space<vmem>>, vector<1x4x4xf32>
    %34 = vector.shape_cast %33 : vector<1x4x4xf32> to vector<4x4xf32>
    %cst_22 = arith.constant dense<0.000000e+00> : vector<16x4xf32>
    %35 = tpu.matmul %32, %34, %cst_22 {dimension_numbers = #tpu.dot_dimension_numbers<[1], [0], [0], [1], [0, 0, 1, 1], [], []>} : vector<16x4xf32>, vector<4x4xf32>, vector<16x4xf32> -> vector<16x4xf32>
    %36 = arith.addf %27, %35 : vector<16x4xf32>
    %37 = vector.extract_strided_slice %30 {offsets = [1, 1, 0], sizes = [4, 4, 4], strides = [1, 1, 1]} : vector<6x6x4xf32> to vector<4x4x4xf32>
    %38 = vector.shape_cast %37 : vector<4x4x4xf32> to vector<16x4xf32>
    %c5 = arith.constant 5 : index
    %c0_23 = arith.constant 0 : index
    %c0_24 = arith.constant 0 : index
    %39 = vector.load %arg4[%c5, %c0_23, %c0_24] : memref<8x4x4xf32, #tpu.memory_space<vmem>>, vector<1x4x4xf32>
    %40 = vector.shape_cast %39 : vector<1x4x4xf32> to vector<4x4xf32>
    %cst_25 = arith.constant dense<0.000000e+00> : vector<16x4xf32>
    %41 = tpu.matmul %38, %40, %cst_25 {dimension_numbers = #tpu.dot_dimension_numbers<[1], [0], [0], [1], [0, 0, 1, 1], [], []>} : vector<16x4xf32>, vector<4x4xf32>, vector<16x4xf32> -> vector<16x4xf32>
    %42 = arith.addf %36, %41 : vector<16x4xf32>
    %43 = vector.extract_strided_slice %30 {offsets = [2, 0, 0], sizes = [4, 4, 4], strides = [1, 1, 1]} : vector<6x6x4xf32> to vector<4x4x4xf32>
    %44 = vector.shape_cast %43 : vector<4x4x4xf32> to vector<16x4xf32>
    %c6 = arith.constant 6 : index
    %c0_26 = arith.constant 0 : index
    %c0_27 = arith.constant 0 : index
    %45 = vector.load %arg4[%c6, %c0_26, %c0_27] : memref<8x4x4xf32, #tpu.memory_space<vmem>>, vector<1x4x4xf32>
    %46 = vector.shape_cast %45 : vector<1x4x4xf32> to vector<4x4xf32>
    %cst_28 = arith.constant dense<0.000000e+00> : vector<16x4xf32>
    %47 = tpu.matmul %44, %46, %cst_28 {dimension_numbers = #tpu.dot_dimension_numbers<[1], [0], [0], [1], [0, 0, 1, 1], [], []>} : vector<16x4xf32>, vector<4x4xf32>, vector<16x4xf32> -> vector<16x4xf32>
    %48 = arith.addf %42, %47 : vector<16x4xf32>
    %49 = vector.extract_strided_slice %30 {offsets = [2, 1, 0], sizes = [4, 4, 4], strides = [1, 1, 1]} : vector<6x6x4xf32> to vector<4x4x4xf32>
    %50 = vector.shape_cast %49 : vector<4x4x4xf32> to vector<16x4xf32>
    %c7 = arith.constant 7 : index
    %c0_29 = arith.constant 0 : index
    %c0_30 = arith.constant 0 : index
    %51 = vector.load %arg4[%c7, %c0_29, %c0_30] : memref<8x4x4xf32, #tpu.memory_space<vmem>>, vector<1x4x4xf32>
    %52 = vector.shape_cast %51 : vector<1x4x4xf32> to vector<4x4xf32>
    %cst_31 = arith.constant dense<0.000000e+00> : vector<16x4xf32>
    %53 = tpu.matmul %50, %52, %cst_31 {dimension_numbers = #tpu.dot_dimension_numbers<[1], [0], [0], [1], [0, 0, 1, 1], [], []>} : vector<16x4xf32>, vector<4x4xf32>, vector<16x4xf32> -> vector<16x4xf32>
    %54 = arith.addf %48, %53 : vector<16x4xf32>
    %c0_32 = arith.constant 0 : index
    %c0_33 = arith.constant 0 : index
    %55 = vector.load %arg5[%c0_32, %c0_33] : memref<1x4xf32, #tpu.memory_space<vmem>>, vector<1x4xf32>
    %56 = vector.broadcast %55 : vector<1x4xf32> to vector<16x4xf32>
    %57 = arith.addf %54, %56 : vector<16x4xf32>
    %58 = arith.truncf %57 : vector<16x4xf32> to vector<16x4xbf16>
    %c0_34 = arith.constant 0 : index
    %c0_35 = arith.constant 0 : index
    %c0_36 = arith.constant 0 : index
    %59 = vector.load %arg6[%c0_34, %c0_35, %c0_36] : memref<1x16x4xbf16, #tpu.memory_space<vmem>>, vector<1x16x4xbf16>
    %60 = vector.shape_cast %59 : vector<1x16x4xbf16> to vector<16x4xbf16>
    %61 = vector.shape_cast %58 : vector<16x4xbf16> to vector<1x16x4xbf16>
    tpu.vector_store %arg6[%c0_34, %c0_35, %c0_36], %61 {strides = array<i32>} : memref<1x16x4xbf16, #tpu.memory_space<vmem>>, vector<1x16x4xbf16>,
    %cst_37 = arith.constant dense<0.000000e+00> : vector<4xf32>
    %62 = vector.multi_reduction <add>, %57, %cst_37 [0] : vector<16x4xf32> to vector<4xf32>
    %63 = vector.shape_cast %62 : vector<4xf32> to vector<1x4xf32>
    %c0_38 = arith.constant 0 : index
    %c0_39 = arith.constant 0 : index
    %c0_40 = arith.constant 0 : index
    %64 = vector.load %arg7[%c0_38, %c0_39, %c0_40] : memref<1x2x4xf32, #tpu.memory_space<vmem>>, vector<1x1x4xf32>
    %65 = vector.shape_cast %64 : vector<1x1x4xf32> to vector<1x4xf32>
    %66 = vector.shape_cast %63 : vector<1x4xf32> to vector<1x1x4xf32>
    tpu.vector_store %arg7[%c0_38, %c0_39, %c0_40], %66 {strides = array<i32>} : memref<1x2x4xf32, #tpu.memory_space<vmem>>, vector<1x1x4xf32>,
    %67 = arith.mulf %57, %57 : vector<16x4xf32>
    %cst_41 = arith.constant dense<0.000000e+00> : vector<4xf32>
    %68 = vector.multi_reduction <add>, %67, %cst_41 [0] : vector<16x4xf32> to vector<4xf32>
    %69 = vector.shape_cast %68 : vector<4xf32> to vector<1x4xf32>
    %c0_42 = arith.constant 0 : index
    %c1_43 = arith.constant 1 : index
    %c0_44 = arith.constant 0 : index
    %70 = vector.load %arg7[%c0_42, %c1_43, %c0_44] : memref<1x2x4xf32, #tpu.memory_space<vmem>>, vector<1x1x4xf32>
    %71 = vector.shape_cast %70 : vector<1x1x4xf32> to vector<1x4xf32>
    %72 = vector.shape_cast %69 : vector<1x4xf32> to vector<1x1x4xf32>
    tpu.vector_store %arg7[%c0_42, %c1_43, %c0_44], %72 {strides = array<i32>} : memref<1x2x4xf32, #tpu.memory_space<vmem>>, vector<1x1x4xf32>,
    return
  }
  func.func @transform_0(%arg0: i32, %arg1: i32) -> (i32, i32, i32, i32) {
    %c6_i32 = arith.constant 6 : i32
    %0 = arith.muli %arg0, %c6_i32 : i32
    %1 = arith.addi %0, %arg1 : i32
    %c0_i32 = arith.constant 0 : i32
    %2 = arith.addi %1, %c0_i32 : i32
    %c0_i32_0 = arith.constant 0 : i32
    %3 = arith.addi %2, %c0_i32_0 : i32
    %c0_i32_1 = arith.constant 0 : i32
    %c0_i32_2 = arith.constant 0 : i32
    %c0_i32_3 = arith.constant 0 : i32
    %c0_i32_4 = arith.constant 0 : i32
    return %3, %c0_i32_1, %c0_i32_2, %c0_i32_3 : i32, i32, i32, i32
  }
  func.func @transform_1(%arg0: i32, %arg1: i32) -> (i32, i32, i32, i32) {
    %c6_i32 = arith.constant 6 : i32
    %0 = arith.muli %arg0, %c6_i32 : i32
    %1 = arith.addi %0, %arg1 : i32
    %c0_i32 = arith.constant 0 : i32
    %2 = arith.addi %1, %c0_i32 : i32
    %c1_i32 = arith.constant 1 : i32
    %3 = arith.addi %2, %c1_i32 : i32
    %c0_i32_0 = arith.constant 0 : i32
    %c0_i32_1 = arith.constant 0 : i32
    %c0_i32_2 = arith.constant 0 : i32
    %c0_i32_3 = arith.constant 0 : i32
    return %3, %c0_i32_0, %c0_i32_1, %c0_i32_2 : i32, i32, i32, i32
  }
  func.func @transform_2(%arg0: i32, %arg1: i32) -> (i32, i32, i32) {
    %c0_i32 = arith.constant 0 : i32
    %c0_i32_0 = arith.constant 0 : i32
    %c0_i32_1 = arith.constant 0 : i32
    %c0_i32_2 = arith.constant 0 : i32
    return %c0_i32, %c0_i32_0, %c0_i32_1 : i32, i32, i32
  }
  func.func @transform_3(%arg0: i32, %arg1: i32) -> (i32, i32) {
    %c0_i32 = arith.constant 0 : i32
    %c0_i32_0 = arith.constant 0 : i32
    %c0_i32_1 = arith.constant 0 : i32
    return %c0_i32, %c0_i32_0 : i32, i32
  }
  func.func @transform_4(%arg0: i32, %arg1: i32) -> (i32, i32, i32) {
    %c4_i32 = arith.constant 4 : i32
    %0 = arith.muli %arg0, %c4_i32 : i32
    %1 = arith.addi %0, %arg1 : i32
    %c0_i32 = arith.constant 0 : i32
    %c0_i32_0 = arith.constant 0 : i32
    %c0_i32_1 = arith.constant 0 : i32
    return %1, %c0_i32, %c0_i32_0 : i32, i32, i32
  }
  func.func @transform_5(%arg0: i32, %arg1: i32) -> (i32, i32, i32) {
    %c4_i32 = arith.constant 4 : i32
    %0 = arith.muli %arg0, %c4_i32 : i32
    %1 = arith.addi %0, %arg1 : i32
    %c0_i32 = arith.constant 0 : i32
    %c0_i32_0 = arith.constant 0 : i32
    %c0_i32_1 = arith.constant 0 : i32
    return %1, %c0_i32, %c0_i32_0 : i32, i32, i32
  }
}

module attributes {stable_mosaic.version = 11 : i64} {
  func.func @kernel(%arg0: i32, %arg1: i32, %arg2: memref<1x6x6x4xbf16, #tpu.memory_space<vmem>>, %arg3: memref<1x6x6x4xbf16, #tpu.memory_space<vmem>>, %arg4: memref<8x4x4xf32, #tpu.memory_space<vmem>>, %arg5: memref<1x4xf32, #tpu.memory_space<vmem>>, %arg6: memref<1x16x4xbf16, #tpu.memory_space<vmem>>, %arg7: memref<1x2x4xf32, #tpu.memory_space<vmem>>) attributes {dimension_semantics = [#tpu.dimension_semantics<parallel>, #tpu.dimension_semantics<parallel>], iteration_bounds = array<i64: 2, 4>, scalar_prefetch = 0 : i64, scratch_operands = 0 : i64, tpu.core_type = #tpu.core_type<tc>, window_params = [{transform_indices = @transform_0, window_bounds = array<i64: 1, 6, 6, 4>}, {transform_indices = @transform_1, window_bounds = array<i64: 1, 6, 6, 4>}, {pipeline_mode = #tpu.pipeline_mode<synchronous>, transform_indices = @transform_2, window_bounds = array<i64: 8, 4, 4>}, {pipeline_mode = #tpu.pipeline_mode<synchronous>, transform_indices = @transform_3, window_bounds = array<i64: 1, 4>}, {transform_indices = @transform_4, window_bounds = array<i64: 1, 16, 4>}, {transform_indices = @transform_5, window_bounds = array<i64: 1, 2, 4>}]} {
    %cst = arith.constant 0.000000e+00 : f32
    %0 = vector.broadcast %cst : f32 to vector<16x4xf32>
    %c0 = arith.constant 0 : index
    %c0_0 = arith.constant 0 : index
    %c0_1 = arith.constant 0 : index
    %c0_2 = arith.constant 0 : index
    %1 = vector.load %arg2[%c0, %c0_0, %c0_1, %c0_2] : memref<1x6x6x4xbf16, #tpu.memory_space<vmem>>, vector<1x6x6x4xbf16>
    %2 = vector.shape_cast %1 : vector<1x6x6x4xbf16> to vector<6x6x4xbf16>
    %3 = arith.extf %2 : vector<6x6x4xbf16> to vector<6x6x4xf32>
    %4 = vector.extract_strided_slice %3 {offsets = [1, 1, 0], sizes = [4, 4, 4], strides = [1, 1, 1]} : vector<6x6x4xf32> to vector<4x4x4xf32>
    %5 = vector.shape_cast %4 : vector<4x4x4xf32> to vector<16x4xf32>
    %c0_3 = arith.constant 0 : index
    %c0_4 = arith.constant 0 : index
    %c0_5 = arith.constant 0 : index
    %6 = vector.load %arg4[%c0_3, %c0_4, %c0_5] : memref<8x4x4xf32, #tpu.memory_space<vmem>>, vector<1x4x4xf32>
    %7 = vector.shape_cast %6 : vector<1x4x4xf32> to vector<4x4xf32>
    %cst_6 = arith.constant dense<0.000000e+00> : vector<16x4xf32>
    %8 = tpu.matmul %5, %7, %cst_6 {dimension_numbers = #tpu.dot_dimension_numbers<[1], [0], [0], [1], [0, 0, 1, 1], [], []>} : vector<16x4xf32>, vector<4x4xf32>, vector<16x4xf32> -> vector<16x4xf32>
    %9 = arith.addf %0, %8 : vector<16x4xf32>
    %10 = vector.extract_strided_slice %3 {offsets = [1, 2, 0], sizes = [4, 4, 4], strides = [1, 1, 1]} : vector<6x6x4xf32> to vector<4x4x4xf32>
    %11 = vector.shape_cast %10 : vector<4x4x4xf32> to vector<16x4xf32>
    %c1 = arith.constant 1 : index
    %c0_7 = arith.constant 0 : index
    %c0_8 = arith.constant 0 : index
    %12 = vector.load %arg4[%c1, %c0_7, %c0_8] : memref<8x4x4xf32, #tpu.memory_space<vmem>>, vector<1x4x4xf32>
    %13 = vector.shape_cast %12 : vector<1x4x4xf32> to vector<4x4xf32>
    %cst_9 = arith.constant dense<0.000000e+00> : vector<16x4xf32>
    %14 = tpu.matmul %11, %13, %cst_9 {dimension_numbers = #tpu.dot_dimension_numbers<[1], [0], [0], [1], [0, 0, 1, 1], [], []>} : vector<16x4xf32>, vector<4x4xf32>, vector<16x4xf32> -> vector<16x4xf32>
    %15 = arith.addf %9, %14 : vector<16x4xf32>
    %16 = vector.extract_strided_slice %3 {offsets = [2, 1, 0], sizes = [4, 4, 4], strides = [1, 1, 1]} : vector<6x6x4xf32> to vector<4x4x4xf32>
    %17 = vector.shape_cast %16 : vector<4x4x4xf32> to vector<16x4xf32>
    %c2 = arith.constant 2 : index
    %c0_10 = arith.constant 0 : index
    %c0_11 = arith.constant 0 : index
    %18 = vector.load %arg4[%c2, %c0_10, %c0_11] : memref<8x4x4xf32, #tpu.memory_space<vmem>>, vector<1x4x4xf32>
    %19 = vector.shape_cast %18 : vector<1x4x4xf32> to vector<4x4xf32>
    %cst_12 = arith.constant dense<0.000000e+00> : vector<16x4xf32>
    %20 = tpu.matmul %17, %19, %cst_12 {dimension_numbers = #tpu.dot_dimension_numbers<[1], [0], [0], [1], [0, 0, 1, 1], [], []>} : vector<16x4xf32>, vector<4x4xf32>, vector<16x4xf32> -> vector<16x4xf32>
    %21 = arith.addf %15, %20 : vector<16x4xf32>
    %22 = vector.extract_strided_slice %3 {offsets = [2, 2, 0], sizes = [4, 4, 4], strides = [1, 1, 1]} : vector<6x6x4xf32> to vector<4x4x4xf32>
    %23 = vector.shape_cast %22 : vector<4x4x4xf32> to vector<16x4xf32>
    %c3 = arith.constant 3 : index
    %c0_13 = arith.constant 0 : index
    %c0_14 = arith.constant 0 : index
    %24 = vector.load %arg4[%c3, %c0_13, %c0_14] : memref<8x4x4xf32, #tpu.memory_space<vmem>>, vector<1x4x4xf32>
    %25 = vector.shape_cast %24 : vector<1x4x4xf32> to vector<4x4xf32>
    %cst_15 = arith.constant dense<0.000000e+00> : vector<16x4xf32>
    %26 = tpu.matmul %23, %25, %cst_15 {dimension_numbers = #tpu.dot_dimension_numbers<[1], [0], [0], [1], [0, 0, 1, 1], [], []>} : vector<16x4xf32>, vector<4x4xf32>, vector<16x4xf32> -> vector<16x4xf32>
    %27 = arith.addf %21, %26 : vector<16x4xf32>
    %c0_16 = arith.constant 0 : index
    %c0_17 = arith.constant 0 : index
    %c0_18 = arith.constant 0 : index
    %c0_19 = arith.constant 0 : index
    %28 = vector.load %arg3[%c0_16, %c0_17, %c0_18, %c0_19] : memref<1x6x6x4xbf16, #tpu.memory_space<vmem>>, vector<1x6x6x4xbf16>
    %29 = vector.shape_cast %28 : vector<1x6x6x4xbf16> to vector<6x6x4xbf16>
    %30 = arith.extf %29 : vector<6x6x4xbf16> to vector<6x6x4xf32>
    %31 = vector.extract_strided_slice %30 {offsets = [1, 1, 0], sizes = [4, 4, 4], strides = [1, 1, 1]} : vector<6x6x4xf32> to vector<4x4x4xf32>
    %32 = vector.shape_cast %31 : vector<4x4x4xf32> to vector<16x4xf32>
    %c4 = arith.constant 4 : index
    %c0_20 = arith.constant 0 : index
    %c0_21 = arith.constant 0 : index
    %33 = vector.load %arg4[%c4, %c0_20, %c0_21] : memref<8x4x4xf32, #tpu.memory_space<vmem>>, vector<1x4x4xf32>
    %34 = vector.shape_cast %33 : vector<1x4x4xf32> to vector<4x4xf32>
    %cst_22 = arith.constant dense<0.000000e+00> : vector<16x4xf32>
    %35 = tpu.matmul %32, %34, %cst_22 {dimension_numbers = #tpu.dot_dimension_numbers<[1], [0], [0], [1], [0, 0, 1, 1], [], []>} : vector<16x4xf32>, vector<4x4xf32>, vector<16x4xf32> -> vector<16x4xf32>
    %36 = arith.addf %27, %35 : vector<16x4xf32>
    %37 = vector.extract_strided_slice %30 {offsets = [1, 2, 0], sizes = [4, 4, 4], strides = [1, 1, 1]} : vector<6x6x4xf32> to vector<4x4x4xf32>
    %38 = vector.shape_cast %37 : vector<4x4x4xf32> to vector<16x4xf32>
    %c5 = arith.constant 5 : index
    %c0_23 = arith.constant 0 : index
    %c0_24 = arith.constant 0 : index
    %39 = vector.load %arg4[%c5, %c0_23, %c0_24] : memref<8x4x4xf32, #tpu.memory_space<vmem>>, vector<1x4x4xf32>
    %40 = vector.shape_cast %39 : vector<1x4x4xf32> to vector<4x4xf32>
    %cst_25 = arith.constant dense<0.000000e+00> : vector<16x4xf32>
    %41 = tpu.matmul %38, %40, %cst_25 {dimension_numbers = #tpu.dot_dimension_numbers<[1], [0], [0], [1], [0, 0, 1, 1], [], []>} : vector<16x4xf32>, vector<4x4xf32>, vector<16x4xf32> -> vector<16x4xf32>
    %42 = arith.addf %36, %41 : vector<16x4xf32>
    %43 = vector.extract_strided_slice %30 {offsets = [2, 1, 0], sizes = [4, 4, 4], strides = [1, 1, 1]} : vector<6x6x4xf32> to vector<4x4x4xf32>
    %44 = vector.shape_cast %43 : vector<4x4x4xf32> to vector<16x4xf32>
    %c6 = arith.constant 6 : index
    %c0_26 = arith.constant 0 : index
    %c0_27 = arith.constant 0 : index
    %45 = vector.load %arg4[%c6, %c0_26, %c0_27] : memref<8x4x4xf32, #tpu.memory_space<vmem>>, vector<1x4x4xf32>
    %46 = vector.shape_cast %45 : vector<1x4x4xf32> to vector<4x4xf32>
    %cst_28 = arith.constant dense<0.000000e+00> : vector<16x4xf32>
    %47 = tpu.matmul %44, %46, %cst_28 {dimension_numbers = #tpu.dot_dimension_numbers<[1], [0], [0], [1], [0, 0, 1, 1], [], []>} : vector<16x4xf32>, vector<4x4xf32>, vector<16x4xf32> -> vector<16x4xf32>
    %48 = arith.addf %42, %47 : vector<16x4xf32>
    %49 = vector.extract_strided_slice %30 {offsets = [2, 2, 0], sizes = [4, 4, 4], strides = [1, 1, 1]} : vector<6x6x4xf32> to vector<4x4x4xf32>
    %50 = vector.shape_cast %49 : vector<4x4x4xf32> to vector<16x4xf32>
    %c7 = arith.constant 7 : index
    %c0_29 = arith.constant 0 : index
    %c0_30 = arith.constant 0 : index
    %51 = vector.load %arg4[%c7, %c0_29, %c0_30] : memref<8x4x4xf32, #tpu.memory_space<vmem>>, vector<1x4x4xf32>
    %52 = vector.shape_cast %51 : vector<1x4x4xf32> to vector<4x4xf32>
    %cst_31 = arith.constant dense<0.000000e+00> : vector<16x4xf32>
    %53 = tpu.matmul %50, %52, %cst_31 {dimension_numbers = #tpu.dot_dimension_numbers<[1], [0], [0], [1], [0, 0, 1, 1], [], []>} : vector<16x4xf32>, vector<4x4xf32>, vector<16x4xf32> -> vector<16x4xf32>
    %54 = arith.addf %48, %53 : vector<16x4xf32>
    %c0_32 = arith.constant 0 : index
    %c0_33 = arith.constant 0 : index
    %55 = vector.load %arg5[%c0_32, %c0_33] : memref<1x4xf32, #tpu.memory_space<vmem>>, vector<1x4xf32>
    %56 = vector.broadcast %55 : vector<1x4xf32> to vector<16x4xf32>
    %57 = arith.addf %54, %56 : vector<16x4xf32>
    %58 = arith.truncf %57 : vector<16x4xf32> to vector<16x4xbf16>
    %c0_34 = arith.constant 0 : index
    %c0_35 = arith.constant 0 : index
    %c0_36 = arith.constant 0 : index
    %59 = vector.load %arg6[%c0_34, %c0_35, %c0_36] : memref<1x16x4xbf16, #tpu.memory_space<vmem>>, vector<1x16x4xbf16>
    %60 = vector.shape_cast %59 : vector<1x16x4xbf16> to vector<16x4xbf16>
    %61 = vector.shape_cast %58 : vector<16x4xbf16> to vector<1x16x4xbf16>
    tpu.vector_store %arg6[%c0_34, %c0_35, %c0_36], %61 {strides = array<i32>} : memref<1x16x4xbf16, #tpu.memory_space<vmem>>, vector<1x16x4xbf16>,
    %cst_37 = arith.constant dense<0.000000e+00> : vector<4xf32>
    %62 = vector.multi_reduction <add>, %57, %cst_37 [0] : vector<16x4xf32> to vector<4xf32>
    %63 = vector.shape_cast %62 : vector<4xf32> to vector<1x4xf32>
    %c0_38 = arith.constant 0 : index
    %c0_39 = arith.constant 0 : index
    %c0_40 = arith.constant 0 : index
    %64 = vector.load %arg7[%c0_38, %c0_39, %c0_40] : memref<1x2x4xf32, #tpu.memory_space<vmem>>, vector<1x1x4xf32>
    %65 = vector.shape_cast %64 : vector<1x1x4xf32> to vector<1x4xf32>
    %66 = vector.shape_cast %63 : vector<1x4xf32> to vector<1x1x4xf32>
    tpu.vector_store %arg7[%c0_38, %c0_39, %c0_40], %66 {strides = array<i32>} : memref<1x2x4xf32, #tpu.memory_space<vmem>>, vector<1x1x4xf32>,
    %67 = arith.mulf %57, %57 : vector<16x4xf32>
    %cst_41 = arith.constant dense<0.000000e+00> : vector<4xf32>
    %68 = vector.multi_reduction <add>, %67, %cst_41 [0] : vector<16x4xf32> to vector<4xf32>
    %69 = vector.shape_cast %68 : vector<4xf32> to vector<1x4xf32>
    %c0_42 = arith.constant 0 : index
    %c1_43 = arith.constant 1 : index
    %c0_44 = arith.constant 0 : index
    %70 = vector.load %arg7[%c0_42, %c1_43, %c0_44] : memref<1x2x4xf32, #tpu.memory_space<vmem>>, vector<1x1x4xf32>
    %71 = vector.shape_cast %70 : vector<1x1x4xf32> to vector<1x4xf32>
    %72 = vector.shape_cast %69 : vector<1x4xf32> to vector<1x1x4xf32>
    tpu.vector_store %arg7[%c0_42, %c1_43, %c0_44], %72 {strides = array<i32>} : memref<1x2x4xf32, #tpu.memory_space<vmem>>, vector<1x1x4xf32>,
    return
  }
  func.func @transform_0(%arg0: i32, %arg1: i32) -> (i32, i32, i32, i32) {
    %c6_i32 = arith.constant 6 : i32
    %0 = arith.muli %arg0, %c6_i32 : i32
    %1 = arith.addi %0, %arg1 : i32
    %c0_i32 = arith.constant 0 : i32
    %2 = arith.addi %1, %c0_i32 : i32
    %c0_i32_0 = arith.constant 0 : i32
    %3 = arith.addi %2, %c0_i32_0 : i32
    %c0_i32_1 = arith.constant 0 : i32
    %c0_i32_2 = arith.constant 0 : i32
    %c0_i32_3 = arith.constant 0 : i32
    %c0_i32_4 = arith.constant 0 : i32
    return %3, %c0_i32_1, %c0_i32_2, %c0_i32_3 : i32, i32, i32, i32
  }
  func.func @transform_1(%arg0: i32, %arg1: i32) -> (i32, i32, i32, i32) {
    %c6_i32 = arith.constant 6 : i32
    %0 = arith.muli %arg0, %c6_i32 : i32
    %1 = arith.addi %0, %arg1 : i32
    %c0_i32 = arith.constant 0 : i32
    %2 = arith.addi %1, %c0_i32 : i32
    %c1_i32 = arith.constant 1 : i32
    %3 = arith.addi %2, %c1_i32 : i32
    %c0_i32_0 = arith.constant 0 : i32
    %c0_i32_1 = arith.constant 0 : i32
    %c0_i32_2 = arith.constant 0 : i32
    %c0_i32_3 = arith.constant 0 : i32
    return %3, %c0_i32_0, %c0_i32_1, %c0_i32_2 : i32, i32, i32, i32
  }
  func.func @transform_2(%arg0: i32, %arg1: i32) -> (i32, i32, i32) {
    %c0_i32 = arith.constant 0 : i32
    %c0_i32_0 = arith.constant 0 : i32
    %c0_i32_1 = arith.constant 0 : i32
    %c0_i32_2 = arith.constant 0 : i32
    return %c0_i32, %c0_i32_0, %c0_i32_1 : i32, i32, i32
  }
  func.func @transform_3(%arg0: i32, %arg1: i32) -> (i32, i32) {
    %c0_i32 = arith.constant 0 : i32
    %c0_i32_0 = arith.constant 0 : i32
    %c0_i32_1 = arith.constant 0 : i32
    return %c0_i32, %c0_i32_0 : i32, i32
  }
  func.func @transform_4(%arg0: i32, %arg1: i32) -> (i32, i32, i32) {
    %c4_i32 = arith.constant 4 : i32
    %0 = arith.muli %arg0, %c4_i32 : i32
    %1 = arith.addi %0, %arg1 : i32
    %c0_i32 = arith.constant 0 : i32
    %c0_i32_0 = arith.constant 0 : i32
    %c0_i32_1 = arith.constant 0 : i32
    return %1, %c0_i32, %c0_i32_0 : i32, i32, i32
  }
  func.func @transform_5(%arg0: i32, %arg1: i32) -> (i32, i32, i32) {
    %c4_i32 = arith.constant 4 : i32
    %0 = arith.muli %arg0, %c4_i32 : i32
    %1 = arith.addi %0, %arg1 : i32
    %c0_i32 = arith.constant 0 : i32
    %c0_i32_0 = arith.constant 0 : i32
    %c0_i32_1 = arith.constant 0 : i32
    return %1, %c0_i32, %c0_i32_0 : i32, i32, i32
  }
}

module attributes {stable_mosaic.version = 11 : i64} {
  func.func @kernel(%arg0: i32, %arg1: i32, %arg2: memref<1x6x6x4xbf16, #tpu.memory_space<vmem>>, %arg3: memref<1x6x6x4xbf16, #tpu.memory_space<vmem>>, %arg4: memref<8x4x4xf32, #tpu.memory_space<vmem>>, %arg5: memref<1x4xf32, #tpu.memory_space<vmem>>, %arg6: memref<1x16x4xbf16, #tpu.memory_space<vmem>>, %arg7: memref<1x2x4xf32, #tpu.memory_space<vmem>>) attributes {dimension_semantics = [#tpu.dimension_semantics<parallel>, #tpu.dimension_semantics<parallel>], iteration_bounds = array<i64: 2, 4>, scalar_prefetch = 0 : i64, scratch_operands = 0 : i64, tpu.core_type = #tpu.core_type<tc>, window_params = [{transform_indices = @transform_0, window_bounds = array<i64: 1, 6, 6, 4>}, {transform_indices = @transform_1, window_bounds = array<i64: 1, 6, 6, 4>}, {pipeline_mode = #tpu.pipeline_mode<synchronous>, transform_indices = @transform_2, window_bounds = array<i64: 8, 4, 4>}, {pipeline_mode = #tpu.pipeline_mode<synchronous>, transform_indices = @transform_3, window_bounds = array<i64: 1, 4>}, {transform_indices = @transform_4, window_bounds = array<i64: 1, 16, 4>}, {transform_indices = @transform_5, window_bounds = array<i64: 1, 2, 4>}]} {
    %cst = arith.constant 0.000000e+00 : f32
    %0 = vector.broadcast %cst : f32 to vector<16x4xf32>
    %c0 = arith.constant 0 : index
    %c0_0 = arith.constant 0 : index
    %c0_1 = arith.constant 0 : index
    %c0_2 = arith.constant 0 : index
    %1 = vector.load %arg2[%c0, %c0_0, %c0_1, %c0_2] : memref<1x6x6x4xbf16, #tpu.memory_space<vmem>>, vector<1x6x6x4xbf16>
    %2 = vector.shape_cast %1 : vector<1x6x6x4xbf16> to vector<6x6x4xbf16>
    %3 = arith.extf %2 : vector<6x6x4xbf16> to vector<6x6x4xf32>
    %4 = vector.extract_strided_slice %3 {offsets = [0, 0, 0], sizes = [4, 4, 4], strides = [1, 1, 1]} : vector<6x6x4xf32> to vector<4x4x4xf32>
    %5 = vector.shape_cast %4 : vector<4x4x4xf32> to vector<16x4xf32>
    %c0_3 = arith.constant 0 : index
    %c0_4 = arith.constant 0 : index
    %c0_5 = arith.constant 0 : index
    %6 = vector.load %arg4[%c0_3, %c0_4, %c0_5] : memref<8x4x4xf32, #tpu.memory_space<vmem>>, vector<1x4x4xf32>
    %7 = vector.shape_cast %6 : vector<1x4x4xf32> to vector<4x4xf32>
    %cst_6 = arith.constant dense<0.000000e+00> : vector<16x4xf32>
    %8 = tpu.matmul %5, %7, %cst_6 {dimension_numbers = #tpu.dot_dimension_numbers<[1], [0], [0], [1], [0, 0, 1, 1], [], []>} : vector<16x4xf32>, vector<4x4xf32>, vector<16x4xf32> -> vector<16x4xf32>
    %9 = arith.addf %0, %8 : vector<16x4xf32>
    %10 = vector.extract_strided_slice %3 {offsets = [0, 1, 0], sizes = [4, 4, 4], strides = [1, 1, 1]} : vector<6x6x4xf32> to vector<4x4x4xf32>
    %11 = vector.shape_cast %10 : vector<4x4x4xf32> to vector<16x4xf32>
    %c1 = arith.constant 1 : index
    %c0_7 = arith.constant 0 : index
    %c0_8 = arith.constant 0 : index
    %12 = vector.load %arg4[%c1, %c0_7, %c0_8] : memref<8x4x4xf32, #tpu.memory_space<vmem>>, vector<1x4x4xf32>
    %13 = vector.shape_cast %12 : vector<1x4x4xf32> to vector<4x4xf32>
    %cst_9 = arith.constant dense<0.000000e+00> : vector<16x4xf32>
    %14 = tpu.matmul %11, %13, %cst_9 {dimension_numbers = #tpu.dot_dimension_numbers<[1], [0], [0], [1], [0, 0, 1, 1], [], []>} : vector<16x4xf32>, vector<4x4xf32>, vector<16x4xf32> -> vector<16x4xf32>
    %15 = arith.addf %9, %14 : vector<16x4xf32>
    %16 = vector.extract_strided_slice %3 {offsets = [1, 0, 0], sizes = [4, 4, 4], strides = [1, 1, 1]} : vector<6x6x4xf32> to vector<4x4x4xf32>
    %17 = vector.shape_cast %16 : vector<4x4x4xf32> to vector<16x4xf32>
    %c2 = arith.constant 2 : index
    %c0_10 = arith.constant 0 : index
    %c0_11 = arith.constant 0 : index
    %18 = vector.load %arg4[%c2, %c0_10, %c0_11] : memref<8x4x4xf32, #tpu.memory_space<vmem>>, vector<1x4x4xf32>
    %19 = vector.shape_cast %18 : vector<1x4x4xf32> to vector<4x4xf32>
    %cst_12 = arith.constant dense<0.000000e+00> : vector<16x4xf32>
    %20 = tpu.matmul %17, %19, %cst_12 {dimension_numbers = #tpu.dot_dimension_numbers<[1], [0], [0], [1], [0, 0, 1, 1], [], []>} : vector<16x4xf32>, vector<4x4xf32>, vector<16x4xf32> -> vector<16x4xf32>
    %21 = arith.addf %15, %20 : vector<16x4xf32>
    %22 = vector.extract_strided_slice %3 {offsets = [1, 1, 0], sizes = [4, 4, 4], strides = [1, 1, 1]} : vector<6x6x4xf32> to vector<4x4x4xf32>
    %23 = vector.shape_cast %22 : vector<4x4x4xf32> to vector<16x4xf32>
    %c3 = arith.constant 3 : index
    %c0_13 = arith.constant 0 : index
    %c0_14 = arith.constant 0 : index
    %24 = vector.load %arg4[%c3, %c0_13, %c0_14] : memref<8x4x4xf32, #tpu.memory_space<vmem>>, vector<1x4x4xf32>
    %25 = vector.shape_cast %24 : vector<1x4x4xf32> to vector<4x4xf32>
    %cst_15 = arith.constant dense<0.000000e+00> : vector<16x4xf32>
    %26 = tpu.matmul %23, %25, %cst_15 {dimension_numbers = #tpu.dot_dimension_numbers<[1], [0], [0], [1], [0, 0, 1, 1], [], []>} : vector<16x4xf32>, vector<4x4xf32>, vector<16x4xf32> -> vector<16x4xf32>
    %27 = arith.addf %21, %26 : vector<16x4xf32>
    %c0_16 = arith.constant 0 : index
    %c0_17 = arith.constant 0 : index
    %c0_18 = arith.constant 0 : index
    %c0_19 = arith.constant 0 : index
    %28 = vector.load %arg3[%c0_16, %c0_17, %c0_18, %c0_19] : memref<1x6x6x4xbf16, #tpu.memory_space<vmem>>, vector<1x6x6x4xbf16>
    %29 = vector.shape_cast %28 : vector<1x6x6x4xbf16> to vector<6x6x4xbf16>
    %30 = arith.extf %29 : vector<6x6x4xbf16> to vector<6x6x4xf32>
    %31 = vector.extract_strided_slice %30 {offsets = [0, 0, 0], sizes = [4, 4, 4], strides = [1, 1, 1]} : vector<6x6x4xf32> to vector<4x4x4xf32>
    %32 = vector.shape_cast %31 : vector<4x4x4xf32> to vector<16x4xf32>
    %c4 = arith.constant 4 : index
    %c0_20 = arith.constant 0 : index
    %c0_21 = arith.constant 0 : index
    %33 = vector.load %arg4[%c4, %c0_20, %c0_21] : memref<8x4x4xf32, #tpu.memory_space<vmem>>, vector<1x4x4xf32>
    %34 = vector.shape_cast %33 : vector<1x4x4xf32> to vector<4x4xf32>
    %cst_22 = arith.constant dense<0.000000e+00> : vector<16x4xf32>
    %35 = tpu.matmul %32, %34, %cst_22 {dimension_numbers = #tpu.dot_dimension_numbers<[1], [0], [0], [1], [0, 0, 1, 1], [], []>} : vector<16x4xf32>, vector<4x4xf32>, vector<16x4xf32> -> vector<16x4xf32>
    %36 = arith.addf %27, %35 : vector<16x4xf32>
    %37 = vector.extract_strided_slice %30 {offsets = [0, 1, 0], sizes = [4, 4, 4], strides = [1, 1, 1]} : vector<6x6x4xf32> to vector<4x4x4xf32>
    %38 = vector.shape_cast %37 : vector<4x4x4xf32> to vector<16x4xf32>
    %c5 = arith.constant 5 : index
    %c0_23 = arith.constant 0 : index
    %c0_24 = arith.constant 0 : index
    %39 = vector.load %arg4[%c5, %c0_23, %c0_24] : memref<8x4x4xf32, #tpu.memory_space<vmem>>, vector<1x4x4xf32>
    %40 = vector.shape_cast %39 : vector<1x4x4xf32> to vector<4x4xf32>
    %cst_25 = arith.constant dense<0.000000e+00> : vector<16x4xf32>
    %41 = tpu.matmul %38, %40, %cst_25 {dimension_numbers = #tpu.dot_dimension_numbers<[1], [0], [0], [1], [0, 0, 1, 1], [], []>} : vector<16x4xf32>, vector<4x4xf32>, vector<16x4xf32> -> vector<16x4xf32>
    %42 = arith.addf %36, %41 : vector<16x4xf32>
    %43 = vector.extract_strided_slice %30 {offsets = [1, 0, 0], sizes = [4, 4, 4], strides = [1, 1, 1]} : vector<6x6x4xf32> to vector<4x4x4xf32>
    %44 = vector.shape_cast %43 : vector<4x4x4xf32> to vector<16x4xf32>
    %c6 = arith.constant 6 : index
    %c0_26 = arith.constant 0 : index
    %c0_27 = arith.constant 0 : index
    %45 = vector.load %arg4[%c6, %c0_26, %c0_27] : memref<8x4x4xf32, #tpu.memory_space<vmem>>, vector<1x4x4xf32>
    %46 = vector.shape_cast %45 : vector<1x4x4xf32> to vector<4x4xf32>
    %cst_28 = arith.constant dense<0.000000e+00> : vector<16x4xf32>
    %47 = tpu.matmul %44, %46, %cst_28 {dimension_numbers = #tpu.dot_dimension_numbers<[1], [0], [0], [1], [0, 0, 1, 1], [], []>} : vector<16x4xf32>, vector<4x4xf32>, vector<16x4xf32> -> vector<16x4xf32>
    %48 = arith.addf %42, %47 : vector<16x4xf32>
    %49 = vector.extract_strided_slice %30 {offsets = [1, 1, 0], sizes = [4, 4, 4], strides = [1, 1, 1]} : vector<6x6x4xf32> to vector<4x4x4xf32>
    %50 = vector.shape_cast %49 : vector<4x4x4xf32> to vector<16x4xf32>
    %c7 = arith.constant 7 : index
    %c0_29 = arith.constant 0 : index
    %c0_30 = arith.constant 0 : index
    %51 = vector.load %arg4[%c7, %c0_29, %c0_30] : memref<8x4x4xf32, #tpu.memory_space<vmem>>, vector<1x4x4xf32>
    %52 = vector.shape_cast %51 : vector<1x4x4xf32> to vector<4x4xf32>
    %cst_31 = arith.constant dense<0.000000e+00> : vector<16x4xf32>
    %53 = tpu.matmul %50, %52, %cst_31 {dimension_numbers = #tpu.dot_dimension_numbers<[1], [0], [0], [1], [0, 0, 1, 1], [], []>} : vector<16x4xf32>, vector<4x4xf32>, vector<16x4xf32> -> vector<16x4xf32>
    %54 = arith.addf %48, %53 : vector<16x4xf32>
    %c0_32 = arith.constant 0 : index
    %c0_33 = arith.constant 0 : index
    %55 = vector.load %arg5[%c0_32, %c0_33] : memref<1x4xf32, #tpu.memory_space<vmem>>, vector<1x4xf32>
    %56 = vector.broadcast %55 : vector<1x4xf32> to vector<16x4xf32>
    %57 = arith.addf %54, %56 : vector<16x4xf32>
    %58 = arith.truncf %57 : vector<16x4xf32> to vector<16x4xbf16>
    %c0_34 = arith.constant 0 : index
    %c0_35 = arith.constant 0 : index
    %c0_36 = arith.constant 0 : index
    %59 = vector.load %arg6[%c0_34, %c0_35, %c0_36] : memref<1x16x4xbf16, #tpu.memory_space<vmem>>, vector<1x16x4xbf16>
    %60 = vector.shape_cast %59 : vector<1x16x4xbf16> to vector<16x4xbf16>
    %61 = vector.shape_cast %58 : vector<16x4xbf16> to vector<1x16x4xbf16>
    tpu.vector_store %arg6[%c0_34, %c0_35, %c0_36], %61 {strides = array<i32>} : memref<1x16x4xbf16, #tpu.memory_space<vmem>>, vector<1x16x4xbf16>,
    %cst_37 = arith.constant dense<0.000000e+00> : vector<4xf32>
    %62 = vector.multi_reduction <add>, %57, %cst_37 [0] : vector<16x4xf32> to vector<4xf32>
    %63 = vector.shape_cast %62 : vector<4xf32> to vector<1x4xf32>
    %c0_38 = arith.constant 0 : index
    %c0_39 = arith.constant 0 : index
    %c0_40 = arith.constant 0 : index
    %64 = vector.load %arg7[%c0_38, %c0_39, %c0_40] : memref<1x2x4xf32, #tpu.memory_space<vmem>>, vector<1x1x4xf32>
    %65 = vector.shape_cast %64 : vector<1x1x4xf32> to vector<1x4xf32>
    %66 = vector.shape_cast %63 : vector<1x4xf32> to vector<1x1x4xf32>
    tpu.vector_store %arg7[%c0_38, %c0_39, %c0_40], %66 {strides = array<i32>} : memref<1x2x4xf32, #tpu.memory_space<vmem>>, vector<1x1x4xf32>,
    %67 = arith.mulf %57, %57 : vector<16x4xf32>
    %cst_41 = arith.constant dense<0.000000e+00> : vector<4xf32>
    %68 = vector.multi_reduction <add>, %67, %cst_41 [0] : vector<16x4xf32> to vector<4xf32>
    %69 = vector.shape_cast %68 : vector<4xf32> to vector<1x4xf32>
    %c0_42 = arith.constant 0 : index
    %c1_43 = arith.constant 1 : index
    %c0_44 = arith.constant 0 : index
    %70 = vector.load %arg7[%c0_42, %c1_43, %c0_44] : memref<1x2x4xf32, #tpu.memory_space<vmem>>, vector<1x1x4xf32>
    %71 = vector.shape_cast %70 : vector<1x1x4xf32> to vector<1x4xf32>
    %72 = vector.shape_cast %69 : vector<1x4xf32> to vector<1x1x4xf32>
    tpu.vector_store %arg7[%c0_42, %c1_43, %c0_44], %72 {strides = array<i32>} : memref<1x2x4xf32, #tpu.memory_space<vmem>>, vector<1x1x4xf32>,
    return
  }
  func.func @transform_0(%arg0: i32, %arg1: i32) -> (i32, i32, i32, i32) {
    %c6_i32 = arith.constant 6 : i32
    %0 = arith.muli %arg0, %c6_i32 : i32
    %1 = arith.addi %0, %arg1 : i32
    %c1_i32 = arith.constant 1 : i32
    %2 = arith.addi %1, %c1_i32 : i32
    %c0_i32 = arith.constant 0 : i32
    %3 = arith.addi %2, %c0_i32 : i32
    %c0_i32_0 = arith.constant 0 : i32
    %c0_i32_1 = arith.constant 0 : i32
    %c0_i32_2 = arith.constant 0 : i32
    %c0_i32_3 = arith.constant 0 : i32
    return %3, %c0_i32_0, %c0_i32_1, %c0_i32_2 : i32, i32, i32, i32
  }
  func.func @transform_1(%arg0: i32, %arg1: i32) -> (i32, i32, i32, i32) {
    %c6_i32 = arith.constant 6 : i32
    %0 = arith.muli %arg0, %c6_i32 : i32
    %1 = arith.addi %0, %arg1 : i32
    %c1_i32 = arith.constant 1 : i32
    %2 = arith.addi %1, %c1_i32 : i32
    %c1_i32_0 = arith.constant 1 : i32
    %3 = arith.addi %2, %c1_i32_0 : i32
    %c0_i32 = arith.constant 0 : i32
    %c0_i32_1 = arith.constant 0 : i32
    %c0_i32_2 = arith.constant 0 : i32
    %c0_i32_3 = arith.constant 0 : i32
    return %3, %c0_i32, %c0_i32_1, %c0_i32_2 : i32, i32, i32, i32
  }
  func.func @transform_2(%arg0: i32, %arg1: i32) -> (i32, i32, i32) {
    %c0_i32 = arith.constant 0 : i32
    %c0_i32_0 = arith.constant 0 : i32
    %c0_i32_1 = arith.constant 0 : i32
    %c0_i32_2 = arith.constant 0 : i32
    return %c0_i32, %c0_i32_0, %c0_i32_1 : i32, i32, i32
  }
  func.func @transform_3(%arg0: i32, %arg1: i32) -> (i32, i32) {
    %c0_i32 = arith.constant 0 : i32
    %c0_i32_0 = arith.constant 0 : i32
    %c0_i32_1 = arith.constant 0 : i32
    return %c0_i32, %c0_i32_0 : i32, i32
  }
  func.func @transform_4(%arg0: i32, %arg1: i32) -> (i32, i32, i32) {
    %c4_i32 = arith.constant 4 : i32
    %0 = arith.muli %arg0, %c4_i32 : i32
    %1 = arith.addi %0, %arg1 : i32
    %c0_i32 = arith.constant 0 : i32
    %c0_i32_0 = arith.constant 0 : i32
    %c0_i32_1 = arith.constant 0 : i32
    return %1, %c0_i32, %c0_i32_0 : i32, i32, i32
  }
  func.func @transform_5(%arg0: i32, %arg1: i32) -> (i32, i32, i32) {
    %c4_i32 = arith.constant 4 : i32
    %0 = arith.muli %arg0, %c4_i32 : i32
    %1 = arith.addi %0, %arg1 : i32
    %c0_i32 = arith.constant 0 : i32
    %c0_i32_0 = arith.constant 0 : i32
    %c0_i32_1 = arith.constant 0 : i32
    return %1, %c0_i32, %c0_i32_0 : i32, i32, i32
  }
}

module attributes {stable_mosaic.version = 11 : i64} {
  func.func @kernel(%arg0: i32, %arg1: i32, %arg2: memref<1x6x6x4xbf16, #tpu.memory_space<vmem>>, %arg3: memref<1x6x6x4xbf16, #tpu.memory_space<vmem>>, %arg4: memref<8x4x4xf32, #tpu.memory_space<vmem>>, %arg5: memref<1x4xf32, #tpu.memory_space<vmem>>, %arg6: memref<1x16x4xbf16, #tpu.memory_space<vmem>>, %arg7: memref<1x2x4xf32, #tpu.memory_space<vmem>>) attributes {dimension_semantics = [#tpu.dimension_semantics<parallel>, #tpu.dimension_semantics<parallel>], iteration_bounds = array<i64: 2, 4>, scalar_prefetch = 0 : i64, scratch_operands = 0 : i64, tpu.core_type = #tpu.core_type<tc>, window_params = [{transform_indices = @transform_0, window_bounds = array<i64: 1, 6, 6, 4>}, {transform_indices = @transform_1, window_bounds = array<i64: 1, 6, 6, 4>}, {pipeline_mode = #tpu.pipeline_mode<synchronous>, transform_indices = @transform_2, window_bounds = array<i64: 8, 4, 4>}, {pipeline_mode = #tpu.pipeline_mode<synchronous>, transform_indices = @transform_3, window_bounds = array<i64: 1, 4>}, {transform_indices = @transform_4, window_bounds = array<i64: 1, 16, 4>}, {transform_indices = @transform_5, window_bounds = array<i64: 1, 2, 4>}]} {
    %cst = arith.constant 0.000000e+00 : f32
    %0 = vector.broadcast %cst : f32 to vector<16x4xf32>
    %c0 = arith.constant 0 : index
    %c0_0 = arith.constant 0 : index
    %c0_1 = arith.constant 0 : index
    %c0_2 = arith.constant 0 : index
    %1 = vector.load %arg2[%c0, %c0_0, %c0_1, %c0_2] : memref<1x6x6x4xbf16, #tpu.memory_space<vmem>>, vector<1x6x6x4xbf16>
    %2 = vector.shape_cast %1 : vector<1x6x6x4xbf16> to vector<6x6x4xbf16>
    %3 = arith.extf %2 : vector<6x6x4xbf16> to vector<6x6x4xf32>
    %4 = vector.extract_strided_slice %3 {offsets = [0, 1, 0], sizes = [4, 4, 4], strides = [1, 1, 1]} : vector<6x6x4xf32> to vector<4x4x4xf32>
    %5 = vector.shape_cast %4 : vector<4x4x4xf32> to vector<16x4xf32>
    %c0_3 = arith.constant 0 : index
    %c0_4 = arith.constant 0 : index
    %c0_5 = arith.constant 0 : index
    %6 = vector.load %arg4[%c0_3, %c0_4, %c0_5] : memref<8x4x4xf32, #tpu.memory_space<vmem>>, vector<1x4x4xf32>
    %7 = vector.shape_cast %6 : vector<1x4x4xf32> to vector<4x4xf32>
    %cst_6 = arith.constant dense<0.000000e+00> : vector<16x4xf32>
    %8 = tpu.matmul %5, %7, %cst_6 {dimension_numbers = #tpu.dot_dimension_numbers<[1], [0], [0], [1], [0, 0, 1, 1], [], []>} : vector<16x4xf32>, vector<4x4xf32>, vector<16x4xf32> -> vector<16x4xf32>
    %9 = arith.addf %0, %8 : vector<16x4xf32>
    %10 = vector.extract_strided_slice %3 {offsets = [0, 2, 0], sizes = [4, 4, 4], strides = [1, 1, 1]} : vector<6x6x4xf32> to vector<4x4x4xf32>
    %11 = vector.shape_cast %10 : vector<4x4x4xf32> to vector<16x4xf32>
    %c1 = arith.constant 1 : index
    %c0_7 = arith.constant 0 : index
    %c0_8 = arith.constant 0 : index
    %12 = vector.load %arg4[%c1, %c0_7, %c0_8] : memref<8x4x4xf32, #tpu.memory_space<vmem>>, vector<1x4x4xf32>
    %13 = vector.shape_cast %12 : vector<1x4x4xf32> to vector<4x4xf32>
    %cst_9 = arith.constant dense<0.000000e+00> : vector<16x4xf32>
    %14 = tpu.matmul %11, %13, %cst_9 {dimension_numbers = #tpu.dot_dimension_numbers<[1], [0], [0], [1], [0, 0, 1, 1], [], []>} : vector<16x4xf32>, vector<4x4xf32>, vector<16x4xf32> -> vector<16x4xf32>
    %15 = arith.addf %9, %14 : vector<16x4xf32>
    %16 = vector.extract_strided_slice %3 {offsets = [1, 1, 0], sizes = [4, 4, 4], strides = [1, 1, 1]} : vector<6x6x4xf32> to vector<4x4x4xf32>
    %17 = vector.shape_cast %16 : vector<4x4x4xf32> to vector<16x4xf32>
    %c2 = arith.constant 2 : index
    %c0_10 = arith.constant 0 : index
    %c0_11 = arith.constant 0 : index
    %18 = vector.load %arg4[%c2, %c0_10, %c0_11] : memref<8x4x4xf32, #tpu.memory_space<vmem>>, vector<1x4x4xf32>
    %19 = vector.shape_cast %18 : vector<1x4x4xf32> to vector<4x4xf32>
    %cst_12 = arith.constant dense<0.000000e+00> : vector<16x4xf32>
    %20 = tpu.matmul %17, %19, %cst_12 {dimension_numbers = #tpu.dot_dimension_numbers<[1], [0], [0], [1], [0, 0, 1, 1], [], []>} : vector<16x4xf32>, vector<4x4xf32>, vector<16x4xf32> -> vector<16x4xf32>
    %21 = arith.addf %15, %20 : vector<16x4xf32>
    %22 = vector.extract_strided_slice %3 {offsets = [1, 2, 0], sizes = [4, 4, 4], strides = [1, 1, 1]} : vector<6x6x4xf32> to vector<4x4x4xf32>
    %23 = vector.shape_cast %22 : vector<4x4x4xf32> to vector<16x4xf32>
    %c3 = arith.constant 3 : index
    %c0_13 = arith.constant 0 : index
    %c0_14 = arith.constant 0 : index
    %24 = vector.load %arg4[%c3, %c0_13, %c0_14] : memref<8x4x4xf32, #tpu.memory_space<vmem>>, vector<1x4x4xf32>
    %25 = vector.shape_cast %24 : vector<1x4x4xf32> to vector<4x4xf32>
    %cst_15 = arith.constant dense<0.000000e+00> : vector<16x4xf32>
    %26 = tpu.matmul %23, %25, %cst_15 {dimension_numbers = #tpu.dot_dimension_numbers<[1], [0], [0], [1], [0, 0, 1, 1], [], []>} : vector<16x4xf32>, vector<4x4xf32>, vector<16x4xf32> -> vector<16x4xf32>
    %27 = arith.addf %21, %26 : vector<16x4xf32>
    %c0_16 = arith.constant 0 : index
    %c0_17 = arith.constant 0 : index
    %c0_18 = arith.constant 0 : index
    %c0_19 = arith.constant 0 : index
    %28 = vector.load %arg3[%c0_16, %c0_17, %c0_18, %c0_19] : memref<1x6x6x4xbf16, #tpu.memory_space<vmem>>, vector<1x6x6x4xbf16>
    %29 = vector.shape_cast %28 : vector<1x6x6x4xbf16> to vector<6x6x4xbf16>
    %30 = arith.extf %29 : vector<6x6x4xbf16> to vector<6x6x4xf32>
    %31 = vector.extract_strided_slice %30 {offsets = [0, 1, 0], sizes = [4, 4, 4], strides = [1, 1, 1]} : vector<6x6x4xf32> to vector<4x4x4xf32>
    %32 = vector.shape_cast %31 : vector<4x4x4xf32> to vector<16x4xf32>
    %c4 = arith.constant 4 : index
    %c0_20 = arith.constant 0 : index
    %c0_21 = arith.constant 0 : index
    %33 = vector.load %arg4[%c4, %c0_20, %c0_21] : memref<8x4x4xf32, #tpu.memory_space<vmem>>, vector<1x4x4xf32>
    %34 = vector.shape_cast %33 : vector<1x4x4xf32> to vector<4x4xf32>
    %cst_22 = arith.constant dense<0.000000e+00> : vector<16x4xf32>
    %35 = tpu.matmul %32, %34, %cst_22 {dimension_numbers = #tpu.dot_dimension_numbers<[1], [0], [0], [1], [0, 0, 1, 1], [], []>} : vector<16x4xf32>, vector<4x4xf32>, vector<16x4xf32> -> vector<16x4xf32>
    %36 = arith.addf %27, %35 : vector<16x4xf32>
    %37 = vector.extract_strided_slice %30 {offsets = [0, 2, 0], sizes = [4, 4, 4], strides = [1, 1, 1]} : vector<6x6x4xf32> to vector<4x4x4xf32>
    %38 = vector.shape_cast %37 : vector<4x4x4xf32> to vector<16x4xf32>
    %c5 = arith.constant 5 : index
    %c0_23 = arith.constant 0 : index
    %c0_24 = arith.constant 0 : index
    %39 = vector.load %arg4[%c5, %c0_23, %c0_24] : memref<8x4x4xf32, #tpu.memory_space<vmem>>, vector<1x4x4xf32>
    %40 = vector.shape_cast %39 : vector<1x4x4xf32> to vector<4x4xf32>
    %cst_25 = arith.constant dense<0.000000e+00> : vector<16x4xf32>
    %41 = tpu.matmul %38, %40, %cst_25 {dimension_numbers = #tpu.dot_dimension_numbers<[1], [0], [0], [1], [0, 0, 1, 1], [], []>} : vector<16x4xf32>, vector<4x4xf32>, vector<16x4xf32> -> vector<16x4xf32>
    %42 = arith.addf %36, %41 : vector<16x4xf32>
    %43 = vector.extract_strided_slice %30 {offsets = [1, 1, 0], sizes = [4, 4, 4], strides = [1, 1, 1]} : vector<6x6x4xf32> to vector<4x4x4xf32>
    %44 = vector.shape_cast %43 : vector<4x4x4xf32> to vector<16x4xf32>
    %c6 = arith.constant 6 : index
    %c0_26 = arith.constant 0 : index
    %c0_27 = arith.constant 0 : index
    %45 = vector.load %arg4[%c6, %c0_26, %c0_27] : memref<8x4x4xf32, #tpu.memory_space<vmem>>, vector<1x4x4xf32>
    %46 = vector.shape_cast %45 : vector<1x4x4xf32> to vector<4x4xf32>
    %cst_28 = arith.constant dense<0.000000e+00> : vector<16x4xf32>
    %47 = tpu.matmul %44, %46, %cst_28 {dimension_numbers = #tpu.dot_dimension_numbers<[1], [0], [0], [1], [0, 0, 1, 1], [], []>} : vector<16x4xf32>, vector<4x4xf32>, vector<16x4xf32> -> vector<16x4xf32>
    %48 = arith.addf %42, %47 : vector<16x4xf32>
    %49 = vector.extract_strided_slice %30 {offsets = [1, 2, 0], sizes = [4, 4, 4], strides = [1, 1, 1]} : vector<6x6x4xf32> to vector<4x4x4xf32>
    %50 = vector.shape_cast %49 : vector<4x4x4xf32> to vector<16x4xf32>
    %c7 = arith.constant 7 : index
    %c0_29 = arith.constant 0 : index
    %c0_30 = arith.constant 0 : index
    %51 = vector.load %arg4[%c7, %c0_29, %c0_30] : memref<8x4x4xf32, #tpu.memory_space<vmem>>, vector<1x4x4xf32>
    %52 = vector.shape_cast %51 : vector<1x4x4xf32> to vector<4x4xf32>
    %cst_31 = arith.constant dense<0.000000e+00> : vector<16x4xf32>
    %53 = tpu.matmul %50, %52, %cst_31 {dimension_numbers = #tpu.dot_dimension_numbers<[1], [0], [0], [1], [0, 0, 1, 1], [], []>} : vector<16x4xf32>, vector<4x4xf32>, vector<16x4xf32> -> vector<16x4xf32>
    %54 = arith.addf %48, %53 : vector<16x4xf32>
    %c0_32 = arith.constant 0 : index
    %c0_33 = arith.constant 0 : index
    %55 = vector.load %arg5[%c0_32, %c0_33] : memref<1x4xf32, #tpu.memory_space<vmem>>, vector<1x4xf32>
    %56 = vector.broadcast %55 : vector<1x4xf32> to vector<16x4xf32>
    %57 = arith.addf %54, %56 : vector<16x4xf32>
    %58 = arith.truncf %57 : vector<16x4xf32> to vector<16x4xbf16>
    %c0_34 = arith.constant 0 : index
    %c0_35 = arith.constant 0 : index
    %c0_36 = arith.constant 0 : index
    %59 = vector.load %arg6[%c0_34, %c0_35, %c0_36] : memref<1x16x4xbf16, #tpu.memory_space<vmem>>, vector<1x16x4xbf16>
    %60 = vector.shape_cast %59 : vector<1x16x4xbf16> to vector<16x4xbf16>
    %61 = vector.shape_cast %58 : vector<16x4xbf16> to vector<1x16x4xbf16>
    tpu.vector_store %arg6[%c0_34, %c0_35, %c0_36], %61 {strides = array<i32>} : memref<1x16x4xbf16, #tpu.memory_space<vmem>>, vector<1x16x4xbf16>,
    %cst_37 = arith.constant dense<0.000000e+00> : vector<4xf32>
    %62 = vector.multi_reduction <add>, %57, %cst_37 [0] : vector<16x4xf32> to vector<4xf32>
    %63 = vector.shape_cast %62 : vector<4xf32> to vector<1x4xf32>
    %c0_38 = arith.constant 0 : index
    %c0_39 = arith.constant 0 : index
    %c0_40 = arith.constant 0 : index
    %64 = vector.load %arg7[%c0_38, %c0_39, %c0_40] : memref<1x2x4xf32, #tpu.memory_space<vmem>>, vector<1x1x4xf32>
    %65 = vector.shape_cast %64 : vector<1x1x4xf32> to vector<1x4xf32>
    %66 = vector.shape_cast %63 : vector<1x4xf32> to vector<1x1x4xf32>
    tpu.vector_store %arg7[%c0_38, %c0_39, %c0_40], %66 {strides = array<i32>} : memref<1x2x4xf32, #tpu.memory_space<vmem>>, vector<1x1x4xf32>,
    %67 = arith.mulf %57, %57 : vector<16x4xf32>
    %cst_41 = arith.constant dense<0.000000e+00> : vector<4xf32>
    %68 = vector.multi_reduction <add>, %67, %cst_41 [0] : vector<16x4xf32> to vector<4xf32>
    %69 = vector.shape_cast %68 : vector<4xf32> to vector<1x4xf32>
    %c0_42 = arith.constant 0 : index
    %c1_43 = arith.constant 1 : index
    %c0_44 = arith.constant 0 : index
    %70 = vector.load %arg7[%c0_42, %c1_43, %c0_44] : memref<1x2x4xf32, #tpu.memory_space<vmem>>, vector<1x1x4xf32>
    %71 = vector.shape_cast %70 : vector<1x1x4xf32> to vector<1x4xf32>
    %72 = vector.shape_cast %69 : vector<1x4xf32> to vector<1x1x4xf32>
    tpu.vector_store %arg7[%c0_42, %c1_43, %c0_44], %72 {strides = array<i32>} : memref<1x2x4xf32, #tpu.memory_space<vmem>>, vector<1x1x4xf32>,
    return
  }
  func.func @transform_0(%arg0: i32, %arg1: i32) -> (i32, i32, i32, i32) {
    %c6_i32 = arith.constant 6 : i32
    %0 = arith.muli %arg0, %c6_i32 : i32
    %1 = arith.addi %0, %arg1 : i32
    %c1_i32 = arith.constant 1 : i32
    %2 = arith.addi %1, %c1_i32 : i32
    %c0_i32 = arith.constant 0 : i32
    %3 = arith.addi %2, %c0_i32 : i32
    %c0_i32_0 = arith.constant 0 : i32
    %c0_i32_1 = arith.constant 0 : i32
    %c0_i32_2 = arith.constant 0 : i32
    %c0_i32_3 = arith.constant 0 : i32
    return %3, %c0_i32_0, %c0_i32_1, %c0_i32_2 : i32, i32, i32, i32
  }
  func.func @transform_1(%arg0: i32, %arg1: i32) -> (i32, i32, i32, i32) {
    %c6_i32 = arith.constant 6 : i32
    %0 = arith.muli %arg0, %c6_i32 : i32
    %1 = arith.addi %0, %arg1 : i32
    %c1_i32 = arith.constant 1 : i32
    %2 = arith.addi %1, %c1_i32 : i32
    %c1_i32_0 = arith.constant 1 : i32
    %3 = arith.addi %2, %c1_i32_0 : i32
    %c0_i32 = arith.constant 0 : i32
    %c0_i32_1 = arith.constant 0 : i32
    %c0_i32_2 = arith.constant 0 : i32
    %c0_i32_3 = arith.constant 0 : i32
    return %3, %c0_i32, %c0_i32_1, %c0_i32_2 : i32, i32, i32, i32
  }
  func.func @transform_2(%arg0: i32, %arg1: i32) -> (i32, i32, i32) {
    %c0_i32 = arith.constant 0 : i32
    %c0_i32_0 = arith.constant 0 : i32
    %c0_i32_1 = arith.constant 0 : i32
    %c0_i32_2 = arith.constant 0 : i32
    return %c0_i32, %c0_i32_0, %c0_i32_1 : i32, i32, i32
  }
  func.func @transform_3(%arg0: i32, %arg1: i32) -> (i32, i32) {
    %c0_i32 = arith.constant 0 : i32
    %c0_i32_0 = arith.constant 0 : i32
    %c0_i32_1 = arith.constant 0 : i32
    return %c0_i32, %c0_i32_0 : i32, i32
  }
  func.func @transform_4(%arg0: i32, %arg1: i32) -> (i32, i32, i32) {
    %c4_i32 = arith.constant 4 : i32
    %0 = arith.muli %arg0, %c4_i32 : i32
    %1 = arith.addi %0, %arg1 : i32
    %c0_i32 = arith.constant 0 : i32
    %c0_i32_0 = arith.constant 0 : i32
    %c0_i32_1 = arith.constant 0 : i32
    return %1, %c0_i32, %c0_i32_0 : i32, i32, i32
  }
  func.func @transform_5(%arg0: i32, %arg1: i32) -> (i32, i32, i32) {
    %c4_i32 = arith.constant 4 : i32
    %0 = arith.muli %arg0, %c4_i32 : i32
    %1 = arith.addi %0, %arg1 : i32
    %c0_i32 = arith.constant 0 : i32
    %c0_i32_0 = arith.constant 0 : i32
    %c0_i32_1 = arith.constant 0 : i32
    return %1, %c0_i32, %c0_i32_0 : i32, i32, i32
  }
}

module attributes {stable_mosaic.version = 11 : i64} {
  func.func @kernel(%arg0: i32, %arg1: i32, %arg2: memref<1x6x6x4xbf16, #tpu.memory_space<vmem>>, %arg3: memref<1x6x6x4xbf16, #tpu.memory_space<vmem>>, %arg4: memref<8x4x4xf32, #tpu.memory_space<vmem>>, %arg5: memref<1x4xf32, #tpu.memory_space<vmem>>, %arg6: memref<1x16x4xbf16, #tpu.memory_space<vmem>>, %arg7: memref<1x2x4xf32, #tpu.memory_space<vmem>>) attributes {dimension_semantics = [#tpu.dimension_semantics<parallel>, #tpu.dimension_semantics<parallel>], iteration_bounds = array<i64: 2, 4>, scalar_prefetch = 0 : i64, scratch_operands = 0 : i64, tpu.core_type = #tpu.core_type<tc>, window_params = [{transform_indices = @transform_0, window_bounds = array<i64: 1, 6, 6, 4>}, {transform_indices = @transform_1, window_bounds = array<i64: 1, 6, 6, 4>}, {pipeline_mode = #tpu.pipeline_mode<synchronous>, transform_indices = @transform_2, window_bounds = array<i64: 8, 4, 4>}, {pipeline_mode = #tpu.pipeline_mode<synchronous>, transform_indices = @transform_3, window_bounds = array<i64: 1, 4>}, {transform_indices = @transform_4, window_bounds = array<i64: 1, 16, 4>}, {transform_indices = @transform_5, window_bounds = array<i64: 1, 2, 4>}]} {
    %cst = arith.constant 0.000000e+00 : f32
    %0 = vector.broadcast %cst : f32 to vector<16x4xf32>
    %c0 = arith.constant 0 : index
    %c0_0 = arith.constant 0 : index
    %c0_1 = arith.constant 0 : index
    %c0_2 = arith.constant 0 : index
    %1 = vector.load %arg2[%c0, %c0_0, %c0_1, %c0_2] : memref<1x6x6x4xbf16, #tpu.memory_space<vmem>>, vector<1x6x6x4xbf16>
    %2 = vector.shape_cast %1 : vector<1x6x6x4xbf16> to vector<6x6x4xbf16>
    %3 = arith.extf %2 : vector<6x6x4xbf16> to vector<6x6x4xf32>
    %4 = vector.extract_strided_slice %3 {offsets = [1, 0, 0], sizes = [4, 4, 4], strides = [1, 1, 1]} : vector<6x6x4xf32> to vector<4x4x4xf32>
    %5 = vector.shape_cast %4 : vector<4x4x4xf32> to vector<16x4xf32>
    %c0_3 = arith.constant 0 : index
    %c0_4 = arith.constant 0 : index
    %c0_5 = arith.constant 0 : index
    %6 = vector.load %arg4[%c0_3, %c0_4, %c0_5] : memref<8x4x4xf32, #tpu.memory_space<vmem>>, vector<1x4x4xf32>
    %7 = vector.shape_cast %6 : vector<1x4x4xf32> to vector<4x4xf32>
    %cst_6 = arith.constant dense<0.000000e+00> : vector<16x4xf32>
    %8 = tpu.matmul %5, %7, %cst_6 {dimension_numbers = #tpu.dot_dimension_numbers<[1], [0], [0], [1], [0, 0, 1, 1], [], []>} : vector<16x4xf32>, vector<4x4xf32>, vector<16x4xf32> -> vector<16x4xf32>
    %9 = arith.addf %0, %8 : vector<16x4xf32>
    %10 = vector.extract_strided_slice %3 {offsets = [1, 1, 0], sizes = [4, 4, 4], strides = [1, 1, 1]} : vector<6x6x4xf32> to vector<4x4x4xf32>
    %11 = vector.shape_cast %10 : vector<4x4x4xf32> to vector<16x4xf32>
    %c1 = arith.constant 1 : index
    %c0_7 = arith.constant 0 : index
    %c0_8 = arith.constant 0 : index
    %12 = vector.load %arg4[%c1, %c0_7, %c0_8] : memref<8x4x4xf32, #tpu.memory_space<vmem>>, vector<1x4x4xf32>
    %13 = vector.shape_cast %12 : vector<1x4x4xf32> to vector<4x4xf32>
    %cst_9 = arith.constant dense<0.000000e+00> : vector<16x4xf32>
    %14 = tpu.matmul %11, %13, %cst_9 {dimension_numbers = #tpu.dot_dimension_numbers<[1], [0], [0], [1], [0, 0, 1, 1], [], []>} : vector<16x4xf32>, vector<4x4xf32>, vector<16x4xf32> -> vector<16x4xf32>
    %15 = arith.addf %9, %14 : vector<16x4xf32>
    %16 = vector.extract_strided_slice %3 {offsets = [2, 0, 0], sizes = [4, 4, 4], strides = [1, 1, 1]} : vector<6x6x4xf32> to vector<4x4x4xf32>
    %17 = vector.shape_cast %16 : vector<4x4x4xf32> to vector<16x4xf32>
    %c2 = arith.constant 2 : index
    %c0_10 = arith.constant 0 : index
    %c0_11 = arith.constant 0 : index
    %18 = vector.load %arg4[%c2, %c0_10, %c0_11] : memref<8x4x4xf32, #tpu.memory_space<vmem>>, vector<1x4x4xf32>
    %19 = vector.shape_cast %18 : vector<1x4x4xf32> to vector<4x4xf32>
    %cst_12 = arith.constant dense<0.000000e+00> : vector<16x4xf32>
    %20 = tpu.matmul %17, %19, %cst_12 {dimension_numbers = #tpu.dot_dimension_numbers<[1], [0], [0], [1], [0, 0, 1, 1], [], []>} : vector<16x4xf32>, vector<4x4xf32>, vector<16x4xf32> -> vector<16x4xf32>
    %21 = arith.addf %15, %20 : vector<16x4xf32>
    %22 = vector.extract_strided_slice %3 {offsets = [2, 1, 0], sizes = [4, 4, 4], strides = [1, 1, 1]} : vector<6x6x4xf32> to vector<4x4x4xf32>
    %23 = vector.shape_cast %22 : vector<4x4x4xf32> to vector<16x4xf32>
    %c3 = arith.constant 3 : index
    %c0_13 = arith.constant 0 : index
    %c0_14 = arith.constant 0 : index
    %24 = vector.load %arg4[%c3, %c0_13, %c0_14] : memref<8x4x4xf32, #tpu.memory_space<vmem>>, vector<1x4x4xf32>
    %25 = vector.shape_cast %24 : vector<1x4x4xf32> to vector<4x4xf32>
    %cst_15 = arith.constant dense<0.000000e+00> : vector<16x4xf32>
    %26 = tpu.matmul %23, %25, %cst_15 {dimension_numbers = #tpu.dot_dimension_numbers<[1], [0], [0], [1], [0, 0, 1, 1], [], []>} : vector<16x4xf32>, vector<4x4xf32>, vector<16x4xf32> -> vector<16x4xf32>
    %27 = arith.addf %21, %26 : vector<16x4xf32>
    %c0_16 = arith.constant 0 : index
    %c0_17 = arith.constant 0 : index
    %c0_18 = arith.constant 0 : index
    %c0_19 = arith.constant 0 : index
    %28 = vector.load %arg3[%c0_16, %c0_17, %c0_18, %c0_19] : memref<1x6x6x4xbf16, #tpu.memory_space<vmem>>, vector<1x6x6x4xbf16>
    %29 = vector.shape_cast %28 : vector<1x6x6x4xbf16> to vector<6x6x4xbf16>
    %30 = arith.extf %29 : vector<6x6x4xbf16> to vector<6x6x4xf32>
    %31 = vector.extract_strided_slice %30 {offsets = [1, 0, 0], sizes = [4, 4, 4], strides = [1, 1, 1]} : vector<6x6x4xf32> to vector<4x4x4xf32>
    %32 = vector.shape_cast %31 : vector<4x4x4xf32> to vector<16x4xf32>
    %c4 = arith.constant 4 : index
    %c0_20 = arith.constant 0 : index
    %c0_21 = arith.constant 0 : index
    %33 = vector.load %arg4[%c4, %c0_20, %c0_21] : memref<8x4x4xf32, #tpu.memory_space<vmem>>, vector<1x4x4xf32>
    %34 = vector.shape_cast %33 : vector<1x4x4xf32> to vector<4x4xf32>
    %cst_22 = arith.constant dense<0.000000e+00> : vector<16x4xf32>
    %35 = tpu.matmul %32, %34, %cst_22 {dimension_numbers = #tpu.dot_dimension_numbers<[1], [0], [0], [1], [0, 0, 1, 1], [], []>} : vector<16x4xf32>, vector<4x4xf32>, vector<16x4xf32> -> vector<16x4xf32>
    %36 = arith.addf %27, %35 : vector<16x4xf32>
    %37 = vector.extract_strided_slice %30 {offsets = [1, 1, 0], sizes = [4, 4, 4], strides = [1, 1, 1]} : vector<6x6x4xf32> to vector<4x4x4xf32>
    %38 = vector.shape_cast %37 : vector<4x4x4xf32> to vector<16x4xf32>
    %c5 = arith.constant 5 : index
    %c0_23 = arith.constant 0 : index
    %c0_24 = arith.constant 0 : index
    %39 = vector.load %arg4[%c5, %c0_23, %c0_24] : memref<8x4x4xf32, #tpu.memory_space<vmem>>, vector<1x4x4xf32>
    %40 = vector.shape_cast %39 : vector<1x4x4xf32> to vector<4x4xf32>
    %cst_25 = arith.constant dense<0.000000e+00> : vector<16x4xf32>
    %41 = tpu.matmul %38, %40, %cst_25 {dimension_numbers = #tpu.dot_dimension_numbers<[1], [0], [0], [1], [0, 0, 1, 1], [], []>} : vector<16x4xf32>, vector<4x4xf32>, vector<16x4xf32> -> vector<16x4xf32>
    %42 = arith.addf %36, %41 : vector<16x4xf32>
    %43 = vector.extract_strided_slice %30 {offsets = [2, 0, 0], sizes = [4, 4, 4], strides = [1, 1, 1]} : vector<6x6x4xf32> to vector<4x4x4xf32>
    %44 = vector.shape_cast %43 : vector<4x4x4xf32> to vector<16x4xf32>
    %c6 = arith.constant 6 : index
    %c0_26 = arith.constant 0 : index
    %c0_27 = arith.constant 0 : index
    %45 = vector.load %arg4[%c6, %c0_26, %c0_27] : memref<8x4x4xf32, #tpu.memory_space<vmem>>, vector<1x4x4xf32>
    %46 = vector.shape_cast %45 : vector<1x4x4xf32> to vector<4x4xf32>
    %cst_28 = arith.constant dense<0.000000e+00> : vector<16x4xf32>
    %47 = tpu.matmul %44, %46, %cst_28 {dimension_numbers = #tpu.dot_dimension_numbers<[1], [0], [0], [1], [0, 0, 1, 1], [], []>} : vector<16x4xf32>, vector<4x4xf32>, vector<16x4xf32> -> vector<16x4xf32>
    %48 = arith.addf %42, %47 : vector<16x4xf32>
    %49 = vector.extract_strided_slice %30 {offsets = [2, 1, 0], sizes = [4, 4, 4], strides = [1, 1, 1]} : vector<6x6x4xf32> to vector<4x4x4xf32>
    %50 = vector.shape_cast %49 : vector<4x4x4xf32> to vector<16x4xf32>
    %c7 = arith.constant 7 : index
    %c0_29 = arith.constant 0 : index
    %c0_30 = arith.constant 0 : index
    %51 = vector.load %arg4[%c7, %c0_29, %c0_30] : memref<8x4x4xf32, #tpu.memory_space<vmem>>, vector<1x4x4xf32>
    %52 = vector.shape_cast %51 : vector<1x4x4xf32> to vector<4x4xf32>
    %cst_31 = arith.constant dense<0.000000e+00> : vector<16x4xf32>
    %53 = tpu.matmul %50, %52, %cst_31 {dimension_numbers = #tpu.dot_dimension_numbers<[1], [0], [0], [1], [0, 0, 1, 1], [], []>} : vector<16x4xf32>, vector<4x4xf32>, vector<16x4xf32> -> vector<16x4xf32>
    %54 = arith.addf %48, %53 : vector<16x4xf32>
    %c0_32 = arith.constant 0 : index
    %c0_33 = arith.constant 0 : index
    %55 = vector.load %arg5[%c0_32, %c0_33] : memref<1x4xf32, #tpu.memory_space<vmem>>, vector<1x4xf32>
    %56 = vector.broadcast %55 : vector<1x4xf32> to vector<16x4xf32>
    %57 = arith.addf %54, %56 : vector<16x4xf32>
    %58 = arith.truncf %57 : vector<16x4xf32> to vector<16x4xbf16>
    %c0_34 = arith.constant 0 : index
    %c0_35 = arith.constant 0 : index
    %c0_36 = arith.constant 0 : index
    %59 = vector.load %arg6[%c0_34, %c0_35, %c0_36] : memref<1x16x4xbf16, #tpu.memory_space<vmem>>, vector<1x16x4xbf16>
    %60 = vector.shape_cast %59 : vector<1x16x4xbf16> to vector<16x4xbf16>
    %61 = vector.shape_cast %58 : vector<16x4xbf16> to vector<1x16x4xbf16>
    tpu.vector_store %arg6[%c0_34, %c0_35, %c0_36], %61 {strides = array<i32>} : memref<1x16x4xbf16, #tpu.memory_space<vmem>>, vector<1x16x4xbf16>,
    %cst_37 = arith.constant dense<0.000000e+00> : vector<4xf32>
    %62 = vector.multi_reduction <add>, %57, %cst_37 [0] : vector<16x4xf32> to vector<4xf32>
    %63 = vector.shape_cast %62 : vector<4xf32> to vector<1x4xf32>
    %c0_38 = arith.constant 0 : index
    %c0_39 = arith.constant 0 : index
    %c0_40 = arith.constant 0 : index
    %64 = vector.load %arg7[%c0_38, %c0_39, %c0_40] : memref<1x2x4xf32, #tpu.memory_space<vmem>>, vector<1x1x4xf32>
    %65 = vector.shape_cast %64 : vector<1x1x4xf32> to vector<1x4xf32>
    %66 = vector.shape_cast %63 : vector<1x4xf32> to vector<1x1x4xf32>
    tpu.vector_store %arg7[%c0_38, %c0_39, %c0_40], %66 {strides = array<i32>} : memref<1x2x4xf32, #tpu.memory_space<vmem>>, vector<1x1x4xf32>,
    %67 = arith.mulf %57, %57 : vector<16x4xf32>
    %cst_41 = arith.constant dense<0.000000e+00> : vector<4xf32>
    %68 = vector.multi_reduction <add>, %67, %cst_41 [0] : vector<16x4xf32> to vector<4xf32>
    %69 = vector.shape_cast %68 : vector<4xf32> to vector<1x4xf32>
    %c0_42 = arith.constant 0 : index
    %c1_43 = arith.constant 1 : index
    %c0_44 = arith.constant 0 : index
    %70 = vector.load %arg7[%c0_42, %c1_43, %c0_44] : memref<1x2x4xf32, #tpu.memory_space<vmem>>, vector<1x1x4xf32>
    %71 = vector.shape_cast %70 : vector<1x1x4xf32> to vector<1x4xf32>
    %72 = vector.shape_cast %69 : vector<1x4xf32> to vector<1x1x4xf32>
    tpu.vector_store %arg7[%c0_42, %c1_43, %c0_44], %72 {strides = array<i32>} : memref<1x2x4xf32, #tpu.memory_space<vmem>>, vector<1x1x4xf32>,
    return
  }
  func.func @transform_0(%arg0: i32, %arg1: i32) -> (i32, i32, i32, i32) {
    %c6_i32 = arith.constant 6 : i32
    %0 = arith.muli %arg0, %c6_i32 : i32
    %1 = arith.addi %0, %arg1 : i32
    %c1_i32 = arith.constant 1 : i32
    %2 = arith.addi %1, %c1_i32 : i32
    %c0_i32 = arith.constant 0 : i32
    %3 = arith.addi %2, %c0_i32 : i32
    %c0_i32_0 = arith.constant 0 : i32
    %c0_i32_1 = arith.constant 0 : i32
    %c0_i32_2 = arith.constant 0 : i32
    %c0_i32_3 = arith.constant 0 : i32
    return %3, %c0_i32_0, %c0_i32_1, %c0_i32_2 : i32, i32, i32, i32
  }
  func.func @transform_1(%arg0: i32, %arg1: i32) -> (i32, i32, i32, i32) {
    %c6_i32 = arith.constant 6 : i32
    %0 = arith.muli %arg0, %c6_i32 : i32
    %1 = arith.addi %0, %arg1 : i32
    %c1_i32 = arith.constant 1 : i32
    %2 = arith.addi %1, %c1_i32 : i32
    %c1_i32_0 = arith.constant 1 : i32
    %3 = arith.addi %2, %c1_i32_0 : i32
    %c0_i32 = arith.constant 0 : i32
    %c0_i32_1 = arith.constant 0 : i32
    %c0_i32_2 = arith.constant 0 : i32
    %c0_i32_3 = arith.constant 0 : i32
    return %3, %c0_i32, %c0_i32_1, %c0_i32_2 : i32, i32, i32, i32
  }
  func.func @transform_2(%arg0: i32, %arg1: i32) -> (i32, i32, i32) {
    %c0_i32 = arith.constant 0 : i32
    %c0_i32_0 = arith.constant 0 : i32
    %c0_i32_1 = arith.constant 0 : i32
    %c0_i32_2 = arith.constant 0 : i32
    return %c0_i32, %c0_i32_0, %c0_i32_1 : i32, i32, i32
  }
  func.func @transform_3(%arg0: i32, %arg1: i32) -> (i32, i32) {
    %c0_i32 = arith.constant 0 : i32
    %c0_i32_0 = arith.constant 0 : i32
    %c0_i32_1 = arith.constant 0 : i32
    return %c0_i32, %c0_i32_0 : i32, i32
  }
  func.func @transform_4(%arg0: i32, %arg1: i32) -> (i32, i32, i32) {
    %c4_i32 = arith.constant 4 : i32
    %0 = arith.muli %arg0, %c4_i32 : i32
    %1 = arith.addi %0, %arg1 : i32
    %c0_i32 = arith.constant 0 : i32
    %c0_i32_0 = arith.constant 0 : i32
    %c0_i32_1 = arith.constant 0 : i32
    return %1, %c0_i32, %c0_i32_0 : i32, i32, i32
  }
  func.func @transform_5(%arg0: i32, %arg1: i32) -> (i32, i32, i32) {
    %c4_i32 = arith.constant 4 : i32
    %0 = arith.muli %arg0, %c4_i32 : i32
    %1 = arith.addi %0, %arg1 : i32
    %c0_i32 = arith.constant 0 : i32
    %c0_i32_0 = arith.constant 0 : i32
    %c0_i32_1 = arith.constant 0 : i32
    return %1, %c0_i32, %c0_i32_0 : i32, i32, i32
  }
}

module attributes {stable_mosaic.version = 11 : i64} {
  func.func @kernel(%arg0: i32, %arg1: i32, %arg2: memref<1x6x6x4xbf16, #tpu.memory_space<vmem>>, %arg3: memref<1x6x6x4xbf16, #tpu.memory_space<vmem>>, %arg4: memref<8x4x4xf32, #tpu.memory_space<vmem>>, %arg5: memref<1x4xf32, #tpu.memory_space<vmem>>, %arg6: memref<1x16x4xbf16, #tpu.memory_space<vmem>>, %arg7: memref<1x2x4xf32, #tpu.memory_space<vmem>>) attributes {dimension_semantics = [#tpu.dimension_semantics<parallel>, #tpu.dimension_semantics<parallel>], iteration_bounds = array<i64: 2, 4>, scalar_prefetch = 0 : i64, scratch_operands = 0 : i64, tpu.core_type = #tpu.core_type<tc>, window_params = [{transform_indices = @transform_0, window_bounds = array<i64: 1, 6, 6, 4>}, {transform_indices = @transform_1, window_bounds = array<i64: 1, 6, 6, 4>}, {pipeline_mode = #tpu.pipeline_mode<synchronous>, transform_indices = @transform_2, window_bounds = array<i64: 8, 4, 4>}, {pipeline_mode = #tpu.pipeline_mode<synchronous>, transform_indices = @transform_3, window_bounds = array<i64: 1, 4>}, {transform_indices = @transform_4, window_bounds = array<i64: 1, 16, 4>}, {transform_indices = @transform_5, window_bounds = array<i64: 1, 2, 4>}]} {
    %cst = arith.constant 0.000000e+00 : f32
    %0 = vector.broadcast %cst : f32 to vector<16x4xf32>
    %c0 = arith.constant 0 : index
    %c0_0 = arith.constant 0 : index
    %c0_1 = arith.constant 0 : index
    %c0_2 = arith.constant 0 : index
    %1 = vector.load %arg2[%c0, %c0_0, %c0_1, %c0_2] : memref<1x6x6x4xbf16, #tpu.memory_space<vmem>>, vector<1x6x6x4xbf16>
    %2 = vector.shape_cast %1 : vector<1x6x6x4xbf16> to vector<6x6x4xbf16>
    %3 = arith.extf %2 : vector<6x6x4xbf16> to vector<6x6x4xf32>
    %4 = vector.extract_strided_slice %3 {offsets = [1, 1, 0], sizes = [4, 4, 4], strides = [1, 1, 1]} : vector<6x6x4xf32> to vector<4x4x4xf32>
    %5 = vector.shape_cast %4 : vector<4x4x4xf32> to vector<16x4xf32>
    %c0_3 = arith.constant 0 : index
    %c0_4 = arith.constant 0 : index
    %c0_5 = arith.constant 0 : index
    %6 = vector.load %arg4[%c0_3, %c0_4, %c0_5] : memref<8x4x4xf32, #tpu.memory_space<vmem>>, vector<1x4x4xf32>
    %7 = vector.shape_cast %6 : vector<1x4x4xf32> to vector<4x4xf32>
    %cst_6 = arith.constant dense<0.000000e+00> : vector<16x4xf32>
    %8 = tpu.matmul %5, %7, %cst_6 {dimension_numbers = #tpu.dot_dimension_numbers<[1], [0], [0], [1], [0, 0, 1, 1], [], []>} : vector<16x4xf32>, vector<4x4xf32>, vector<16x4xf32> -> vector<16x4xf32>
    %9 = arith.addf %0, %8 : vector<16x4xf32>
    %10 = vector.extract_strided_slice %3 {offsets = [1, 2, 0], sizes = [4, 4, 4], strides = [1, 1, 1]} : vector<6x6x4xf32> to vector<4x4x4xf32>
    %11 = vector.shape_cast %10 : vector<4x4x4xf32> to vector<16x4xf32>
    %c1 = arith.constant 1 : index
    %c0_7 = arith.constant 0 : index
    %c0_8 = arith.constant 0 : index
    %12 = vector.load %arg4[%c1, %c0_7, %c0_8] : memref<8x4x4xf32, #tpu.memory_space<vmem>>, vector<1x4x4xf32>
    %13 = vector.shape_cast %12 : vector<1x4x4xf32> to vector<4x4xf32>
    %cst_9 = arith.constant dense<0.000000e+00> : vector<16x4xf32>
    %14 = tpu.matmul %11, %13, %cst_9 {dimension_numbers = #tpu.dot_dimension_numbers<[1], [0], [0], [1], [0, 0, 1, 1], [], []>} : vector<16x4xf32>, vector<4x4xf32>, vector<16x4xf32> -> vector<16x4xf32>
    %15 = arith.addf %9, %14 : vector<16x4xf32>
    %16 = vector.extract_strided_slice %3 {offsets = [2, 1, 0], sizes = [4, 4, 4], strides = [1, 1, 1]} : vector<6x6x4xf32> to vector<4x4x4xf32>
    %17 = vector.shape_cast %16 : vector<4x4x4xf32> to vector<16x4xf32>
    %c2 = arith.constant 2 : index
    %c0_10 = arith.constant 0 : index
    %c0_11 = arith.constant 0 : index
    %18 = vector.load %arg4[%c2, %c0_10, %c0_11] : memref<8x4x4xf32, #tpu.memory_space<vmem>>, vector<1x4x4xf32>
    %19 = vector.shape_cast %18 : vector<1x4x4xf32> to vector<4x4xf32>
    %cst_12 = arith.constant dense<0.000000e+00> : vector<16x4xf32>
    %20 = tpu.matmul %17, %19, %cst_12 {dimension_numbers = #tpu.dot_dimension_numbers<[1], [0], [0], [1], [0, 0, 1, 1], [], []>} : vector<16x4xf32>, vector<4x4xf32>, vector<16x4xf32> -> vector<16x4xf32>
    %21 = arith.addf %15, %20 : vector<16x4xf32>
    %22 = vector.extract_strided_slice %3 {offsets = [2, 2, 0], sizes = [4, 4, 4], strides = [1, 1, 1]} : vector<6x6x4xf32> to vector<4x4x4xf32>
    %23 = vector.shape_cast %22 : vector<4x4x4xf32> to vector<16x4xf32>
    %c3 = arith.constant 3 : index
    %c0_13 = arith.constant 0 : index
    %c0_14 = arith.constant 0 : index
    %24 = vector.load %arg4[%c3, %c0_13, %c0_14] : memref<8x4x4xf32, #tpu.memory_space<vmem>>, vector<1x4x4xf32>
    %25 = vector.shape_cast %24 : vector<1x4x4xf32> to vector<4x4xf32>
    %cst_15 = arith.constant dense<0.000000e+00> : vector<16x4xf32>
    %26 = tpu.matmul %23, %25, %cst_15 {dimension_numbers = #tpu.dot_dimension_numbers<[1], [0], [0], [1], [0, 0, 1, 1], [], []>} : vector<16x4xf32>, vector<4x4xf32>, vector<16x4xf32> -> vector<16x4xf32>
    %27 = arith.addf %21, %26 : vector<16x4xf32>
    %c0_16 = arith.constant 0 : index
    %c0_17 = arith.constant 0 : index
    %c0_18 = arith.constant 0 : index
    %c0_19 = arith.constant 0 : index
    %28 = vector.load %arg3[%c0_16, %c0_17, %c0_18, %c0_19] : memref<1x6x6x4xbf16, #tpu.memory_space<vmem>>, vector<1x6x6x4xbf16>
    %29 = vector.shape_cast %28 : vector<1x6x6x4xbf16> to vector<6x6x4xbf16>
    %30 = arith.extf %29 : vector<6x6x4xbf16> to vector<6x6x4xf32>
    %31 = vector.extract_strided_slice %30 {offsets = [1, 1, 0], sizes = [4, 4, 4], strides = [1, 1, 1]} : vector<6x6x4xf32> to vector<4x4x4xf32>
    %32 = vector.shape_cast %31 : vector<4x4x4xf32> to vector<16x4xf32>
    %c4 = arith.constant 4 : index
    %c0_20 = arith.constant 0 : index
    %c0_21 = arith.constant 0 : index
    %33 = vector.load %arg4[%c4, %c0_20, %c0_21] : memref<8x4x4xf32, #tpu.memory_space<vmem>>, vector<1x4x4xf32>
    %34 = vector.shape_cast %33 : vector<1x4x4xf32> to vector<4x4xf32>
    %cst_22 = arith.constant dense<0.000000e+00> : vector<16x4xf32>
    %35 = tpu.matmul %32, %34, %cst_22 {dimension_numbers = #tpu.dot_dimension_numbers<[1], [0], [0], [1], [0, 0, 1, 1], [], []>} : vector<16x4xf32>, vector<4x4xf32>, vector<16x4xf32> -> vector<16x4xf32>
    %36 = arith.addf %27, %35 : vector<16x4xf32>
    %37 = vector.extract_strided_slice %30 {offsets = [1, 2, 0], sizes = [4, 4, 4], strides = [1, 1, 1]} : vector<6x6x4xf32> to vector<4x4x4xf32>
    %38 = vector.shape_cast %37 : vector<4x4x4xf32> to vector<16x4xf32>
    %c5 = arith.constant 5 : index
    %c0_23 = arith.constant 0 : index
    %c0_24 = arith.constant 0 : index
    %39 = vector.load %arg4[%c5, %c0_23, %c0_24] : memref<8x4x4xf32, #tpu.memory_space<vmem>>, vector<1x4x4xf32>
    %40 = vector.shape_cast %39 : vector<1x4x4xf32> to vector<4x4xf32>
    %cst_25 = arith.constant dense<0.000000e+00> : vector<16x4xf32>
    %41 = tpu.matmul %38, %40, %cst_25 {dimension_numbers = #tpu.dot_dimension_numbers<[1], [0], [0], [1], [0, 0, 1, 1], [], []>} : vector<16x4xf32>, vector<4x4xf32>, vector<16x4xf32> -> vector<16x4xf32>
    %42 = arith.addf %36, %41 : vector<16x4xf32>
    %43 = vector.extract_strided_slice %30 {offsets = [2, 1, 0], sizes = [4, 4, 4], strides = [1, 1, 1]} : vector<6x6x4xf32> to vector<4x4x4xf32>
    %44 = vector.shape_cast %43 : vector<4x4x4xf32> to vector<16x4xf32>
    %c6 = arith.constant 6 : index
    %c0_26 = arith.constant 0 : index
    %c0_27 = arith.constant 0 : index
    %45 = vector.load %arg4[%c6, %c0_26, %c0_27] : memref<8x4x4xf32, #tpu.memory_space<vmem>>, vector<1x4x4xf32>
    %46 = vector.shape_cast %45 : vector<1x4x4xf32> to vector<4x4xf32>
    %cst_28 = arith.constant dense<0.000000e+00> : vector<16x4xf32>
    %47 = tpu.matmul %44, %46, %cst_28 {dimension_numbers = #tpu.dot_dimension_numbers<[1], [0], [0], [1], [0, 0, 1, 1], [], []>} : vector<16x4xf32>, vector<4x4xf32>, vector<16x4xf32> -> vector<16x4xf32>
    %48 = arith.addf %42, %47 : vector<16x4xf32>
    %49 = vector.extract_strided_slice %30 {offsets = [2, 2, 0], sizes = [4, 4, 4], strides = [1, 1, 1]} : vector<6x6x4xf32> to vector<4x4x4xf32>
    %50 = vector.shape_cast %49 : vector<4x4x4xf32> to vector<16x4xf32>
    %c7 = arith.constant 7 : index
    %c0_29 = arith.constant 0 : index
    %c0_30 = arith.constant 0 : index
    %51 = vector.load %arg4[%c7, %c0_29, %c0_30] : memref<8x4x4xf32, #tpu.memory_space<vmem>>, vector<1x4x4xf32>
    %52 = vector.shape_cast %51 : vector<1x4x4xf32> to vector<4x4xf32>
    %cst_31 = arith.constant dense<0.000000e+00> : vector<16x4xf32>
    %53 = tpu.matmul %50, %52, %cst_31 {dimension_numbers = #tpu.dot_dimension_numbers<[1], [0], [0], [1], [0, 0, 1, 1], [], []>} : vector<16x4xf32>, vector<4x4xf32>, vector<16x4xf32> -> vector<16x4xf32>
    %54 = arith.addf %48, %53 : vector<16x4xf32>
    %c0_32 = arith.constant 0 : index
    %c0_33 = arith.constant 0 : index
    %55 = vector.load %arg5[%c0_32, %c0_33] : memref<1x4xf32, #tpu.memory_space<vmem>>, vector<1x4xf32>
    %56 = vector.broadcast %55 : vector<1x4xf32> to vector<16x4xf32>
    %57 = arith.addf %54, %56 : vector<16x4xf32>
    %58 = arith.truncf %57 : vector<16x4xf32> to vector<16x4xbf16>
    %c0_34 = arith.constant 0 : index
    %c0_35 = arith.constant 0 : index
    %c0_36 = arith.constant 0 : index
    %59 = vector.load %arg6[%c0_34, %c0_35, %c0_36] : memref<1x16x4xbf16, #tpu.memory_space<vmem>>, vector<1x16x4xbf16>
    %60 = vector.shape_cast %59 : vector<1x16x4xbf16> to vector<16x4xbf16>
    %61 = vector.shape_cast %58 : vector<16x4xbf16> to vector<1x16x4xbf16>
    tpu.vector_store %arg6[%c0_34, %c0_35, %c0_36], %61 {strides = array<i32>} : memref<1x16x4xbf16, #tpu.memory_space<vmem>>, vector<1x16x4xbf16>,
    %cst_37 = arith.constant dense<0.000000e+00> : vector<4xf32>
    %62 = vector.multi_reduction <add>, %57, %cst_37 [0] : vector<16x4xf32> to vector<4xf32>
    %63 = vector.shape_cast %62 : vector<4xf32> to vector<1x4xf32>
    %c0_38 = arith.constant 0 : index
    %c0_39 = arith.constant 0 : index
    %c0_40 = arith.constant 0 : index
    %64 = vector.load %arg7[%c0_38, %c0_39, %c0_40] : memref<1x2x4xf32, #tpu.memory_space<vmem>>, vector<1x1x4xf32>
    %65 = vector.shape_cast %64 : vector<1x1x4xf32> to vector<1x4xf32>
    %66 = vector.shape_cast %63 : vector<1x4xf32> to vector<1x1x4xf32>
    tpu.vector_store %arg7[%c0_38, %c0_39, %c0_40], %66 {strides = array<i32>} : memref<1x2x4xf32, #tpu.memory_space<vmem>>, vector<1x1x4xf32>,
    %67 = arith.mulf %57, %57 : vector<16x4xf32>
    %cst_41 = arith.constant dense<0.000000e+00> : vector<4xf32>
    %68 = vector.multi_reduction <add>, %67, %cst_41 [0] : vector<16x4xf32> to vector<4xf32>
    %69 = vector.shape_cast %68 : vector<4xf32> to vector<1x4xf32>
    %c0_42 = arith.constant 0 : index
    %c1_43 = arith.constant 1 : index
    %c0_44 = arith.constant 0 : index
    %70 = vector.load %arg7[%c0_42, %c1_43, %c0_44] : memref<1x2x4xf32, #tpu.memory_space<vmem>>, vector<1x1x4xf32>
    %71 = vector.shape_cast %70 : vector<1x1x4xf32> to vector<1x4xf32>
    %72 = vector.shape_cast %69 : vector<1x4xf32> to vector<1x1x4xf32>
    tpu.vector_store %arg7[%c0_42, %c1_43, %c0_44], %72 {strides = array<i32>} : memref<1x2x4xf32, #tpu.memory_space<vmem>>, vector<1x1x4xf32>,
    return
  }
  func.func @transform_0(%arg0: i32, %arg1: i32) -> (i32, i32, i32, i32) {
    %c6_i32 = arith.constant 6 : i32
    %0 = arith.muli %arg0, %c6_i32 : i32
    %1 = arith.addi %0, %arg1 : i32
    %c1_i32 = arith.constant 1 : i32
    %2 = arith.addi %1, %c1_i32 : i32
    %c0_i32 = arith.constant 0 : i32
    %3 = arith.addi %2, %c0_i32 : i32
    %c0_i32_0 = arith.constant 0 : i32
    %c0_i32_1 = arith.constant 0 : i32
    %c0_i32_2 = arith.constant 0 : i32
    %c0_i32_3 = arith.constant 0 : i32
    return %3, %c0_i32_0, %c0_i32_1, %c0_i32_2 : i32, i32, i32, i32
  }
  func.func @transform_1(%arg0: i32, %arg1: i32) -> (i32, i32, i32, i32) {
    %c6_i32 = arith.constant 6 : i32
    %0 = arith.muli %arg0, %c6_i32 : i32
    %1 = arith.addi %0, %arg1 : i32
    %c1_i32 = arith.constant 1 : i32
    %2 = arith.addi %1, %c1_i32 : i32
    %c1_i32_0 = arith.constant 1 : i32
    %3 = arith.addi %2, %c1_i32_0 : i32
    %c0_i32 = arith.constant 0 : i32
    %c0_i32_1 = arith.constant 0 : i32
    %c0_i32_2 = arith.constant 0 : i32
    %c0_i32_3 = arith.constant 0 : i32
    return %3, %c0_i32, %c0_i32_1, %c0_i32_2 : i32, i32, i32, i32
  }
  func.func @transform_2(%arg0: i32, %arg1: i32) -> (i32, i32, i32) {
    %c0_i32 = arith.constant 0 : i32
    %c0_i32_0 = arith.constant 0 : i32
    %c0_i32_1 = arith.constant 0 : i32
    %c0_i32_2 = arith.constant 0 : i32
    return %c0_i32, %c0_i32_0, %c0_i32_1 : i32, i32, i32
  }
  func.func @transform_3(%arg0: i32, %arg1: i32) -> (i32, i32) {
    %c0_i32 = arith.constant 0 : i32
    %c0_i32_0 = arith.constant 0 : i32
    %c0_i32_1 = arith.constant 0 : i32
    return %c0_i32, %c0_i32_0 : i32, i32
  }
  func.func @transform_4(%arg0: i32, %arg1: i32) -> (i32, i32, i32) {
    %c4_i32 = arith.constant 4 : i32
    %0 = arith.muli %arg0, %c4_i32 : i32
    %1 = arith.addi %0, %arg1 : i32
    %c0_i32 = arith.constant 0 : i32
    %c0_i32_0 = arith.constant 0 : i32
    %c0_i32_1 = arith.constant 0 : i32
    return %1, %c0_i32, %c0_i32_0 : i32, i32, i32
  }
  func.func @transform_5(%arg0: i32, %arg1: i32) -> (i32, i32, i32) {
    %c4_i32 = arith.constant 4 : i32
    %0 = arith.muli %arg0, %c4_i32 : i32
    %1 = arith.addi %0, %arg1 : i32
    %c0_i32 = arith.constant 0 : i32
    %c0_i32_0 = arith.constant 0 : i32
    %c0_i32_1 = arith.constant 0 : i32
    return %1, %c0_i32, %c0_i32_0 : i32, i32, i32
  }
}

module attributes {stable_mosaic.version = 11 : i64} {
  func.func @kernel(%arg0: i32, %arg1: i32, %arg2: memref<1x10x10x8xbf16, #tpu.memory_space<vmem>>, %arg3: memref<1x10x10x8xbf16, #tpu.memory_space<vmem>>, %arg4: memref<1x10x10x8xbf16, #tpu.memory_space<vmem>>, %arg5: memref<27x8x8xf32, #tpu.memory_space<vmem>>, %arg6: memref<1x8xf32, #tpu.memory_space<vmem>>, %arg7: memref<1x64x8xbf16, #tpu.memory_space<vmem>>, %arg8: memref<1x2x8xf32, #tpu.memory_space<vmem>>) attributes {dimension_semantics = [#tpu.dimension_semantics<parallel>, #tpu.dimension_semantics<parallel>], iteration_bounds = array<i64: 2, 8>, scalar_prefetch = 0 : i64, scratch_operands = 0 : i64, tpu.core_type = #tpu.core_type<tc>, window_params = [{transform_indices = @transform_0, window_bounds = array<i64: 1, 10, 10, 8>}, {transform_indices = @transform_1, window_bounds = array<i64: 1, 10, 10, 8>}, {transform_indices = @transform_2, window_bounds = array<i64: 1, 10, 10, 8>}, {pipeline_mode = #tpu.pipeline_mode<synchronous>, transform_indices = @transform_3, window_bounds = array<i64: 27, 8, 8>}, {pipeline_mode = #tpu.pipeline_mode<synchronous>, transform_indices = @transform_4, window_bounds = array<i64: 1, 8>}, {transform_indices = @transform_5, window_bounds = array<i64: 1, 64, 8>}, {transform_indices = @transform_6, window_bounds = array<i64: 1, 2, 8>}]} {
    %cst = arith.constant 0.000000e+00 : f32
    %0 = vector.broadcast %cst : f32 to vector<64x8xf32>
    %c0 = arith.constant 0 : index
    %c0_0 = arith.constant 0 : index
    %c0_1 = arith.constant 0 : index
    %c0_2 = arith.constant 0 : index
    %1 = vector.load %arg2[%c0, %c0_0, %c0_1, %c0_2] : memref<1x10x10x8xbf16, #tpu.memory_space<vmem>>, vector<1x10x10x8xbf16>
    %2 = vector.shape_cast %1 : vector<1x10x10x8xbf16> to vector<10x10x8xbf16>
    %3 = arith.extf %2 : vector<10x10x8xbf16> to vector<10x10x8xf32>
    %4 = vector.extract_strided_slice %3 {offsets = [0, 0, 0], sizes = [8, 8, 8], strides = [1, 1, 1]} : vector<10x10x8xf32> to vector<8x8x8xf32>
    %5 = vector.shape_cast %4 : vector<8x8x8xf32> to vector<64x8xf32>
    %c0_3 = arith.constant 0 : index
    %c0_4 = arith.constant 0 : index
    %c0_5 = arith.constant 0 : index
    %6 = vector.load %arg5[%c0_3, %c0_4, %c0_5] : memref<27x8x8xf32, #tpu.memory_space<vmem>>, vector<1x8x8xf32>
    %7 = vector.shape_cast %6 : vector<1x8x8xf32> to vector<8x8xf32>
    %cst_6 = arith.constant dense<0.000000e+00> : vector<64x8xf32>
    %8 = tpu.matmul %5, %7, %cst_6 {dimension_numbers = #tpu.dot_dimension_numbers<[1], [0], [0], [1], [0, 0, 1, 1], [], []>} : vector<64x8xf32>, vector<8x8xf32>, vector<64x8xf32> -> vector<64x8xf32>
    %9 = arith.addf %0, %8 : vector<64x8xf32>
    %10 = vector.extract_strided_slice %3 {offsets = [0, 1, 0], sizes = [8, 8, 8], strides = [1, 1, 1]} : vector<10x10x8xf32> to vector<8x8x8xf32>
    %11 = vector.shape_cast %10 : vector<8x8x8xf32> to vector<64x8xf32>
    %c1 = arith.constant 1 : index
    %c0_7 = arith.constant 0 : index
    %c0_8 = arith.constant 0 : index
    %12 = vector.load %arg5[%c1, %c0_7, %c0_8] : memref<27x8x8xf32, #tpu.memory_space<vmem>>, vector<1x8x8xf32>
    %13 = vector.shape_cast %12 : vector<1x8x8xf32> to vector<8x8xf32>
    %cst_9 = arith.constant dense<0.000000e+00> : vector<64x8xf32>
    %14 = tpu.matmul %11, %13, %cst_9 {dimension_numbers = #tpu.dot_dimension_numbers<[1], [0], [0], [1], [0, 0, 1, 1], [], []>} : vector<64x8xf32>, vector<8x8xf32>, vector<64x8xf32> -> vector<64x8xf32>
    %15 = arith.addf %9, %14 : vector<64x8xf32>
    %16 = vector.extract_strided_slice %3 {offsets = [0, 2, 0], sizes = [8, 8, 8], strides = [1, 1, 1]} : vector<10x10x8xf32> to vector<8x8x8xf32>
    %17 = vector.shape_cast %16 : vector<8x8x8xf32> to vector<64x8xf32>
    %c2 = arith.constant 2 : index
    %c0_10 = arith.constant 0 : index
    %c0_11 = arith.constant 0 : index
    %18 = vector.load %arg5[%c2, %c0_10, %c0_11] : memref<27x8x8xf32, #tpu.memory_space<vmem>>, vector<1x8x8xf32>
    %19 = vector.shape_cast %18 : vector<1x8x8xf32> to vector<8x8xf32>
    %cst_12 = arith.constant dense<0.000000e+00> : vector<64x8xf32>
    %20 = tpu.matmul %17, %19, %cst_12 {dimension_numbers = #tpu.dot_dimension_numbers<[1], [0], [0], [1], [0, 0, 1, 1], [], []>} : vector<64x8xf32>, vector<8x8xf32>, vector<64x8xf32> -> vector<64x8xf32>
    %21 = arith.addf %15, %20 : vector<64x8xf32>
    %22 = vector.extract_strided_slice %3 {offsets = [1, 0, 0], sizes = [8, 8, 8], strides = [1, 1, 1]} : vector<10x10x8xf32> to vector<8x8x8xf32>
    %23 = vector.shape_cast %22 : vector<8x8x8xf32> to vector<64x8xf32>
    %c3 = arith.constant 3 : index
    %c0_13 = arith.constant 0 : index
    %c0_14 = arith.constant 0 : index
    %24 = vector.load %arg5[%c3, %c0_13, %c0_14] : memref<27x8x8xf32, #tpu.memory_space<vmem>>, vector<1x8x8xf32>
    %25 = vector.shape_cast %24 : vector<1x8x8xf32> to vector<8x8xf32>
    %cst_15 = arith.constant dense<0.000000e+00> : vector<64x8xf32>
    %26 = tpu.matmul %23, %25, %cst_15 {dimension_numbers = #tpu.dot_dimension_numbers<[1], [0], [0], [1], [0, 0, 1, 1], [], []>} : vector<64x8xf32>, vector<8x8xf32>, vector<64x8xf32> -> vector<64x8xf32>
    %27 = arith.addf %21, %26 : vector<64x8xf32>
    %28 = vector.extract_strided_slice %3 {offsets = [1, 1, 0], sizes = [8, 8, 8], strides = [1, 1, 1]} : vector<10x10x8xf32> to vector<8x8x8xf32>
    %29 = vector.shape_cast %28 : vector<8x8x8xf32> to vector<64x8xf32>
    %c4 = arith.constant 4 : index
    %c0_16 = arith.constant 0 : index
    %c0_17 = arith.constant 0 : index
    %30 = vector.load %arg5[%c4, %c0_16, %c0_17] : memref<27x8x8xf32, #tpu.memory_space<vmem>>, vector<1x8x8xf32>
    %31 = vector.shape_cast %30 : vector<1x8x8xf32> to vector<8x8xf32>
    %cst_18 = arith.constant dense<0.000000e+00> : vector<64x8xf32>
    %32 = tpu.matmul %29, %31, %cst_18 {dimension_numbers = #tpu.dot_dimension_numbers<[1], [0], [0], [1], [0, 0, 1, 1], [], []>} : vector<64x8xf32>, vector<8x8xf32>, vector<64x8xf32> -> vector<64x8xf32>
    %33 = arith.addf %27, %32 : vector<64x8xf32>
    %34 = vector.extract_strided_slice %3 {offsets = [1, 2, 0], sizes = [8, 8, 8], strides = [1, 1, 1]} : vector<10x10x8xf32> to vector<8x8x8xf32>
    %35 = vector.shape_cast %34 : vector<8x8x8xf32> to vector<64x8xf32>
    %c5 = arith.constant 5 : index
    %c0_19 = arith.constant 0 : index
    %c0_20 = arith.constant 0 : index
    %36 = vector.load %arg5[%c5, %c0_19, %c0_20] : memref<27x8x8xf32, #tpu.memory_space<vmem>>, vector<1x8x8xf32>
    %37 = vector.shape_cast %36 : vector<1x8x8xf32> to vector<8x8xf32>
    %cst_21 = arith.constant dense<0.000000e+00> : vector<64x8xf32>
    %38 = tpu.matmul %35, %37, %cst_21 {dimension_numbers = #tpu.dot_dimension_numbers<[1], [0], [0], [1], [0, 0, 1, 1], [], []>} : vector<64x8xf32>, vector<8x8xf32>, vector<64x8xf32> -> vector<64x8xf32>
    %39 = arith.addf %33, %38 : vector<64x8xf32>
    %40 = vector.extract_strided_slice %3 {offsets = [2, 0, 0], sizes = [8, 8, 8], strides = [1, 1, 1]} : vector<10x10x8xf32> to vector<8x8x8xf32>
    %41 = vector.shape_cast %40 : vector<8x8x8xf32> to vector<64x8xf32>
    %c6 = arith.constant 6 : index
    %c0_22 = arith.constant 0 : index
    %c0_23 = arith.constant 0 : index
    %42 = vector.load %arg5[%c6, %c0_22, %c0_23] : memref<27x8x8xf32, #tpu.memory_space<vmem>>, vector<1x8x8xf32>
    %43 = vector.shape_cast %42 : vector<1x8x8xf32> to vector<8x8xf32>
    %cst_24 = arith.constant dense<0.000000e+00> : vector<64x8xf32>
    %44 = tpu.matmul %41, %43, %cst_24 {dimension_numbers = #tpu.dot_dimension_numbers<[1], [0], [0], [1], [0, 0, 1, 1], [], []>} : vector<64x8xf32>, vector<8x8xf32>, vector<64x8xf32> -> vector<64x8xf32>
    %45 = arith.addf %39, %44 : vector<64x8xf32>
    %46 = vector.extract_strided_slice %3 {offsets = [2, 1, 0], sizes = [8, 8, 8], strides = [1, 1, 1]} : vector<10x10x8xf32> to vector<8x8x8xf32>
    %47 = vector.shape_cast %46 : vector<8x8x8xf32> to vector<64x8xf32>
    %c7 = arith.constant 7 : index
    %c0_25 = arith.constant 0 : index
    %c0_26 = arith.constant 0 : index
    %48 = vector.load %arg5[%c7, %c0_25, %c0_26] : memref<27x8x8xf32, #tpu.memory_space<vmem>>, vector<1x8x8xf32>
    %49 = vector.shape_cast %48 : vector<1x8x8xf32> to vector<8x8xf32>
    %cst_27 = arith.constant dense<0.000000e+00> : vector<64x8xf32>
    %50 = tpu.matmul %47, %49, %cst_27 {dimension_numbers = #tpu.dot_dimension_numbers<[1], [0], [0], [1], [0, 0, 1, 1], [], []>} : vector<64x8xf32>, vector<8x8xf32>, vector<64x8xf32> -> vector<64x8xf32>
    %51 = arith.addf %45, %50 : vector<64x8xf32>
    %52 = vector.extract_strided_slice %3 {offsets = [2, 2, 0], sizes = [8, 8, 8], strides = [1, 1, 1]} : vector<10x10x8xf32> to vector<8x8x8xf32>
    %53 = vector.shape_cast %52 : vector<8x8x8xf32> to vector<64x8xf32>
    %c8 = arith.constant 8 : index
    %c0_28 = arith.constant 0 : index
    %c0_29 = arith.constant 0 : index
    %54 = vector.load %arg5[%c8, %c0_28, %c0_29] : memref<27x8x8xf32, #tpu.memory_space<vmem>>, vector<1x8x8xf32>
    %55 = vector.shape_cast %54 : vector<1x8x8xf32> to vector<8x8xf32>
    %cst_30 = arith.constant dense<0.000000e+00> : vector<64x8xf32>
    %56 = tpu.matmul %53, %55, %cst_30 {dimension_numbers = #tpu.dot_dimension_numbers<[1], [0], [0], [1], [0, 0, 1, 1], [], []>} : vector<64x8xf32>, vector<8x8xf32>, vector<64x8xf32> -> vector<64x8xf32>
    %57 = arith.addf %51, %56 : vector<64x8xf32>
    %c0_31 = arith.constant 0 : index
    %c0_32 = arith.constant 0 : index
    %c0_33 = arith.constant 0 : index
    %c0_34 = arith.constant 0 : index
    %58 = vector.load %arg3[%c0_31, %c0_32, %c0_33, %c0_34] : memref<1x10x10x8xbf16, #tpu.memory_space<vmem>>, vector<1x10x10x8xbf16>
    %59 = vector.shape_cast %58 : vector<1x10x10x8xbf16> to vector<10x10x8xbf16>
    %60 = arith.extf %59 : vector<10x10x8xbf16> to vector<10x10x8xf32>
    %61 = vector.extract_strided_slice %60 {offsets = [0, 0, 0], sizes = [8, 8, 8], strides = [1, 1, 1]} : vector<10x10x8xf32> to vector<8x8x8xf32>
    %62 = vector.shape_cast %61 : vector<8x8x8xf32> to vector<64x8xf32>
    %c9 = arith.constant 9 : index
    %c0_35 = arith.constant 0 : index
    %c0_36 = arith.constant 0 : index
    %63 = vector.load %arg5[%c9, %c0_35, %c0_36] : memref<27x8x8xf32, #tpu.memory_space<vmem>>, vector<1x8x8xf32>
    %64 = vector.shape_cast %63 : vector<1x8x8xf32> to vector<8x8xf32>
    %cst_37 = arith.constant dense<0.000000e+00> : vector<64x8xf32>
    %65 = tpu.matmul %62, %64, %cst_37 {dimension_numbers = #tpu.dot_dimension_numbers<[1], [0], [0], [1], [0, 0, 1, 1], [], []>} : vector<64x8xf32>, vector<8x8xf32>, vector<64x8xf32> -> vector<64x8xf32>
    %66 = arith.addf %57, %65 : vector<64x8xf32>
    %67 = vector.extract_strided_slice %60 {offsets = [0, 1, 0], sizes = [8, 8, 8], strides = [1, 1, 1]} : vector<10x10x8xf32> to vector<8x8x8xf32>
    %68 = vector.shape_cast %67 : vector<8x8x8xf32> to vector<64x8xf32>
    %c10 = arith.constant 10 : index
    %c0_38 = arith.constant 0 : index
    %c0_39 = arith.constant 0 : index
    %69 = vector.load %arg5[%c10, %c0_38, %c0_39] : memref<27x8x8xf32, #tpu.memory_space<vmem>>, vector<1x8x8xf32>
    %70 = vector.shape_cast %69 : vector<1x8x8xf32> to vector<8x8xf32>
    %cst_40 = arith.constant dense<0.000000e+00> : vector<64x8xf32>
    %71 = tpu.matmul %68, %70, %cst_40 {dimension_numbers = #tpu.dot_dimension_numbers<[1], [0], [0], [1], [0, 0, 1, 1], [], []>} : vector<64x8xf32>, vector<8x8xf32>, vector<64x8xf32> -> vector<64x8xf32>
    %72 = arith.addf %66, %71 : vector<64x8xf32>
    %73 = vector.extract_strided_slice %60 {offsets = [0, 2, 0], sizes = [8, 8, 8], strides = [1, 1, 1]} : vector<10x10x8xf32> to vector<8x8x8xf32>
    %74 = vector.shape_cast %73 : vector<8x8x8xf32> to vector<64x8xf32>
    %c11 = arith.constant 11 : index
    %c0_41 = arith.constant 0 : index
    %c0_42 = arith.constant 0 : index
    %75 = vector.load %arg5[%c11, %c0_41, %c0_42] : memref<27x8x8xf32, #tpu.memory_space<vmem>>, vector<1x8x8xf32>
    %76 = vector.shape_cast %75 : vector<1x8x8xf32> to vector<8x8xf32>
    %cst_43 = arith.constant dense<0.000000e+00> : vector<64x8xf32>
    %77 = tpu.matmul %74, %76, %cst_43 {dimension_numbers = #tpu.dot_dimension_numbers<[1], [0], [0], [1], [0, 0, 1, 1], [], []>} : vector<64x8xf32>, vector<8x8xf32>, vector<64x8xf32> -> vector<64x8xf32>
    %78 = arith.addf %72, %77 : vector<64x8xf32>
    %79 = vector.extract_strided_slice %60 {offsets = [1, 0, 0], sizes = [8, 8, 8], strides = [1, 1, 1]} : vector<10x10x8xf32> to vector<8x8x8xf32>
    %80 = vector.shape_cast %79 : vector<8x8x8xf32> to vector<64x8xf32>
    %c12 = arith.constant 12 : index
    %c0_44 = arith.constant 0 : index
    %c0_45 = arith.constant 0 : index
    %81 = vector.load %arg5[%c12, %c0_44, %c0_45] : memref<27x8x8xf32, #tpu.memory_space<vmem>>, vector<1x8x8xf32>
    %82 = vector.shape_cast %81 : vector<1x8x8xf32> to vector<8x8xf32>
    %cst_46 = arith.constant dense<0.000000e+00> : vector<64x8xf32>
    %83 = tpu.matmul %80, %82, %cst_46 {dimension_numbers = #tpu.dot_dimension_numbers<[1], [0], [0], [1], [0, 0, 1, 1], [], []>} : vector<64x8xf32>, vector<8x8xf32>, vector<64x8xf32> -> vector<64x8xf32>
    %84 = arith.addf %78, %83 : vector<64x8xf32>
    %85 = vector.extract_strided_slice %60 {offsets = [1, 1, 0], sizes = [8, 8, 8], strides = [1, 1, 1]} : vector<10x10x8xf32> to vector<8x8x8xf32>
    %86 = vector.shape_cast %85 : vector<8x8x8xf32> to vector<64x8xf32>
    %c13 = arith.constant 13 : index
    %c0_47 = arith.constant 0 : index
    %c0_48 = arith.constant 0 : index
    %87 = vector.load %arg5[%c13, %c0_47, %c0_48] : memref<27x8x8xf32, #tpu.memory_space<vmem>>, vector<1x8x8xf32>
    %88 = vector.shape_cast %87 : vector<1x8x8xf32> to vector<8x8xf32>
    %cst_49 = arith.constant dense<0.000000e+00> : vector<64x8xf32>
    %89 = tpu.matmul %86, %88, %cst_49 {dimension_numbers = #tpu.dot_dimension_numbers<[1], [0], [0], [1], [0, 0, 1, 1], [], []>} : vector<64x8xf32>, vector<8x8xf32>, vector<64x8xf32> -> vector<64x8xf32>
    %90 = arith.addf %84, %89 : vector<64x8xf32>
    %91 = vector.extract_strided_slice %60 {offsets = [1, 2, 0], sizes = [8, 8, 8], strides = [1, 1, 1]} : vector<10x10x8xf32> to vector<8x8x8xf32>
    %92 = vector.shape_cast %91 : vector<8x8x8xf32> to vector<64x8xf32>
    %c14 = arith.constant 14 : index
    %c0_50 = arith.constant 0 : index
    %c0_51 = arith.constant 0 : index
    %93 = vector.load %arg5[%c14, %c0_50, %c0_51] : memref<27x8x8xf32, #tpu.memory_space<vmem>>, vector<1x8x8xf32>
    %94 = vector.shape_cast %93 : vector<1x8x8xf32> to vector<8x8xf32>
    %cst_52 = arith.constant dense<0.000000e+00> : vector<64x8xf32>
    %95 = tpu.matmul %92, %94, %cst_52 {dimension_numbers = #tpu.dot_dimension_numbers<[1], [0], [0], [1], [0, 0, 1, 1], [], []>} : vector<64x8xf32>, vector<8x8xf32>, vector<64x8xf32> -> vector<64x8xf32>
    %96 = arith.addf %90, %95 : vector<64x8xf32>
    %97 = vector.extract_strided_slice %60 {offsets = [2, 0, 0], sizes = [8, 8, 8], strides = [1, 1, 1]} : vector<10x10x8xf32> to vector<8x8x8xf32>
    %98 = vector.shape_cast %97 : vector<8x8x8xf32> to vector<64x8xf32>
    %c15 = arith.constant 15 : index
    %c0_53 = arith.constant 0 : index
    %c0_54 = arith.constant 0 : index
    %99 = vector.load %arg5[%c15, %c0_53, %c0_54] : memref<27x8x8xf32, #tpu.memory_space<vmem>>, vector<1x8x8xf32>
    %100 = vector.shape_cast %99 : vector<1x8x8xf32> to vector<8x8xf32>
    %cst_55 = arith.constant dense<0.000000e+00> : vector<64x8xf32>
    %101 = tpu.matmul %98, %100, %cst_55 {dimension_numbers = #tpu.dot_dimension_numbers<[1], [0], [0], [1], [0, 0, 1, 1], [], []>} : vector<64x8xf32>, vector<8x8xf32>, vector<64x8xf32> -> vector<64x8xf32>
    %102 = arith.addf %96, %101 : vector<64x8xf32>
    %103 = vector.extract_strided_slice %60 {offsets = [2, 1, 0], sizes = [8, 8, 8], strides = [1, 1, 1]} : vector<10x10x8xf32> to vector<8x8x8xf32>
    %104 = vector.shape_cast %103 : vector<8x8x8xf32> to vector<64x8xf32>
    %c16 = arith.constant 16 : index
    %c0_56 = arith.constant 0 : index
    %c0_57 = arith.constant 0 : index
    %105 = vector.load %arg5[%c16, %c0_56, %c0_57] : memref<27x8x8xf32, #tpu.memory_space<vmem>>, vector<1x8x8xf32>
    %106 = vector.shape_cast %105 : vector<1x8x8xf32> to vector<8x8xf32>
    %cst_58 = arith.constant dense<0.000000e+00> : vector<64x8xf32>
    %107 = tpu.matmul %104, %106, %cst_58 {dimension_numbers = #tpu.dot_dimension_numbers<[1], [0], [0], [1], [0, 0, 1, 1], [], []>} : vector<64x8xf32>, vector<8x8xf32>, vector<64x8xf32> -> vector<64x8xf32>
    %108 = arith.addf %102, %107 : vector<64x8xf32>
    %109 = vector.extract_strided_slice %60 {offsets = [2, 2, 0], sizes = [8, 8, 8], strides = [1, 1, 1]} : vector<10x10x8xf32> to vector<8x8x8xf32>
    %110 = vector.shape_cast %109 : vector<8x8x8xf32> to vector<64x8xf32>
    %c17 = arith.constant 17 : index
    %c0_59 = arith.constant 0 : index
    %c0_60 = arith.constant 0 : index
    %111 = vector.load %arg5[%c17, %c0_59, %c0_60] : memref<27x8x8xf32, #tpu.memory_space<vmem>>, vector<1x8x8xf32>
    %112 = vector.shape_cast %111 : vector<1x8x8xf32> to vector<8x8xf32>
    %cst_61 = arith.constant dense<0.000000e+00> : vector<64x8xf32>
    %113 = tpu.matmul %110, %112, %cst_61 {dimension_numbers = #tpu.dot_dimension_numbers<[1], [0], [0], [1], [0, 0, 1, 1], [], []>} : vector<64x8xf32>, vector<8x8xf32>, vector<64x8xf32> -> vector<64x8xf32>
    %114 = arith.addf %108, %113 : vector<64x8xf32>
    %c0_62 = arith.constant 0 : index
    %c0_63 = arith.constant 0 : index
    %c0_64 = arith.constant 0 : index
    %c0_65 = arith.constant 0 : index
    %115 = vector.load %arg4[%c0_62, %c0_63, %c0_64, %c0_65] : memref<1x10x10x8xbf16, #tpu.memory_space<vmem>>, vector<1x10x10x8xbf16>
    %116 = vector.shape_cast %115 : vector<1x10x10x8xbf16> to vector<10x10x8xbf16>
    %117 = arith.extf %116 : vector<10x10x8xbf16> to vector<10x10x8xf32>
    %118 = vector.extract_strided_slice %117 {offsets = [0, 0, 0], sizes = [8, 8, 8], strides = [1, 1, 1]} : vector<10x10x8xf32> to vector<8x8x8xf32>
    %119 = vector.shape_cast %118 : vector<8x8x8xf32> to vector<64x8xf32>
    %c18 = arith.constant 18 : index
    %c0_66 = arith.constant 0 : index
    %c0_67 = arith.constant 0 : index
    %120 = vector.load %arg5[%c18, %c0_66, %c0_67] : memref<27x8x8xf32, #tpu.memory_space<vmem>>, vector<1x8x8xf32>
    %121 = vector.shape_cast %120 : vector<1x8x8xf32> to vector<8x8xf32>
    %cst_68 = arith.constant dense<0.000000e+00> : vector<64x8xf32>
    %122 = tpu.matmul %119, %121, %cst_68 {dimension_numbers = #tpu.dot_dimension_numbers<[1], [0], [0], [1], [0, 0, 1, 1], [], []>} : vector<64x8xf32>, vector<8x8xf32>, vector<64x8xf32> -> vector<64x8xf32>
    %123 = arith.addf %114, %122 : vector<64x8xf32>
    %124 = vector.extract_strided_slice %117 {offsets = [0, 1, 0], sizes = [8, 8, 8], strides = [1, 1, 1]} : vector<10x10x8xf32> to vector<8x8x8xf32>
    %125 = vector.shape_cast %124 : vector<8x8x8xf32> to vector<64x8xf32>
    %c19 = arith.constant 19 : index
    %c0_69 = arith.constant 0 : index
    %c0_70 = arith.constant 0 : index
    %126 = vector.load %arg5[%c19, %c0_69, %c0_70] : memref<27x8x8xf32, #tpu.memory_space<vmem>>, vector<1x8x8xf32>
    %127 = vector.shape_cast %126 : vector<1x8x8xf32> to vector<8x8xf32>
    %cst_71 = arith.constant dense<0.000000e+00> : vector<64x8xf32>
    %128 = tpu.matmul %125, %127, %cst_71 {dimension_numbers = #tpu.dot_dimension_numbers<[1], [0], [0], [1], [0, 0, 1, 1], [], []>} : vector<64x8xf32>, vector<8x8xf32>, vector<64x8xf32> -> vector<64x8xf32>
    %129 = arith.addf %123, %128 : vector<64x8xf32>
    %130 = vector.extract_strided_slice %117 {offsets = [0, 2, 0], sizes = [8, 8, 8], strides = [1, 1, 1]} : vector<10x10x8xf32> to vector<8x8x8xf32>
    %131 = vector.shape_cast %130 : vector<8x8x8xf32> to vector<64x8xf32>
    %c20 = arith.constant 20 : index
    %c0_72 = arith.constant 0 : index
    %c0_73 = arith.constant 0 : index
    %132 = vector.load %arg5[%c20, %c0_72, %c0_73] : memref<27x8x8xf32, #tpu.memory_space<vmem>>, vector<1x8x8xf32>
    %133 = vector.shape_cast %132 : vector<1x8x8xf32> to vector<8x8xf32>
    %cst_74 = arith.constant dense<0.000000e+00> : vector<64x8xf32>
    %134 = tpu.matmul %131, %133, %cst_74 {dimension_numbers = #tpu.dot_dimension_numbers<[1], [0], [0], [1], [0, 0, 1, 1], [], []>} : vector<64x8xf32>, vector<8x8xf32>, vector<64x8xf32> -> vector<64x8xf32>
    %135 = arith.addf %129, %134 : vector<64x8xf32>
    %136 = vector.extract_strided_slice %117 {offsets = [1, 0, 0], sizes = [8, 8, 8], strides = [1, 1, 1]} : vector<10x10x8xf32> to vector<8x8x8xf32>
    %137 = vector.shape_cast %136 : vector<8x8x8xf32> to vector<64x8xf32>
    %c21 = arith.constant 21 : index
    %c0_75 = arith.constant 0 : index
    %c0_76 = arith.constant 0 : index
    %138 = vector.load %arg5[%c21, %c0_75, %c0_76] : memref<27x8x8xf32, #tpu.memory_space<vmem>>, vector<1x8x8xf32>
    %139 = vector.shape_cast %138 : vector<1x8x8xf32> to vector<8x8xf32>
    %cst_77 = arith.constant dense<0.000000e+00> : vector<64x8xf32>
    %140 = tpu.matmul %137, %139, %cst_77 {dimension_numbers = #tpu.dot_dimension_numbers<[1], [0], [0], [1], [0, 0, 1, 1], [], []>} : vector<64x8xf32>, vector<8x8xf32>, vector<64x8xf32> -> vector<64x8xf32>
    %141 = arith.addf %135, %140 : vector<64x8xf32>
    %142 = vector.extract_strided_slice %117 {offsets = [1, 1, 0], sizes = [8, 8, 8], strides = [1, 1, 1]} : vector<10x10x8xf32> to vector<8x8x8xf32>
    %143 = vector.shape_cast %142 : vector<8x8x8xf32> to vector<64x8xf32>
    %c22 = arith.constant 22 : index
    %c0_78 = arith.constant 0 : index
    %c0_79 = arith.constant 0 : index
    %144 = vector.load %arg5[%c22, %c0_78, %c0_79] : memref<27x8x8xf32, #tpu.memory_space<vmem>>, vector<1x8x8xf32>
    %145 = vector.shape_cast %144 : vector<1x8x8xf32> to vector<8x8xf32>
    %cst_80 = arith.constant dense<0.000000e+00> : vector<64x8xf32>
    %146 = tpu.matmul %143, %145, %cst_80 {dimension_numbers = #tpu.dot_dimension_numbers<[1], [0], [0], [1], [0, 0, 1, 1], [], []>} : vector<64x8xf32>, vector<8x8xf32>, vector<64x8xf32> -> vector<64x8xf32>
    %147 = arith.addf %141, %146 : vector<64x8xf32>
    %148 = vector.extract_strided_slice %117 {offsets = [1, 2, 0], sizes = [8, 8, 8], strides = [1, 1, 1]} : vector<10x10x8xf32> to vector<8x8x8xf32>
    %149 = vector.shape_cast %148 : vector<8x8x8xf32> to vector<64x8xf32>
    %c23 = arith.constant 23 : index
    %c0_81 = arith.constant 0 : index
    %c0_82 = arith.constant 0 : index
    %150 = vector.load %arg5[%c23, %c0_81, %c0_82] : memref<27x8x8xf32, #tpu.memory_space<vmem>>, vector<1x8x8xf32>
    %151 = vector.shape_cast %150 : vector<1x8x8xf32> to vector<8x8xf32>
    %cst_83 = arith.constant dense<0.000000e+00> : vector<64x8xf32>
    %152 = tpu.matmul %149, %151, %cst_83 {dimension_numbers = #tpu.dot_dimension_numbers<[1], [0], [0], [1], [0, 0, 1, 1], [], []>} : vector<64x8xf32>, vector<8x8xf32>, vector<64x8xf32> -> vector<64x8xf32>
    %153 = arith.addf %147, %152 : vector<64x8xf32>
    %154 = vector.extract_strided_slice %117 {offsets = [2, 0, 0], sizes = [8, 8, 8], strides = [1, 1, 1]} : vector<10x10x8xf32> to vector<8x8x8xf32>
    %155 = vector.shape_cast %154 : vector<8x8x8xf32> to vector<64x8xf32>
    %c24 = arith.constant 24 : index
    %c0_84 = arith.constant 0 : index
    %c0_85 = arith.constant 0 : index
    %156 = vector.load %arg5[%c24, %c0_84, %c0_85] : memref<27x8x8xf32, #tpu.memory_space<vmem>>, vector<1x8x8xf32>
    %157 = vector.shape_cast %156 : vector<1x8x8xf32> to vector<8x8xf32>
    %cst_86 = arith.constant dense<0.000000e+00> : vector<64x8xf32>
    %158 = tpu.matmul %155, %157, %cst_86 {dimension_numbers = #tpu.dot_dimension_numbers<[1], [0], [0], [1], [0, 0, 1, 1], [], []>} : vector<64x8xf32>, vector<8x8xf32>, vector<64x8xf32> -> vector<64x8xf32>
    %159 = arith.addf %153, %158 : vector<64x8xf32>
    %160 = vector.extract_strided_slice %117 {offsets = [2, 1, 0], sizes = [8, 8, 8], strides = [1, 1, 1]} : vector<10x10x8xf32> to vector<8x8x8xf32>
    %161 = vector.shape_cast %160 : vector<8x8x8xf32> to vector<64x8xf32>
    %c25 = arith.constant 25 : index
    %c0_87 = arith.constant 0 : index
    %c0_88 = arith.constant 0 : index
    %162 = vector.load %arg5[%c25, %c0_87, %c0_88] : memref<27x8x8xf32, #tpu.memory_space<vmem>>, vector<1x8x8xf32>
    %163 = vector.shape_cast %162 : vector<1x8x8xf32> to vector<8x8xf32>
    %cst_89 = arith.constant dense<0.000000e+00> : vector<64x8xf32>
    %164 = tpu.matmul %161, %163, %cst_89 {dimension_numbers = #tpu.dot_dimension_numbers<[1], [0], [0], [1], [0, 0, 1, 1], [], []>} : vector<64x8xf32>, vector<8x8xf32>, vector<64x8xf32> -> vector<64x8xf32>
    %165 = arith.addf %159, %164 : vector<64x8xf32>
    %166 = vector.extract_strided_slice %117 {offsets = [2, 2, 0], sizes = [8, 8, 8], strides = [1, 1, 1]} : vector<10x10x8xf32> to vector<8x8x8xf32>
    %167 = vector.shape_cast %166 : vector<8x8x8xf32> to vector<64x8xf32>
    %c26 = arith.constant 26 : index
    %c0_90 = arith.constant 0 : index
    %c0_91 = arith.constant 0 : index
    %168 = vector.load %arg5[%c26, %c0_90, %c0_91] : memref<27x8x8xf32, #tpu.memory_space<vmem>>, vector<1x8x8xf32>
    %169 = vector.shape_cast %168 : vector<1x8x8xf32> to vector<8x8xf32>
    %cst_92 = arith.constant dense<0.000000e+00> : vector<64x8xf32>
    %170 = tpu.matmul %167, %169, %cst_92 {dimension_numbers = #tpu.dot_dimension_numbers<[1], [0], [0], [1], [0, 0, 1, 1], [], []>} : vector<64x8xf32>, vector<8x8xf32>, vector<64x8xf32> -> vector<64x8xf32>
    %171 = arith.addf %165, %170 : vector<64x8xf32>
    %c0_93 = arith.constant 0 : index
    %c0_94 = arith.constant 0 : index
    %172 = vector.load %arg6[%c0_93, %c0_94] : memref<1x8xf32, #tpu.memory_space<vmem>>, vector<1x8xf32>
    %173 = vector.broadcast %172 : vector<1x8xf32> to vector<64x8xf32>
    %174 = arith.addf %171, %173 : vector<64x8xf32>
    %175 = arith.truncf %174 : vector<64x8xf32> to vector<64x8xbf16>
    %c0_95 = arith.constant 0 : index
    %c0_96 = arith.constant 0 : index
    %c0_97 = arith.constant 0 : index
    %176 = vector.load %arg7[%c0_95, %c0_96, %c0_97] : memref<1x64x8xbf16, #tpu.memory_space<vmem>>, vector<1x64x8xbf16>
    %177 = vector.shape_cast %176 : vector<1x64x8xbf16> to vector<64x8xbf16>
    %178 = vector.shape_cast %175 : vector<64x8xbf16> to vector<1x64x8xbf16>
    tpu.vector_store %arg7[%c0_95, %c0_96, %c0_97], %178 {strides = array<i32>} : memref<1x64x8xbf16, #tpu.memory_space<vmem>>, vector<1x64x8xbf16>,
    %cst_98 = arith.constant dense<0.000000e+00> : vector<8xf32>
    %179 = vector.multi_reduction <add>, %174, %cst_98 [0] : vector<64x8xf32> to vector<8xf32>
    %180 = vector.shape_cast %179 : vector<8xf32> to vector<1x8xf32>
    %c0_99 = arith.constant 0 : index
    %c0_100 = arith.constant 0 : index
    %c0_101 = arith.constant 0 : index
    %181 = vector.load %arg8[%c0_99, %c0_100, %c0_101] : memref<1x2x8xf32, #tpu.memory_space<vmem>>, vector<1x1x8xf32>
    %182 = vector.shape_cast %181 : vector<1x1x8xf32> to vector<1x8xf32>
    %183 = vector.shape_cast %180 : vector<1x8xf32> to vector<1x1x8xf32>
    tpu.vector_store %arg8[%c0_99, %c0_100, %c0_101], %183 {strides = array<i32>} : memref<1x2x8xf32, #tpu.memory_space<vmem>>, vector<1x1x8xf32>,
    %184 = arith.mulf %174, %174 : vector<64x8xf32>
    %cst_102 = arith.constant dense<0.000000e+00> : vector<8xf32>
    %185 = vector.multi_reduction <add>, %184, %cst_102 [0] : vector<64x8xf32> to vector<8xf32>
    %186 = vector.shape_cast %185 : vector<8xf32> to vector<1x8xf32>
    %c0_103 = arith.constant 0 : index
    %c1_104 = arith.constant 1 : index
    %c0_105 = arith.constant 0 : index
    %187 = vector.load %arg8[%c0_103, %c1_104, %c0_105] : memref<1x2x8xf32, #tpu.memory_space<vmem>>, vector<1x1x8xf32>
    %188 = vector.shape_cast %187 : vector<1x1x8xf32> to vector<1x8xf32>
    %189 = vector.shape_cast %186 : vector<1x8xf32> to vector<1x1x8xf32>
    tpu.vector_store %arg8[%c0_103, %c1_104, %c0_105], %189 {strides = array<i32>} : memref<1x2x8xf32, #tpu.memory_space<vmem>>, vector<1x1x8xf32>,
    return
  }
  func.func @transform_0(%arg0: i32, %arg1: i32) -> (i32, i32, i32, i32) {
    %c10_i32 = arith.constant 10 : i32
    %0 = arith.muli %arg0, %c10_i32 : i32
    %1 = arith.addi %0, %arg1 : i32
    %c0_i32 = arith.constant 0 : i32
    %2 = arith.addi %1, %c0_i32 : i32
    %c0_i32_0 = arith.constant 0 : i32
    %3 = arith.addi %2, %c0_i32_0 : i32
    %c0_i32_1 = arith.constant 0 : i32
    %c0_i32_2 = arith.constant 0 : i32
    %c0_i32_3 = arith.constant 0 : i32
    %c0_i32_4 = arith.constant 0 : i32
    return %3, %c0_i32_1, %c0_i32_2, %c0_i32_3 : i32, i32, i32, i32
  }
  func.func @transform_1(%arg0: i32, %arg1: i32) -> (i32, i32, i32, i32) {
    %c10_i32 = arith.constant 10 : i32
    %0 = arith.muli %arg0, %c10_i32 : i32
    %1 = arith.addi %0, %arg1 : i32
    %c0_i32 = arith.constant 0 : i32
    %2 = arith.addi %1, %c0_i32 : i32
    %c1_i32 = arith.constant 1 : i32
    %3 = arith.addi %2, %c1_i32 : i32
    %c0_i32_0 = arith.constant 0 : i32
    %c0_i32_1 = arith.constant 0 : i32
    %c0_i32_2 = arith.constant 0 : i32
    %c0_i32_3 = arith.constant 0 : i32
    return %3, %c0_i32_0, %c0_i32_1, %c0_i32_2 : i32, i32, i32, i32
  }
  func.func @transform_2(%arg0: i32, %arg1: i32) -> (i32, i32, i32, i32) {
    %c10_i32 = arith.constant 10 : i32
    %0 = arith.muli %arg0, %c10_i32 : i32
    %1 = arith.addi %0, %arg1 : i32
    %c0_i32 = arith.constant 0 : i32
    %2 = arith.addi %1, %c0_i32 : i32
    %c2_i32 = arith.constant 2 : i32
    %3 = arith.addi %2, %c2_i32 : i32
    %c0_i32_0 = arith.constant 0 : i32
    %c0_i32_1 = arith.constant 0 : i32
    %c0_i32_2 = arith.constant 0 : i32
    %c0_i32_3 = arith.constant 0 : i32
    return %3, %c0_i32_0, %c0_i32_1, %c0_i32_2 : i32, i32, i32, i32
  }
  func.func @transform_3(%arg0: i32, %arg1: i32) -> (i32, i32, i32) {
    %c0_i32 = arith.constant 0 : i32
    %c0_i32_0 = arith.constant 0 : i32
    %c0_i32_1 = arith.constant 0 : i32
    %c0_i32_2 = arith.constant 0 : i32
    return %c0_i32, %c0_i32_0, %c0_i32_1 : i32, i32, i32
  }
  func.func @transform_4(%arg0: i32, %arg1: i32) -> (i32, i32) {
    %c0_i32 = arith.constant 0 : i32
    %c0_i32_0 = arith.constant 0 : i32
    %c0_i32_1 = arith.constant 0 : i32
    return %c0_i32, %c0_i32_0 : i32, i32
  }
  func.func @transform_5(%arg0: i32, %arg1: i32) -> (i32, i32, i32) {
    %c8_i32 = arith.constant 8 : i32
    %0 = arith.muli %arg0, %c8_i32 : i32
    %1 = arith.addi %0, %arg1 : i32
    %c0_i32 = arith.constant 0 : i32
    %c0_i32_0 = arith.constant 0 : i32
    %c0_i32_1 = arith.constant 0 : i32
    return %1, %c0_i32, %c0_i32_0 : i32, i32, i32
  }
  func.func @transform_6(%arg0: i32, %arg1: i32) -> (i32, i32, i32) {
    %c8_i32 = arith.constant 8 : i32
    %0 = arith.muli %arg0, %c8_i32 : i32
    %1 = arith.addi %0, %arg1 : i32
    %c0_i32 = arith.constant 0 : i32
    %c0_i32_0 = arith.constant 0 : i32
    %c0_i32_1 = arith.constant 0 : i32
    return %1, %c0_i32, %c0_i32_0 : i32, i32, i32
  }
}

module attributes {stable_mosaic.version = 11 : i64} {
  func.func @_bn_act_kernel(%arg0: i32, %arg1: memref<64x128xbf16, #tpu.memory_space<vmem>>, %arg2: memref<1x128xf32, #tpu.memory_space<vmem>>, %arg3: memref<1x128xf32, #tpu.memory_space<vmem>>, %arg4: memref<64x128xbf16, #tpu.memory_space<vmem>>) attributes {dimension_semantics = [#tpu.dimension_semantics<parallel>], iteration_bounds = array<i64: 1>, scalar_prefetch = 0 : i64, scratch_operands = 0 : i64, tpu.core_type = #tpu.core_type<tc>, window_params = [{transform_indices = @transform_0, window_bounds = array<i64: 64, 128>}, {pipeline_mode = #tpu.pipeline_mode<synchronous>, transform_indices = @transform_1, window_bounds = array<i64: 1, 128>}, {pipeline_mode = #tpu.pipeline_mode<synchronous>, transform_indices = @transform_2, window_bounds = array<i64: 1, 128>}, {transform_indices = @transform_3, window_bounds = array<i64: 64, 128>}]} {
    %c0 = arith.constant 0 : index
    %c0_0 = arith.constant 0 : index
    %0 = vector.load %arg1[%c0, %c0_0] : memref<64x128xbf16, #tpu.memory_space<vmem>>, vector<64x128xbf16>
    %1 = arith.extf %0 : vector<64x128xbf16> to vector<64x128xf32>
    %c0_1 = arith.constant 0 : index
    %c0_2 = arith.constant 0 : index
    %2 = vector.load %arg2[%c0_1, %c0_2] : memref<1x128xf32, #tpu.memory_space<vmem>>, vector<1x128xf32>
    %3 = vector.broadcast %2 : vector<1x128xf32> to vector<64x128xf32>
    %4 = arith.mulf %1, %3 : vector<64x128xf32>
    %c0_3 = arith.constant 0 : index
    %c0_4 = arith.constant 0 : index
    %5 = vector.load %arg3[%c0_3, %c0_4] : memref<1x128xf32, #tpu.memory_space<vmem>>, vector<1x128xf32>
    %6 = vector.broadcast %5 : vector<1x128xf32> to vector<64x128xf32>
    %7 = arith.addf %4, %6 : vector<64x128xf32>
    %cst = arith.constant 0.000000e+00 : f32
    %8 = vector.broadcast %cst : f32 to vector<64x128xf32>
    %9 = arith.cmpf ogt, %7, %8 : vector<64x128xf32>
    %cst_5 = arith.constant 2.000000e-01 : f32
    %10 = vector.broadcast %cst_5 : f32 to vector<64x128xf32>
    %11 = arith.mulf %10, %7 : vector<64x128xf32>
    %12 = arith.select %9, %7, %11 : vector<64x128xi1>, vector<64x128xf32>
    %13 = arith.truncf %12 : vector<64x128xf32> to vector<64x128xbf16>
    %c0_6 = arith.constant 0 : index
    %c0_7 = arith.constant 0 : index
    %14 = vector.load %arg4[%c0_6, %c0_7] : memref<64x128xbf16, #tpu.memory_space<vmem>>, vector<64x128xbf16>
    tpu.vector_store %arg4[%c0_6, %c0_7], %13 {strides = array<i32>} : memref<64x128xbf16, #tpu.memory_space<vmem>>, vector<64x128xbf16>,
    return
  }
  func.func @transform_0(%arg0: i32) -> (i32, i32) {
    %c0_i32 = arith.constant 0 : i32
    %c0_i32_0 = arith.constant 0 : i32
    return %arg0, %c0_i32 : i32, i32
  }
  func.func @transform_1(%arg0: i32) -> (i32, i32) {
    %c0_i32 = arith.constant 0 : i32
    %c0_i32_0 = arith.constant 0 : i32
    %c0_i32_1 = arith.constant 0 : i32
    return %c0_i32, %c0_i32_0 : i32, i32
  }
  func.func @transform_2(%arg0: i32) -> (i32, i32) {
    %c0_i32 = arith.constant 0 : i32
    %c0_i32_0 = arith.constant 0 : i32
    %c0_i32_1 = arith.constant 0 : i32
    return %c0_i32, %c0_i32_0 : i32, i32
  }
  func.func @transform_3(%arg0: i32) -> (i32, i32) {
    %c0_i32 = arith.constant 0 : i32
    %c0_i32_0 = arith.constant 0 : i32
    return %arg0, %c0_i32 : i32, i32
  }
}

module attributes {stable_mosaic.version = 11 : i64} {
  func.func @_bn_act_kernel(%arg0: i32, %arg1: memref<64x128xbf16, #tpu.memory_space<vmem>>, %arg2: memref<1x128xf32, #tpu.memory_space<vmem>>, %arg3: memref<1x128xf32, #tpu.memory_space<vmem>>, %arg4: memref<64x128xf32, #tpu.memory_space<vmem>>) attributes {dimension_semantics = [#tpu.dimension_semantics<parallel>], iteration_bounds = array<i64: 1>, scalar_prefetch = 0 : i64, scratch_operands = 0 : i64, tpu.core_type = #tpu.core_type<tc>, window_params = [{transform_indices = @transform_0, window_bounds = array<i64: 64, 128>}, {pipeline_mode = #tpu.pipeline_mode<synchronous>, transform_indices = @transform_1, window_bounds = array<i64: 1, 128>}, {pipeline_mode = #tpu.pipeline_mode<synchronous>, transform_indices = @transform_2, window_bounds = array<i64: 1, 128>}, {transform_indices = @transform_3, window_bounds = array<i64: 64, 128>}]} {
    %c0 = arith.constant 0 : index
    %c0_0 = arith.constant 0 : index
    %0 = vector.load %arg1[%c0, %c0_0] : memref<64x128xbf16, #tpu.memory_space<vmem>>, vector<64x128xbf16>
    %1 = arith.extf %0 : vector<64x128xbf16> to vector<64x128xf32>
    %c0_1 = arith.constant 0 : index
    %c0_2 = arith.constant 0 : index
    %2 = vector.load %arg2[%c0_1, %c0_2] : memref<1x128xf32, #tpu.memory_space<vmem>>, vector<1x128xf32>
    %3 = vector.broadcast %2 : vector<1x128xf32> to vector<64x128xf32>
    %4 = arith.mulf %1, %3 : vector<64x128xf32>
    %c0_3 = arith.constant 0 : index
    %c0_4 = arith.constant 0 : index
    %5 = vector.load %arg3[%c0_3, %c0_4] : memref<1x128xf32, #tpu.memory_space<vmem>>, vector<1x128xf32>
    %6 = vector.broadcast %5 : vector<1x128xf32> to vector<64x128xf32>
    %7 = arith.addf %4, %6 : vector<64x128xf32>
    %cst = arith.constant 0.000000e+00 : f32
    %8 = vector.broadcast %cst : f32 to vector<64x128xf32>
    %9 = arith.cmpf ogt, %7, %8 : vector<64x128xf32>
    %cst_5 = arith.constant 2.000000e-01 : f32
    %10 = vector.broadcast %cst_5 : f32 to vector<64x128xf32>
    %11 = arith.mulf %10, %7 : vector<64x128xf32>
    %12 = arith.select %9, %7, %11 : vector<64x128xi1>, vector<64x128xf32>
    %c0_6 = arith.constant 0 : index
    %c0_7 = arith.constant 0 : index
    %13 = vector.load %arg4[%c0_6, %c0_7] : memref<64x128xf32, #tpu.memory_space<vmem>>, vector<64x128xf32>
    tpu.vector_store %arg4[%c0_6, %c0_7], %12 {strides = array<i32>} : memref<64x128xf32, #tpu.memory_space<vmem>>, vector<64x128xf32>,
    return
  }
  func.func @transform_0(%arg0: i32) -> (i32, i32) {
    %c0_i32 = arith.constant 0 : i32
    %c0_i32_0 = arith.constant 0 : i32
    return %arg0, %c0_i32 : i32, i32
  }
  func.func @transform_1(%arg0: i32) -> (i32, i32) {
    %c0_i32 = arith.constant 0 : i32
    %c0_i32_0 = arith.constant 0 : i32
    %c0_i32_1 = arith.constant 0 : i32
    return %c0_i32, %c0_i32_0 : i32, i32
  }
  func.func @transform_2(%arg0: i32) -> (i32, i32) {
    %c0_i32 = arith.constant 0 : i32
    %c0_i32_0 = arith.constant 0 : i32
    %c0_i32_1 = arith.constant 0 : i32
    return %c0_i32, %c0_i32_0 : i32, i32
  }
  func.func @transform_3(%arg0: i32) -> (i32, i32) {
    %c0_i32 = arith.constant 0 : i32
    %c0_i32_0 = arith.constant 0 : i32
    return %arg0, %c0_i32 : i32, i32
  }
}

</mosaic_0001>

<bundles_post_ra>
// kernel: _lambda_.16
= control target key start
LH: loop header
LB: loop body
LE: loop exit
PB: predicated region body
PF: predicated region fallthrough
CT: control target
= control target key end

     0   :  { %11 = vsyncpa [#allocation3], 0  ;;  %s1936_s0 = inlined_call_operand.vmem [shape: bf16[12,6,6,4], index: 0, kind: input, shape index: {}, may-alias: {0,1}]   ;;  %s1937_s1 = inlined_call_operand.vmem [shape: bf16[12,6,6,4], index: 1, kind: input, shape index: {}, may-alias: {0,1}]   ;;  %s1938_s2 = inlined_call_operand.vmem [shape: f32[8,4,4], index: 2, kind: input, shape index: {}]   ;;  %s1939_s3 = inlined_call_operand.vmem [shape: f32[1,4], index: 3, kind: input, shape index: {}]   ;;  %s1940_s4 = inlined_call_operand.vmem [shape: bf16[8,16,4], index: 4, kind: output, shape index: {0}]   ;;  %s1941_s5 = inlined_call_operand.hbm [shape: f32[8,2,4], index: 5, kind: output, shape index: {1}]  }
   0x1   :  { %13 = vsyncpa [#allocation3 + $0x1], 0  ;;  %s1630_s18 = smov 0   ;;  %s1632_s19 = smov 0  }
   0x2   :  { %s1634_s20 = smov 0   ;;  %s1636_s21 = smov 0  }
   0x3   :  { %s1638_s22 = smov 0   ;;  %s1640_s23 = smov 0  }
   0x4   :  { %s1642_s24 = smov 0   ;;  %s1644_s25 = smov 0  }
   0x5 LB: > { %s1285_s26 = sadd.s32 4294967295, %s1597_s25   ;;  %s28_s27 = sadd.s32 1, %s1589_s23  ;;  %s1597_s25 = sphi %s1644_s25, %s19_s25   ;;  %s1593_s24 = sphi %s1642_s24, %s1952_s24   ;;  %s1589_s23 = sphi %s1640_s23, %s1951_s23   ;;  %s1585_s22 = sphi %s1638_s22, %s1950_s22   ;;  %s1581_s21 = sphi %s1636_s21, %s1949_s21   ;;  %s1577_s20 = sphi %s1634_s20, %s1948_s20   ;;  %s1573_s19 = sphi %s1632_s19, %s1947_s19   ;;  %s1569_s18 = sphi %s1630_s18, %s1946_s18  }
   0x6   : > { %s31_s28 = sadd.s32 1, %s1593_s24  ;;  %p29_p0 = scmp.ge.s32.totalorder %s28_s27, 4 }
   0x7   : > { %s1289_s29 = sshll.u32 %s1593_s24, 2  ;;  %s1286_s30 = sadd.s32 4294967294, %s1597_s25  }
   0x8   : > { %s170_s6 = sadd.s32 %s1589_s23, %s1289_s29  ;;  %s1954_s27 = smov (%p29_p0, %s28_s27), 0 }
   0x9   : > { %s1956_s28 = smov (!%p29_p0, %s31_s28), %s1593_s24  ;;  %p186_p1 = scmp.ne.s32.totalorder %s1577_s20, %s1573_s19 }
   0xa   : > { %p187_p2 = scmp.eq.s32.totalorder %s1285_s26, 7  ;;  %p33_p3 = scmp.ge.s32.totalorder %s1956_s28, 2 }
   0xb   : > { %p192_p4 = scmp.ne.s32.totalorder %s1573_s19, %s1569_s18  ;;  %p193_p6 = scmp.eq.s32.totalorder %s1286_s30, 7 }
   0xc   : > { %p1683_p5 = por %p187_p2, %p186_p1  ;;  %s1958_s28 = smov (%p33_p3, %s1956_s28), 0 }
   0xd   : > { %p1689_p7 = por %p193_p6, %p192_p4  ;;  %p1293_p8 = scmp.ge.s32.totalorder %s1597_s25, 1 }
   0xe   : > { %s1290_s9 = sshll.u32 %s1958_s28, 2  ;;  %p243_p9 = scmp.lt.s32.totalorder %s1597_s25, 9 }
   0xf   : > { %s172_s10 = sadd.s32 %s1290_s9, %s1954_s27  ;;  %s176_s11 = sadd.s32 1, %s1577_s20 }
  0x10   : > { %s173_s12 = ssub.s32 %s170_s6, %s172_s10  ;;  %p244_p10 = pnand %p1293_p8, %p243_p9 }
  0x11   : > { %p174_p11 = scmp.eq.s32.totalorder %s173_s12, 0  ;;  %vm366_vm0 = vcmask (!%p244_p10), 1043456   ;;  %v1320_v0 = vld [vmem:[%s1938_s2 + $0x10] sm:$0xf] (!%p244_p10)  ;;  %s288_s16 = smul.u32 (!%p244_p10), 6, %s1585_s22  ;;  %vm338_vm1 = vcmask (!%p244_p10), 1042432  }
  0x12   : > { %247 = sbr.rel (%p244_p10) target bundleno = 314 (0x13a), region = 36  ;;  %1396 = vmatprep.subr.msk.mxu0 (!%p244_p10), %vm366_vm0, %v1320_v0  ;;  %v1304_v1 = vld [vmem:[%s1938_s2 + $0x4] sm:$0xf] (!%p244_p10)  ;;  %v1712_v2 = vld [vmem:[%s1938_s2] sm:$0xf] (!%p244_p10)  ;;  %vm339_vm2 = vcmask (!%p244_p10), 1046532  }
  0x13   : > { %s1699_s13 = scalar_select %p174_p11, %s1577_s20, %s176_s11  }
  0x14   : > { %1397 = vmatpush3.msk.msra.mxu0 (!%p244_p10), %vm366_vm0, %v1320_v0  ;;  %s289_s6 = sadd.s32 (!%p244_p10), %s1581_s21, %s288_s16  ;;  %1376 = vmatprep.subr.msk.mxu1 (!%p244_p10), %vm366_vm0, %v1304_v1  ;;  %v1328_v3 = vld [vmem:[%s1938_s2 + $0x14] sm:$0xf] (!%p244_p10)  ;;  %vm361_vm3 = vcmask (!%p244_p10), 31744   ;;  %vm1764_vm4 = vmor (!%p244_p10), %vm338_vm1, %vm339_vm2  ;;  %v1332_v34 = vld [vmem:[%s1938_s2 + $0x18] sm:$0xf] (!%p244_p10)  ;;  %vm1120_vm5 = vcmask (!%p244_p10), 27648  }
  0x15   : > { %p290_p12 = scmp.lt.s32.totalorder (!%p244_p10), %s289_s6, 11  ;;  %s299_s11 = sadd.s32 (!%p244_p10), 1, %s289_s6  ;;  %1377 = vmatpush3.msk.msra.mxu1 (!%p244_p10), %vm366_vm0, %v1304_v1  ;;  %1401 = vmatprep.subr.msk.mxu0 (!%p244_p10), %vm366_vm0, %v1328_v3  ;;  %v1311_v51 = vld [vmem:[%s1938_s2 + $0x8] sm:$0xf] (!%p244_p10)  ;;  %vm1132_vm6 = vcmask (!%p244_p10), 24576  }
  0x16   : > { %p300_p13 = scmp.lt.s32.totalorder (!%p244_p10), %s299_s11, 11  ;;  %1381 = vmatprep.subr.msk.mxu1 (!%p244_p10), %vm366_vm0, %v1712_v2 }
  0x19   : > { %s1960_s6 = smov (!%p290_p12, %s289_s6), 11  ;;  %s1962_s11 = smov (!%p300_p13, %s299_s11), 11 }
  0x1a   : > { %s1430_s12 = smul.u32 24, %s1960_s6 }
  0x1b   : > { %s1431_s14 = smul.u32 24, %s1962_s11  ;;  %s285_s11 = sand.u32 1, %s1573_s19  }
  0x1c   : > { %s1727_s17 = scalar_lea.vmem %s1936_s0, %s1430_s12  ;;  %s1294_s12 = sshll.u32 %s285_s11, 1 }
  0x1d   : > { %s1732_s30 = scalar_lea.vmem %s1937_s1, %s1431_s14  ;;  %v319_v4 = vld [vmem:[%s1727_s17 + $0x4] sm:$0x7]  ;;  %v320_v5 = vld [vmem:[%s1727_s17 + $0x8] sm:$0x7]  ;;  %v321_v6 = vld [vmem:[%s1727_s17 + $0xc] sm:$0x7] }
  0x1e   : > { %v711_v7 = vld [vmem:[%s1732_s30 + $0x4] sm:$0x7]  ;;  %v712_v8 = vld [vmem:[%s1732_s30 + $0x8] sm:$0x7]  ;;  %v713_v9 = vld [vmem:[%s1732_s30 + $0xc] sm:$0x7]  ;;  %v324_v10 = vunpack.c.l.bf16 %v319_v4  ;;  %v1740_v11 = vunpack.c.l.bf16 %v320_v5  ;;  %v1742_v12 = vunpack.c.l.bf16 %v321_v6 }
  0x1f   : > { %v716_v13 = vunpack.c.l.bf16 %v711_v7  ;;  %v1744_v14 = vunpack.c.l.bf16 %v712_v8  ;;  %v714_v15 = vld [vmem:[%s1732_s30 + $0x10] sm:$0x7]  ;;  %v1747_v16 = vunpack.c.l.bf16 %v713_v9  ;;  %v715_v59 = vld [vmem:[%s1732_s30 + $0x14] sm:$0x7]  ;;  %v1337_v4 = vld [vmem:[%s1938_s2 + $0x1c] sm:$0xf] }
  0x20   : > { %v322_v17 = vld [vmem:[%s1727_s17 + $0x10] sm:$0x7]  ;;  %v1750_v18 = vunpack.c.l.bf16 %v714_v15  ;;  %v334_v20 = vcombine.high %v324_v10, %v324_v10  ;;  %v335_v24 = vcombine.high %v1740_v11, %v1740_v11  ;;  %v336_v26 = vcombine.high %v1742_v12, %v1742_v12  ;;  %v323_v63 = vld [vmem:[%s1727_s17 + $0x14] sm:$0x7]  ;;  %v1316_v6 = vld [vmem:[%s1938_s2 + $0xc] sm:$0xf] }
  0x21   : > { %v1752_v19 = vunpack.c.l.bf16 %v322_v17  ;;  %v727_v21 = vcombine.low %v716_v13, %v1744_v14  ;;  %v813_v22 = vcombine.high %v716_v13, %v716_v13  ;;  %v1324_v23 = vrot.slane %v716_v13, 9  ;;  %s1297_s17 = sshll.u32 %s1585_s22, 2  ;;  %s287_s15 = scalar_lea.vmem [#allocation2], %s1294_s12 }
  0x22   : > { %v728_v25 = vcombine.low %v1747_v16, %v1750_v18  ;;  %v1300_v29 = vrot.slane %v324_v10, 9  ;;  %v343_v31 = vrot.slane %v334_v20, 5  ;;  %v1301_v32 = vrot.slane %v1740_v11, 9  ;;  %s1864_s26 = sadd.s32 %s1581_s21, %s1297_s17  ;;  %s1174_s16 = sshll.u32 %s287_s15, 4  ;;  %s1885_s16 = int_to_ptr.vmem [resolvable:$true] %s1174_s16 }
  0x23   : > { %v337_v27 = vcombine.high %v1752_v19, %v1752_v19  ;;  %1398 = vmatprep.mubr.msk.f32.mxu0 %vm361_vm3, %v727_v21  ;;  %v819_v30 = vrot.slane %v813_v22, 5  ;;  %v347_v33 = vrot.slane %v335_v24, 5  ;;  %v1302_v35 = vrot.slane %v1742_v12, 9  ;;  %p310_p0 = scmp.lt.s32.totalorder %s1864_s26, 7  ;;  %v1341_v24 = vld [vmem:[%s1939_s3] ss:$0 sm:$0xff] }
  0x24   : > { %1399 = vmatmul.mubr.msk.f32.vlgmr.msra.gmra.mrb[0].mxu0 %vm361_vm3, %v728_v25  ;;  %v351_v36 = vrot.slane %v336_v26, 5  ;;  %v1303_v37 = vrot.slane %v1752_v19, 9  ;;  %v344_v39 = vsel %vm1764_vm4, %v1300_v29, %v343_v31  ;;  %v814_v44 = vcombine.high %v1744_v14, %v1744_v14  ;;  %s1346_s14 = sshll.u32 %s1864_s26, 5  ;;  %s1154_s6 = scalar_lea.sflag [#allocation3], %s285_s11 }
  0x25   : > { %v355_v38 = vrot.slane %v337_v27, 5  ;;  %v1780_v40 = vsel %vm1764_vm4, %v1301_v32, %v347_v33  ;;  %1402 = vmatpush3.msk.msra.mxu0 %vm366_vm0, %v1328_v3  ;;  %v820_v46 = vsel %vm1764_vm4, %v1324_v23, %v819_v30  ;;  %v1325_v47 = vrot.slane %v1744_v14, 9  ;;  %s311_s29 = scalar_select %p310_p0, %s1864_s26, 7 }
  0x26   : > { %v1785_v41 = vsel %vm1764_vm4, %v1302_v35, %v351_v36  ;;  %v359_v43 = vcombine.low %v344_v39, %v1780_v40  ;;  %1406 = vmatprep.subr.msk.mxu0 %vm366_vm0, %v1332_v34  ;;  %v823_v48 = vrot.slane %v814_v44, 5  ;;  %v815_v49 = vcombine.high %v1747_v16, %v1747_v16  ;;  %s1883_s30 = scalar_lea.hbm %s1941_s5, %s1346_s14  ;;  %s1599_s26 = smov [#allocation2]  }
  0x27   : > { %v1789_v42 = vsel %vm1764_vm4, %v1303_v37, %v355_v38  ;;  %v816_v50 = vcombine.high %v1750_v18, %v1750_v18  ;;  %v1326_v52 = vrot.slane %v1747_v16, 9  ;;  %v1327_v53 = vrot.slane %v1750_v18, 9  ;;  %s1349_s9 = sshll.u32 %s311_s29, 3  ;;  %s1507_s22 = sshll.u32 %s1599_s26, 4  ;;  %s1508_s22 = int_to_ptr.vmem [resolvable:$false] %s1507_s22 }
  0x28   : > { %v360_v45 = vcombine.low %v1785_v41, %v1789_v42  ;;  %1378 = vmatprep.mubr.msk.f32.mxu1 %vm361_vm3, %v359_v43  ;;  %v445_v54 = vcombine.low %v324_v10, %v1740_v11  ;;  %v824_v55 = vsel %vm1764_vm4, %v1325_v47, %v823_v48  ;;  %v827_v56 = vrot.slane %v815_v49, 5  ;;  %s314_s10 = scalar_lea.vmem %s1940_s4, %s1349_s9  ;;  %s1503_s9 = scalar_lea.vmem %s1885_s16, 32 }
  0x29   : > { %v831_v57 = vrot.slane %v816_v50, 5  ;;  %v835_v58 = vcombine.low %v820_v46, %v824_v55  ;;  %v924_v62 = vcombine.low %v1744_v14, %v1747_v16  ;;  %v446_v1 = vcombine.low %v1742_v12, %v1752_v19  ;;  %p1504_p1 = scmp.ne.s32.totalorder %s1885_s16, %s1503_s9  ;;  %s1509_s21 = scalar_lea.vmem %s1508_s22, 64 }
  0x2a   : > { %1379 = vmatmul.mubr.msk.f32.vlgmr.msra.gmra.mrb[0].mxu1 %vm361_vm3, %v360_v45  ;;  %v828_v60 = vsel %vm1764_vm4, %v1326_v52, %v827_v56  ;;  %v532_v3 = vcombine.low %v1740_v11, %v1742_v12  ;;  %v328_v5 = vunpack.c.l.bf16 %v323_v63  ;;  %v625_v16 = vcombine.low %v1780_v40, %v1785_v41  ;;  %p1510_p4 = scmp.lt.s32.totalorder %s1885_s16, %s1508_s22  ;;  %p1511_p6 = scmp.lt.s32.totalorder %s1509_s21, %s1503_s9 }
  0x2b   : > { %1382 = vmatpush3.msk.msra.mxu1 %vm366_vm0, %v1712_v2  ;;  %1383 = vmatprep.mubr.msk.f32.mxu1 %vm361_vm3, %v445_v54  ;;  %v832_v61 = vsel %vm1764_vm4, %v1327_v53, %v831_v57  ;;  %v720_v2 = vunpack.c.l.bf16 %v715_v59  ;;  %v1017_v10 = vcombine.low %v824_v55, %v828_v60  ;;  %p1505_p2 = pnand %p1504_p1, %p1683_p5 }
  0x2c   : > { %1386 = vmatprep.subr.msk.mxu1 %vm366_vm0, %v1311_v51  ;;  %1403 = vmatprep.mubr.msk.f32.mxu0 %vm361_vm3, %v835_v58  ;;  %v836_v0 = vcombine.low %v828_v60, %v832_v61  ;;  %v618_v8 = vcombine.high %v328_v5, %v328_v5  ;;  %v533_v13 = vcombine.low %v1752_v19, %v328_v5  ;;  %v1315_v14 = vrot.slane %v328_v5, 9  ;;  %p1512_p8 = por %p1511_p6, %p1510_p4 }
  0x2d   : > { %v1010_v7 = vcombine.high %v720_v2, %v720_v2  ;;  %v925_v9 = vcombine.low %v1750_v18, %v720_v2  ;;  %v1336_v11 = vrot.slane %v720_v2, 9  ;;  %p1506_p3 = pneg %p1505_p2 }
  0x2e   : > { %1404 = vmatmul.mubr.msk.f32.vlgmr.msra.gmra.mrb[0].mxu0 %vm361_vm3, %v836_v0  ;;  %v621_v15 = vrot.slane %v618_v8, 5 }
  0x2f   : > { %1407 = vmatpush3.msk.msra.mxu0 %vm366_vm0, %v1332_v34  ;;  %1408 = vmatprep.mubr.msk.f32.mxu0 %vm361_vm3, %v924_v62  ;;  %v1013_v12 = vrot.slane %v1010_v7, 5  ;;  %p1513_p9 = pnand %p1512_p8, %p1506_p3 }
  0x30   : > { %1411 = vmatprep.subr.msk.mxu0 %vm366_vm0, %v1337_v4  ;;  %v622_v18 = vsel %vm1764_vm4, %v1315_v14, %v621_v15 }
  0x31   : > { %v1014_v17 = vsel %vm1764_vm4, %v1336_v11, %v1013_v12  ;;  %v626_v20 = vcombine.low %v1789_v42, %v622_v18 }
  0x32   : > { %1384 = vmatmul.mubr.msk.f32.vlgmr.msra.gmra.mrb[0].mxu1 %vm361_vm3, %v446_v1  ;;  %v1018_v19 = vcombine.low %v832_v61, %v1014_v17 }
  0x33   : > { %1387 = vmatpush3.msk.msra.mxu1 %vm366_vm0, %v1311_v51  ;;  %1388 = vmatprep.mubr.msk.f32.mxu1 %vm361_vm3, %v532_v3 }
  0x34   : > { %1391 = vmatprep.subr.msk.mxu1 %vm366_vm0, %v1316_v6 }
  0x36   : > { %1409 = vmatmul.mubr.msk.f32.vlgmr.msra.gmra.mrb[0].mxu0 %vm361_vm3, %v925_v9 }
  0x37   : > { %1412 = vmatpush3.msk.msra.mxu0 %vm366_vm0, %v1337_v4  ;;  %1413 = vmatprep.mubr.msk.f32.mxu0 %vm361_vm3, %v1017_v10 }
  0x3a   : > { %1389 = vmatmul.mubr.msk.f32.vlgmr.msra.gmra.mrb[0].mxu1 %vm361_vm3, %v533_v13 }
  0x3b   : > { %1392 = vmatpush3.msk.msra.mxu1 %vm366_vm0, %v1316_v6  ;;  %1393 = vmatprep.mubr.msk.f32.mxu1 %vm361_vm3, %v625_v16 }
  0x3e   : > { %1414 = vmatmul.mubr.msk.f32.vlgmr.msra.gmra.mrb[0].mxu0 %vm361_vm3, %v1018_v19 }
  0x42   : > { %1394 = vmatmul.mubr.msk.f32.vlgmr.msra.gmra.mrb[0].mxu1 %vm361_vm3, %v626_v20 }
 0x111   : > { %v1415_v21 = vpop.f32.mrb[0].mxu0 }
 0x112   : > { %v1092_v22 = vpop.f32.mrb[1].mxu0 }
 0x115   : > { %v1395_v23 = vpop.f32.mrb[0].mxu1 }
 0x116   : > { %v1416_v25 = vadd.f32 %v1415_v21, %v1395_v23  ;;  %v700_v26 = vpop.f32.mrb[1].mxu1 }
 0x117   : > { %v1417_v27 = vadd.f32 %v1092_v22, %v700_v26 }
 0x118   : > { %v1111_v28 = vadd.f32 %v1416_v25, %v1341_v24 }
 0x119   : > { %v1110_v29 = vadd.f32 %v1417_v27, %v1341_v24 }
 0x11a   : > { %v1351_v30 = vpack.c.bf16 %v1111_v28, %v1111_v28  ;;  %v1124_v31 = vsel %vm361_vm3, %v1111_v28, 0.0  ;;  %v1135_v32 = vmul.f32 %v1111_v28, %v1111_v28 }
 0x11b   : > { %v1350_v33 = vpack.c.bf16 %v1110_v29, %v1110_v29  ;;  %v1123_v34 = vsel %vm361_vm3, %v1110_v29, 0.0  ;;  %v1134_v35 = vmul.f32 %v1110_v29, %v1110_v29 }
 0x11c   : > { %v1137_v36 = vsel %vm361_vm3, %v1135_v32, 0.0  ;;  %v1125_v37 = vadd.f32 %v1124_v31, %v1123_v34  ;;  %1122 = vst.msk [vmem:[%s314_s10 + $0x4] sm:$0xf] %vm1120_vm5, %v1351_v30 }
 0x11d   : > { %v1136_v38 = vsel %vm361_vm3, %v1134_v35, 0.0  ;;  %1121 = vst.msk [vmem:[%s314_s10] sm:$0xf] %vm1120_vm5, %v1350_v33 }
 0x11e   : > { %v1126_v39 = vrot.slane %v1125_v37, 4  ;;  %v1138_v40 = vadd.f32 %v1137_v36, %v1136_v38 }
 0x120   : > { %v1127_v41 = vadd.f32 %v1126_v39, %v1125_v37  ;;  %v1139_v42 = vrot.slane %v1138_v40, 4 }
 0x122   : > { %v1128_v43 = vrot.slane %v1127_v41, 2  ;;  %v1140_v44 = vadd.f32 %v1139_v42, %v1138_v40 }
 0x124   : > { %v1129_v45 = vadd.f32 %v1128_v43, %v1127_v41  ;;  %v1141_v46 = vrot.slane %v1140_v44, 2 }
 0x126   : > { %v1130_v47 = vrot.slane %v1129_v45, 1  ;;  %v1142_v48 = vadd.f32 %v1141_v46, %v1140_v44 }
 0x128   : > { %v1131_v49 = vadd.f32 %v1130_v47, %v1129_v45  ;;  %v1143_v50 = vrot.slane %v1142_v48, 1 }
 0x12a   : > { %1133 = vst.msk [vmem:[%s287_s15] sm:$0x1] %vm1132_vm6, %v1131_v49  ;;  %v1144_v51 = vadd.f32 %v1143_v50, %v1142_v48 }
 0x12c   : > { %1145 = vst.msk [vmem:[%s287_s15 + $0x1] sm:$0x1] %vm1132_vm6, %v1144_v51 }
 0x12d   : > { %1516 = shalt.err (!%p1513_p9)
}
 0x12e   : > { %s1517_s10 = scalar_lea.hbm %s1883_s30, 32  ;;  %s1521_s14 = scalar_lea.hbm %s1941_s5, 256 }
 0x12f   : > { %p1518_p10 = scmp.ne.s32.totalorder %s1883_s30, %s1517_s10  ;;  %p1522_p13 = scmp.lt.u32.totalorder %s1883_s30, %s1941_s5 }
 0x130   : > { %p1523_p0 = scmp.lt.u32.totalorder %s1521_s14, %s1517_s10  ;;  %p1525_p2 = scmp.lt.u32.totalorder %s1517_s10, %s1883_s30 }
 0x131   : > { %p1519_p11 = pnand %p1518_p10, %p1683_p5 }
 0x132   : > { %p1524_p1 = por %p1523_p0, %p1522_p13 }
 0x133   : > { %p1520_p12 = pneg %p1519_p11 }
 0x134   : > { %p1526_p3 = por %p1525_p2, %p1524_p1 }
 0x136   : > { %p1527_p4 = pnand %p1526_p3, %p1520_p12 }
 0x138   : > { %1530 = shalt.err (!%p1527_p4)
}
 0x139   : > { %1432 = dma.vmem_to_hbm [thread:$0]  (%p1683_p5), %s1885_s16, 32, %s1883_s30, %s1154_s6  }
 0x13a PF: > { %p1438_p6 = scmp.ge.s32.totalorder %s1597_s25, 2  ;;  %s1196_s29 = sand.u32 1, %s1569_s18  }
 0x13b   : > { %s1197_s9 = scalar_lea.sflag [#allocation3], %s1196_s29 }
 0x13c   : > { %p1435_p8 = pnand %p1438_p6, %p1689_p7 }
 0x13e   : > { %1564 = dma.done.wait (!%p1435_p8), %s1197_s9, 32  }
 0x13f   : > { %1566 = vsyncadd (!%p1435_p8), %s1197_s9, 4294967264  ;;  %s19_s25 = sadd.s32 1, %s1597_s25   ;;  %s1946_s18 = smov %s1573_s19 }
 0x140   : > { %p16_p9 = scmp.ge.s32.totalorder %s19_s25, 10   ;;  %s1947_s19 = smov %s1577_s20 }
 0x141   : > { %s1948_s20 = smov %s1699_s13  ;;  %s1949_s21 = smov %s1589_s23 }
 0x142   : > { %s1950_s22 = smov %s1593_s24  ;;  %s1951_s23 = smov %s1954_s27 }
 0x143   : > { %s1952_s24 = smov %s1958_s28  ;;  %18 = sbr.rel (!%p16_p9) target bundleno = 5 (0x5), region = 93 }
 0x14a   :  { %1202 = vsyncpa [#allocation3], 1 }
 0x14b   :  { %1204 = vsyncpa [#allocation3 + $0x1], 1 }

// kernel: _lambda_.15
= control target key start
LH: loop header
LB: loop body
LE: loop exit
PB: predicated region body
PF: predicated region fallthrough
CT: control target
= control target key end

     0   :  { %11 = vsyncpa [#allocation3], 0  ;;  %s2068_s0 = inlined_call_operand.vmem [shape: bf16[12,6,6,4], index: 0, kind: input, shape index: {}, may-alias: {0,1}]   ;;  %s2069_s1 = inlined_call_operand.vmem [shape: bf16[12,6,6,4], index: 1, kind: input, shape index: {}, may-alias: {0,1}]   ;;  %s2070_s2 = inlined_call_operand.vmem [shape: f32[8,4,4], index: 2, kind: input, shape index: {}]   ;;  %s2071_s3 = inlined_call_operand.vmem [shape: f32[1,4], index: 3, kind: input, shape index: {}]   ;;  %s2072_s4 = inlined_call_operand.vmem [shape: bf16[8,16,4], index: 4, kind: output, shape index: {0}]   ;;  %s2073_s5 = inlined_call_operand.hbm [shape: f32[8,2,4], index: 5, kind: output, shape index: {1}]  }
   0x1   :  { %13 = vsyncpa [#allocation3 + $0x1], 0  ;;  %s1683_s18 = smov 0   ;;  %s1685_s19 = smov 0  }
   0x2   :  { %s1687_s20 = smov 0   ;;  %s1689_s21 = smov 0  }
   0x3   :  { %s1691_s22 = smov 0   ;;  %s1693_s23 = smov 0  }
   0x4   :  { %s1695_s24 = smov 0   ;;  %s1697_s25 = smov 0  }
   0x5 LB: > { %s1328_s26 = sadd.s32 4294967295, %s1650_s25   ;;  %s28_s27 = sadd.s32 1, %s1642_s23  ;;  %s1650_s25 = sphi %s1697_s25, %s19_s25   ;;  %s1646_s24 = sphi %s1695_s24, %s2086_s24   ;;  %s1642_s23 = sphi %s1693_s23, %s2085_s23   ;;  %s1638_s22 = sphi %s1691_s22, %s2084_s22   ;;  %s1634_s21 = sphi %s1689_s21, %s2083_s21   ;;  %s1630_s20 = sphi %s1687_s20, %s2082_s20   ;;  %s1626_s19 = sphi %s1685_s19, %s2081_s19   ;;  %s1622_s18 = sphi %s1683_s18, %s2080_s18  }
   0x6   : > { %s31_s28 = sadd.s32 1, %s1646_s24  ;;  %p29_p0 = scmp.ge.s32.totalorder %s28_s27, 4 }
   0x7   : > { %s1332_s29 = sshll.u32 %s1646_s24, 2  ;;  %s1329_s30 = sadd.s32 4294967294, %s1650_s25  }
   0x8   : > { %s170_s6 = sadd.s32 %s1642_s23, %s1332_s29  ;;  %s2088_s27 = smov (%p29_p0, %s28_s27), 0 }
   0x9   : > { %s2090_s28 = smov (!%p29_p0, %s31_s28), %s1646_s24  ;;  %p186_p1 = scmp.ne.s32.totalorder %s1630_s20, %s1626_s19 }
   0xa   : > { %p187_p2 = scmp.eq.s32.totalorder %s1328_s26, 7  ;;  %p33_p3 = scmp.ge.s32.totalorder %s2090_s28, 2 }
   0xb   : > { %p192_p4 = scmp.ne.s32.totalorder %s1626_s19, %s1622_s18  ;;  %p193_p6 = scmp.eq.s32.totalorder %s1329_s30, 7 }
   0xc   : > { %p1736_p5 = por %p187_p2, %p186_p1  ;;  %s2092_s28 = smov (%p33_p3, %s2090_s28), 0 }
   0xd   : > { %p1742_p7 = por %p193_p6, %p192_p4  ;;  %p1336_p8 = scmp.ge.s32.totalorder %s1650_s25, 1 }
   0xe   : > { %s1333_s9 = sshll.u32 %s2092_s28, 2  ;;  %p243_p9 = scmp.lt.s32.totalorder %s1650_s25, 9 }
   0xf   : > { %s172_s10 = sadd.s32 %s1333_s9, %s2088_s27  ;;  %s176_s11 = sadd.s32 1, %s1630_s20 }
  0x10   : > { %s173_s12 = ssub.s32 %s170_s6, %s172_s10  ;;  %p244_p10 = pnand %p1336_p8, %p243_p9 }
  0x11   : > { %p174_p11 = scmp.eq.s32.totalorder %s173_s12, 0  ;;  %v1351_v0 = vld [vmem:[%s2070_s2 + $0x4] sm:$0xf] (!%p244_p10)  ;;  %vm385_vm0 = vcmask (!%p244_p10), 1043456   ;;  %v1372_v1 = vld [vmem:[%s2070_s2 + $0x10] sm:$0xf] (!%p244_p10) }
  0x12   : > { %247 = sbr.rel (%p244_p10) target bundleno = 318 (0x13e), region = 36  ;;  %1429 = vmatprep.subr.msk.mxu1 (!%p244_p10), %vm385_vm0, %v1351_v0  ;;  %1449 = vmatprep.subr.msk.mxu0 (!%p244_p10), %vm385_vm0, %v1372_v1  ;;  %v1766_v2 = vld [vmem:[%s2070_s2] sm:$0xf] (!%p244_p10)  ;;  %v1774_v3 = vld [vmem:[%s2070_s2 + $0x14] sm:$0xf] (!%p244_p10)  ;;  %vm357_vm1 = vcmask (!%p244_p10), 1041408  }
  0x13   : > { %s1752_s13 = scalar_select %p174_p11, %s1630_s20, %s176_s11  }
  0x14   : > { %s288_s26 = smul.u32 (!%p244_p10), 6, %s1638_s22  ;;  %1430 = vmatpush3.msk.msra.mxu1 (!%p244_p10), %vm385_vm0, %v1351_v0  ;;  %1450 = vmatpush3.msk.msra.mxu0 (!%p244_p10), %vm385_vm0, %v1372_v1  ;;  %vm358_vm2 = vcmask (!%p244_p10), 1045508   ;;  %vm380_vm4 = vcmask (!%p244_p10), 31744   ;;  %vm337_vm5 = vcmask (!%p244_p10), 1042432   ;;  %vm338_vm6 = vcmask (!%p244_p10), 1046532  }
  0x15   : > { %1434 = vmatprep.subr.msk.mxu1 (!%p244_p10), %vm385_vm0, %v1766_v2  ;;  %1454 = vmatprep.subr.msk.mxu0 (!%p244_p10), %vm385_vm0, %v1774_v3  ;;  %vm1821_vm3 = vmor (!%p244_p10), %vm357_vm1, %vm358_vm2  ;;  %v1359_v46 = vld [vmem:[%s2070_s2 + $0x8] sm:$0xf] (!%p244_p10)  ;;  %v1394_v18 = vld [vmem:[%s2071_s3] ss:$0 sm:$0xff] (!%p244_p10)  ;;  %vm1163_vm8 = vcmask (!%p244_p10), 27648   ;;  %vm1175_vm9 = vcmask (!%p244_p10), 24576  }
  0x16   : > { %s289_s6 = sadd.s32 (!%p244_p10), %s1634_s21, %s288_s26  ;;  %vm1867_vm7 = vmor (!%p244_p10), %vm337_vm5, %vm338_vm6 }
  0x17   : > { %p290_p12 = scmp.lt.s32.totalorder (!%p244_p10), %s289_s6, 11  ;;  %s299_s11 = sadd.s32 (!%p244_p10), 1, %s289_s6 }
  0x18   : > { %p300_p13 = scmp.lt.s32.totalorder (!%p244_p10), %s299_s11, 11 }
  0x19   : > { %s2094_s6 = smov (!%p290_p12, %s289_s6), 11 }
  0x1a   : > { %s2096_s11 = smov (!%p300_p13, %s299_s11), 11  ;;  %s1483_s12 = smul.u32 24, %s2094_s6 }
  0x1b   : > { %s1484_s14 = smul.u32 24, %s2096_s11  ;;  %s285_s11 = sand.u32 1, %s1626_s19  }
  0x1c   : > { %s1783_s17 = scalar_lea.vmem %s2068_s0, %s1483_s12  ;;  %s1337_s12 = sshll.u32 %s285_s11, 1 }
  0x1d   : > { %v319_v4 = vld [vmem:[%s1783_s17] sm:$0x7]  ;;  %v320_v5 = vld [vmem:[%s1783_s17 + $0x4] sm:$0x7]  ;;  %v321_v6 = vld [vmem:[%s1783_s17 + $0x8] sm:$0x7]  ;;  %s1791_s30 = scalar_lea.vmem %s2069_s1, %s1484_s14 }
  0x1e   : > { %v322_v7 = vld [vmem:[%s1783_s17 + $0xc] sm:$0x7]  ;;  %v1794_v8 = vunpack.c.l.bf16 %v319_v4  ;;  %v1796_v9 = vunpack.c.l.bf16 %v320_v5  ;;  %v1798_v10 = vunpack.c.l.bf16 %v321_v6  ;;  %v734_v16 = vld [vmem:[%s1791_s30] sm:$0x7]  ;;  %v735_v22 = vld [vmem:[%s1791_s30 + $0x4] sm:$0x7] }
  0x1f   : > { %v1800_v11 = vunpack.c.l.bf16 %v322_v7  ;;  %v736_v24 = vld [vmem:[%s1791_s30 + $0x8] sm:$0x7]  ;;  %v1834_v28 = vunpack.c.l.bf16 %v734_v16  ;;  %v737_v30 = vld [vmem:[%s1791_s30 + $0xc] sm:$0x7]  ;;  %v1839_v31 = vunpack.c.l.bf16 %v735_v22  ;;  %v323_v32 = vld [vmem:[%s1783_s17 + $0x10] sm:$0x7] }
  0x20   : > { %v1804_v12 = vcombine.high %v1794_v8, %v1794_v8  ;;  %v1808_v13 = vcombine.high %v1796_v9, %v1796_v9  ;;  %v1812_v14 = vcombine.high %v1798_v10, %v1798_v10  ;;  %v1347_v15 = vrot.slane %v1794_v8, 10  ;;  %v738_v51 = vld [vmem:[%s1791_s30 + $0x10] sm:$0x7]  ;;  %s1340_s17 = sshll.u32 %s1638_s22, 2  ;;  %s287_s15 = scalar_lea.vmem [#allocation2], %s1337_s12 }
  0x21   : > { %v1818_v17 = vcombine.high %v1800_v11, %v1800_v11  ;;  %v1348_v19 = vrot.slane %v1796_v9, 10  ;;  %v1349_v20 = vrot.slane %v1798_v10, 10  ;;  %v1350_v21 = vrot.slane %v1800_v11, 10  ;;  %s1996_s26 = sadd.s32 %s1634_s21, %s1340_s17  ;;  %s1217_s16 = sshll.u32 %s287_s15, 4  ;;  %s2017_s16 = int_to_ptr.vmem [resolvable:$true] %s1217_s16 }
  0x22   : > { %v362_v23 = vrot.slane %v1804_v12, 6  ;;  %v366_v25 = vrot.slane %v1808_v13, 6  ;;  %v370_v26 = vrot.slane %v1812_v14, 6  ;;  %v1854_v36 = vunpack.c.l.bf16 %v736_v24  ;;  %p310_p0 = scmp.lt.s32.totalorder %s1996_s26, 7  ;;  %s1399_s14 = sshll.u32 %s1996_s26, 5 }
  0x23   : > { %v374_v27 = vrot.slane %v1818_v17, 6  ;;  %v1859_v39 = vunpack.c.l.bf16 %v737_v30  ;;  %v748_v40 = vcombine.high %v1834_v28, %v1834_v28  ;;  %v1863_v41 = vunpack.c.l.bf16 %v323_v32  ;;  %v1364_v30 = vld [vmem:[%s2070_s2 + $0xc] sm:$0xf]  ;;  %s2015_s30 = scalar_lea.hbm %s2073_s5, %s1399_s14  ;;  %s1197_s6 = scalar_lea.sflag [#allocation3], %s285_s11 }
  0x24   : > { %v363_v29 = vsel %vm1821_vm3, %v1347_v15, %v362_v23  ;;  %v1844_v33 = vsel %vm1821_vm3, %v1348_v19, %v366_v25  ;;  %v1848_v34 = vsel %vm1821_vm3, %v1349_v20, %v370_v26  ;;  %v749_v43 = vcombine.high %v1839_v31, %v1839_v31  ;;  %s311_s29 = scalar_select %p310_p0, %s1996_s26, 7 }
  0x25   : > { %v1852_v35 = vsel %vm1821_vm3, %v1350_v21, %v374_v27  ;;  %v378_v37 = vcombine.low %v363_v29, %v1844_v33  ;;  %v1875_v44 = vcombine.high %v1854_v36, %v1854_v36  ;;  %v1368_v45 = vrot.slane %v1834_v28, 9  ;;  %s1652_s26 = smov [#allocation2]  }
  0x26   : > { %v379_v38 = vcombine.low %v1848_v34, %v1852_v35  ;;  %v342_v47 = vrot.slane %v1804_v12, 5  ;;  %v1885_v48 = vcombine.high %v1859_v39, %v1859_v39  ;;  %v754_v49 = vrot.slane %v748_v40, 5  ;;  %s1402_s9 = sshll.u32 %s311_s29, 3  ;;  %s1560_s22 = sshll.u32 %s1652_s26, 4  ;;  %s1561_s22 = int_to_ptr.vmem [resolvable:$false] %s1560_s22 }
  0x27   : > { %1431 = vmatprep.mubr.msk.f32.mxu1 %vm380_vm4, %v378_v37  ;;  %v1369_v50 = vrot.slane %v1839_v31, 9  ;;  %v758_v52 = vrot.slane %v749_v43, 5  ;;  %v1370_v53 = vrot.slane %v1854_v36, 9  ;;  %v762_v54 = vrot.slane %v1875_v44, 5  ;;  %s314_s10 = scalar_lea.vmem %s2072_s4, %s1402_s9  ;;  %s1556_s9 = scalar_lea.vmem %s2017_s16, 32 }
  0x28   : > { %1432 = vmatmul.mubr.msk.f32.vlgmr.msra.gmra.mrb[0].mxu1 %vm380_vm4, %v379_v38  ;;  %v1371_v55 = vrot.slane %v1859_v39, 9  ;;  %v346_v56 = vrot.slane %v1808_v13, 5  ;;  %v350_v57 = vrot.slane %v1812_v14, 5  ;;  %v755_v58 = vsel %vm1867_vm7, %v1368_v45, %v754_v49  ;;  %p1557_p1 = scmp.ne.s32.totalorder %s2017_s16, %s1556_s9  ;;  %s1562_s21 = scalar_lea.vmem %s1561_s22, 64 }
  0x29   : > { %1435 = vmatpush3.msk.msra.mxu1 %vm385_vm0, %v1766_v2  ;;  %v766_v59 = vrot.slane %v1885_v48, 5  ;;  %v354_v60 = vrot.slane %v1818_v17, 5  ;;  %v1903_v61 = vcombine.high %v1863_v41, %v1863_v41  ;;  %v759_v62 = vsel %vm1867_vm7, %v1369_v50, %v758_v52  ;;  %v1385_v17 = vld [vmem:[%s2070_s2 + $0x18] sm:$0xf]  ;;  %p1563_p4 = scmp.lt.s32.totalorder %s2017_s16, %s1561_s22  ;;  %p1564_p6 = scmp.lt.s32.totalorder %s1562_s21, %s1556_s9 }
  0x2a   : > { %1439 = vmatprep.subr.msk.mxu1 %vm385_vm0, %v1359_v46  ;;  %v763_v63 = vsel %vm1867_vm7, %v1370_v53, %v762_v54  ;;  %v1909_v0 = vunpack.c.l.bf16 %v738_v51  ;;  %v770_v2 = vcombine.low %v755_v58, %v759_v62  ;;  %v858_v4 = vrot.slane %v748_v40, 6  ;;  %p1558_p2 = pnand %p1557_p1, %p1736_p5 }
  0x2b   : > { %v1913_v1 = vsel %vm1867_vm7, %v1371_v55, %v766_v59  ;;  %v862_v6 = vrot.slane %v749_v43, 6  ;;  %v1343_v7 = vrot.slane %v1794_v8, 9  ;;  %v1344_v12 = vrot.slane %v1796_v9, 9  ;;  %p1565_p8 = por %p1564_p6, %p1563_p4 }
  0x2c   : > { %v771_v5 = vcombine.low %v763_v63, %v1913_v1  ;;  %1451 = vmatprep.mubr.msk.f32.mxu0 %vm380_vm4, %v770_v2  ;;  %v866_v13 = vrot.slane %v1875_v44, 6  ;;  %v870_v14 = vrot.slane %v1885_v48, 6  ;;  %v1345_v15 = vrot.slane %v1798_v10, 9  ;;  %v1390_v44 = vld [vmem:[%s2070_s2 + $0x1c] sm:$0xf]  ;;  %p1559_p3 = pneg %p1558_p2 }
  0x2d   : > { %v1346_v16 = vrot.slane %v1800_v11, 9  ;;  %v343_v8 = vsel %vm1867_vm7, %v1343_v7, %v342_v47  ;;  %v347_v9 = vsel %vm1867_vm7, %v1344_v12, %v346_v56  ;;  %v1376_v19 = vrot.slane %v1834_v28, 10 }
  0x2e   : > { %1452 = vmatmul.mubr.msk.f32.vlgmr.msra.gmra.mrb[0].mxu0 %vm380_vm4, %v771_v5  ;;  %v1377_v20 = vrot.slane %v1839_v31, 10  ;;  %v961_v10 = vcombine.high %v1909_v0, %v1909_v0  ;;  %v464_v11 = vcombine.low %v343_v8, %v347_v9  ;;  %v351_v21 = vsel %vm1867_vm7, %v1345_v15, %v350_v57  ;;  %p1566_p9 = pnand %p1565_p8, %p1559_p3 }
  0x2f   : > { %1455 = vmatpush3.msk.msra.mxu0 %vm385_vm0, %v1774_v3  ;;  %v355_v22 = vsel %vm1867_vm7, %v1346_v16, %v354_v60  ;;  %v552_v23 = vrot.slane %v1903_v61, 5  ;;  %v859_v25 = vsel %vm1821_vm3, %v1376_v19, %v858_v4  ;;  %v1378_v27 = vrot.slane %v1854_v36, 10 }
  0x30   : > { %v465_v24 = vcombine.low %v351_v21, %v355_v22  ;;  %v863_v26 = vsel %vm1821_vm3, %v1377_v20, %v862_v6  ;;  %1459 = vmatprep.subr.msk.mxu0 %vm385_vm0, %v1385_v17  ;;  %1436 = vmatprep.mubr.msk.f32.mxu1 %vm380_vm4, %v464_v11  ;;  %v1379_v28 = vrot.slane %v1859_v39, 10  ;;  %v556_v29 = vcombine.low %v347_v9, %v351_v21 }
  0x31   : > { %v874_v3 = vcombine.low %v859_v25, %v863_v26  ;;  %v1384_v31 = vrot.slane %v1909_v0, 9  ;;  %v1358_v32 = vrot.slane %v1863_v41, 9  ;;  %v964_v37 = vrot.slane %v961_v10, 5 }
  0x32   : > { %1437 = vmatmul.mubr.msk.f32.vlgmr.msra.gmra.mrb[0].mxu1 %vm380_vm4, %v465_v24  ;;  %v968_v38 = vcombine.low %v759_v62, %v763_v63  ;;  %v867_v36 = vsel %vm1821_vm3, %v1378_v27, %v866_v13  ;;  %v871_v39 = vsel %vm1821_vm3, %v1379_v28, %v870_v14  ;;  %v644_v47 = vrot.slane %v1903_v61, 6 }
  0x33   : > { %1456 = vmatprep.mubr.msk.f32.mxu0 %vm380_vm4, %v874_v3  ;;  %1440 = vmatpush3.msk.msra.mxu1 %vm385_vm0, %v1359_v46  ;;  %v875_v40 = vcombine.low %v867_v36, %v871_v39  ;;  %v553_v43 = vsel %vm1867_vm7, %v1358_v32, %v552_v23  ;;  %v1363_v46 = vrot.slane %v1863_v41, 10  ;;  %v648_v48 = vcombine.low %v1844_v33, %v1848_v34 }
  0x34   : > { %1441 = vmatprep.mubr.msk.f32.mxu1 %vm380_vm4, %v556_v29  ;;  %1444 = vmatprep.subr.msk.mxu1 %vm385_vm0, %v1364_v30  ;;  %v557_v45 = vcombine.low %v355_v22, %v553_v43  ;;  %v965_v49 = vsel %vm1867_vm7, %v1384_v31, %v964_v37  ;;  %v1056_v51 = vrot.slane %v961_v10, 6  ;;  %v1060_v33 = vcombine.low %v863_v26, %v867_v36 }
  0x35   : > { %v969_v50 = vcombine.low %v1913_v1, %v965_v49  ;;  %v645_v41 = vsel %vm1821_vm3, %v1363_v46, %v644_v47  ;;  %v1389_v34 = vrot.slane %v1909_v0, 10 }
  0x36   : > { %1457 = vmatmul.mubr.msk.f32.vlgmr.msra.gmra.mrb[0].mxu0 %vm380_vm4, %v875_v40  ;;  %v649_v42 = vcombine.low %v1852_v35, %v645_v41 }
  0x37   : > { %1460 = vmatpush3.msk.msra.mxu0 %vm385_vm0, %v1385_v17  ;;  %1461 = vmatprep.mubr.msk.f32.mxu0 %vm380_vm4, %v968_v38  ;;  %v1057_v52 = vsel %vm1821_vm3, %v1389_v34, %v1056_v51 }
  0x38   : > { %1464 = vmatprep.subr.msk.mxu0 %vm385_vm0, %v1390_v44  ;;  %v1061_v53 = vcombine.low %v871_v39, %v1057_v52 }
  0x3a   : > { %1442 = vmatmul.mubr.msk.f32.vlgmr.msra.gmra.mrb[0].mxu1 %vm380_vm4, %v557_v45 }
  0x3b   : > { %1445 = vmatpush3.msk.msra.mxu1 %vm385_vm0, %v1364_v30  ;;  %1446 = vmatprep.mubr.msk.f32.mxu1 %vm380_vm4, %v648_v48 }
  0x3e   : > { %1462 = vmatmul.mubr.msk.f32.vlgmr.msra.gmra.mrb[0].mxu0 %vm380_vm4, %v969_v50 }
  0x3f   : > { %1465 = vmatpush3.msk.msra.mxu0 %vm385_vm0, %v1390_v44  ;;  %1466 = vmatprep.mubr.msk.f32.mxu0 %vm380_vm4, %v1060_v33 }
  0x42   : > { %1447 = vmatmul.mubr.msk.f32.vlgmr.msra.gmra.mrb[0].mxu1 %vm380_vm4, %v649_v42 }
  0x46   : > { %1467 = vmatmul.mubr.msk.f32.vlgmr.msra.gmra.mrb[0].mxu0 %vm380_vm4, %v1061_v53 }
 0x115   : > { %v1448_v35 = vpop.f32.mrb[0].mxu1 }
 0x116   : > { %v723_v54 = vpop.f32.mrb[1].mxu1 }
 0x119   : > { %v1468_v55 = vpop.f32.mrb[0].mxu0 }
 0x11a   : > { %v1469_v56 = vadd.f32 %v1468_v55, %v1448_v35  ;;  %v1135_v57 = vpop.f32.mrb[1].mxu0 }
 0x11b   : > { %v1470_v58 = vadd.f32 %v1135_v57, %v723_v54 }
 0x11c   : > { %v1154_v59 = vadd.f32 %v1469_v56, %v1394_v18 }
 0x11d   : > { %v1153_v60 = vadd.f32 %v1470_v58, %v1394_v18 }
 0x11e   : > { %v1404_v61 = vpack.c.bf16 %v1154_v59, %v1154_v59  ;;  %v1167_v62 = vsel %vm380_vm4, %v1154_v59, 0.0  ;;  %v1178_v63 = vmul.f32 %v1154_v59, %v1154_v59 }
 0x11f   : > { %v1403_v0 = vpack.c.bf16 %v1153_v60, %v1153_v60  ;;  %v1166_v1 = vsel %vm380_vm4, %v1153_v60, 0.0  ;;  %v1177_v2 = vmul.f32 %v1153_v60, %v1153_v60 }
 0x120   : > { %v1180_v4 = vsel %vm380_vm4, %v1178_v63, 0.0  ;;  %v1168_v5 = vadd.f32 %v1167_v62, %v1166_v1  ;;  %1165 = vst.msk [vmem:[%s314_s10 + $0x4] sm:$0xf] %vm1163_vm8, %v1404_v61 }
 0x121   : > { %v1179_v6 = vsel %vm380_vm4, %v1177_v2, 0.0  ;;  %1164 = vst.msk [vmem:[%s314_s10] sm:$0xf] %vm1163_vm8, %v1403_v0 }
 0x122   : > { %v1169_v7 = vrot.slane %v1168_v5, 4  ;;  %v1181_v12 = vadd.f32 %v1180_v4, %v1179_v6 }
 0x124   : > { %v1170_v13 = vadd.f32 %v1169_v7, %v1168_v5  ;;  %v1182_v14 = vrot.slane %v1181_v12, 4 }
 0x126   : > { %v1171_v15 = vrot.slane %v1170_v13, 2  ;;  %v1183_v16 = vadd.f32 %v1182_v14, %v1181_v12 }
 0x128   : > { %v1172_v17 = vadd.f32 %v1171_v15, %v1170_v13  ;;  %v1184_v8 = vrot.slane %v1183_v16, 2 }
 0x12a   : > { %v1173_v9 = vrot.slane %v1172_v17, 1  ;;  %v1185_v19 = vadd.f32 %v1184_v8, %v1183_v16 }
 0x12c   : > { %v1174_v20 = vadd.f32 %v1173_v9, %v1172_v17  ;;  %v1186_v10 = vrot.slane %v1185_v19, 1 }
 0x12e   : > { %1176 = vst.msk [vmem:[%s287_s15] sm:$0x1] %vm1175_vm9, %v1174_v20  ;;  %v1187_v11 = vadd.f32 %v1186_v10, %v1185_v19 }
 0x130   : > { %1188 = vst.msk [vmem:[%s287_s15 + $0x1] sm:$0x1] %vm1175_vm9, %v1187_v11 }
 0x131   : > { %1569 = shalt.err (!%p1566_p9)
}
 0x132   : > { %s1570_s10 = scalar_lea.hbm %s2015_s30, 32  ;;  %s1574_s14 = scalar_lea.hbm %s2073_s5, 256 }
 0x133   : > { %p1571_p10 = scmp.ne.s32.totalorder %s2015_s30, %s1570_s10  ;;  %p1575_p13 = scmp.lt.u32.totalorder %s2015_s30, %s2073_s5 }
 0x134   : > { %p1576_p0 = scmp.lt.u32.totalorder %s1574_s14, %s1570_s10  ;;  %p1578_p2 = scmp.lt.u32.totalorder %s1570_s10, %s2015_s30 }
 0x135   : > { %p1572_p11 = pnand %p1571_p10, %p1736_p5 }
 0x136   : > { %p1577_p1 = por %p1576_p0, %p1575_p13 }
 0x137   : > { %p1573_p12 = pneg %p1572_p11 }
 0x138   : > { %p1579_p3 = por %p1578_p2, %p1577_p1 }
 0x13a   : > { %p1580_p4 = pnand %p1579_p3, %p1573_p12 }
 0x13c   : > { %1583 = shalt.err (!%p1580_p4)
}
 0x13d   : > { %1485 = dma.vmem_to_hbm [thread:$0]  (%p1736_p5), %s2017_s16, 32, %s2015_s30, %s1197_s6  }
 0x13e PF: > { %p1491_p6 = scmp.ge.s32.totalorder %s1650_s25, 2  ;;  %s1239_s29 = sand.u32 1, %s1622_s18  }
 0x13f   : > { %s1240_s9 = scalar_lea.sflag [#allocation3], %s1239_s29 }
 0x140   : > { %p1488_p8 = pnand %p1491_p6, %p1742_p7 }
 0x142   : > { %1617 = dma.done.wait (!%p1488_p8), %s1240_s9, 32  }
 0x143   : > { %1619 = vsyncadd (!%p1488_p8), %s1240_s9, 4294967264  ;;  %s19_s25 = sadd.s32 1, %s1650_s25   ;;  %s2080_s18 = smov %s1626_s19 }
 0x144   : > { %p16_p9 = scmp.ge.s32.totalorder %s19_s25, 10   ;;  %s2081_s19 = smov %s1630_s20 }
 0x145   : > { %s2082_s20 = smov %s1752_s13  ;;  %s2083_s21 = smov %s1642_s23 }
 0x146   : > { %s2084_s22 = smov %s1646_s24  ;;  %s2085_s23 = smov %s2088_s27 }
 0x147   : > { %s2086_s24 = smov %s2092_s28  ;;  %18 = sbr.rel (!%p16_p9) target bundleno = 5 (0x5), region = 93 }
 0x14e   :  { %1245 = vsyncpa [#allocation3], 1 }
 0x14f   :  { %1247 = vsyncpa [#allocation3 + $0x1], 1 }

// kernel: _lambda_.14
= control target key start
LH: loop header
LB: loop body
LE: loop exit
PB: predicated region body
PF: predicated region fallthrough
CT: control target
= control target key end

     0   :  { %11 = vsyncpa [#allocation3], 0  ;;  %s1936_s0 = inlined_call_operand.vmem [shape: bf16[12,6,6,4], index: 0, kind: input, shape index: {}, may-alias: {0,1}]   ;;  %s1937_s1 = inlined_call_operand.vmem [shape: bf16[12,6,6,4], index: 1, kind: input, shape index: {}, may-alias: {0,1}]   ;;  %s1938_s2 = inlined_call_operand.vmem [shape: f32[8,4,4], index: 2, kind: input, shape index: {}]   ;;  %s1939_s3 = inlined_call_operand.vmem [shape: f32[1,4], index: 3, kind: input, shape index: {}]   ;;  %s1940_s4 = inlined_call_operand.vmem [shape: bf16[8,16,4], index: 4, kind: output, shape index: {0}]   ;;  %s1941_s5 = inlined_call_operand.hbm [shape: f32[8,2,4], index: 5, kind: output, shape index: {1}]  }
   0x1   :  { %13 = vsyncpa [#allocation3 + $0x1], 0  ;;  %s1630_s18 = smov 0   ;;  %s1632_s19 = smov 0  }
   0x2   :  { %s1634_s20 = smov 0   ;;  %s1636_s21 = smov 0  }
   0x3   :  { %s1638_s22 = smov 0   ;;  %s1640_s23 = smov 0  }
   0x4   :  { %s1642_s24 = smov 0   ;;  %s1644_s25 = smov 0  }
   0x5 LB: > { %s1285_s26 = sadd.s32 4294967295, %s1597_s25   ;;  %s28_s27 = sadd.s32 1, %s1589_s23  ;;  %s1597_s25 = sphi %s1644_s25, %s19_s25   ;;  %s1593_s24 = sphi %s1642_s24, %s1952_s24   ;;  %s1589_s23 = sphi %s1640_s23, %s1951_s23   ;;  %s1585_s22 = sphi %s1638_s22, %s1950_s22   ;;  %s1581_s21 = sphi %s1636_s21, %s1949_s21   ;;  %s1577_s20 = sphi %s1634_s20, %s1948_s20   ;;  %s1573_s19 = sphi %s1632_s19, %s1947_s19   ;;  %s1569_s18 = sphi %s1630_s18, %s1946_s18  }
   0x6   : > { %s31_s28 = sadd.s32 1, %s1593_s24  ;;  %p29_p0 = scmp.ge.s32.totalorder %s28_s27, 4 }
   0x7   : > { %s1289_s29 = sshll.u32 %s1593_s24, 2  ;;  %s1286_s30 = sadd.s32 4294967294, %s1597_s25  }
   0x8   : > { %s170_s6 = sadd.s32 %s1589_s23, %s1289_s29  ;;  %s1954_s27 = smov (%p29_p0, %s28_s27), 0 }
   0x9   : > { %s1956_s28 = smov (!%p29_p0, %s31_s28), %s1593_s24  ;;  %p186_p1 = scmp.ne.s32.totalorder %s1577_s20, %s1573_s19 }
   0xa   : > { %p187_p2 = scmp.eq.s32.totalorder %s1285_s26, 7  ;;  %p33_p3 = scmp.ge.s32.totalorder %s1956_s28, 2 }
   0xb   : > { %p192_p4 = scmp.ne.s32.totalorder %s1573_s19, %s1569_s18  ;;  %p193_p6 = scmp.eq.s32.totalorder %s1286_s30, 7 }
   0xc   : > { %p1683_p5 = por %p187_p2, %p186_p1  ;;  %s1958_s28 = smov (%p33_p3, %s1956_s28), 0 }
   0xd   : > { %p1689_p7 = por %p193_p6, %p192_p4  ;;  %p1293_p8 = scmp.ge.s32.totalorder %s1597_s25, 1 }
   0xe   : > { %s1290_s9 = sshll.u32 %s1958_s28, 2  ;;  %p243_p9 = scmp.lt.s32.totalorder %s1597_s25, 9 }
   0xf   : > { %s172_s10 = sadd.s32 %s1290_s9, %s1954_s27  ;;  %s176_s11 = sadd.s32 1, %s1577_s20 }
  0x10   : > { %s173_s12 = ssub.s32 %s170_s6, %s172_s10  ;;  %p244_p10 = pnand %p1293_p8, %p243_p9 }
  0x11   : > { %p174_p11 = scmp.eq.s32.totalorder %s173_s12, 0  ;;  %vm366_vm0 = vcmask (!%p244_p10), 1043456   ;;  %v1320_v0 = vld [vmem:[%s1938_s2 + $0x10] sm:$0xf] (!%p244_p10)  ;;  %s288_s16 = smul.u32 (!%p244_p10), 6, %s1585_s22  ;;  %vm338_vm1 = vcmask (!%p244_p10), 1042432  }
  0x12   : > { %247 = sbr.rel (%p244_p10) target bundleno = 314 (0x13a), region = 36  ;;  %1396 = vmatprep.subr.msk.mxu0 (!%p244_p10), %vm366_vm0, %v1320_v0  ;;  %v1304_v1 = vld [vmem:[%s1938_s2 + $0x4] sm:$0xf] (!%p244_p10)  ;;  %v1712_v2 = vld [vmem:[%s1938_s2] sm:$0xf] (!%p244_p10)  ;;  %vm339_vm2 = vcmask (!%p244_p10), 1046532  }
  0x13   : > { %s1699_s13 = scalar_select %p174_p11, %s1577_s20, %s176_s11  }
  0x14   : > { %1397 = vmatpush3.msk.msra.mxu0 (!%p244_p10), %vm366_vm0, %v1320_v0  ;;  %s289_s6 = sadd.s32 (!%p244_p10), %s1581_s21, %s288_s16  ;;  %1376 = vmatprep.subr.msk.mxu1 (!%p244_p10), %vm366_vm0, %v1304_v1  ;;  %v1328_v3 = vld [vmem:[%s1938_s2 + $0x14] sm:$0xf] (!%p244_p10)  ;;  %vm361_vm3 = vcmask (!%p244_p10), 31744   ;;  %vm1764_vm4 = vmor (!%p244_p10), %vm338_vm1, %vm339_vm2  ;;  %v1332_v34 = vld [vmem:[%s1938_s2 + $0x18] sm:$0xf] (!%p244_p10)  ;;  %vm1120_vm5 = vcmask (!%p244_p10), 27648  }
  0x15   : > { %p290_p12 = scmp.lt.s32.totalorder (!%p244_p10), %s289_s6, 11  ;;  %s299_s11 = sadd.s32 (!%p244_p10), 1, %s289_s6  ;;  %1377 = vmatpush3.msk.msra.mxu1 (!%p244_p10), %vm366_vm0, %v1304_v1  ;;  %1401 = vmatprep.subr.msk.mxu0 (!%p244_p10), %vm366_vm0, %v1328_v3  ;;  %v1311_v51 = vld [vmem:[%s1938_s2 + $0x8] sm:$0xf] (!%p244_p10)  ;;  %vm1132_vm6 = vcmask (!%p244_p10), 24576  }
  0x16   : > { %p300_p13 = scmp.lt.s32.totalorder (!%p244_p10), %s299_s11, 11  ;;  %1381 = vmatprep.subr.msk.mxu1 (!%p244_p10), %vm366_vm0, %v1712_v2 }
  0x19   : > { %s1960_s6 = smov (!%p290_p12, %s289_s6), 11  ;;  %s1962_s11 = smov (!%p300_p13, %s299_s11), 11 }
  0x1a   : > { %s1430_s12 = smul.u32 24, %s1960_s6 }
  0x1b   : > { %s1431_s14 = smul.u32 24, %s1962_s11  ;;  %s285_s11 = sand.u32 1, %s1573_s19  }
  0x1c   : > { %s1727_s17 = scalar_lea.vmem %s1936_s0, %s1430_s12  ;;  %s1294_s12 = sshll.u32 %s285_s11, 1 }
  0x1d   : > { %s1732_s30 = scalar_lea.vmem %s1937_s1, %s1431_s14  ;;  %v319_v4 = vld [vmem:[%s1727_s17] sm:$0x7]  ;;  %v320_v5 = vld [vmem:[%s1727_s17 + $0x4] sm:$0x7]  ;;  %v321_v6 = vld [vmem:[%s1727_s17 + $0x8] sm:$0x7] }
  0x1e   : > { %v711_v7 = vld [vmem:[%s1732_s30] sm:$0x7]  ;;  %v712_v8 = vld [vmem:[%s1732_s30 + $0x4] sm:$0x7]  ;;  %v713_v9 = vld [vmem:[%s1732_s30 + $0x8] sm:$0x7]  ;;  %v324_v10 = vunpack.c.l.bf16 %v319_v4  ;;  %v1740_v11 = vunpack.c.l.bf16 %v320_v5  ;;  %v1742_v12 = vunpack.c.l.bf16 %v321_v6 }
  0x1f   : > { %v716_v13 = vunpack.c.l.bf16 %v711_v7  ;;  %v1744_v14 = vunpack.c.l.bf16 %v712_v8  ;;  %v714_v15 = vld [vmem:[%s1732_s30 + $0xc] sm:$0x7]  ;;  %v1747_v16 = vunpack.c.l.bf16 %v713_v9  ;;  %v715_v59 = vld [vmem:[%s1732_s30 + $0x10] sm:$0x7]  ;;  %v1337_v4 = vld [vmem:[%s1938_s2 + $0x1c] sm:$0xf] }
  0x20   : > { %v322_v17 = vld [vmem:[%s1727_s17 + $0xc] sm:$0x7]  ;;  %v1750_v18 = vunpack.c.l.bf16 %v714_v15  ;;  %v334_v20 = vcombine.high %v324_v10, %v324_v10  ;;  %v335_v24 = vcombine.high %v1740_v11, %v1740_v11  ;;  %v336_v26 = vcombine.high %v1742_v12, %v1742_v12  ;;  %v323_v63 = vld [vmem:[%s1727_s17 + $0x10] sm:$0x7]  ;;  %s1297_s17 = sshll.u32 %s1585_s22, 2  ;;  %s287_s15 = scalar_lea.vmem [#allocation2], %s1294_s12 }
  0x21   : > { %v1752_v19 = vunpack.c.l.bf16 %v322_v17  ;;  %v727_v21 = vcombine.low %v716_v13, %v1744_v14  ;;  %v813_v22 = vcombine.high %v716_v13, %v716_v13  ;;  %v1324_v23 = vrot.slane %v716_v13, 9  ;;  %v1316_v6 = vld [vmem:[%s1938_s2 + $0xc] sm:$0xf]  ;;  %s1864_s26 = sadd.s32 %s1581_s21, %s1297_s17  ;;  %s1174_s16 = sshll.u32 %s287_s15, 4  ;;  %s1885_s16 = int_to_ptr.vmem [resolvable:$true] %s1174_s16 }
  0x22   : > { %v728_v25 = vcombine.low %v1747_v16, %v1750_v18  ;;  %v1300_v29 = vrot.slane %v324_v10, 9  ;;  %v343_v31 = vrot.slane %v334_v20, 5  ;;  %v1301_v32 = vrot.slane %v1740_v11, 9  ;;  %p310_p0 = scmp.lt.s32.totalorder %s1864_s26, 7  ;;  %s1346_s14 = sshll.u32 %s1864_s26, 5 }
  0x23   : > { %v337_v27 = vcombine.high %v1752_v19, %v1752_v19  ;;  %1398 = vmatprep.mubr.msk.f32.mxu0 %vm361_vm3, %v727_v21  ;;  %v819_v30 = vrot.slane %v813_v22, 5  ;;  %v347_v33 = vrot.slane %v335_v24, 5  ;;  %v1302_v35 = vrot.slane %v1742_v12, 9  ;;  %v1341_v24 = vld [vmem:[%s1939_s3] ss:$0 sm:$0xff]  ;;  %s1883_s30 = scalar_lea.hbm %s1941_s5, %s1346_s14  ;;  %s1154_s6 = scalar_lea.sflag [#allocation3], %s285_s11 }
  0x24   : > { %1399 = vmatmul.mubr.msk.f32.vlgmr.msra.gmra.mrb[0].mxu0 %vm361_vm3, %v728_v25  ;;  %v351_v36 = vrot.slane %v336_v26, 5  ;;  %v1303_v37 = vrot.slane %v1752_v19, 9  ;;  %v344_v39 = vsel %vm1764_vm4, %v1300_v29, %v343_v31  ;;  %v814_v44 = vcombine.high %v1744_v14, %v1744_v14  ;;  %s311_s29 = scalar_select %p310_p0, %s1864_s26, 7 }
  0x25   : > { %v355_v38 = vrot.slane %v337_v27, 5  ;;  %v1780_v40 = vsel %vm1764_vm4, %v1301_v32, %v347_v33  ;;  %1402 = vmatpush3.msk.msra.mxu0 %vm366_vm0, %v1328_v3  ;;  %v820_v46 = vsel %vm1764_vm4, %v1324_v23, %v819_v30  ;;  %v1325_v47 = vrot.slane %v1744_v14, 9  ;;  %s1599_s26 = smov [#allocation2]  }
  0x26   : > { %v1785_v41 = vsel %vm1764_vm4, %v1302_v35, %v351_v36  ;;  %v359_v43 = vcombine.low %v344_v39, %v1780_v40  ;;  %1406 = vmatprep.subr.msk.mxu0 %vm366_vm0, %v1332_v34  ;;  %v823_v48 = vrot.slane %v814_v44, 5  ;;  %v815_v49 = vcombine.high %v1747_v16, %v1747_v16  ;;  %s1349_s9 = sshll.u32 %s311_s29, 3  ;;  %s1507_s22 = sshll.u32 %s1599_s26, 4  ;;  %s1508_s22 = int_to_ptr.vmem [resolvable:$false] %s1507_s22 }
  0x27   : > { %v1789_v42 = vsel %vm1764_vm4, %v1303_v37, %v355_v38  ;;  %v816_v50 = vcombine.high %v1750_v18, %v1750_v18  ;;  %v1326_v52 = vrot.slane %v1747_v16, 9  ;;  %v1327_v53 = vrot.slane %v1750_v18, 9  ;;  %s314_s10 = scalar_lea.vmem %s1940_s4, %s1349_s9  ;;  %s1503_s9 = scalar_lea.vmem %s1885_s16, 32 }
  0x28   : > { %v360_v45 = vcombine.low %v1785_v41, %v1789_v42  ;;  %1378 = vmatprep.mubr.msk.f32.mxu1 %vm361_vm3, %v359_v43  ;;  %v445_v54 = vcombine.low %v324_v10, %v1740_v11  ;;  %v824_v55 = vsel %vm1764_vm4, %v1325_v47, %v823_v48  ;;  %v827_v56 = vrot.slane %v815_v49, 5  ;;  %p1504_p1 = scmp.ne.s32.totalorder %s1885_s16, %s1503_s9  ;;  %s1509_s21 = scalar_lea.vmem %s1508_s22, 64 }
  0x29   : > { %v831_v57 = vrot.slane %v816_v50, 5  ;;  %v835_v58 = vcombine.low %v820_v46, %v824_v55  ;;  %v924_v62 = vcombine.low %v1744_v14, %v1747_v16  ;;  %v446_v1 = vcombine.low %v1742_v12, %v1752_v19  ;;  %p1510_p4 = scmp.lt.s32.totalorder %s1885_s16, %s1508_s22  ;;  %p1511_p6 = scmp.lt.s32.totalorder %s1509_s21, %s1503_s9 }
  0x2a   : > { %1379 = vmatmul.mubr.msk.f32.vlgmr.msra.gmra.mrb[0].mxu1 %vm361_vm3, %v360_v45  ;;  %v828_v60 = vsel %vm1764_vm4, %v1326_v52, %v827_v56  ;;  %v532_v3 = vcombine.low %v1740_v11, %v1742_v12  ;;  %v328_v5 = vunpack.c.l.bf16 %v323_v63  ;;  %v625_v16 = vcombine.low %v1780_v40, %v1785_v41  ;;  %p1505_p2 = pnand %p1504_p1, %p1683_p5 }
  0x2b   : > { %1382 = vmatpush3.msk.msra.mxu1 %vm366_vm0, %v1712_v2  ;;  %1383 = vmatprep.mubr.msk.f32.mxu1 %vm361_vm3, %v445_v54  ;;  %v832_v61 = vsel %vm1764_vm4, %v1327_v53, %v831_v57  ;;  %v720_v2 = vunpack.c.l.bf16 %v715_v59  ;;  %v1017_v10 = vcombine.low %v824_v55, %v828_v60  ;;  %p1512_p8 = por %p1511_p6, %p1510_p4 }
  0x2c   : > { %1386 = vmatprep.subr.msk.mxu1 %vm366_vm0, %v1311_v51  ;;  %1403 = vmatprep.mubr.msk.f32.mxu0 %vm361_vm3, %v835_v58  ;;  %v836_v0 = vcombine.low %v828_v60, %v832_v61  ;;  %v618_v8 = vcombine.high %v328_v5, %v328_v5  ;;  %v533_v13 = vcombine.low %v1752_v19, %v328_v5  ;;  %v1315_v14 = vrot.slane %v328_v5, 9  ;;  %p1506_p3 = pneg %p1505_p2 }
  0x2d   : > { %v1010_v7 = vcombine.high %v720_v2, %v720_v2  ;;  %v925_v9 = vcombine.low %v1750_v18, %v720_v2  ;;  %v1336_v11 = vrot.slane %v720_v2, 9 }
  0x2e   : > { %1404 = vmatmul.mubr.msk.f32.vlgmr.msra.gmra.mrb[0].mxu0 %vm361_vm3, %v836_v0  ;;  %v621_v15 = vrot.slane %v618_v8, 5  ;;  %p1513_p9 = pnand %p1512_p8, %p1506_p3 }
  0x2f   : > { %1407 = vmatpush3.msk.msra.mxu0 %vm366_vm0, %v1332_v34  ;;  %1408 = vmatprep.mubr.msk.f32.mxu0 %vm361_vm3, %v924_v62  ;;  %v1013_v12 = vrot.slane %v1010_v7, 5 }
  0x30   : > { %1411 = vmatprep.subr.msk.mxu0 %vm366_vm0, %v1337_v4  ;;  %v622_v18 = vsel %vm1764_vm4, %v1315_v14, %v621_v15 }
  0x31   : > { %v1014_v17 = vsel %vm1764_vm4, %v1336_v11, %v1013_v12  ;;  %v626_v20 = vcombine.low %v1789_v42, %v622_v18 }
  0x32   : > { %1384 = vmatmul.mubr.msk.f32.vlgmr.msra.gmra.mrb[0].mxu1 %vm361_vm3, %v446_v1  ;;  %v1018_v19 = vcombine.low %v832_v61, %v1014_v17 }
  0x33   : > { %1387 = vmatpush3.msk.msra.mxu1 %vm366_vm0, %v1311_v51  ;;  %1388 = vmatprep.mubr.msk.f32.mxu1 %vm361_vm3, %v532_v3 }
  0x34   : > { %1391 = vmatprep.subr.msk.mxu1 %vm366_vm0, %v1316_v6 }
  0x36   : > { %1409 = vmatmul.mubr.msk.f32.vlgmr.msra.gmra.mrb[0].mxu0 %vm361_vm3, %v925_v9 }
  0x37   : > { %1412 = vmatpush3.msk.msra.mxu0 %vm366_vm0, %v1337_v4  ;;  %1413 = vmatprep.mubr.msk.f32.mxu0 %vm361_vm3, %v1017_v10 }
  0x3a   : > { %1389 = vmatmul.mubr.msk.f32.vlgmr.msra.gmra.mrb[0].mxu1 %vm361_vm3, %v533_v13 }
  0x3b   : > { %1392 = vmatpush3.msk.msra.mxu1 %vm366_vm0, %v1316_v6  ;;  %1393 = vmatprep.mubr.msk.f32.mxu1 %vm361_vm3, %v625_v16 }
  0x3e   : > { %1414 = vmatmul.mubr.msk.f32.vlgmr.msra.gmra.mrb[0].mxu0 %vm361_vm3, %v1018_v19 }
  0x42   : > { %1394 = vmatmul.mubr.msk.f32.vlgmr.msra.gmra.mrb[0].mxu1 %vm361_vm3, %v626_v20 }
 0x111   : > { %v1415_v21 = vpop.f32.mrb[0].mxu0 }
 0x112   : > { %v1092_v22 = vpop.f32.mrb[1].mxu0 }
 0x115   : > { %v1395_v23 = vpop.f32.mrb[0].mxu1 }
 0x116   : > { %v1416_v25 = vadd.f32 %v1415_v21, %v1395_v23  ;;  %v700_v26 = vpop.f32.mrb[1].mxu1 }
 0x117   : > { %v1417_v27 = vadd.f32 %v1092_v22, %v700_v26 }
 0x118   : > { %v1111_v28 = vadd.f32 %v1416_v25, %v1341_v24 }
 0x119   : > { %v1110_v29 = vadd.f32 %v1417_v27, %v1341_v24 }
 0x11a   : > { %v1351_v30 = vpack.c.bf16 %v1111_v28, %v1111_v28  ;;  %v1124_v31 = vsel %vm361_vm3, %v1111_v28, 0.0  ;;  %v1135_v32 = vmul.f32 %v1111_v28, %v1111_v28 }
 0x11b   : > { %v1350_v33 = vpack.c.bf16 %v1110_v29, %v1110_v29  ;;  %v1123_v34 = vsel %vm361_vm3, %v1110_v29, 0.0  ;;  %v1134_v35 = vmul.f32 %v1110_v29, %v1110_v29 }
 0x11c   : > { %v1137_v36 = vsel %vm361_vm3, %v1135_v32, 0.0  ;;  %v1125_v37 = vadd.f32 %v1124_v31, %v1123_v34  ;;  %1122 = vst.msk [vmem:[%s314_s10 + $0x4] sm:$0xf] %vm1120_vm5, %v1351_v30 }
 0x11d   : > { %v1136_v38 = vsel %vm361_vm3, %v1134_v35, 0.0  ;;  %1121 = vst.msk [vmem:[%s314_s10] sm:$0xf] %vm1120_vm5, %v1350_v33 }
 0x11e   : > { %v1126_v39 = vrot.slane %v1125_v37, 4  ;;  %v1138_v40 = vadd.f32 %v1137_v36, %v1136_v38 }
 0x120   : > { %v1127_v41 = vadd.f32 %v1126_v39, %v1125_v37  ;;  %v1139_v42 = vrot.slane %v1138_v40, 4 }
 0x122   : > { %v1128_v43 = vrot.slane %v1127_v41, 2  ;;  %v1140_v44 = vadd.f32 %v1139_v42, %v1138_v40 }
 0x124   : > { %v1129_v45 = vadd.f32 %v1128_v43, %v1127_v41  ;;  %v1141_v46 = vrot.slane %v1140_v44, 2 }
 0x126   : > { %v1130_v47 = vrot.slane %v1129_v45, 1  ;;  %v1142_v48 = vadd.f32 %v1141_v46, %v1140_v44 }
 0x128   : > { %v1131_v49 = vadd.f32 %v1130_v47, %v1129_v45  ;;  %v1143_v50 = vrot.slane %v1142_v48, 1 }
 0x12a   : > { %1133 = vst.msk [vmem:[%s287_s15] sm:$0x1] %vm1132_vm6, %v1131_v49  ;;  %v1144_v51 = vadd.f32 %v1143_v50, %v1142_v48 }
 0x12c   : > { %1145 = vst.msk [vmem:[%s287_s15 + $0x1] sm:$0x1] %vm1132_vm6, %v1144_v51 }
 0x12d   : > { %1516 = shalt.err (!%p1513_p9)
}
 0x12e   : > { %s1517_s10 = scalar_lea.hbm %s1883_s30, 32  ;;  %s1521_s14 = scalar_lea.hbm %s1941_s5, 256 }
 0x12f   : > { %p1518_p10 = scmp.ne.s32.totalorder %s1883_s30, %s1517_s10  ;;  %p1522_p13 = scmp.lt.u32.totalorder %s1883_s30, %s1941_s5 }
 0x130   : > { %p1523_p0 = scmp.lt.u32.totalorder %s1521_s14, %s1517_s10  ;;  %p1525_p2 = scmp.lt.u32.totalorder %s1517_s10, %s1883_s30 }
 0x131   : > { %p1519_p11 = pnand %p1518_p10, %p1683_p5 }
 0x132   : > { %p1524_p1 = por %p1523_p0, %p1522_p13 }
 0x133   : > { %p1520_p12 = pneg %p1519_p11 }
 0x134   : > { %p1526_p3 = por %p1525_p2, %p1524_p1 }
 0x136   : > { %p1527_p4 = pnand %p1526_p3, %p1520_p12 }
 0x138   : > { %1530 = shalt.err (!%p1527_p4)
}
 0x139   : > { %1432 = dma.vmem_to_hbm [thread:$0]  (%p1683_p5), %s1885_s16, 32, %s1883_s30, %s1154_s6  }
 0x13a PF: > { %p1438_p6 = scmp.ge.s32.totalorder %s1597_s25, 2  ;;  %s1196_s29 = sand.u32 1, %s1569_s18  }
 0x13b   : > { %s1197_s9 = scalar_lea.sflag [#allocation3], %s1196_s29 }
 0x13c   : > { %p1435_p8 = pnand %p1438_p6, %p1689_p7 }
 0x13e   : > { %1564 = dma.done.wait (!%p1435_p8), %s1197_s9, 32  }
 0x13f   : > { %1566 = vsyncadd (!%p1435_p8), %s1197_s9, 4294967264  ;;  %s19_s25 = sadd.s32 1, %s1597_s25   ;;  %s1946_s18 = smov %s1573_s19 }
 0x140   : > { %p16_p9 = scmp.ge.s32.totalorder %s19_s25, 10   ;;  %s1947_s19 = smov %s1577_s20 }
 0x141   : > { %s1948_s20 = smov %s1699_s13  ;;  %s1949_s21 = smov %s1589_s23 }
 0x142   : > { %s1950_s22 = smov %s1593_s24  ;;  %s1951_s23 = smov %s1954_s27 }
 0x143   : > { %s1952_s24 = smov %s1958_s28  ;;  %18 = sbr.rel (!%p16_p9) target bundleno = 5 (0x5), region = 93 }
 0x14a   :  { %1202 = vsyncpa [#allocation3], 1 }
 0x14b   :  { %1204 = vsyncpa [#allocation3 + $0x1], 1 }

// kernel: _lambda_.17
= control target key start
LH: loop header
LB: loop body
LE: loop exit
PB: predicated region body
PF: predicated region fallthrough
CT: control target
= control target key end

     0   :  { %11 = vsyncpa [#allocation3], 0  ;;  %s2068_s0 = inlined_call_operand.vmem [shape: bf16[12,6,6,4], index: 0, kind: input, shape index: {}, may-alias: {0,1}]   ;;  %s2069_s1 = inlined_call_operand.vmem [shape: bf16[12,6,6,4], index: 1, kind: input, shape index: {}, may-alias: {0,1}]   ;;  %s2070_s2 = inlined_call_operand.vmem [shape: f32[8,4,4], index: 2, kind: input, shape index: {}]   ;;  %s2071_s3 = inlined_call_operand.vmem [shape: f32[1,4], index: 3, kind: input, shape index: {}]   ;;  %s2072_s4 = inlined_call_operand.vmem [shape: bf16[8,16,4], index: 4, kind: output, shape index: {0}]   ;;  %s2073_s5 = inlined_call_operand.hbm [shape: f32[8,2,4], index: 5, kind: output, shape index: {1}]  }
   0x1   :  { %13 = vsyncpa [#allocation3 + $0x1], 0  ;;  %s1683_s18 = smov 0   ;;  %s1685_s19 = smov 0  }
   0x2   :  { %s1687_s20 = smov 0   ;;  %s1689_s21 = smov 0  }
   0x3   :  { %s1691_s22 = smov 0   ;;  %s1693_s23 = smov 0  }
   0x4   :  { %s1695_s24 = smov 0   ;;  %s1697_s25 = smov 0  }
   0x5 LB: > { %s1328_s26 = sadd.s32 4294967295, %s1650_s25   ;;  %s28_s27 = sadd.s32 1, %s1642_s23  ;;  %s1650_s25 = sphi %s1697_s25, %s19_s25   ;;  %s1646_s24 = sphi %s1695_s24, %s2086_s24   ;;  %s1642_s23 = sphi %s1693_s23, %s2085_s23   ;;  %s1638_s22 = sphi %s1691_s22, %s2084_s22   ;;  %s1634_s21 = sphi %s1689_s21, %s2083_s21   ;;  %s1630_s20 = sphi %s1687_s20, %s2082_s20   ;;  %s1626_s19 = sphi %s1685_s19, %s2081_s19   ;;  %s1622_s18 = sphi %s1683_s18, %s2080_s18  }
   0x6   : > { %s31_s28 = sadd.s32 1, %s1646_s24  ;;  %p29_p0 = scmp.ge.s32.totalorder %s28_s27, 4 }
   0x7   : > { %s1332_s29 = sshll.u32 %s1646_s24, 2  ;;  %s1329_s30 = sadd.s32 4294967294, %s1650_s25  }
   0x8   : > { %s170_s6 = sadd.s32 %s1642_s23, %s1332_s29  ;;  %s2088_s27 = smov (%p29_p0, %s28_s27), 0 }
   0x9   : > { %s2090_s28 = smov (!%p29_p0, %s31_s28), %s1646_s24  ;;  %p186_p1 = scmp.ne.s32.totalorder %s1630_s20, %s1626_s19 }
   0xa   : > { %p187_p2 = scmp.eq.s32.totalorder %s1328_s26, 7  ;;  %p33_p3 = scmp.ge.s32.totalorder %s2090_s28, 2 }
   0xb   : > { %p192_p4 = scmp.ne.s32.totalorder %s1626_s19, %s1622_s18  ;;  %p193_p6 = scmp.eq.s32.totalorder %s1329_s30, 7 }
   0xc   : > { %p1736_p5 = por %p187_p2, %p186_p1  ;;  %s2092_s28 = smov (%p33_p3, %s2090_s28), 0 }
   0xd   : > { %p1742_p7 = por %p193_p6, %p192_p4  ;;  %p1336_p8 = scmp.ge.s32.totalorder %s1650_s25, 1 }
   0xe   : > { %s1333_s9 = sshll.u32 %s2092_s28, 2  ;;  %p243_p9 = scmp.lt.s32.totalorder %s1650_s25, 9 }
   0xf   : > { %s172_s10 = sadd.s32 %s1333_s9, %s2088_s27  ;;  %s176_s11 = sadd.s32 1, %s1630_s20 }
  0x10   : > { %s173_s12 = ssub.s32 %s170_s6, %s172_s10  ;;  %p244_p10 = pnand %p1336_p8, %p243_p9 }
  0x11   : > { %p174_p11 = scmp.eq.s32.totalorder %s173_s12, 0  ;;  %v1351_v0 = vld [vmem:[%s2070_s2 + $0x4] sm:$0xf] (!%p244_p10)  ;;  %vm385_vm0 = vcmask (!%p244_p10), 1043456   ;;  %v1372_v1 = vld [vmem:[%s2070_s2 + $0x10] sm:$0xf] (!%p244_p10) }
  0x12   : > { %247 = sbr.rel (%p244_p10) target bundleno = 318 (0x13e), region = 36  ;;  %1429 = vmatprep.subr.msk.mxu1 (!%p244_p10), %vm385_vm0, %v1351_v0  ;;  %1449 = vmatprep.subr.msk.mxu0 (!%p244_p10), %vm385_vm0, %v1372_v1  ;;  %v1766_v2 = vld [vmem:[%s2070_s2] sm:$0xf] (!%p244_p10)  ;;  %v1774_v3 = vld [vmem:[%s2070_s2 + $0x14] sm:$0xf] (!%p244_p10)  ;;  %vm357_vm1 = vcmask (!%p244_p10), 1041408  }
  0x13   : > { %s1752_s13 = scalar_select %p174_p11, %s1630_s20, %s176_s11  }
  0x14   : > { %s288_s26 = smul.u32 (!%p244_p10), 6, %s1638_s22  ;;  %1430 = vmatpush3.msk.msra.mxu1 (!%p244_p10), %vm385_vm0, %v1351_v0  ;;  %1450 = vmatpush3.msk.msra.mxu0 (!%p244_p10), %vm385_vm0, %v1372_v1  ;;  %vm358_vm2 = vcmask (!%p244_p10), 1045508   ;;  %vm380_vm4 = vcmask (!%p244_p10), 31744   ;;  %vm337_vm5 = vcmask (!%p244_p10), 1042432   ;;  %vm338_vm6 = vcmask (!%p244_p10), 1046532  }
  0x15   : > { %1434 = vmatprep.subr.msk.mxu1 (!%p244_p10), %vm385_vm0, %v1766_v2  ;;  %1454 = vmatprep.subr.msk.mxu0 (!%p244_p10), %vm385_vm0, %v1774_v3  ;;  %vm1821_vm3 = vmor (!%p244_p10), %vm357_vm1, %vm358_vm2  ;;  %v1359_v46 = vld [vmem:[%s2070_s2 + $0x8] sm:$0xf] (!%p244_p10)  ;;  %v1394_v18 = vld [vmem:[%s2071_s3] ss:$0 sm:$0xff] (!%p244_p10)  ;;  %vm1163_vm8 = vcmask (!%p244_p10), 27648   ;;  %vm1175_vm9 = vcmask (!%p244_p10), 24576  }
  0x16   : > { %s289_s6 = sadd.s32 (!%p244_p10), %s1634_s21, %s288_s26  ;;  %vm1867_vm7 = vmor (!%p244_p10), %vm337_vm5, %vm338_vm6 }
  0x17   : > { %p290_p12 = scmp.lt.s32.totalorder (!%p244_p10), %s289_s6, 11  ;;  %s299_s11 = sadd.s32 (!%p244_p10), 1, %s289_s6 }
  0x18   : > { %p300_p13 = scmp.lt.s32.totalorder (!%p244_p10), %s299_s11, 11 }
  0x19   : > { %s2094_s6 = smov (!%p290_p12, %s289_s6), 11 }
  0x1a   : > { %s2096_s11 = smov (!%p300_p13, %s299_s11), 11  ;;  %s1483_s12 = smul.u32 24, %s2094_s6 }
  0x1b   : > { %s1484_s14 = smul.u32 24, %s2096_s11  ;;  %s285_s11 = sand.u32 1, %s1626_s19  }
  0x1c   : > { %s1783_s17 = scalar_lea.vmem %s2068_s0, %s1483_s12  ;;  %s1337_s12 = sshll.u32 %s285_s11, 1 }
  0x1d   : > { %v319_v4 = vld [vmem:[%s1783_s17 + $0x4] sm:$0x7]  ;;  %v320_v5 = vld [vmem:[%s1783_s17 + $0x8] sm:$0x7]  ;;  %v321_v6 = vld [vmem:[%s1783_s17 + $0xc] sm:$0x7]  ;;  %s1791_s30 = scalar_lea.vmem %s2069_s1, %s1484_s14 }
  0x1e   : > { %v322_v7 = vld [vmem:[%s1783_s17 + $0x10] sm:$0x7]  ;;  %v1794_v8 = vunpack.c.l.bf16 %v319_v4  ;;  %v1796_v9 = vunpack.c.l.bf16 %v320_v5  ;;  %v1798_v10 = vunpack.c.l.bf16 %v321_v6  ;;  %v734_v16 = vld [vmem:[%s1791_s30 + $0x4] sm:$0x7]  ;;  %v735_v22 = vld [vmem:[%s1791_s30 + $0x8] sm:$0x7] }
  0x1f   : > { %v1800_v11 = vunpack.c.l.bf16 %v322_v7  ;;  %v736_v24 = vld [vmem:[%s1791_s30 + $0xc] sm:$0x7]  ;;  %v1834_v28 = vunpack.c.l.bf16 %v734_v16  ;;  %v737_v30 = vld [vmem:[%s1791_s30 + $0x10] sm:$0x7]  ;;  %v1839_v31 = vunpack.c.l.bf16 %v735_v22  ;;  %v323_v32 = vld [vmem:[%s1783_s17 + $0x14] sm:$0x7] }
  0x20   : > { %v1804_v12 = vcombine.high %v1794_v8, %v1794_v8  ;;  %v1808_v13 = vcombine.high %v1796_v9, %v1796_v9  ;;  %v1812_v14 = vcombine.high %v1798_v10, %v1798_v10  ;;  %v1347_v15 = vrot.slane %v1794_v8, 10  ;;  %v738_v51 = vld [vmem:[%s1791_s30 + $0x14] sm:$0x7]  ;;  %s1340_s17 = sshll.u32 %s1638_s22, 2  ;;  %s287_s15 = scalar_lea.vmem [#allocation2], %s1337_s12 }
  0x21   : > { %v1818_v17 = vcombine.high %v1800_v11, %v1800_v11  ;;  %v1348_v19 = vrot.slane %v1796_v9, 10  ;;  %v1349_v20 = vrot.slane %v1798_v10, 10  ;;  %v1350_v21 = vrot.slane %v1800_v11, 10  ;;  %s1996_s26 = sadd.s32 %s1634_s21, %s1340_s17  ;;  %s1217_s16 = sshll.u32 %s287_s15, 4  ;;  %s2017_s16 = int_to_ptr.vmem [resolvable:$true] %s1217_s16 }
  0x22   : > { %v362_v23 = vrot.slane %v1804_v12, 6  ;;  %v366_v25 = vrot.slane %v1808_v13, 6  ;;  %v370_v26 = vrot.slane %v1812_v14, 6  ;;  %v1854_v36 = vunpack.c.l.bf16 %v736_v24  ;;  %p310_p0 = scmp.lt.s32.totalorder %s1996_s26, 7  ;;  %s1399_s14 = sshll.u32 %s1996_s26, 5 }
  0x23   : > { %v374_v27 = vrot.slane %v1818_v17, 6  ;;  %v1859_v39 = vunpack.c.l.bf16 %v737_v30  ;;  %v748_v40 = vcombine.high %v1834_v28, %v1834_v28  ;;  %v1863_v41 = vunpack.c.l.bf16 %v323_v32  ;;  %v1364_v30 = vld [vmem:[%s2070_s2 + $0xc] sm:$0xf]  ;;  %s2015_s30 = scalar_lea.hbm %s2073_s5, %s1399_s14  ;;  %s1197_s6 = scalar_lea.sflag [#allocation3], %s285_s11 }
  0x24   : > { %v363_v29 = vsel %vm1821_vm3, %v1347_v15, %v362_v23  ;;  %v1844_v33 = vsel %vm1821_vm3, %v1348_v19, %v366_v25  ;;  %v1848_v34 = vsel %vm1821_vm3, %v1349_v20, %v370_v26  ;;  %v749_v43 = vcombine.high %v1839_v31, %v1839_v31  ;;  %s311_s29 = scalar_select %p310_p0, %s1996_s26, 7 }
  0x25   : > { %v1852_v35 = vsel %vm1821_vm3, %v1350_v21, %v374_v27  ;;  %v378_v37 = vcombine.low %v363_v29, %v1844_v33  ;;  %v1875_v44 = vcombine.high %v1854_v36, %v1854_v36  ;;  %v1368_v45 = vrot.slane %v1834_v28, 9  ;;  %s1652_s26 = smov [#allocation2]  }
  0x26   : > { %v379_v38 = vcombine.low %v1848_v34, %v1852_v35  ;;  %v342_v47 = vrot.slane %v1804_v12, 5  ;;  %v1885_v48 = vcombine.high %v1859_v39, %v1859_v39  ;;  %v754_v49 = vrot.slane %v748_v40, 5  ;;  %s1402_s9 = sshll.u32 %s311_s29, 3  ;;  %s1560_s22 = sshll.u32 %s1652_s26, 4  ;;  %s1561_s22 = int_to_ptr.vmem [resolvable:$false] %s1560_s22 }
  0x27   : > { %1431 = vmatprep.mubr.msk.f32.mxu1 %vm380_vm4, %v378_v37  ;;  %v1369_v50 = vrot.slane %v1839_v31, 9  ;;  %v758_v52 = vrot.slane %v749_v43, 5  ;;  %v1370_v53 = vrot.slane %v1854_v36, 9  ;;  %v762_v54 = vrot.slane %v1875_v44, 5  ;;  %s314_s10 = scalar_lea.vmem %s2072_s4, %s1402_s9  ;;  %s1556_s9 = scalar_lea.vmem %s2017_s16, 32 }
  0x28   : > { %1432 = vmatmul.mubr.msk.f32.vlgmr.msra.gmra.mrb[0].mxu1 %vm380_vm4, %v379_v38  ;;  %v1371_v55 = vrot.slane %v1859_v39, 9  ;;  %v346_v56 = vrot.slane %v1808_v13, 5  ;;  %v350_v57 = vrot.slane %v1812_v14, 5  ;;  %v755_v58 = vsel %vm1867_vm7, %v1368_v45, %v754_v49  ;;  %p1557_p1 = scmp.ne.s32.totalorder %s2017_s16, %s1556_s9  ;;  %s1562_s21 = scalar_lea.vmem %s1561_s22, 64 }
  0x29   : > { %1435 = vmatpush3.msk.msra.mxu1 %vm385_vm0, %v1766_v2  ;;  %v766_v59 = vrot.slane %v1885_v48, 5  ;;  %v354_v60 = vrot.slane %v1818_v17, 5  ;;  %v1903_v61 = vcombine.high %v1863_v41, %v1863_v41  ;;  %v759_v62 = vsel %vm1867_vm7, %v1369_v50, %v758_v52  ;;  %v1385_v17 = vld [vmem:[%s2070_s2 + $0x18] sm:$0xf]  ;;  %p1563_p4 = scmp.lt.s32.totalorder %s2017_s16, %s1561_s22  ;;  %p1564_p6 = scmp.lt.s32.totalorder %s1562_s21, %s1556_s9 }
  0x2a   : > { %1439 = vmatprep.subr.msk.mxu1 %vm385_vm0, %v1359_v46  ;;  %v763_v63 = vsel %vm1867_vm7, %v1370_v53, %v762_v54  ;;  %v1909_v0 = vunpack.c.l.bf16 %v738_v51  ;;  %v770_v2 = vcombine.low %v755_v58, %v759_v62  ;;  %v858_v4 = vrot.slane %v748_v40, 6  ;;  %p1558_p2 = pnand %p1557_p1, %p1736_p5 }
  0x2b   : > { %v1913_v1 = vsel %vm1867_vm7, %v1371_v55, %v766_v59  ;;  %v862_v6 = vrot.slane %v749_v43, 6  ;;  %v1343_v7 = vrot.slane %v1794_v8, 9  ;;  %v1344_v12 = vrot.slane %v1796_v9, 9  ;;  %p1565_p8 = por %p1564_p6, %p1563_p4 }
  0x2c   : > { %v771_v5 = vcombine.low %v763_v63, %v1913_v1  ;;  %1451 = vmatprep.mubr.msk.f32.mxu0 %vm380_vm4, %v770_v2  ;;  %v866_v13 = vrot.slane %v1875_v44, 6  ;;  %v870_v14 = vrot.slane %v1885_v48, 6  ;;  %v1345_v15 = vrot.slane %v1798_v10, 9  ;;  %v1390_v44 = vld [vmem:[%s2070_s2 + $0x1c] sm:$0xf]  ;;  %p1559_p3 = pneg %p1558_p2 }
  0x2d   : > { %v1346_v16 = vrot.slane %v1800_v11, 9  ;;  %v343_v8 = vsel %vm1867_vm7, %v1343_v7, %v342_v47  ;;  %v347_v9 = vsel %vm1867_vm7, %v1344_v12, %v346_v56  ;;  %v1376_v19 = vrot.slane %v1834_v28, 10 }
  0x2e   : > { %1452 = vmatmul.mubr.msk.f32.vlgmr.msra.gmra.mrb[0].mxu0 %vm380_vm4, %v771_v5  ;;  %v1377_v20 = vrot.slane %v1839_v31, 10  ;;  %v961_v10 = vcombine.high %v1909_v0, %v1909_v0  ;;  %v464_v11 = vcombine.low %v343_v8, %v347_v9  ;;  %v351_v21 = vsel %vm1867_vm7, %v1345_v15, %v350_v57  ;;  %p1566_p9 = pnand %p1565_p8, %p1559_p3 }
  0x2f   : > { %1455 = vmatpush3.msk.msra.mxu0 %vm385_vm0, %v1774_v3  ;;  %v355_v22 = vsel %vm1867_vm7, %v1346_v16, %v354_v60  ;;  %v552_v23 = vrot.slane %v1903_v61, 5  ;;  %v859_v25 = vsel %vm1821_vm3, %v1376_v19, %v858_v4  ;;  %v1378_v27 = vrot.slane %v1854_v36, 10 }
  0x30   : > { %v465_v24 = vcombine.low %v351_v21, %v355_v22  ;;  %v863_v26 = vsel %vm1821_vm3, %v1377_v20, %v862_v6  ;;  %1459 = vmatprep.subr.msk.mxu0 %vm385_vm0, %v1385_v17  ;;  %1436 = vmatprep.mubr.msk.f32.mxu1 %vm380_vm4, %v464_v11  ;;  %v1379_v28 = vrot.slane %v1859_v39, 10  ;;  %v556_v29 = vcombine.low %v347_v9, %v351_v21 }
  0x31   : > { %v874_v3 = vcombine.low %v859_v25, %v863_v26  ;;  %v1384_v31 = vrot.slane %v1909_v0, 9  ;;  %v1358_v32 = vrot.slane %v1863_v41, 9  ;;  %v964_v37 = vrot.slane %v961_v10, 5 }
  0x32   : > { %1437 = vmatmul.mubr.msk.f32.vlgmr.msra.gmra.mrb[0].mxu1 %vm380_vm4, %v465_v24  ;;  %v968_v38 = vcombine.low %v759_v62, %v763_v63  ;;  %v867_v36 = vsel %vm1821_vm3, %v1378_v27, %v866_v13  ;;  %v871_v39 = vsel %vm1821_vm3, %v1379_v28, %v870_v14  ;;  %v644_v47 = vrot.slane %v1903_v61, 6 }
  0x33   : > { %1456 = vmatprep.mubr.msk.f32.mxu0 %vm380_vm4, %v874_v3  ;;  %1440 = vmatpush3.msk.msra.mxu1 %vm385_vm0, %v1359_v46  ;;  %v875_v40 = vcombine.low %v867_v36, %v871_v39  ;;  %v553_v43 = vsel %vm1867_vm7, %v1358_v32, %v552_v23  ;;  %v1363_v46 = vrot.slane %v1863_v41, 10  ;;  %v648_v48 = vcombine.low %v1844_v33, %v1848_v34 }
  0x34   : > { %1441 = vmatprep.mubr.msk.f32.mxu1 %vm380_vm4, %v556_v29  ;;  %1444 = vmatprep.subr.msk.mxu1 %vm385_vm0, %v1364_v30  ;;  %v557_v45 = vcombine.low %v355_v22, %v553_v43  ;;  %v965_v49 = vsel %vm1867_vm7, %v1384_v31, %v964_v37  ;;  %v1056_v51 = vrot.slane %v961_v10, 6  ;;  %v1060_v33 = vcombine.low %v863_v26, %v867_v36 }
  0x35   : > { %v969_v50 = vcombine.low %v1913_v1, %v965_v49  ;;  %v645_v41 = vsel %vm1821_vm3, %v1363_v46, %v644_v47  ;;  %v1389_v34 = vrot.slane %v1909_v0, 10 }
  0x36   : > { %1457 = vmatmul.mubr.msk.f32.vlgmr.msra.gmra.mrb[0].mxu0 %vm380_vm4, %v875_v40  ;;  %v649_v42 = vcombine.low %v1852_v35, %v645_v41 }
  0x37   : > { %1460 = vmatpush3.msk.msra.mxu0 %vm385_vm0, %v1385_v17  ;;  %1461 = vmatprep.mubr.msk.f32.mxu0 %vm380_vm4, %v968_v38  ;;  %v1057_v52 = vsel %vm1821_vm3, %v1389_v34, %v1056_v51 }
  0x38   : > { %1464 = vmatprep.subr.msk.mxu0 %vm385_vm0, %v1390_v44  ;;  %v1061_v53 = vcombine.low %v871_v39, %v1057_v52 }
  0x3a   : > { %1442 = vmatmul.mubr.msk.f32.vlgmr.msra.gmra.mrb[0].mxu1 %vm380_vm4, %v557_v45 }
  0x3b   : > { %1445 = vmatpush3.msk.msra.mxu1 %vm385_vm0, %v1364_v30  ;;  %1446 = vmatprep.mubr.msk.f32.mxu1 %vm380_vm4, %v648_v48 }
  0x3e   : > { %1462 = vmatmul.mubr.msk.f32.vlgmr.msra.gmra.mrb[0].mxu0 %vm380_vm4, %v969_v50 }
  0x3f   : > { %1465 = vmatpush3.msk.msra.mxu0 %vm385_vm0, %v1390_v44  ;;  %1466 = vmatprep.mubr.msk.f32.mxu0 %vm380_vm4, %v1060_v33 }
  0x42   : > { %1447 = vmatmul.mubr.msk.f32.vlgmr.msra.gmra.mrb[0].mxu1 %vm380_vm4, %v649_v42 }
  0x46   : > { %1467 = vmatmul.mubr.msk.f32.vlgmr.msra.gmra.mrb[0].mxu0 %vm380_vm4, %v1061_v53 }
 0x115   : > { %v1448_v35 = vpop.f32.mrb[0].mxu1 }
 0x116   : > { %v723_v54 = vpop.f32.mrb[1].mxu1 }
 0x119   : > { %v1468_v55 = vpop.f32.mrb[0].mxu0 }
 0x11a   : > { %v1469_v56 = vadd.f32 %v1468_v55, %v1448_v35  ;;  %v1135_v57 = vpop.f32.mrb[1].mxu0 }
 0x11b   : > { %v1470_v58 = vadd.f32 %v1135_v57, %v723_v54 }
 0x11c   : > { %v1154_v59 = vadd.f32 %v1469_v56, %v1394_v18 }
 0x11d   : > { %v1153_v60 = vadd.f32 %v1470_v58, %v1394_v18 }
 0x11e   : > { %v1404_v61 = vpack.c.bf16 %v1154_v59, %v1154_v59  ;;  %v1167_v62 = vsel %vm380_vm4, %v1154_v59, 0.0  ;;  %v1178_v63 = vmul.f32 %v1154_v59, %v1154_v59 }
 0x11f   : > { %v1403_v0 = vpack.c.bf16 %v1153_v60, %v1153_v60  ;;  %v1166_v1 = vsel %vm380_vm4, %v1153_v60, 0.0  ;;  %v1177_v2 = vmul.f32 %v1153_v60, %v1153_v60 }
 0x120   : > { %v1180_v4 = vsel %vm380_vm4, %v1178_v63, 0.0  ;;  %v1168_v5 = vadd.f32 %v1167_v62, %v1166_v1  ;;  %1165 = vst.msk [vmem:[%s314_s10 + $0x4] sm:$0xf] %vm1163_vm8, %v1404_v61 }
 0x121   : > { %v1179_v6 = vsel %vm380_vm4, %v1177_v2, 0.0  ;;  %1164 = vst.msk [vmem:[%s314_s10] sm:$0xf] %vm1163_vm8, %v1403_v0 }
 0x122   : > { %v1169_v7 = vrot.slane %v1168_v5, 4  ;;  %v1181_v12 = vadd.f32 %v1180_v4, %v1179_v6 }
 0x124   : > { %v1170_v13 = vadd.f32 %v1169_v7, %v1168_v5  ;;  %v1182_v14 = vrot.slane %v1181_v12, 4 }
 0x126   : > { %v1171_v15 = vrot.slane %v1170_v13, 2  ;;  %v1183_v16 = vadd.f32 %v1182_v14, %v1181_v12 }
 0x128   : > { %v1172_v17 = vadd.f32 %v1171_v15, %v1170_v13  ;;  %v1184_v8 = vrot.slane %v1183_v16, 2 }
 0x12a   : > { %v1173_v9 = vrot.slane %v1172_v17, 1  ;;  %v1185_v19 = vadd.f32 %v1184_v8, %v1183_v16 }
 0x12c   : > { %v1174_v20 = vadd.f32 %v1173_v9, %v1172_v17  ;;  %v1186_v10 = vrot.slane %v1185_v19, 1 }
 0x12e   : > { %1176 = vst.msk [vmem:[%s287_s15] sm:$0x1] %vm1175_vm9, %v1174_v20  ;;  %v1187_v11 = vadd.f32 %v1186_v10, %v1185_v19 }
 0x130   : > { %1188 = vst.msk [vmem:[%s287_s15 + $0x1] sm:$0x1] %vm1175_vm9, %v1187_v11 }
 0x131   : > { %1569 = shalt.err (!%p1566_p9)
}
 0x132   : > { %s1570_s10 = scalar_lea.hbm %s2015_s30, 32  ;;  %s1574_s14 = scalar_lea.hbm %s2073_s5, 256 }
 0x133   : > { %p1571_p10 = scmp.ne.s32.totalorder %s2015_s30, %s1570_s10  ;;  %p1575_p13 = scmp.lt.u32.totalorder %s2015_s30, %s2073_s5 }
 0x134   : > { %p1576_p0 = scmp.lt.u32.totalorder %s1574_s14, %s1570_s10  ;;  %p1578_p2 = scmp.lt.u32.totalorder %s1570_s10, %s2015_s30 }
 0x135   : > { %p1572_p11 = pnand %p1571_p10, %p1736_p5 }
 0x136   : > { %p1577_p1 = por %p1576_p0, %p1575_p13 }
 0x137   : > { %p1573_p12 = pneg %p1572_p11 }
 0x138   : > { %p1579_p3 = por %p1578_p2, %p1577_p1 }
 0x13a   : > { %p1580_p4 = pnand %p1579_p3, %p1573_p12 }
 0x13c   : > { %1583 = shalt.err (!%p1580_p4)
}
 0x13d   : > { %1485 = dma.vmem_to_hbm [thread:$0]  (%p1736_p5), %s2017_s16, 32, %s2015_s30, %s1197_s6  }
 0x13e PF: > { %p1491_p6 = scmp.ge.s32.totalorder %s1650_s25, 2  ;;  %s1239_s29 = sand.u32 1, %s1622_s18  }
 0x13f   : > { %s1240_s9 = scalar_lea.sflag [#allocation3], %s1239_s29 }
 0x140   : > { %p1488_p8 = pnand %p1491_p6, %p1742_p7 }
 0x142   : > { %1617 = dma.done.wait (!%p1488_p8), %s1240_s9, 32  }
 0x143   : > { %1619 = vsyncadd (!%p1488_p8), %s1240_s9, 4294967264  ;;  %s19_s25 = sadd.s32 1, %s1650_s25   ;;  %s2080_s18 = smov %s1626_s19 }
 0x144   : > { %p16_p9 = scmp.ge.s32.totalorder %s19_s25, 10   ;;  %s2081_s19 = smov %s1630_s20 }
 0x145   : > { %s2082_s20 = smov %s1752_s13  ;;  %s2083_s21 = smov %s1642_s23 }
 0x146   : > { %s2084_s22 = smov %s1646_s24  ;;  %s2085_s23 = smov %s2088_s27 }
 0x147   : > { %s2086_s24 = smov %s2092_s28  ;;  %18 = sbr.rel (!%p16_p9) target bundleno = 5 (0x5), region = 93 }
 0x14e   :  { %1245 = vsyncpa [#allocation3], 1 }
 0x14f   :  { %1247 = vsyncpa [#allocation3 + $0x1], 1 }

// kernel: _lambda_.18
= control target key start
LH: loop header
LB: loop body
LE: loop exit
PB: predicated region body
PF: predicated region fallthrough
CT: control target
= control target key end

     0   :  { %11 = vsyncpa [#allocation3], 0  ;;  %s1943_s0 = inlined_call_operand.vmem [shape: bf16[12,6,6,4], index: 0, kind: input, shape index: {}, may-alias: {0,1}]   ;;  %s1944_s1 = inlined_call_operand.vmem [shape: bf16[12,6,6,4], index: 1, kind: input, shape index: {}, may-alias: {0,1}]   ;;  %s1945_s2 = inlined_call_operand.vmem [shape: f32[8,4,4], index: 2, kind: input, shape index: {}]   ;;  %s1946_s3 = inlined_call_operand.vmem [shape: f32[1,4], index: 3, kind: input, shape index: {}]   ;;  %s1947_s4 = inlined_call_operand.vmem [shape: bf16[8,16,4], index: 4, kind: output, shape index: {0}]   ;;  %s1948_s5 = inlined_call_operand.hbm [shape: f32[8,2,4], index: 5, kind: output, shape index: {1}]  }
   0x1   :  { %13 = vsyncpa [#allocation3 + $0x1], 0  ;;  %s1637_s18 = smov 0   ;;  %s1639_s19 = smov 0  }
   0x2   :  { %s1641_s20 = smov 0   ;;  %s1643_s21 = smov 0  }
   0x3   :  { %s1645_s22 = smov 0   ;;  %s1647_s23 = smov 0  }
   0x4   :  { %s1649_s24 = smov 0   ;;  %s1651_s25 = smov 0  }
   0x5 LB: > { %s1292_s26 = sadd.s32 4294967295, %s1604_s25   ;;  %s28_s27 = sadd.s32 1, %s1596_s23  ;;  %s1604_s25 = sphi %s1651_s25, %s19_s25   ;;  %s1600_s24 = sphi %s1649_s24, %s1959_s24   ;;  %s1596_s23 = sphi %s1647_s23, %s1958_s23   ;;  %s1592_s22 = sphi %s1645_s22, %s1957_s22   ;;  %s1588_s21 = sphi %s1643_s21, %s1956_s21   ;;  %s1584_s20 = sphi %s1641_s20, %s1955_s20   ;;  %s1580_s19 = sphi %s1639_s19, %s1954_s19   ;;  %s1576_s18 = sphi %s1637_s18, %s1953_s18  }
   0x6   : > { %s31_s28 = sadd.s32 1, %s1600_s24  ;;  %p29_p0 = scmp.ge.s32.totalorder %s28_s27, 4 }
   0x7   : > { %s1296_s29 = sshll.u32 %s1600_s24, 2  ;;  %s1293_s30 = sadd.s32 4294967294, %s1604_s25  }
   0x8   : > { %s172_s6 = sadd.s32 %s1596_s23, %s1296_s29  ;;  %s1961_s27 = smov (%p29_p0, %s28_s27), 0 }
   0x9   : > { %s1963_s28 = smov (!%p29_p0, %s31_s28), %s1600_s24  ;;  %p188_p1 = scmp.ne.s32.totalorder %s1584_s20, %s1580_s19 }
   0xa   : > { %p189_p2 = scmp.eq.s32.totalorder %s1292_s26, 7  ;;  %p33_p3 = scmp.ge.s32.totalorder %s1963_s28, 2 }
   0xb   : > { %p194_p4 = scmp.ne.s32.totalorder %s1580_s19, %s1576_s18  ;;  %p195_p6 = scmp.eq.s32.totalorder %s1293_s30, 7 }
   0xc   : > { %p1690_p5 = por %p189_p2, %p188_p1  ;;  %s1965_s28 = smov (%p33_p3, %s1963_s28), 0 }
   0xd   : > { %p1696_p7 = por %p195_p6, %p194_p4  ;;  %p1300_p8 = scmp.ge.s32.totalorder %s1604_s25, 1 }
   0xe   : > { %s1297_s9 = sshll.u32 %s1965_s28, 2  ;;  %p247_p9 = scmp.lt.s32.totalorder %s1604_s25, 9 }
   0xf   : > { %s174_s10 = sadd.s32 %s1297_s9, %s1961_s27  ;;  %s178_s11 = sadd.s32 1, %s1584_s20 }
  0x10   : > { %s175_s12 = ssub.s32 %s172_s6, %s174_s10  ;;  %p248_p10 = pnand %p1300_p8, %p247_p9 }
  0x11   : > { %p176_p11 = scmp.eq.s32.totalorder %s175_s12, 0  ;;  %vm373_vm0 = vcmask (!%p248_p10), 1043456   ;;  %v1327_v0 = vld [vmem:[%s1945_s2 + $0x10] sm:$0xf] (!%p248_p10)  ;;  %s293_s16 = smul.u32 (!%p248_p10), 6, %s1592_s22  ;;  %vm345_vm1 = vcmask (!%p248_p10), 1042432  }
  0x12   : > { %251 = sbr.rel (%p248_p10) target bundleno = 314 (0x13a), region = 36  ;;  %1403 = vmatprep.subr.msk.mxu0 (!%p248_p10), %vm373_vm0, %v1327_v0  ;;  %v1311_v1 = vld [vmem:[%s1945_s2 + $0x4] sm:$0xf] (!%p248_p10)  ;;  %v1719_v2 = vld [vmem:[%s1945_s2] sm:$0xf] (!%p248_p10)  ;;  %vm346_vm2 = vcmask (!%p248_p10), 1046532  }
  0x13   : > { %s1706_s13 = scalar_select %p176_p11, %s1584_s20, %s178_s11  }
  0x14   : > { %1404 = vmatpush3.msk.msra.mxu0 (!%p248_p10), %vm373_vm0, %v1327_v0  ;;  %s294_s6 = sadd.s32 (!%p248_p10), %s1588_s21, %s293_s16  ;;  %1383 = vmatprep.subr.msk.mxu1 (!%p248_p10), %vm373_vm0, %v1311_v1  ;;  %v1335_v3 = vld [vmem:[%s1945_s2 + $0x14] sm:$0xf] (!%p248_p10)  ;;  %vm368_vm3 = vcmask (!%p248_p10), 31744   ;;  %vm1771_vm4 = vmor (!%p248_p10), %vm345_vm1, %vm346_vm2  ;;  %v1339_v34 = vld [vmem:[%s1945_s2 + $0x18] sm:$0xf] (!%p248_p10)  ;;  %vm1127_vm5 = vcmask (!%p248_p10), 27648  }
  0x15   : > { %s295_s11 = sadd.s32 (!%p248_p10), 1, %s294_s6  ;;  %s306_s12 = sadd.s32 (!%p248_p10), 2, %s294_s6  ;;  %1384 = vmatpush3.msk.msra.mxu1 (!%p248_p10), %vm373_vm0, %v1311_v1  ;;  %1408 = vmatprep.subr.msk.mxu0 (!%p248_p10), %vm373_vm0, %v1335_v3  ;;  %v1318_v51 = vld [vmem:[%s1945_s2 + $0x8] sm:$0xf] (!%p248_p10)  ;;  %vm1139_vm6 = vcmask (!%p248_p10), 24576  }
  0x16   : > { %p296_p12 = scmp.lt.s32.totalorder (!%p248_p10), %s295_s11, 11  ;;  %p307_p13 = scmp.lt.s32.totalorder (!%p248_p10), %s306_s12, 11  ;;  %1388 = vmatprep.subr.msk.mxu1 (!%p248_p10), %vm373_vm0, %v1719_v2 }
  0x19   : > { %s1967_s11 = smov (!%p296_p12, %s295_s11), 11  ;;  %s1969_s12 = smov (!%p307_p13, %s306_s12), 11 }
  0x1a   : > { %s1437_s14 = smul.u32 24, %s1967_s11 }
  0x1b   : > { %s1438_s15 = smul.u32 24, %s1969_s12  ;;  %s290_s12 = sand.u32 1, %s1580_s19  }
  0x1c   : > { %s1734_s26 = scalar_lea.vmem %s1943_s0, %s1437_s14  ;;  %s1301_s14 = sshll.u32 %s290_s12, 1 }
  0x1d   : > { %s1739_s6 = scalar_lea.vmem %s1944_s1, %s1438_s15  ;;  %v326_v4 = vld [vmem:[%s1734_s26] sm:$0x7]  ;;  %v327_v5 = vld [vmem:[%s1734_s26 + $0x4] sm:$0x7]  ;;  %v328_v6 = vld [vmem:[%s1734_s26 + $0x8] sm:$0x7] }
  0x1e   : > { %v718_v7 = vld [vmem:[%s1739_s6] sm:$0x7]  ;;  %v719_v8 = vld [vmem:[%s1739_s6 + $0x4] sm:$0x7]  ;;  %v720_v9 = vld [vmem:[%s1739_s6 + $0x8] sm:$0x7]  ;;  %v331_v10 = vunpack.c.l.bf16 %v326_v4  ;;  %v1747_v11 = vunpack.c.l.bf16 %v327_v5  ;;  %v1749_v12 = vunpack.c.l.bf16 %v328_v6 }
  0x1f   : > { %v723_v13 = vunpack.c.l.bf16 %v718_v7  ;;  %v1751_v14 = vunpack.c.l.bf16 %v719_v8  ;;  %v721_v15 = vld [vmem:[%s1739_s6 + $0xc] sm:$0x7]  ;;  %v1754_v16 = vunpack.c.l.bf16 %v720_v9  ;;  %v722_v59 = vld [vmem:[%s1739_s6 + $0x10] sm:$0x7]  ;;  %v1344_v4 = vld [vmem:[%s1945_s2 + $0x1c] sm:$0xf] }
  0x20   : > { %v329_v17 = vld [vmem:[%s1734_s26 + $0xc] sm:$0x7]  ;;  %v1757_v18 = vunpack.c.l.bf16 %v721_v15  ;;  %v341_v20 = vcombine.high %v331_v10, %v331_v10  ;;  %v342_v24 = vcombine.high %v1747_v11, %v1747_v11  ;;  %v343_v26 = vcombine.high %v1749_v12, %v1749_v12  ;;  %v330_v63 = vld [vmem:[%s1734_s26 + $0x10] sm:$0x7]  ;;  %s1304_s26 = sshll.u32 %s1592_s22, 2  ;;  %s292_s16 = scalar_lea.vmem [#allocation2], %s1301_s14 }
  0x21   : > { %v1759_v19 = vunpack.c.l.bf16 %v329_v17  ;;  %v734_v21 = vcombine.low %v723_v13, %v1751_v14  ;;  %v820_v22 = vcombine.high %v723_v13, %v723_v13  ;;  %v1331_v23 = vrot.slane %v723_v13, 9  ;;  %v1323_v6 = vld [vmem:[%s1945_s2 + $0xc] sm:$0xf]  ;;  %s1871_s29 = sadd.s32 %s1588_s21, %s1304_s26  ;;  %s1181_s17 = sshll.u32 %s292_s16, 4  ;;  %s1892_s17 = int_to_ptr.vmem [resolvable:$true] %s1181_s17 }
  0x22   : > { %v735_v25 = vcombine.low %v1754_v16, %v1757_v18  ;;  %v1307_v29 = vrot.slane %v331_v10, 9  ;;  %v350_v31 = vrot.slane %v341_v20, 5  ;;  %v1308_v32 = vrot.slane %v1747_v11, 9  ;;  %p317_p0 = scmp.lt.s32.totalorder %s1871_s29, 7  ;;  %s1353_s15 = sshll.u32 %s1871_s29, 5 }
  0x23   : > { %v344_v27 = vcombine.high %v1759_v19, %v1759_v19  ;;  %1405 = vmatprep.mubr.msk.f32.mxu0 %vm368_vm3, %v734_v21  ;;  %v826_v30 = vrot.slane %v820_v22, 5  ;;  %v354_v33 = vrot.slane %v342_v24, 5  ;;  %v1309_v35 = vrot.slane %v1749_v12, 9  ;;  %v1348_v24 = vld [vmem:[%s1946_s3] ss:$0 sm:$0xff]  ;;  %s1890_s6 = scalar_lea.hbm %s1948_s5, %s1353_s15  ;;  %s1161_s9 = scalar_lea.sflag [#allocation3], %s290_s12 }
  0x24   : > { %1406 = vmatmul.mubr.msk.f32.vlgmr.msra.gmra.mrb[0].mxu0 %vm368_vm3, %v735_v25  ;;  %v358_v36 = vrot.slane %v343_v26, 5  ;;  %v1310_v37 = vrot.slane %v1759_v19, 9  ;;  %v351_v39 = vsel %vm1771_vm4, %v1307_v29, %v350_v31  ;;  %v821_v44 = vcombine.high %v1751_v14, %v1751_v14  ;;  %s318_s30 = scalar_select %p317_p0, %s1871_s29, 7 }
  0x25   : > { %v362_v38 = vrot.slane %v344_v27, 5  ;;  %v1787_v40 = vsel %vm1771_vm4, %v1308_v32, %v354_v33  ;;  %1409 = vmatpush3.msk.msra.mxu0 %vm373_vm0, %v1335_v3  ;;  %v827_v46 = vsel %vm1771_vm4, %v1331_v23, %v826_v30  ;;  %v1332_v47 = vrot.slane %v1751_v14, 9  ;;  %s1606_s29 = smov [#allocation2]  }
  0x26   : > { %v1792_v41 = vsel %vm1771_vm4, %v1309_v35, %v358_v36  ;;  %v366_v43 = vcombine.low %v351_v39, %v1787_v40  ;;  %1413 = vmatprep.subr.msk.mxu0 %vm373_vm0, %v1339_v34  ;;  %v830_v48 = vrot.slane %v821_v44, 5  ;;  %v822_v49 = vcombine.high %v1754_v16, %v1754_v16  ;;  %s1356_s10 = sshll.u32 %s318_s30, 3  ;;  %s1514_s22 = sshll.u32 %s1606_s29, 4  ;;  %s1515_s22 = int_to_ptr.vmem [resolvable:$false] %s1514_s22 }
  0x27   : > { %v1796_v42 = vsel %vm1771_vm4, %v1310_v37, %v362_v38  ;;  %v823_v50 = vcombine.high %v1757_v18, %v1757_v18  ;;  %v1333_v52 = vrot.slane %v1754_v16, 9  ;;  %v1334_v53 = vrot.slane %v1757_v18, 9  ;;  %s321_s11 = scalar_lea.vmem %s1947_s4, %s1356_s10  ;;  %s1510_s10 = scalar_lea.vmem %s1892_s17, 32 }
  0x28   : > { %v367_v45 = vcombine.low %v1792_v41, %v1796_v42  ;;  %1385 = vmatprep.mubr.msk.f32.mxu1 %vm368_vm3, %v366_v43  ;;  %v452_v54 = vcombine.low %v331_v10, %v1747_v11  ;;  %v831_v55 = vsel %vm1771_vm4, %v1332_v47, %v830_v48  ;;  %v834_v56 = vrot.slane %v822_v49, 5  ;;  %p1511_p1 = scmp.ne.s32.totalorder %s1892_s17, %s1510_s10  ;;  %s1516_s21 = scalar_lea.vmem %s1515_s22, 64 }
  0x29   : > { %v838_v57 = vrot.slane %v823_v50, 5  ;;  %v842_v58 = vcombine.low %v827_v46, %v831_v55  ;;  %v931_v62 = vcombine.low %v1751_v14, %v1754_v16  ;;  %v453_v1 = vcombine.low %v1749_v12, %v1759_v19  ;;  %p1517_p4 = scmp.lt.s32.totalorder %s1892_s17, %s1515_s22  ;;  %p1518_p6 = scmp.lt.s32.totalorder %s1516_s21, %s1510_s10 }
  0x2a   : > { %1386 = vmatmul.mubr.msk.f32.vlgmr.msra.gmra.mrb[0].mxu1 %vm368_vm3, %v367_v45  ;;  %v835_v60 = vsel %vm1771_vm4, %v1333_v52, %v834_v56  ;;  %v539_v3 = vcombine.low %v1747_v11, %v1749_v12  ;;  %v335_v5 = vunpack.c.l.bf16 %v330_v63  ;;  %v632_v16 = vcombine.low %v1787_v40, %v1792_v41  ;;  %p1512_p2 = pnand %p1511_p1, %p1690_p5 }
  0x2b   : > { %1389 = vmatpush3.msk.msra.mxu1 %vm373_vm0, %v1719_v2  ;;  %1390 = vmatprep.mubr.msk.f32.mxu1 %vm368_vm3, %v452_v54  ;;  %v839_v61 = vsel %vm1771_vm4, %v1334_v53, %v838_v57  ;;  %v727_v2 = vunpack.c.l.bf16 %v722_v59  ;;  %v1024_v10 = vcombine.low %v831_v55, %v835_v60  ;;  %p1519_p8 = por %p1518_p6, %p1517_p4 }
  0x2c   : > { %1393 = vmatprep.subr.msk.mxu1 %vm373_vm0, %v1318_v51  ;;  %1410 = vmatprep.mubr.msk.f32.mxu0 %vm368_vm3, %v842_v58  ;;  %v843_v0 = vcombine.low %v835_v60, %v839_v61  ;;  %v625_v8 = vcombine.high %v335_v5, %v335_v5  ;;  %v540_v13 = vcombine.low %v1759_v19, %v335_v5  ;;  %v1322_v14 = vrot.slane %v335_v5, 9  ;;  %p1513_p3 = pneg %p1512_p2 }
  0x2d   : > { %v1017_v7 = vcombine.high %v727_v2, %v727_v2  ;;  %v932_v9 = vcombine.low %v1757_v18, %v727_v2  ;;  %v1343_v11 = vrot.slane %v727_v2, 9 }
  0x2e   : > { %1411 = vmatmul.mubr.msk.f32.vlgmr.msra.gmra.mrb[0].mxu0 %vm368_vm3, %v843_v0  ;;  %v628_v15 = vrot.slane %v625_v8, 5  ;;  %p1520_p9 = pnand %p1519_p8, %p1513_p3 }
  0x2f   : > { %1414 = vmatpush3.msk.msra.mxu0 %vm373_vm0, %v1339_v34  ;;  %1415 = vmatprep.mubr.msk.f32.mxu0 %vm368_vm3, %v931_v62  ;;  %v1020_v12 = vrot.slane %v1017_v7, 5 }
  0x30   : > { %1418 = vmatprep.subr.msk.mxu0 %vm373_vm0, %v1344_v4  ;;  %v629_v18 = vsel %vm1771_vm4, %v1322_v14, %v628_v15 }
  0x31   : > { %v1021_v17 = vsel %vm1771_vm4, %v1343_v11, %v1020_v12  ;;  %v633_v20 = vcombine.low %v1796_v42, %v629_v18 }
  0x32   : > { %1391 = vmatmul.mubr.msk.f32.vlgmr.msra.gmra.mrb[0].mxu1 %vm368_vm3, %v453_v1  ;;  %v1025_v19 = vcombine.low %v839_v61, %v1021_v17 }
  0x33   : > { %1394 = vmatpush3.msk.msra.mxu1 %vm373_vm0, %v1318_v51  ;;  %1395 = vmatprep.mubr.msk.f32.mxu1 %vm368_vm3, %v539_v3 }
  0x34   : > { %1398 = vmatprep.subr.msk.mxu1 %vm373_vm0, %v1323_v6 }
  0x36   : > { %1416 = vmatmul.mubr.msk.f32.vlgmr.msra.gmra.mrb[0].mxu0 %vm368_vm3, %v932_v9 }
  0x37   : > { %1419 = vmatpush3.msk.msra.mxu0 %vm373_vm0, %v1344_v4  ;;  %1420 = vmatprep.mubr.msk.f32.mxu0 %vm368_vm3, %v1024_v10 }
  0x3a   : > { %1396 = vmatmul.mubr.msk.f32.vlgmr.msra.gmra.mrb[0].mxu1 %vm368_vm3, %v540_v13 }
  0x3b   : > { %1399 = vmatpush3.msk.msra.mxu1 %vm373_vm0, %v1323_v6  ;;  %1400 = vmatprep.mubr.msk.f32.mxu1 %vm368_vm3, %v632_v16 }
  0x3e   : > { %1421 = vmatmul.mubr.msk.f32.vlgmr.msra.gmra.mrb[0].mxu0 %vm368_vm3, %v1025_v19 }
  0x42   : > { %1401 = vmatmul.mubr.msk.f32.vlgmr.msra.gmra.mrb[0].mxu1 %vm368_vm3, %v633_v20 }
 0x111   : > { %v1422_v21 = vpop.f32.mrb[0].mxu0 }
 0x112   : > { %v1099_v22 = vpop.f32.mrb[1].mxu0 }
 0x115   : > { %v1402_v23 = vpop.f32.mrb[0].mxu1 }
 0x116   : > { %v1423_v25 = vadd.f32 %v1422_v21, %v1402_v23  ;;  %v707_v26 = vpop.f32.mrb[1].mxu1 }
 0x117   : > { %v1424_v27 = vadd.f32 %v1099_v22, %v707_v26 }
 0x118   : > { %v1118_v28 = vadd.f32 %v1423_v25, %v1348_v24 }
 0x119   : > { %v1117_v29 = vadd.f32 %v1424_v27, %v1348_v24 }
 0x11a   : > { %v1358_v30 = vpack.c.bf16 %v1118_v28, %v1118_v28  ;;  %v1131_v31 = vsel %vm368_vm3, %v1118_v28, 0.0  ;;  %v1142_v32 = vmul.f32 %v1118_v28, %v1118_v28 }
 0x11b   : > { %v1357_v33 = vpack.c.bf16 %v1117_v29, %v1117_v29  ;;  %v1130_v34 = vsel %vm368_vm3, %v1117_v29, 0.0  ;;  %v1141_v35 = vmul.f32 %v1117_v29, %v1117_v29 }
 0x11c   : > { %v1144_v36 = vsel %vm368_vm3, %v1142_v32, 0.0  ;;  %v1132_v37 = vadd.f32 %v1131_v31, %v1130_v34  ;;  %1129 = vst.msk [vmem:[%s321_s11 + $0x4] sm:$0xf] %vm1127_vm5, %v1358_v30 }
 0x11d   : > { %v1143_v38 = vsel %vm368_vm3, %v1141_v35, 0.0  ;;  %1128 = vst.msk [vmem:[%s321_s11] sm:$0xf] %vm1127_vm5, %v1357_v33 }
 0x11e   : > { %v1133_v39 = vrot.slane %v1132_v37, 4  ;;  %v1145_v40 = vadd.f32 %v1144_v36, %v1143_v38 }
 0x120   : > { %v1134_v41 = vadd.f32 %v1133_v39, %v1132_v37  ;;  %v1146_v42 = vrot.slane %v1145_v40, 4 }
 0x122   : > { %v1135_v43 = vrot.slane %v1134_v41, 2  ;;  %v1147_v44 = vadd.f32 %v1146_v42, %v1145_v40 }
 0x124   : > { %v1136_v45 = vadd.f32 %v1135_v43, %v1134_v41  ;;  %v1148_v46 = vrot.slane %v1147_v44, 2 }
 0x126   : > { %v1137_v47 = vrot.slane %v1136_v45, 1  ;;  %v1149_v48 = vadd.f32 %v1148_v46, %v1147_v44 }
 0x128   : > { %v1138_v49 = vadd.f32 %v1137_v47, %v1136_v45  ;;  %v1150_v50 = vrot.slane %v1149_v48, 1 }
 0x12a   : > { %1140 = vst.msk [vmem:[%s292_s16] sm:$0x1] %vm1139_vm6, %v1138_v49  ;;  %v1151_v51 = vadd.f32 %v1150_v50, %v1149_v48 }
 0x12c   : > { %1152 = vst.msk [vmem:[%s292_s16 + $0x1] sm:$0x1] %vm1139_vm6, %v1151_v51 }
 0x12d   : > { %1523 = shalt.err (!%p1520_p9)
}
 0x12e   : > { %s1524_s11 = scalar_lea.hbm %s1890_s6, 32  ;;  %s1528_s15 = scalar_lea.hbm %s1948_s5, 256 }
 0x12f   : > { %p1525_p10 = scmp.ne.s32.totalorder %s1890_s6, %s1524_s11  ;;  %p1529_p13 = scmp.lt.u32.totalorder %s1890_s6, %s1948_s5 }
 0x130   : > { %p1530_p0 = scmp.lt.u32.totalorder %s1528_s15, %s1524_s11  ;;  %p1532_p2 = scmp.lt.u32.totalorder %s1524_s11, %s1890_s6 }
 0x131   : > { %p1526_p11 = pnand %p1525_p10, %p1690_p5 }
 0x132   : > { %p1531_p1 = por %p1530_p0, %p1529_p13 }
 0x133   : > { %p1527_p12 = pneg %p1526_p11 }
 0x134   : > { %p1533_p3 = por %p1532_p2, %p1531_p1 }
 0x136   : > { %p1534_p4 = pnand %p1533_p3, %p1527_p12 }
 0x138   : > { %1537 = shalt.err (!%p1534_p4)
}
 0x139   : > { %1439 = dma.vmem_to_hbm [thread:$0]  (%p1690_p5), %s1892_s17, 32, %s1890_s6, %s1161_s9  }
 0x13a PF: > { %p1445_p6 = scmp.ge.s32.totalorder %s1604_s25, 2  ;;  %s1203_s30 = sand.u32 1, %s1576_s18  }
 0x13b   : > { %s1204_s10 = scalar_lea.sflag [#allocation3], %s1203_s30 }
 0x13c   : > { %p1442_p8 = pnand %p1445_p6, %p1696_p7 }
 0x13e   : > { %1571 = dma.done.wait (!%p1442_p8), %s1204_s10, 32  }
 0x13f   : > { %1573 = vsyncadd (!%p1442_p8), %s1204_s10, 4294967264  ;;  %s19_s25 = sadd.s32 1, %s1604_s25   ;;  %s1953_s18 = smov %s1580_s19 }
 0x140   : > { %p16_p9 = scmp.ge.s32.totalorder %s19_s25, 10   ;;  %s1954_s19 = smov %s1584_s20 }
 0x141   : > { %s1955_s20 = smov %s1706_s13  ;;  %s1956_s21 = smov %s1596_s23 }
 0x142   : > { %s1957_s22 = smov %s1600_s24  ;;  %s1958_s23 = smov %s1961_s27 }
 0x143   : > { %s1959_s24 = smov %s1965_s28  ;;  %18 = sbr.rel (!%p16_p9) target bundleno = 5 (0x5), region = 93 }
 0x14a   :  { %1209 = vsyncpa [#allocation3], 1 }
 0x14b   :  { %1211 = vsyncpa [#allocation3 + $0x1], 1 }

// kernel: _lambda_.19
= control target key start
LH: loop header
LB: loop body
LE: loop exit
PB: predicated region body
PF: predicated region fallthrough
CT: control target
= control target key end

     0   :  { %11 = vsyncpa [#allocation3], 0  ;;  %s2065_s0 = inlined_call_operand.vmem [shape: bf16[12,6,6,4], index: 0, kind: input, shape index: {}, may-alias: {0,1}]   ;;  %s2066_s1 = inlined_call_operand.vmem [shape: bf16[12,6,6,4], index: 1, kind: input, shape index: {}, may-alias: {0,1}]   ;;  %s2067_s2 = inlined_call_operand.vmem [shape: f32[8,4,4], index: 2, kind: input, shape index: {}]   ;;  %s2068_s3 = inlined_call_operand.vmem [shape: f32[1,4], index: 3, kind: input, shape index: {}]   ;;  %s2069_s4 = inlined_call_operand.vmem [shape: bf16[8,16,4], index: 4, kind: output, shape index: {0}]   ;;  %s2070_s5 = inlined_call_operand.hbm [shape: f32[8,2,4], index: 5, kind: output, shape index: {1}]  }
   0x1   :  { %13 = vsyncpa [#allocation3 + $0x1], 0  ;;  %s1690_s18 = smov 0   ;;  %s1692_s19 = smov 0  }
   0x2   :  { %s1694_s20 = smov 0   ;;  %s1696_s21 = smov 0  }
   0x3   :  { %s1698_s22 = smov 0   ;;  %s1700_s23 = smov 0  }
   0x4   :  { %s1702_s24 = smov 0   ;;  %s1704_s25 = smov 0  }
   0x5 LB: > { %s1335_s26 = sadd.s32 4294967295, %s1657_s25   ;;  %s28_s27 = sadd.s32 1, %s1649_s23  ;;  %s1657_s25 = sphi %s1704_s25, %s19_s25   ;;  %s1653_s24 = sphi %s1702_s24, %s2083_s24   ;;  %s1649_s23 = sphi %s1700_s23, %s2082_s23   ;;  %s1645_s22 = sphi %s1698_s22, %s2081_s22   ;;  %s1641_s21 = sphi %s1696_s21, %s2080_s21   ;;  %s1637_s20 = sphi %s1694_s20, %s2079_s20   ;;  %s1633_s19 = sphi %s1692_s19, %s2078_s19   ;;  %s1629_s18 = sphi %s1690_s18, %s2077_s18  }
   0x6   : > { %s31_s28 = sadd.s32 1, %s1653_s24  ;;  %p29_p0 = scmp.ge.s32.totalorder %s28_s27, 4 }
   0x7   : > { %s1339_s29 = sshll.u32 %s1653_s24, 2  ;;  %s1336_s30 = sadd.s32 4294967294, %s1657_s25  }
   0x8   : > { %s172_s6 = sadd.s32 %s1649_s23, %s1339_s29  ;;  %s2085_s27 = smov (%p29_p0, %s28_s27), 0 }
   0x9   : > { %s2087_s28 = smov (!%p29_p0, %s31_s28), %s1653_s24  ;;  %p188_p1 = scmp.ne.s32.totalorder %s1637_s20, %s1633_s19 }
   0xa   : > { %p189_p2 = scmp.eq.s32.totalorder %s1335_s26, 7  ;;  %p33_p3 = scmp.ge.s32.totalorder %s2087_s28, 2 }
   0xb   : > { %p194_p4 = scmp.ne.s32.totalorder %s1633_s19, %s1629_s18  ;;  %p195_p6 = scmp.eq.s32.totalorder %s1336_s30, 7 }
   0xc   : > { %p1743_p5 = por %p189_p2, %p188_p1  ;;  %s2089_s28 = smov (%p33_p3, %s2087_s28), 0 }
   0xd   : > { %p1749_p7 = por %p195_p6, %p194_p4  ;;  %p1343_p8 = scmp.ge.s32.totalorder %s1657_s25, 1 }
   0xe   : > { %s1340_s9 = sshll.u32 %s2089_s28, 2  ;;  %p247_p9 = scmp.lt.s32.totalorder %s1657_s25, 9 }
   0xf   : > { %s174_s10 = sadd.s32 %s1340_s9, %s2085_s27  ;;  %s178_s11 = sadd.s32 1, %s1637_s20 }
  0x10   : > { %s175_s12 = ssub.s32 %s172_s6, %s174_s10  ;;  %p248_p10 = pnand %p1343_p8, %p247_p9 }
  0x11   : > { %p176_p11 = scmp.eq.s32.totalorder %s175_s12, 0  ;;  %v1358_v0 = vld [vmem:[%s2067_s2 + $0x4] sm:$0xf] (!%p248_p10)  ;;  %vm392_vm0 = vcmask (!%p248_p10), 1043456   ;;  %v1379_v1 = vld [vmem:[%s2067_s2 + $0x10] sm:$0xf] (!%p248_p10) }
  0x12   : > { %251 = sbr.rel (%p248_p10) target bundleno = 319 (0x13f), region = 36  ;;  %1436 = vmatprep.subr.msk.mxu1 (!%p248_p10), %vm392_vm0, %v1358_v0  ;;  %1456 = vmatprep.subr.msk.mxu0 (!%p248_p10), %vm392_vm0, %v1379_v1  ;;  %v1773_v2 = vld [vmem:[%s2067_s2] sm:$0xf] (!%p248_p10)  ;;  %v1781_v3 = vld [vmem:[%s2067_s2 + $0x14] sm:$0xf] (!%p248_p10)  ;;  %vm364_vm1 = vcmask (!%p248_p10), 1041408  }
  0x13   : > { %s1759_s13 = scalar_select %p176_p11, %s1637_s20, %s178_s11  }
  0x14   : > { %s293_s26 = smul.u32 (!%p248_p10), 6, %s1645_s22  ;;  %1437 = vmatpush3.msk.msra.mxu1 (!%p248_p10), %vm392_vm0, %v1358_v0  ;;  %1457 = vmatpush3.msk.msra.mxu0 (!%p248_p10), %vm392_vm0, %v1379_v1  ;;  %vm365_vm2 = vcmask (!%p248_p10), 1045508   ;;  %vm387_vm4 = vcmask (!%p248_p10), 31744   ;;  %vm344_vm5 = vcmask (!%p248_p10), 1042432   ;;  %vm345_vm6 = vcmask (!%p248_p10), 1046532  }
  0x15   : > { %1441 = vmatprep.subr.msk.mxu1 (!%p248_p10), %vm392_vm0, %v1773_v2  ;;  %1461 = vmatprep.subr.msk.mxu0 (!%p248_p10), %vm392_vm0, %v1781_v3  ;;  %vm1828_vm3 = vmor (!%p248_p10), %vm364_vm1, %vm365_vm2  ;;  %v1884_v46 = vld [vmem:[%s2067_s2 + $0x8] sm:$0xf] (!%p248_p10)  ;;  %v1401_v18 = vld [vmem:[%s2068_s3] ss:$0 sm:$0xff] (!%p248_p10)  ;;  %vm1170_vm8 = vcmask (!%p248_p10), 27648   ;;  %vm1182_vm9 = vcmask (!%p248_p10), 24576  }
  0x16   : > { %s294_s6 = sadd.s32 (!%p248_p10), %s1641_s21, %s293_s26  ;;  %vm1872_vm7 = vmor (!%p248_p10), %vm344_vm5, %vm345_vm6 }
  0x17   : > { %s295_s11 = sadd.s32 (!%p248_p10), 1, %s294_s6  ;;  %s306_s12 = sadd.s32 (!%p248_p10), 2, %s294_s6 }
  0x18   : > { %p296_p12 = scmp.lt.s32.totalorder (!%p248_p10), %s295_s11, 11  ;;  %p307_p13 = scmp.lt.s32.totalorder (!%p248_p10), %s306_s12, 11 }
  0x1a   : > { %s2091_s11 = smov (!%p296_p12, %s295_s11), 11  ;;  %s2093_s12 = smov (!%p307_p13, %s306_s12), 11 }
  0x1b   : > { %s1490_s14 = smul.u32 24, %s2091_s11 }
  0x1c   : > { %s1491_s15 = smul.u32 24, %s2093_s12  ;;  %s290_s12 = sand.u32 1, %s1633_s19  }
  0x1d   : > { %s1790_s26 = scalar_lea.vmem %s2065_s0, %s1490_s14  ;;  %s1344_s14 = sshll.u32 %s290_s12, 1 }
  0x1e   : > { %v326_v4 = vld [vmem:[%s1790_s26] sm:$0x7]  ;;  %v327_v5 = vld [vmem:[%s1790_s26 + $0x4] sm:$0x7]  ;;  %v328_v6 = vld [vmem:[%s1790_s26 + $0x8] sm:$0x7]  ;;  %s1798_s6 = scalar_lea.vmem %s2066_s1, %s1491_s15 }
  0x1f   : > { %v329_v7 = vld [vmem:[%s1790_s26 + $0xc] sm:$0x7]  ;;  %v1801_v8 = vunpack.c.l.bf16 %v326_v4  ;;  %v1803_v9 = vunpack.c.l.bf16 %v327_v5  ;;  %v1805_v10 = vunpack.c.l.bf16 %v328_v6  ;;  %v741_v16 = vld [vmem:[%s1798_s6] sm:$0x7]  ;;  %v742_v22 = vld [vmem:[%s1798_s6 + $0x4] sm:$0x7] }
  0x20   : > { %v1807_v11 = vunpack.c.l.bf16 %v329_v7  ;;  %v743_v24 = vld [vmem:[%s1798_s6 + $0x8] sm:$0x7]  ;;  %v1841_v28 = vunpack.c.l.bf16 %v741_v16  ;;  %v744_v30 = vld [vmem:[%s1798_s6 + $0xc] sm:$0x7]  ;;  %v747_v31 = vunpack.c.l.bf16 %v742_v22  ;;  %v330_v32 = vld [vmem:[%s1790_s26 + $0x10] sm:$0x7] }
  0x21   : > { %v1811_v12 = vcombine.high %v1801_v8, %v1801_v8  ;;  %v1815_v13 = vcombine.high %v1803_v9, %v1803_v9  ;;  %v1819_v14 = vcombine.high %v1805_v10, %v1805_v10  ;;  %v1354_v15 = vrot.slane %v1801_v8, 10  ;;  %v745_v48 = vld [vmem:[%s1798_s6 + $0x10] sm:$0x7]  ;;  %s1347_s26 = sshll.u32 %s1645_s22, 2  ;;  %s292_s16 = scalar_lea.vmem [#allocation2], %s1344_s14 }
  0x22   : > { %v1825_v17 = vcombine.high %v1807_v11, %v1807_v11  ;;  %v1355_v19 = vrot.slane %v1803_v9, 10  ;;  %v1356_v20 = vrot.slane %v1805_v10, 10  ;;  %v1357_v21 = vrot.slane %v1807_v11, 10  ;;  %s1993_s29 = sadd.s32 %s1641_s21, %s1347_s26  ;;  %s1224_s17 = sshll.u32 %s292_s16, 4  ;;  %s2014_s17 = int_to_ptr.vmem [resolvable:$true] %s1224_s17 }
  0x23   : > { %v369_v23 = vrot.slane %v1811_v12, 6  ;;  %v373_v25 = vrot.slane %v1815_v13, 6  ;;  %v377_v26 = vrot.slane %v1819_v14, 6  ;;  %v1859_v36 = vunpack.c.l.bf16 %v743_v24  ;;  %p317_p0 = scmp.lt.s32.totalorder %s1993_s29, 7  ;;  %s1406_s15 = sshll.u32 %s1993_s29, 5 }
  0x24   : > { %v381_v27 = vrot.slane %v1825_v17, 6  ;;  %v1864_v39 = vunpack.c.l.bf16 %v744_v30  ;;  %v755_v40 = vcombine.high %v1841_v28, %v1841_v28  ;;  %v1868_v41 = vunpack.c.l.bf16 %v330_v32  ;;  %s2012_s6 = scalar_lea.hbm %s2070_s5, %s1406_s15  ;;  %s1204_s9 = scalar_lea.sflag [#allocation3], %s290_s12 }
  0x25   : > { %v370_v29 = vsel %vm1828_vm3, %v1354_v15, %v369_v23  ;;  %v1849_v33 = vsel %vm1828_vm3, %v1355_v19, %v373_v25  ;;  %v1853_v34 = vsel %vm1828_vm3, %v1356_v20, %v377_v26  ;;  %v756_v43 = vcombine.high %v747_v31, %v747_v31  ;;  %s318_s30 = scalar_select %p317_p0, %s1993_s29, 7 }
  0x26   : > { %v1857_v35 = vsel %vm1828_vm3, %v1357_v21, %v381_v27  ;;  %v385_v37 = vcombine.low %v370_v29, %v1849_v33  ;;  %v1878_v44 = vcombine.high %v1859_v36, %v1859_v36  ;;  %v1375_v45 = vrot.slane %v1841_v28, 9  ;;  %s1659_s29 = smov [#allocation2]  }
  0x27   : > { %v386_v38 = vcombine.low %v1853_v34, %v1857_v35  ;;  %v349_v47 = vrot.slane %v1811_v12, 5  ;;  %v758_v49 = vcombine.high %v1864_v39, %v1864_v39  ;;  %v761_v50 = vrot.slane %v755_v40, 5  ;;  %s1409_s10 = sshll.u32 %s318_s30, 3  ;;  %s1567_s22 = sshll.u32 %s1659_s29, 4  ;;  %s1568_s22 = int_to_ptr.vmem [resolvable:$false] %s1567_s22 }
  0x28   : > { %1438 = vmatprep.mubr.msk.f32.mxu1 %vm387_vm4, %v385_v37  ;;  %v1376_v51 = vrot.slane %v747_v31, 9  ;;  %v765_v52 = vrot.slane %v756_v43, 5  ;;  %v1377_v53 = vrot.slane %v1859_v36, 9  ;;  %v769_v54 = vrot.slane %v1878_v44, 5  ;;  %s321_s11 = scalar_lea.vmem %s2069_s4, %s1409_s10  ;;  %s1563_s10 = scalar_lea.vmem %s2014_s17, 32 }
  0x29   : > { %1439 = vmatmul.mubr.msk.f32.vlgmr.msra.gmra.mrb[0].mxu1 %vm387_vm4, %v386_v38  ;;  %v1378_v55 = vrot.slane %v1864_v39, 9  ;;  %v353_v56 = vrot.slane %v1815_v13, 5  ;;  %v357_v57 = vrot.slane %v1819_v14, 5  ;;  %v762_v58 = vsel %vm1872_vm7, %v1375_v45, %v761_v50  ;;  %p1564_p1 = scmp.ne.s32.totalorder %s2014_s17, %s1563_s10  ;;  %s1569_s21 = scalar_lea.vmem %s1568_s22, 64 }
  0x2a   : > { %1442 = vmatpush3.msk.msra.mxu1 %vm392_vm0, %v1773_v2  ;;  %v773_v59 = vrot.slane %v758_v49, 5  ;;  %v361_v60 = vrot.slane %v1825_v17, 5  ;;  %v1903_v61 = vunpack.c.l.bf16 %v745_v48  ;;  %v766_v62 = vsel %vm1872_vm7, %v1376_v51, %v765_v52  ;;  %v1392_v17 = vld [vmem:[%s2067_s2 + $0x18] sm:$0xf]  ;;  %p1570_p4 = scmp.lt.s32.totalorder %s2014_s17, %s1568_s22  ;;  %p1571_p6 = scmp.lt.s32.totalorder %s1569_s21, %s1563_s10 }
  0x2b   : > { %1446 = vmatprep.subr.msk.mxu1 %vm392_vm0, %v1884_v46  ;;  %v770_v63 = vsel %vm1872_vm7, %v1377_v53, %v769_v54  ;;  %v777_v1 = vcombine.low %v762_v58, %v766_v62  ;;  %v865_v2 = vrot.slane %v755_v40, 6  ;;  %v869_v4 = vrot.slane %v756_v43, 6  ;;  %p1565_p2 = pnand %p1564_p1, %p1743_p5 }
  0x2c   : > { %v1911_v0 = vsel %vm1872_vm7, %v1378_v55, %v773_v59  ;;  %v556_v5 = vcombine.high %v1868_v41, %v1868_v41  ;;  %v1350_v7 = vrot.slane %v1801_v8, 9  ;;  %v1351_v12 = vrot.slane %v1803_v9, 9  ;;  %p1572_p8 = por %p1571_p6, %p1570_p4 }
  0x2d   : > { %v778_v6 = vcombine.low %v770_v63, %v1911_v0  ;;  %1458 = vmatprep.mubr.msk.f32.mxu0 %vm387_vm4, %v777_v1  ;;  %v873_v13 = vrot.slane %v1878_v44, 6  ;;  %v877_v14 = vrot.slane %v758_v49, 6  ;;  %v1383_v15 = vrot.slane %v1841_v28, 10  ;;  %v1397_v44 = vld [vmem:[%s2067_s2 + $0x1c] sm:$0xf]  ;;  %p1566_p3 = pneg %p1565_p2 }
  0x2e   : > { %v1384_v16 = vrot.slane %v747_v31, 10  ;;  %v350_v19 = vsel %vm1872_vm7, %v1350_v7, %v349_v47  ;;  %v354_v8 = vsel %vm1872_vm7, %v1351_v12, %v353_v56  ;;  %v1352_v9 = vrot.slane %v1805_v10, 9  ;;  %v1371_v31 = vld [vmem:[%s2067_s2 + $0xc] sm:$0xf] }
  0x2f   : > { %1459 = vmatmul.mubr.msk.f32.vlgmr.msra.gmra.mrb[0].mxu0 %vm387_vm4, %v778_v6  ;;  %v1353_v20 = vrot.slane %v1807_v11, 9  ;;  %v968_v21 = vcombine.high %v1903_v61, %v1903_v61  ;;  %v471_v22 = vcombine.low %v350_v19, %v354_v8  ;;  %v866_v23 = vsel %vm1828_vm3, %v1383_v15, %v865_v2  ;;  %p1573_p9 = pnand %p1572_p8, %p1566_p3 }
  0x30   : > { %1462 = vmatpush3.msk.msra.mxu0 %vm392_vm0, %v1781_v3  ;;  %v870_v24 = vsel %vm1828_vm3, %v1384_v16, %v869_v4  ;;  %v559_v25 = vrot.slane %v556_v5, 5  ;;  %v358_v10 = vsel %vm1872_vm7, %v1352_v9, %v357_v57  ;;  %v1385_v27 = vrot.slane %v1859_v36, 10 }
  0x31   : > { %v881_v26 = vcombine.low %v866_v23, %v870_v24  ;;  %1466 = vmatprep.subr.msk.mxu0 %vm392_vm0, %v1392_v17  ;;  %v362_v11 = vsel %vm1872_vm7, %v1353_v20, %v361_v60  ;;  %1443 = vmatprep.mubr.msk.f32.mxu1 %vm387_vm4, %v471_v22  ;;  %v1386_v28 = vrot.slane %v1864_v39, 10  ;;  %v563_v29 = vcombine.low %v354_v8, %v358_v10 }
  0x32   : > { %v472_v3 = vcombine.low %v358_v10, %v362_v11  ;;  %v1391_v30 = vrot.slane %v1903_v61, 9  ;;  %v1365_v32 = vrot.slane %v1868_v41, 9  ;;  %v971_v37 = vrot.slane %v968_v21, 5 }
  0x33   : > { %1463 = vmatprep.mubr.msk.f32.mxu0 %vm387_vm4, %v881_v26  ;;  %v975_v38 = vcombine.low %v766_v62, %v770_v63  ;;  %v874_v36 = vsel %vm1828_vm3, %v1385_v27, %v873_v13  ;;  %v878_v39 = vsel %vm1828_vm3, %v1386_v28, %v877_v14  ;;  %v1370_v47 = vrot.slane %v1868_v41, 10 }
  0x34   : > { %1444 = vmatmul.mubr.msk.f32.vlgmr.msra.gmra.mrb[0].mxu1 %vm387_vm4, %v472_v3  ;;  %v882_v40 = vcombine.low %v874_v36, %v878_v39  ;;  %v560_v43 = vsel %vm1872_vm7, %v1365_v32, %v559_v25  ;;  %v972_v45 = vsel %vm1872_vm7, %v1391_v30, %v971_v37  ;;  %v651_v48 = vrot.slane %v556_v5, 6 }
  0x35   : > { %1447 = vmatpush3.msk.msra.mxu1 %vm392_vm0, %v1884_v46  ;;  %1448 = vmatprep.mubr.msk.f32.mxu1 %vm387_vm4, %v563_v29  ;;  %v564_v46 = vcombine.low %v362_v11, %v560_v43  ;;  %v655_v49 = vcombine.low %v1849_v33, %v1853_v34  ;;  %v976_v50 = vcombine.low %v1911_v0, %v972_v45  ;;  %v1063_v51 = vrot.slane %v968_v21, 6 }
  0x36   : > { %1451 = vmatprep.subr.msk.mxu1 %vm392_vm0, %v1371_v31  ;;  %v1067_v42 = vcombine.low %v870_v24, %v874_v36  ;;  %v1396_v52 = vrot.slane %v1903_v61, 10  ;;  %v652_v53 = vsel %vm1828_vm3, %v1370_v47, %v651_v48 }
  0x37   : > { %1464 = vmatmul.mubr.msk.f32.vlgmr.msra.gmra.mrb[0].mxu0 %vm387_vm4, %v882_v40  ;;  %v656_v33 = vcombine.low %v1857_v35, %v652_v53 }
  0x38   : > { %1467 = vmatpush3.msk.msra.mxu0 %vm392_vm0, %v1392_v17  ;;  %1468 = vmatprep.mubr.msk.f32.mxu0 %vm387_vm4, %v975_v38  ;;  %v1064_v34 = vsel %vm1828_vm3, %v1396_v52, %v1063_v51 }
  0x39   : > { %1471 = vmatprep.subr.msk.mxu0 %vm392_vm0, %v1397_v44  ;;  %v1068_v41 = vcombine.low %v878_v39, %v1064_v34 }
  0x3c   : > { %1449 = vmatmul.mubr.msk.f32.vlgmr.msra.gmra.mrb[0].mxu1 %vm387_vm4, %v564_v46 }
  0x3d   : > { %1452 = vmatpush3.msk.msra.mxu1 %vm392_vm0, %v1371_v31  ;;  %1453 = vmatprep.mubr.msk.f32.mxu1 %vm387_vm4, %v655_v49 }
  0x3f   : > { %1469 = vmatmul.mubr.msk.f32.vlgmr.msra.gmra.mrb[0].mxu0 %vm387_vm4, %v976_v50 }
  0x40   : > { %1472 = vmatpush3.msk.msra.mxu0 %vm392_vm0, %v1397_v44  ;;  %1473 = vmatprep.mubr.msk.f32.mxu0 %vm387_vm4, %v1067_v42 }
  0x44   : > { %1454 = vmatmul.mubr.msk.f32.vlgmr.msra.gmra.mrb[0].mxu1 %vm387_vm4, %v656_v33 }
  0x47   : > { %1474 = vmatmul.mubr.msk.f32.vlgmr.msra.gmra.mrb[0].mxu0 %vm387_vm4, %v1068_v41 }
 0x117   : > { %v1455_v54 = vpop.f32.mrb[0].mxu1 }
 0x118   : > { %v730_v35 = vpop.f32.mrb[1].mxu1 }
 0x11a   : > { %v1475_v55 = vpop.f32.mrb[0].mxu0 }
 0x11b   : > { %v1476_v56 = vadd.f32 %v1475_v55, %v1455_v54  ;;  %v1142_v57 = vpop.f32.mrb[1].mxu0 }
 0x11c   : > { %v1477_v58 = vadd.f32 %v1142_v57, %v730_v35 }
 0x11d   : > { %v1161_v59 = vadd.f32 %v1476_v56, %v1401_v18 }
 0x11e   : > { %v1160_v60 = vadd.f32 %v1477_v58, %v1401_v18 }
 0x11f   : > { %v1411_v61 = vpack.c.bf16 %v1161_v59, %v1161_v59  ;;  %v1174_v62 = vsel %vm387_vm4, %v1161_v59, 0.0  ;;  %v1185_v63 = vmul.f32 %v1161_v59, %v1161_v59 }
 0x120   : > { %v1410_v0 = vpack.c.bf16 %v1160_v60, %v1160_v60  ;;  %v1173_v1 = vsel %vm387_vm4, %v1160_v60, 0.0  ;;  %v1184_v2 = vmul.f32 %v1160_v60, %v1160_v60 }
 0x121   : > { %v1187_v4 = vsel %vm387_vm4, %v1185_v63, 0.0  ;;  %v1175_v5 = vadd.f32 %v1174_v62, %v1173_v1  ;;  %1172 = vst.msk [vmem:[%s321_s11 + $0x4] sm:$0xf] %vm1170_vm8, %v1411_v61 }
 0x122   : > { %v1186_v6 = vsel %vm387_vm4, %v1184_v2, 0.0  ;;  %1171 = vst.msk [vmem:[%s321_s11] sm:$0xf] %vm1170_vm8, %v1410_v0 }
 0x123   : > { %v1176_v7 = vrot.slane %v1175_v5, 4  ;;  %v1188_v12 = vadd.f32 %v1187_v4, %v1186_v6 }
 0x125   : > { %v1177_v13 = vadd.f32 %v1176_v7, %v1175_v5  ;;  %v1189_v14 = vrot.slane %v1188_v12, 4 }
 0x127   : > { %v1178_v15 = vrot.slane %v1177_v13, 2  ;;  %v1190_v16 = vadd.f32 %v1189_v14, %v1188_v12 }
 0x129   : > { %v1179_v17 = vadd.f32 %v1178_v15, %v1177_v13  ;;  %v1191_v19 = vrot.slane %v1190_v16, 2 }
 0x12b   : > { %v1180_v8 = vrot.slane %v1179_v17, 1  ;;  %v1192_v9 = vadd.f32 %v1191_v19, %v1190_v16 }
 0x12d   : > { %v1181_v20 = vadd.f32 %v1180_v8, %v1179_v17  ;;  %v1193_v21 = vrot.slane %v1192_v9, 1 }
 0x12f   : > { %1183 = vst.msk [vmem:[%s292_s16] sm:$0x1] %vm1182_vm9, %v1181_v20  ;;  %v1194_v22 = vadd.f32 %v1193_v21, %v1192_v9 }
 0x131   : > { %1195 = vst.msk [vmem:[%s292_s16 + $0x1] sm:$0x1] %vm1182_vm9, %v1194_v22 }
 0x132   : > { %1576 = shalt.err (!%p1573_p9)
}
 0x133   : > { %s1577_s11 = scalar_lea.hbm %s2012_s6, 32  ;;  %s1581_s15 = scalar_lea.hbm %s2070_s5, 256 }
 0x134   : > { %p1578_p10 = scmp.ne.s32.totalorder %s2012_s6, %s1577_s11  ;;  %p1582_p13 = scmp.lt.u32.totalorder %s2012_s6, %s2070_s5 }
 0x135   : > { %p1583_p0 = scmp.lt.u32.totalorder %s1581_s15, %s1577_s11  ;;  %p1585_p2 = scmp.lt.u32.totalorder %s1577_s11, %s2012_s6 }
 0x136   : > { %p1579_p11 = pnand %p1578_p10, %p1743_p5 }
 0x137   : > { %p1584_p1 = por %p1583_p0, %p1582_p13 }
 0x138   : > { %p1580_p12 = pneg %p1579_p11 }
 0x139   : > { %p1586_p3 = por %p1585_p2, %p1584_p1 }
 0x13b   : > { %p1587_p4 = pnand %p1586_p3, %p1580_p12 }
 0x13d   : > { %1590 = shalt.err (!%p1587_p4)
}
 0x13e   : > { %1492 = dma.vmem_to_hbm [thread:$0]  (%p1743_p5), %s2014_s17, 32, %s2012_s6, %s1204_s9  }
 0x13f PF: > { %p1498_p6 = scmp.ge.s32.totalorder %s1657_s25, 2  ;;  %s1246_s30 = sand.u32 1, %s1629_s18  }
 0x140   : > { %s1247_s10 = scalar_lea.sflag [#allocation3], %s1246_s30 }
 0x141   : > { %p1495_p8 = pnand %p1498_p6, %p1749_p7 }
 0x143   : > { %1624 = dma.done.wait (!%p1495_p8), %s1247_s10, 32  }
 0x144   : > { %1626 = vsyncadd (!%p1495_p8), %s1247_s10, 4294967264  ;;  %s19_s25 = sadd.s32 1, %s1657_s25   ;;  %s2077_s18 = smov %s1633_s19 }
 0x145   : > { %p16_p9 = scmp.ge.s32.totalorder %s19_s25, 10   ;;  %s2078_s19 = smov %s1637_s20 }
 0x146   : > { %s2079_s20 = smov %s1759_s13  ;;  %s2080_s21 = smov %s1649_s23 }
 0x147   : > { %s2081_s22 = smov %s1653_s24  ;;  %s2082_s23 = smov %s2085_s27 }
 0x148   : > { %s2083_s24 = smov %s2089_s28  ;;  %18 = sbr.rel (!%p16_p9) target bundleno = 5 (0x5), region = 93 }
 0x14f   :  { %1252 = vsyncpa [#allocation3], 1 }
 0x150   :  { %1254 = vsyncpa [#allocation3 + $0x1], 1 }

// kernel: _lambda_.20
= control target key start
LH: loop header
LB: loop body
LE: loop exit
PB: predicated region body
PF: predicated region fallthrough
CT: control target
= control target key end

     0   :  { %11 = vsyncpa [#allocation3], 0  ;;  %s1943_s0 = inlined_call_operand.vmem [shape: bf16[12,6,6,4], index: 0, kind: input, shape index: {}, may-alias: {0,1}]   ;;  %s1944_s1 = inlined_call_operand.vmem [shape: bf16[12,6,6,4], index: 1, kind: input, shape index: {}, may-alias: {0,1}]   ;;  %s1945_s2 = inlined_call_operand.vmem [shape: f32[8,4,4], index: 2, kind: input, shape index: {}]   ;;  %s1946_s3 = inlined_call_operand.vmem [shape: f32[1,4], index: 3, kind: input, shape index: {}]   ;;  %s1947_s4 = inlined_call_operand.vmem [shape: bf16[8,16,4], index: 4, kind: output, shape index: {0}]   ;;  %s1948_s5 = inlined_call_operand.hbm [shape: f32[8,2,4], index: 5, kind: output, shape index: {1}]  }
   0x1   :  { %13 = vsyncpa [#allocation3 + $0x1], 0  ;;  %s1637_s18 = smov 0   ;;  %s1639_s19 = smov 0  }
   0x2   :  { %s1641_s20 = smov 0   ;;  %s1643_s21 = smov 0  }
   0x3   :  { %s1645_s22 = smov 0   ;;  %s1647_s23 = smov 0  }
   0x4   :  { %s1649_s24 = smov 0   ;;  %s1651_s25 = smov 0  }
   0x5 LB: > { %s1292_s26 = sadd.s32 4294967295, %s1604_s25   ;;  %s28_s27 = sadd.s32 1, %s1596_s23  ;;  %s1604_s25 = sphi %s1651_s25, %s19_s25   ;;  %s1600_s24 = sphi %s1649_s24, %s1959_s24   ;;  %s1596_s23 = sphi %s1647_s23, %s1958_s23   ;;  %s1592_s22 = sphi %s1645_s22, %s1957_s22   ;;  %s1588_s21 = sphi %s1643_s21, %s1956_s21   ;;  %s1584_s20 = sphi %s1641_s20, %s1955_s20   ;;  %s1580_s19 = sphi %s1639_s19, %s1954_s19   ;;  %s1576_s18 = sphi %s1637_s18, %s1953_s18  }
   0x6   : > { %s31_s28 = sadd.s32 1, %s1600_s24  ;;  %p29_p0 = scmp.ge.s32.totalorder %s28_s27, 4 }
   0x7   : > { %s1296_s29 = sshll.u32 %s1600_s24, 2  ;;  %s1293_s30 = sadd.s32 4294967294, %s1604_s25  }
   0x8   : > { %s172_s6 = sadd.s32 %s1596_s23, %s1296_s29  ;;  %s1961_s27 = smov (%p29_p0, %s28_s27), 0 }
   0x9   : > { %s1963_s28 = smov (!%p29_p0, %s31_s28), %s1600_s24  ;;  %p188_p1 = scmp.ne.s32.totalorder %s1584_s20, %s1580_s19 }
   0xa   : > { %p189_p2 = scmp.eq.s32.totalorder %s1292_s26, 7  ;;  %p33_p3 = scmp.ge.s32.totalorder %s1963_s28, 2 }
   0xb   : > { %p194_p4 = scmp.ne.s32.totalorder %s1580_s19, %s1576_s18  ;;  %p195_p6 = scmp.eq.s32.totalorder %s1293_s30, 7 }
   0xc   : > { %p1690_p5 = por %p189_p2, %p188_p1  ;;  %s1965_s28 = smov (%p33_p3, %s1963_s28), 0 }
   0xd   : > { %p1696_p7 = por %p195_p6, %p194_p4  ;;  %p1300_p8 = scmp.ge.s32.totalorder %s1604_s25, 1 }
   0xe   : > { %s1297_s9 = sshll.u32 %s1965_s28, 2  ;;  %p247_p9 = scmp.lt.s32.totalorder %s1604_s25, 9 }
   0xf   : > { %s174_s10 = sadd.s32 %s1297_s9, %s1961_s27  ;;  %s178_s11 = sadd.s32 1, %s1584_s20 }
  0x10   : > { %s175_s12 = ssub.s32 %s172_s6, %s174_s10  ;;  %p248_p10 = pnand %p1300_p8, %p247_p9 }
  0x11   : > { %p176_p11 = scmp.eq.s32.totalorder %s175_s12, 0  ;;  %vm373_vm0 = vcmask (!%p248_p10), 1043456   ;;  %v1327_v0 = vld [vmem:[%s1945_s2 + $0x10] sm:$0xf] (!%p248_p10)  ;;  %s293_s16 = smul.u32 (!%p248_p10), 6, %s1592_s22  ;;  %vm345_vm1 = vcmask (!%p248_p10), 1042432  }
  0x12   : > { %251 = sbr.rel (%p248_p10) target bundleno = 314 (0x13a), region = 36  ;;  %1403 = vmatprep.subr.msk.mxu0 (!%p248_p10), %vm373_vm0, %v1327_v0  ;;  %v1311_v1 = vld [vmem:[%s1945_s2 + $0x4] sm:$0xf] (!%p248_p10)  ;;  %v1719_v2 = vld [vmem:[%s1945_s2] sm:$0xf] (!%p248_p10)  ;;  %vm346_vm2 = vcmask (!%p248_p10), 1046532  }
  0x13   : > { %s1706_s13 = scalar_select %p176_p11, %s1584_s20, %s178_s11  }
  0x14   : > { %1404 = vmatpush3.msk.msra.mxu0 (!%p248_p10), %vm373_vm0, %v1327_v0  ;;  %s294_s6 = sadd.s32 (!%p248_p10), %s1588_s21, %s293_s16  ;;  %1383 = vmatprep.subr.msk.mxu1 (!%p248_p10), %vm373_vm0, %v1311_v1  ;;  %v1335_v3 = vld [vmem:[%s1945_s2 + $0x14] sm:$0xf] (!%p248_p10)  ;;  %vm368_vm3 = vcmask (!%p248_p10), 31744   ;;  %vm1771_vm4 = vmor (!%p248_p10), %vm345_vm1, %vm346_vm2  ;;  %v1339_v34 = vld [vmem:[%s1945_s2 + $0x18] sm:$0xf] (!%p248_p10)  ;;  %vm1127_vm5 = vcmask (!%p248_p10), 27648  }
  0x15   : > { %s295_s11 = sadd.s32 (!%p248_p10), 1, %s294_s6  ;;  %s306_s12 = sadd.s32 (!%p248_p10), 2, %s294_s6  ;;  %1384 = vmatpush3.msk.msra.mxu1 (!%p248_p10), %vm373_vm0, %v1311_v1  ;;  %1408 = vmatprep.subr.msk.mxu0 (!%p248_p10), %vm373_vm0, %v1335_v3  ;;  %v1318_v51 = vld [vmem:[%s1945_s2 + $0x8] sm:$0xf] (!%p248_p10)  ;;  %vm1139_vm6 = vcmask (!%p248_p10), 24576  }
  0x16   : > { %p296_p12 = scmp.lt.s32.totalorder (!%p248_p10), %s295_s11, 11  ;;  %p307_p13 = scmp.lt.s32.totalorder (!%p248_p10), %s306_s12, 11  ;;  %1388 = vmatprep.subr.msk.mxu1 (!%p248_p10), %vm373_vm0, %v1719_v2 }
  0x19   : > { %s1967_s11 = smov (!%p296_p12, %s295_s11), 11  ;;  %s1969_s12 = smov (!%p307_p13, %s306_s12), 11 }
  0x1a   : > { %s1437_s14 = smul.u32 24, %s1967_s11 }
  0x1b   : > { %s1438_s15 = smul.u32 24, %s1969_s12  ;;  %s290_s12 = sand.u32 1, %s1580_s19  }
  0x1c   : > { %s1734_s26 = scalar_lea.vmem %s1943_s0, %s1437_s14  ;;  %s1301_s14 = sshll.u32 %s290_s12, 1 }
  0x1d   : > { %s1739_s6 = scalar_lea.vmem %s1944_s1, %s1438_s15  ;;  %v326_v4 = vld [vmem:[%s1734_s26 + $0x4] sm:$0x7]  ;;  %v327_v5 = vld [vmem:[%s1734_s26 + $0x8] sm:$0x7]  ;;  %v328_v6 = vld [vmem:[%s1734_s26 + $0xc] sm:$0x7] }
  0x1e   : > { %v718_v7 = vld [vmem:[%s1739_s6 + $0x4] sm:$0x7]  ;;  %v719_v8 = vld [vmem:[%s1739_s6 + $0x8] sm:$0x7]  ;;  %v720_v9 = vld [vmem:[%s1739_s6 + $0xc] sm:$0x7]  ;;  %v331_v10 = vunpack.c.l.bf16 %v326_v4  ;;  %v1747_v11 = vunpack.c.l.bf16 %v327_v5  ;;  %v1749_v12 = vunpack.c.l.bf16 %v328_v6 }
  0x1f   : > { %v723_v13 = vunpack.c.l.bf16 %v718_v7  ;;  %v1751_v14 = vunpack.c.l.bf16 %v719_v8  ;;  %v721_v15 = vld [vmem:[%s1739_s6 + $0x10] sm:$0x7]  ;;  %v1754_v16 = vunpack.c.l.bf16 %v720_v9  ;;  %v722_v59 = vld [vmem:[%s1739_s6 + $0x14] sm:$0x7]  ;;  %v1344_v4 = vld [vmem:[%s1945_s2 + $0x1c] sm:$0xf] }
  0x20   : > { %v329_v17 = vld [vmem:[%s1734_s26 + $0x10] sm:$0x7]  ;;  %v1757_v18 = vunpack.c.l.bf16 %v721_v15  ;;  %v341_v20 = vcombine.high %v331_v10, %v331_v10  ;;  %v342_v24 = vcombine.high %v1747_v11, %v1747_v11  ;;  %v343_v26 = vcombine.high %v1749_v12, %v1749_v12  ;;  %v330_v63 = vld [vmem:[%s1734_s26 + $0x14] sm:$0x7]  ;;  %v1323_v6 = vld [vmem:[%s1945_s2 + $0xc] sm:$0xf] }
  0x21   : > { %v1759_v19 = vunpack.c.l.bf16 %v329_v17  ;;  %v734_v21 = vcombine.low %v723_v13, %v1751_v14  ;;  %v820_v22 = vcombine.high %v723_v13, %v723_v13  ;;  %v1331_v23 = vrot.slane %v723_v13, 9  ;;  %s1304_s26 = sshll.u32 %s1592_s22, 2  ;;  %s292_s16 = scalar_lea.vmem [#allocation2], %s1301_s14 }
  0x22   : > { %v735_v25 = vcombine.low %v1754_v16, %v1757_v18  ;;  %v1307_v29 = vrot.slane %v331_v10, 9  ;;  %v350_v31 = vrot.slane %v341_v20, 5  ;;  %v1308_v32 = vrot.slane %v1747_v11, 9  ;;  %s1871_s29 = sadd.s32 %s1588_s21, %s1304_s26  ;;  %s1181_s17 = sshll.u32 %s292_s16, 4  ;;  %s1892_s17 = int_to_ptr.vmem [resolvable:$true] %s1181_s17 }
  0x23   : > { %v344_v27 = vcombine.high %v1759_v19, %v1759_v19  ;;  %1405 = vmatprep.mubr.msk.f32.mxu0 %vm368_vm3, %v734_v21  ;;  %v826_v30 = vrot.slane %v820_v22, 5  ;;  %v354_v33 = vrot.slane %v342_v24, 5  ;;  %v1309_v35 = vrot.slane %v1749_v12, 9  ;;  %p317_p0 = scmp.lt.s32.totalorder %s1871_s29, 7  ;;  %v1348_v24 = vld [vmem:[%s1946_s3] ss:$0 sm:$0xff] }
  0x24   : > { %1406 = vmatmul.mubr.msk.f32.vlgmr.msra.gmra.mrb[0].mxu0 %vm368_vm3, %v735_v25  ;;  %v358_v36 = vrot.slane %v343_v26, 5  ;;  %v1310_v37 = vrot.slane %v1759_v19, 9  ;;  %v351_v39 = vsel %vm1771_vm4, %v1307_v29, %v350_v31  ;;  %v821_v44 = vcombine.high %v1751_v14, %v1751_v14  ;;  %s1353_s15 = sshll.u32 %s1871_s29, 5  ;;  %s1161_s9 = scalar_lea.sflag [#allocation3], %s290_s12 }
  0x25   : > { %v362_v38 = vrot.slane %v344_v27, 5  ;;  %v1787_v40 = vsel %vm1771_vm4, %v1308_v32, %v354_v33  ;;  %1409 = vmatpush3.msk.msra.mxu0 %vm373_vm0, %v1335_v3  ;;  %v827_v46 = vsel %vm1771_vm4, %v1331_v23, %v826_v30  ;;  %v1332_v47 = vrot.slane %v1751_v14, 9  ;;  %s318_s30 = scalar_select %p317_p0, %s1871_s29, 7 }
  0x26   : > { %v1792_v41 = vsel %vm1771_vm4, %v1309_v35, %v358_v36  ;;  %v366_v43 = vcombine.low %v351_v39, %v1787_v40  ;;  %1413 = vmatprep.subr.msk.mxu0 %vm373_vm0, %v1339_v34  ;;  %v830_v48 = vrot.slane %v821_v44, 5  ;;  %v822_v49 = vcombine.high %v1754_v16, %v1754_v16  ;;  %s1890_s6 = scalar_lea.hbm %s1948_s5, %s1353_s15  ;;  %s1606_s29 = smov [#allocation2]  }
  0x27   : > { %v1796_v42 = vsel %vm1771_vm4, %v1310_v37, %v362_v38  ;;  %v823_v50 = vcombine.high %v1757_v18, %v1757_v18  ;;  %v1333_v52 = vrot.slane %v1754_v16, 9  ;;  %v1334_v53 = vrot.slane %v1757_v18, 9  ;;  %s1356_s10 = sshll.u32 %s318_s30, 3  ;;  %s1514_s22 = sshll.u32 %s1606_s29, 4  ;;  %s1515_s22 = int_to_ptr.vmem [resolvable:$false] %s1514_s22 }
  0x28   : > { %v367_v45 = vcombine.low %v1792_v41, %v1796_v42  ;;  %1385 = vmatprep.mubr.msk.f32.mxu1 %vm368_vm3, %v366_v43  ;;  %v452_v54 = vcombine.low %v331_v10, %v1747_v11  ;;  %v831_v55 = vsel %vm1771_vm4, %v1332_v47, %v830_v48  ;;  %v834_v56 = vrot.slane %v822_v49, 5  ;;  %s321_s11 = scalar_lea.vmem %s1947_s4, %s1356_s10  ;;  %s1510_s10 = scalar_lea.vmem %s1892_s17, 32 }
  0x29   : > { %v838_v57 = vrot.slane %v823_v50, 5  ;;  %v842_v58 = vcombine.low %v827_v46, %v831_v55  ;;  %v931_v62 = vcombine.low %v1751_v14, %v1754_v16  ;;  %v453_v1 = vcombine.low %v1749_v12, %v1759_v19  ;;  %p1511_p1 = scmp.ne.s32.totalorder %s1892_s17, %s1510_s10  ;;  %s1516_s21 = scalar_lea.vmem %s1515_s22, 64 }
  0x2a   : > { %1386 = vmatmul.mubr.msk.f32.vlgmr.msra.gmra.mrb[0].mxu1 %vm368_vm3, %v367_v45  ;;  %v835_v60 = vsel %vm1771_vm4, %v1333_v52, %v834_v56  ;;  %v539_v3 = vcombine.low %v1747_v11, %v1749_v12  ;;  %v335_v5 = vunpack.c.l.bf16 %v330_v63  ;;  %v632_v16 = vcombine.low %v1787_v40, %v1792_v41  ;;  %p1517_p4 = scmp.lt.s32.totalorder %s1892_s17, %s1515_s22  ;;  %p1518_p6 = scmp.lt.s32.totalorder %s1516_s21, %s1510_s10 }
  0x2b   : > { %1389 = vmatpush3.msk.msra.mxu1 %vm373_vm0, %v1719_v2  ;;  %1390 = vmatprep.mubr.msk.f32.mxu1 %vm368_vm3, %v452_v54  ;;  %v839_v61 = vsel %vm1771_vm4, %v1334_v53, %v838_v57  ;;  %v727_v2 = vunpack.c.l.bf16 %v722_v59  ;;  %v1024_v10 = vcombine.low %v831_v55, %v835_v60  ;;  %p1512_p2 = pnand %p1511_p1, %p1690_p5 }
  0x2c   : > { %1393 = vmatprep.subr.msk.mxu1 %vm373_vm0, %v1318_v51  ;;  %1410 = vmatprep.mubr.msk.f32.mxu0 %vm368_vm3, %v842_v58  ;;  %v843_v0 = vcombine.low %v835_v60, %v839_v61  ;;  %v625_v8 = vcombine.high %v335_v5, %v335_v5  ;;  %v540_v13 = vcombine.low %v1759_v19, %v335_v5  ;;  %v1322_v14 = vrot.slane %v335_v5, 9  ;;  %p1519_p8 = por %p1518_p6, %p1517_p4 }
  0x2d   : > { %v1017_v7 = vcombine.high %v727_v2, %v727_v2  ;;  %v932_v9 = vcombine.low %v1757_v18, %v727_v2  ;;  %v1343_v11 = vrot.slane %v727_v2, 9  ;;  %p1513_p3 = pneg %p1512_p2 }
  0x2e   : > { %1411 = vmatmul.mubr.msk.f32.vlgmr.msra.gmra.mrb[0].mxu0 %vm368_vm3, %v843_v0  ;;  %v628_v15 = vrot.slane %v625_v8, 5 }
  0x2f   : > { %1414 = vmatpush3.msk.msra.mxu0 %vm373_vm0, %v1339_v34  ;;  %1415 = vmatprep.mubr.msk.f32.mxu0 %vm368_vm3, %v931_v62  ;;  %v1020_v12 = vrot.slane %v1017_v7, 5  ;;  %p1520_p9 = pnand %p1519_p8, %p1513_p3 }
  0x30   : > { %1418 = vmatprep.subr.msk.mxu0 %vm373_vm0, %v1344_v4  ;;  %v629_v18 = vsel %vm1771_vm4, %v1322_v14, %v628_v15 }
  0x31   : > { %v1021_v17 = vsel %vm1771_vm4, %v1343_v11, %v1020_v12  ;;  %v633_v20 = vcombine.low %v1796_v42, %v629_v18 }
  0x32   : > { %1391 = vmatmul.mubr.msk.f32.vlgmr.msra.gmra.mrb[0].mxu1 %vm368_vm3, %v453_v1  ;;  %v1025_v19 = vcombine.low %v839_v61, %v1021_v17 }
  0x33   : > { %1394 = vmatpush3.msk.msra.mxu1 %vm373_vm0, %v1318_v51  ;;  %1395 = vmatprep.mubr.msk.f32.mxu1 %vm368_vm3, %v539_v3 }
  0x34   : > { %1398 = vmatprep.subr.msk.mxu1 %vm373_vm0, %v1323_v6 }
  0x36   : > { %1416 = vmatmul.mubr.msk.f32.vlgmr.msra.gmra.mrb[0].mxu0 %vm368_vm3, %v932_v9 }
  0x37   : > { %1419 = vmatpush3.msk.msra.mxu0 %vm373_vm0, %v1344_v4  ;;  %1420 = vmatprep.mubr.msk.f32.mxu0 %vm368_vm3, %v1024_v10 }
  0x3a   : > { %1396 = vmatmul.mubr.msk.f32.vlgmr.msra.gmra.mrb[0].mxu1 %vm368_vm3, %v540_v13 }
  0x3b   : > { %1399 = vmatpush3.msk.msra.mxu1 %vm373_vm0, %v1323_v6  ;;  %1400 = vmatprep.mubr.msk.f32.mxu1 %vm368_vm3, %v632_v16 }
  0x3e   : > { %1421 = vmatmul.mubr.msk.f32.vlgmr.msra.gmra.mrb[0].mxu0 %vm368_vm3, %v1025_v19 }
  0x42   : > { %1401 = vmatmul.mubr.msk.f32.vlgmr.msra.gmra.mrb[0].mxu1 %vm368_vm3, %v633_v20 }
 0x111   : > { %v1422_v21 = vpop.f32.mrb[0].mxu0 }
 0x112   : > { %v1099_v22 = vpop.f32.mrb[1].mxu0 }
 0x115   : > { %v1402_v23 = vpop.f32.mrb[0].mxu1 }
 0x116   : > { %v1423_v25 = vadd.f32 %v1422_v21, %v1402_v23  ;;  %v707_v26 = vpop.f32.mrb[1].mxu1 }
 0x117   : > { %v1424_v27 = vadd.f32 %v1099_v22, %v707_v26 }
 0x118   : > { %v1118_v28 = vadd.f32 %v1423_v25, %v1348_v24 }
 0x119   : > { %v1117_v29 = vadd.f32 %v1424_v27, %v1348_v24 }
 0x11a   : > { %v1358_v30 = vpack.c.bf16 %v1118_v28, %v1118_v28  ;;  %v1131_v31 = vsel %vm368_vm3, %v1118_v28, 0.0  ;;  %v1142_v32 = vmul.f32 %v1118_v28, %v1118_v28 }
 0x11b   : > { %v1357_v33 = vpack.c.bf16 %v1117_v29, %v1117_v29  ;;  %v1130_v34 = vsel %vm368_vm3, %v1117_v29, 0.0  ;;  %v1141_v35 = vmul.f32 %v1117_v29, %v1117_v29 }
 0x11c   : > { %v1144_v36 = vsel %vm368_vm3, %v1142_v32, 0.0  ;;  %v1132_v37 = vadd.f32 %v1131_v31, %v1130_v34  ;;  %1129 = vst.msk [vmem:[%s321_s11 + $0x4] sm:$0xf] %vm1127_vm5, %v1358_v30 }
 0x11d   : > { %v1143_v38 = vsel %vm368_vm3, %v1141_v35, 0.0  ;;  %1128 = vst.msk [vmem:[%s321_s11] sm:$0xf] %vm1127_vm5, %v1357_v33 }
 0x11e   : > { %v1133_v39 = vrot.slane %v1132_v37, 4  ;;  %v1145_v40 = vadd.f32 %v1144_v36, %v1143_v38 }
 0x120   : > { %v1134_v41 = vadd.f32 %v1133_v39, %v1132_v37  ;;  %v1146_v42 = vrot.slane %v1145_v40, 4 }
 0x122   : > { %v1135_v43 = vrot.slane %v1134_v41, 2  ;;  %v1147_v44 = vadd.f32 %v1146_v42, %v1145_v40 }
 0x124   : > { %v1136_v45 = vadd.f32 %v1135_v43, %v1134_v41  ;;  %v1148_v46 = vrot.slane %v1147_v44, 2 }
 0x126   : > { %v1137_v47 = vrot.slane %v1136_v45, 1  ;;  %v1149_v48 = vadd.f32 %v1148_v46, %v1147_v44 }
 0x128   : > { %v1138_v49 = vadd.f32 %v1137_v47, %v1136_v45  ;;  %v1150_v50 = vrot.slane %v1149_v48, 1 }
 0x12a   : > { %1140 = vst.msk [vmem:[%s292_s16] sm:$0x1] %vm1139_vm6, %v1138_v49  ;;  %v1151_v51 = vadd.f32 %v1150_v50, %v1149_v48 }
 0x12c   : > { %1152 = vst.msk [vmem:[%s292_s16 + $0x1] sm:$0x1] %vm1139_vm6, %v1151_v51 }
 0x12d   : > { %1523 = shalt.err (!%p1520_p9)
}
 0x12e   : > { %s1524_s11 = scalar_lea.hbm %s1890_s6, 32  ;;  %s1528_s15 = scalar_lea.hbm %s1948_s5, 256 }
 0x12f   : > { %p1525_p10 = scmp.ne.s32.totalorder %s1890_s6, %s1524_s11  ;;  %p1529_p13 = scmp.lt.u32.totalorder %s1890_s6, %s1948_s5 }
 0x130   : > { %p1530_p0 = scmp.lt.u32.totalorder %s1528_s15, %s1524_s11  ;;  %p1532_p2 = scmp.lt.u32.totalorder %s1524_s11, %s1890_s6 }
 0x131   : > { %p1526_p11 = pnand %p1525_p10, %p1690_p5 }
 0x132   : > { %p1531_p1 = por %p1530_p0, %p1529_p13 }
 0x133   : > { %p1527_p12 = pneg %p1526_p11 }
 0x134   : > { %p1533_p3 = por %p1532_p2, %p1531_p1 }
 0x136   : > { %p1534_p4 = pnand %p1533_p3, %p1527_p12 }
 0x138   : > { %1537 = shalt.err (!%p1534_p4)
}
 0x139   : > { %1439 = dma.vmem_to_hbm [thread:$0]  (%p1690_p5), %s1892_s17, 32, %s1890_s6, %s1161_s9  }
 0x13a PF: > { %p1445_p6 = scmp.ge.s32.totalorder %s1604_s25, 2  ;;  %s1203_s30 = sand.u32 1, %s1576_s18  }
 0x13b   : > { %s1204_s10 = scalar_lea.sflag [#allocation3], %s1203_s30 }
 0x13c   : > { %p1442_p8 = pnand %p1445_p6, %p1696_p7 }
 0x13e   : > { %1571 = dma.done.wait (!%p1442_p8), %s1204_s10, 32  }
 0x13f   : > { %1573 = vsyncadd (!%p1442_p8), %s1204_s10, 4294967264  ;;  %s19_s25 = sadd.s32 1, %s1604_s25   ;;  %s1953_s18 = smov %s1580_s19 }
 0x140   : > { %p16_p9 = scmp.ge.s32.totalorder %s19_s25, 10   ;;  %s1954_s19 = smov %s1584_s20 }
 0x141   : > { %s1955_s20 = smov %s1706_s13  ;;  %s1956_s21 = smov %s1596_s23 }
 0x142   : > { %s1957_s22 = smov %s1600_s24  ;;  %s1958_s23 = smov %s1961_s27 }
 0x143   : > { %s1959_s24 = smov %s1965_s28  ;;  %18 = sbr.rel (!%p16_p9) target bundleno = 5 (0x5), region = 93 }
 0x14a   :  { %1209 = vsyncpa [#allocation3], 1 }
 0x14b   :  { %1211 = vsyncpa [#allocation3 + $0x1], 1 }

// kernel: _lambda_.21
= control target key start
LH: loop header
LB: loop body
LE: loop exit
PB: predicated region body
PF: predicated region fallthrough
CT: control target
= control target key end

     0   :  { %11 = vsyncpa [#allocation3], 0  ;;  %s2065_s0 = inlined_call_operand.vmem [shape: bf16[12,6,6,4], index: 0, kind: input, shape index: {}, may-alias: {0,1}]   ;;  %s2066_s1 = inlined_call_operand.vmem [shape: bf16[12,6,6,4], index: 1, kind: input, shape index: {}, may-alias: {0,1}]   ;;  %s2067_s2 = inlined_call_operand.vmem [shape: f32[8,4,4], index: 2, kind: input, shape index: {}]   ;;  %s2068_s3 = inlined_call_operand.vmem [shape: f32[1,4], index: 3, kind: input, shape index: {}]   ;;  %s2069_s4 = inlined_call_operand.vmem [shape: bf16[8,16,4], index: 4, kind: output, shape index: {0}]   ;;  %s2070_s5 = inlined_call_operand.hbm [shape: f32[8,2,4], index: 5, kind: output, shape index: {1}]  }
   0x1   :  { %13 = vsyncpa [#allocation3 + $0x1], 0  ;;  %s1690_s18 = smov 0   ;;  %s1692_s19 = smov 0  }
   0x2   :  { %s1694_s20 = smov 0   ;;  %s1696_s21 = smov 0  }
   0x3   :  { %s1698_s22 = smov 0   ;;  %s1700_s23 = smov 0  }
   0x4   :  { %s1702_s24 = smov 0   ;;  %s1704_s25 = smov 0  }
   0x5 LB: > { %s1335_s26 = sadd.s32 4294967295, %s1657_s25   ;;  %s28_s27 = sadd.s32 1, %s1649_s23  ;;  %s1657_s25 = sphi %s1704_s25, %s19_s25   ;;  %s1653_s24 = sphi %s1702_s24, %s2083_s24   ;;  %s1649_s23 = sphi %s1700_s23, %s2082_s23   ;;  %s1645_s22 = sphi %s1698_s22, %s2081_s22   ;;  %s1641_s21 = sphi %s1696_s21, %s2080_s21   ;;  %s1637_s20 = sphi %s1694_s20, %s2079_s20   ;;  %s1633_s19 = sphi %s1692_s19, %s2078_s19   ;;  %s1629_s18 = sphi %s1690_s18, %s2077_s18  }
   0x6   : > { %s31_s28 = sadd.s32 1, %s1653_s24  ;;  %p29_p0 = scmp.ge.s32.totalorder %s28_s27, 4 }
   0x7   : > { %s1339_s29 = sshll.u32 %s1653_s24, 2  ;;  %s1336_s30 = sadd.s32 4294967294, %s1657_s25  }
   0x8   : > { %s172_s6 = sadd.s32 %s1649_s23, %s1339_s29  ;;  %s2085_s27 = smov (%p29_p0, %s28_s27), 0 }
   0x9   : > { %s2087_s28 = smov (!%p29_p0, %s31_s28), %s1653_s24  ;;  %p188_p1 = scmp.ne.s32.totalorder %s1637_s20, %s1633_s19 }
   0xa   : > { %p189_p2 = scmp.eq.s32.totalorder %s1335_s26, 7  ;;  %p33_p3 = scmp.ge.s32.totalorder %s2087_s28, 2 }
   0xb   : > { %p194_p4 = scmp.ne.s32.totalorder %s1633_s19, %s1629_s18  ;;  %p195_p6 = scmp.eq.s32.totalorder %s1336_s30, 7 }
   0xc   : > { %p1743_p5 = por %p189_p2, %p188_p1  ;;  %s2089_s28 = smov (%p33_p3, %s2087_s28), 0 }
   0xd   : > { %p1749_p7 = por %p195_p6, %p194_p4  ;;  %p1343_p8 = scmp.ge.s32.totalorder %s1657_s25, 1 }
   0xe   : > { %s1340_s9 = sshll.u32 %s2089_s28, 2  ;;  %p247_p9 = scmp.lt.s32.totalorder %s1657_s25, 9 }
   0xf   : > { %s174_s10 = sadd.s32 %s1340_s9, %s2085_s27  ;;  %s178_s11 = sadd.s32 1, %s1637_s20 }
  0x10   : > { %s175_s12 = ssub.s32 %s172_s6, %s174_s10  ;;  %p248_p10 = pnand %p1343_p8, %p247_p9 }
  0x11   : > { %p176_p11 = scmp.eq.s32.totalorder %s175_s12, 0  ;;  %v1358_v0 = vld [vmem:[%s2067_s2 + $0x4] sm:$0xf] (!%p248_p10)  ;;  %vm392_vm0 = vcmask (!%p248_p10), 1043456   ;;  %v1379_v1 = vld [vmem:[%s2067_s2 + $0x10] sm:$0xf] (!%p248_p10) }
  0x12   : > { %251 = sbr.rel (%p248_p10) target bundleno = 319 (0x13f), region = 36  ;;  %1436 = vmatprep.subr.msk.mxu1 (!%p248_p10), %vm392_vm0, %v1358_v0  ;;  %1456 = vmatprep.subr.msk.mxu0 (!%p248_p10), %vm392_vm0, %v1379_v1  ;;  %v1773_v2 = vld [vmem:[%s2067_s2] sm:$0xf] (!%p248_p10)  ;;  %v1781_v3 = vld [vmem:[%s2067_s2 + $0x14] sm:$0xf] (!%p248_p10)  ;;  %vm364_vm1 = vcmask (!%p248_p10), 1041408  }
  0x13   : > { %s1759_s13 = scalar_select %p176_p11, %s1637_s20, %s178_s11  }
  0x14   : > { %s293_s26 = smul.u32 (!%p248_p10), 6, %s1645_s22  ;;  %1437 = vmatpush3.msk.msra.mxu1 (!%p248_p10), %vm392_vm0, %v1358_v0  ;;  %1457 = vmatpush3.msk.msra.mxu0 (!%p248_p10), %vm392_vm0, %v1379_v1  ;;  %vm365_vm2 = vcmask (!%p248_p10), 1045508   ;;  %vm387_vm4 = vcmask (!%p248_p10), 31744   ;;  %vm344_vm5 = vcmask (!%p248_p10), 1042432   ;;  %vm345_vm6 = vcmask (!%p248_p10), 1046532  }
  0x15   : > { %1441 = vmatprep.subr.msk.mxu1 (!%p248_p10), %vm392_vm0, %v1773_v2  ;;  %1461 = vmatprep.subr.msk.mxu0 (!%p248_p10), %vm392_vm0, %v1781_v3  ;;  %vm1828_vm3 = vmor (!%p248_p10), %vm364_vm1, %vm365_vm2  ;;  %v1884_v46 = vld [vmem:[%s2067_s2 + $0x8] sm:$0xf] (!%p248_p10)  ;;  %v1401_v18 = vld [vmem:[%s2068_s3] ss:$0 sm:$0xff] (!%p248_p10)  ;;  %vm1170_vm8 = vcmask (!%p248_p10), 27648   ;;  %vm1182_vm9 = vcmask (!%p248_p10), 24576  }
  0x16   : > { %s294_s6 = sadd.s32 (!%p248_p10), %s1641_s21, %s293_s26  ;;  %vm1872_vm7 = vmor (!%p248_p10), %vm344_vm5, %vm345_vm6 }
  0x17   : > { %s295_s11 = sadd.s32 (!%p248_p10), 1, %s294_s6  ;;  %s306_s12 = sadd.s32 (!%p248_p10), 2, %s294_s6 }
  0x18   : > { %p296_p12 = scmp.lt.s32.totalorder (!%p248_p10), %s295_s11, 11  ;;  %p307_p13 = scmp.lt.s32.totalorder (!%p248_p10), %s306_s12, 11 }
  0x1a   : > { %s2091_s11 = smov (!%p296_p12, %s295_s11), 11  ;;  %s2093_s12 = smov (!%p307_p13, %s306_s12), 11 }
  0x1b   : > { %s1490_s14 = smul.u32 24, %s2091_s11 }
  0x1c   : > { %s1491_s15 = smul.u32 24, %s2093_s12  ;;  %s290_s12 = sand.u32 1, %s1633_s19  }
  0x1d   : > { %s1790_s26 = scalar_lea.vmem %s2065_s0, %s1490_s14  ;;  %s1344_s14 = sshll.u32 %s290_s12, 1 }
  0x1e   : > { %v326_v4 = vld [vmem:[%s1790_s26 + $0x4] sm:$0x7]  ;;  %v327_v5 = vld [vmem:[%s1790_s26 + $0x8] sm:$0x7]  ;;  %v328_v6 = vld [vmem:[%s1790_s26 + $0xc] sm:$0x7]  ;;  %s1798_s6 = scalar_lea.vmem %s2066_s1, %s1491_s15 }
  0x1f   : > { %v329_v7 = vld [vmem:[%s1790_s26 + $0x10] sm:$0x7]  ;;  %v1801_v8 = vunpack.c.l.bf16 %v326_v4  ;;  %v1803_v9 = vunpack.c.l.bf16 %v327_v5  ;;  %v1805_v10 = vunpack.c.l.bf16 %v328_v6  ;;  %v741_v16 = vld [vmem:[%s1798_s6 + $0x4] sm:$0x7]  ;;  %v742_v22 = vld [vmem:[%s1798_s6 + $0x8] sm:$0x7] }
  0x20   : > { %v1807_v11 = vunpack.c.l.bf16 %v329_v7  ;;  %v743_v24 = vld [vmem:[%s1798_s6 + $0xc] sm:$0x7]  ;;  %v1841_v28 = vunpack.c.l.bf16 %v741_v16  ;;  %v744_v30 = vld [vmem:[%s1798_s6 + $0x10] sm:$0x7]  ;;  %v747_v31 = vunpack.c.l.bf16 %v742_v22  ;;  %v330_v32 = vld [vmem:[%s1790_s26 + $0x14] sm:$0x7] }
  0x21   : > { %v1811_v12 = vcombine.high %v1801_v8, %v1801_v8  ;;  %v1815_v13 = vcombine.high %v1803_v9, %v1803_v9  ;;  %v1819_v14 = vcombine.high %v1805_v10, %v1805_v10  ;;  %v1354_v15 = vrot.slane %v1801_v8, 10  ;;  %v745_v48 = vld [vmem:[%s1798_s6 + $0x14] sm:$0x7]  ;;  %s1347_s26 = sshll.u32 %s1645_s22, 2  ;;  %s292_s16 = scalar_lea.vmem [#allocation2], %s1344_s14 }
  0x22   : > { %v1825_v17 = vcombine.high %v1807_v11, %v1807_v11  ;;  %v1355_v19 = vrot.slane %v1803_v9, 10  ;;  %v1356_v20 = vrot.slane %v1805_v10, 10  ;;  %v1357_v21 = vrot.slane %v1807_v11, 10  ;;  %s1993_s29 = sadd.s32 %s1641_s21, %s1347_s26  ;;  %s1224_s17 = sshll.u32 %s292_s16, 4  ;;  %s2014_s17 = int_to_ptr.vmem [resolvable:$true] %s1224_s17 }
  0x23   : > { %v369_v23 = vrot.slane %v1811_v12, 6  ;;  %v373_v25 = vrot.slane %v1815_v13, 6  ;;  %v377_v26 = vrot.slane %v1819_v14, 6  ;;  %v1859_v36 = vunpack.c.l.bf16 %v743_v24  ;;  %p317_p0 = scmp.lt.s32.totalorder %s1993_s29, 7  ;;  %s1406_s15 = sshll.u32 %s1993_s29, 5 }
  0x24   : > { %v381_v27 = vrot.slane %v1825_v17, 6  ;;  %v1864_v39 = vunpack.c.l.bf16 %v744_v30  ;;  %v755_v40 = vcombine.high %v1841_v28, %v1841_v28  ;;  %v1868_v41 = vunpack.c.l.bf16 %v330_v32  ;;  %s2012_s6 = scalar_lea.hbm %s2070_s5, %s1406_s15  ;;  %s1204_s9 = scalar_lea.sflag [#allocation3], %s290_s12 }
  0x25   : > { %v370_v29 = vsel %vm1828_vm3, %v1354_v15, %v369_v23  ;;  %v1849_v33 = vsel %vm1828_vm3, %v1355_v19, %v373_v25  ;;  %v1853_v34 = vsel %vm1828_vm3, %v1356_v20, %v377_v26  ;;  %v756_v43 = vcombine.high %v747_v31, %v747_v31  ;;  %s318_s30 = scalar_select %p317_p0, %s1993_s29, 7 }
  0x26   : > { %v1857_v35 = vsel %vm1828_vm3, %v1357_v21, %v381_v27  ;;  %v385_v37 = vcombine.low %v370_v29, %v1849_v33  ;;  %v1878_v44 = vcombine.high %v1859_v36, %v1859_v36  ;;  %v1375_v45 = vrot.slane %v1841_v28, 9  ;;  %s1659_s29 = smov [#allocation2]  }
  0x27   : > { %v386_v38 = vcombine.low %v1853_v34, %v1857_v35  ;;  %v349_v47 = vrot.slane %v1811_v12, 5  ;;  %v758_v49 = vcombine.high %v1864_v39, %v1864_v39  ;;  %v761_v50 = vrot.slane %v755_v40, 5  ;;  %s1409_s10 = sshll.u32 %s318_s30, 3  ;;  %s1567_s22 = sshll.u32 %s1659_s29, 4  ;;  %s1568_s22 = int_to_ptr.vmem [resolvable:$false] %s1567_s22 }
  0x28   : > { %1438 = vmatprep.mubr.msk.f32.mxu1 %vm387_vm4, %v385_v37  ;;  %v1376_v51 = vrot.slane %v747_v31, 9  ;;  %v765_v52 = vrot.slane %v756_v43, 5  ;;  %v1377_v53 = vrot.slane %v1859_v36, 9  ;;  %v769_v54 = vrot.slane %v1878_v44, 5  ;;  %s321_s11 = scalar_lea.vmem %s2069_s4, %s1409_s10  ;;  %s1563_s10 = scalar_lea.vmem %s2014_s17, 32 }
  0x29   : > { %1439 = vmatmul.mubr.msk.f32.vlgmr.msra.gmra.mrb[0].mxu1 %vm387_vm4, %v386_v38  ;;  %v1378_v55 = vrot.slane %v1864_v39, 9  ;;  %v353_v56 = vrot.slane %v1815_v13, 5  ;;  %v357_v57 = vrot.slane %v1819_v14, 5  ;;  %v762_v58 = vsel %vm1872_vm7, %v1375_v45, %v761_v50  ;;  %p1564_p1 = scmp.ne.s32.totalorder %s2014_s17, %s1563_s10  ;;  %s1569_s21 = scalar_lea.vmem %s1568_s22, 64 }
  0x2a   : > { %1442 = vmatpush3.msk.msra.mxu1 %vm392_vm0, %v1773_v2  ;;  %v773_v59 = vrot.slane %v758_v49, 5  ;;  %v361_v60 = vrot.slane %v1825_v17, 5  ;;  %v1903_v61 = vunpack.c.l.bf16 %v745_v48  ;;  %v766_v62 = vsel %vm1872_vm7, %v1376_v51, %v765_v52  ;;  %v1392_v17 = vld [vmem:[%s2067_s2 + $0x18] sm:$0xf]  ;;  %p1570_p4 = scmp.lt.s32.totalorder %s2014_s17, %s1568_s22  ;;  %p1571_p6 = scmp.lt.s32.totalorder %s1569_s21, %s1563_s10 }
  0x2b   : > { %1446 = vmatprep.subr.msk.mxu1 %vm392_vm0, %v1884_v46  ;;  %v770_v63 = vsel %vm1872_vm7, %v1377_v53, %v769_v54  ;;  %v777_v1 = vcombine.low %v762_v58, %v766_v62  ;;  %v865_v2 = vrot.slane %v755_v40, 6  ;;  %v869_v4 = vrot.slane %v756_v43, 6  ;;  %p1565_p2 = pnand %p1564_p1, %p1743_p5 }
  0x2c   : > { %v1911_v0 = vsel %vm1872_vm7, %v1378_v55, %v773_v59  ;;  %v556_v5 = vcombine.high %v1868_v41, %v1868_v41  ;;  %v1350_v7 = vrot.slane %v1801_v8, 9  ;;  %v1351_v12 = vrot.slane %v1803_v9, 9  ;;  %p1572_p8 = por %p1571_p6, %p1570_p4 }
  0x2d   : > { %v778_v6 = vcombine.low %v770_v63, %v1911_v0  ;;  %1458 = vmatprep.mubr.msk.f32.mxu0 %vm387_vm4, %v777_v1  ;;  %v873_v13 = vrot.slane %v1878_v44, 6  ;;  %v877_v14 = vrot.slane %v758_v49, 6  ;;  %v1383_v15 = vrot.slane %v1841_v28, 10  ;;  %v1397_v44 = vld [vmem:[%s2067_s2 + $0x1c] sm:$0xf]  ;;  %p1566_p3 = pneg %p1565_p2 }
  0x2e   : > { %v1384_v16 = vrot.slane %v747_v31, 10  ;;  %v350_v19 = vsel %vm1872_vm7, %v1350_v7, %v349_v47  ;;  %v354_v8 = vsel %vm1872_vm7, %v1351_v12, %v353_v56  ;;  %v1352_v9 = vrot.slane %v1805_v10, 9  ;;  %v1371_v31 = vld [vmem:[%s2067_s2 + $0xc] sm:$0xf] }
  0x2f   : > { %1459 = vmatmul.mubr.msk.f32.vlgmr.msra.gmra.mrb[0].mxu0 %vm387_vm4, %v778_v6  ;;  %v1353_v20 = vrot.slane %v1807_v11, 9  ;;  %v968_v21 = vcombine.high %v1903_v61, %v1903_v61  ;;  %v471_v22 = vcombine.low %v350_v19, %v354_v8  ;;  %v866_v23 = vsel %vm1828_vm3, %v1383_v15, %v865_v2  ;;  %p1573_p9 = pnand %p1572_p8, %p1566_p3 }
  0x30   : > { %1462 = vmatpush3.msk.msra.mxu0 %vm392_vm0, %v1781_v3  ;;  %v870_v24 = vsel %vm1828_vm3, %v1384_v16, %v869_v4  ;;  %v559_v25 = vrot.slane %v556_v5, 5  ;;  %v358_v10 = vsel %vm1872_vm7, %v1352_v9, %v357_v57  ;;  %v1385_v27 = vrot.slane %v1859_v36, 10 }
  0x31   : > { %v881_v26 = vcombine.low %v866_v23, %v870_v24  ;;  %1466 = vmatprep.subr.msk.mxu0 %vm392_vm0, %v1392_v17  ;;  %v362_v11 = vsel %vm1872_vm7, %v1353_v20, %v361_v60  ;;  %1443 = vmatprep.mubr.msk.f32.mxu1 %vm387_vm4, %v471_v22  ;;  %v1386_v28 = vrot.slane %v1864_v39, 10  ;;  %v563_v29 = vcombine.low %v354_v8, %v358_v10 }
  0x32   : > { %v472_v3 = vcombine.low %v358_v10, %v362_v11  ;;  %v1391_v30 = vrot.slane %v1903_v61, 9  ;;  %v1365_v32 = vrot.slane %v1868_v41, 9  ;;  %v971_v37 = vrot.slane %v968_v21, 5 }
  0x33   : > { %1463 = vmatprep.mubr.msk.f32.mxu0 %vm387_vm4, %v881_v26  ;;  %v975_v38 = vcombine.low %v766_v62, %v770_v63  ;;  %v874_v36 = vsel %vm1828_vm3, %v1385_v27, %v873_v13  ;;  %v878_v39 = vsel %vm1828_vm3, %v1386_v28, %v877_v14  ;;  %v1370_v47 = vrot.slane %v1868_v41, 10 }
  0x34   : > { %1444 = vmatmul.mubr.msk.f32.vlgmr.msra.gmra.mrb[0].mxu1 %vm387_vm4, %v472_v3  ;;  %v882_v40 = vcombine.low %v874_v36, %v878_v39  ;;  %v560_v43 = vsel %vm1872_vm7, %v1365_v32, %v559_v25  ;;  %v972_v45 = vsel %vm1872_vm7, %v1391_v30, %v971_v37  ;;  %v651_v48 = vrot.slane %v556_v5, 6 }
  0x35   : > { %1447 = vmatpush3.msk.msra.mxu1 %vm392_vm0, %v1884_v46  ;;  %1448 = vmatprep.mubr.msk.f32.mxu1 %vm387_vm4, %v563_v29  ;;  %v564_v46 = vcombine.low %v362_v11, %v560_v43  ;;  %v655_v49 = vcombine.low %v1849_v33, %v1853_v34  ;;  %v976_v50 = vcombine.low %v1911_v0, %v972_v45  ;;  %v1063_v51 = vrot.slane %v968_v21, 6 }
  0x36   : > { %1451 = vmatprep.subr.msk.mxu1 %vm392_vm0, %v1371_v31  ;;  %v1067_v42 = vcombine.low %v870_v24, %v874_v36  ;;  %v1396_v52 = vrot.slane %v1903_v61, 10  ;;  %v652_v53 = vsel %vm1828_vm3, %v1370_v47, %v651_v48 }
  0x37   : > { %1464 = vmatmul.mubr.msk.f32.vlgmr.msra.gmra.mrb[0].mxu0 %vm387_vm4, %v882_v40  ;;  %v656_v33 = vcombine.low %v1857_v35, %v652_v53 }
  0x38   : > { %1467 = vmatpush3.msk.msra.mxu0 %vm392_vm0, %v1392_v17  ;;  %1468 = vmatprep.mubr.msk.f32.mxu0 %vm387_vm4, %v975_v38  ;;  %v1064_v34 = vsel %vm1828_vm3, %v1396_v52, %v1063_v51 }
  0x39   : > { %1471 = vmatprep.subr.msk.mxu0 %vm392_vm0, %v1397_v44  ;;  %v1068_v41 = vcombine.low %v878_v39, %v1064_v34 }
  0x3c   : > { %1449 = vmatmul.mubr.msk.f32.vlgmr.msra.gmra.mrb[0].mxu1 %vm387_vm4, %v564_v46 }
  0x3d   : > { %1452 = vmatpush3.msk.msra.mxu1 %vm392_vm0, %v1371_v31  ;;  %1453 = vmatprep.mubr.msk.f32.mxu1 %vm387_vm4, %v655_v49 }
  0x3f   : > { %1469 = vmatmul.mubr.msk.f32.vlgmr.msra.gmra.mrb[0].mxu0 %vm387_vm4, %v976_v50 }
  0x40   : > { %1472 = vmatpush3.msk.msra.mxu0 %vm392_vm0, %v1397_v44  ;;  %1473 = vmatprep.mubr.msk.f32.mxu0 %vm387_vm4, %v1067_v42 }
  0x44   : > { %1454 = vmatmul.mubr.msk.f32.vlgmr.msra.gmra.mrb[0].mxu1 %vm387_vm4, %v656_v33 }
  0x47   : > { %1474 = vmatmul.mubr.msk.f32.vlgmr.msra.gmra.mrb[0].mxu0 %vm387_vm4, %v1068_v41 }
 0x117   : > { %v1455_v54 = vpop.f32.mrb[0].mxu1 }
 0x118   : > { %v730_v35 = vpop.f32.mrb[1].mxu1 }
 0x11a   : > { %v1475_v55 = vpop.f32.mrb[0].mxu0 }
 0x11b   : > { %v1476_v56 = vadd.f32 %v1475_v55, %v1455_v54  ;;  %v1142_v57 = vpop.f32.mrb[1].mxu0 }
 0x11c   : > { %v1477_v58 = vadd.f32 %v1142_v57, %v730_v35 }
 0x11d   : > { %v1161_v59 = vadd.f32 %v1476_v56, %v1401_v18 }
 0x11e   : > { %v1160_v60 = vadd.f32 %v1477_v58, %v1401_v18 }
 0x11f   : > { %v1411_v61 = vpack.c.bf16 %v1161_v59, %v1161_v59  ;;  %v1174_v62 = vsel %vm387_vm4, %v1161_v59, 0.0  ;;  %v1185_v63 = vmul.f32 %v1161_v59, %v1161_v59 }
 0x120   : > { %v1410_v0 = vpack.c.bf16 %v1160_v60, %v1160_v60  ;;  %v1173_v1 = vsel %vm387_vm4, %v1160_v60, 0.0  ;;  %v1184_v2 = vmul.f32 %v1160_v60, %v1160_v60 }
 0x121   : > { %v1187_v4 = vsel %vm387_vm4, %v1185_v63, 0.0  ;;  %v1175_v5 = vadd.f32 %v1174_v62, %v1173_v1  ;;  %1172 = vst.msk [vmem:[%s321_s11 + $0x4] sm:$0xf] %vm1170_vm8, %v1411_v61 }
 0x122   : > { %v1186_v6 = vsel %vm387_vm4, %v1184_v2, 0.0  ;;  %1171 = vst.msk [vmem:[%s321_s11] sm:$0xf] %vm1170_vm8, %v1410_v0 }
 0x123   : > { %v1176_v7 = vrot.slane %v1175_v5, 4  ;;  %v1188_v12 = vadd.f32 %v1187_v4, %v1186_v6 }
 0x125   : > { %v1177_v13 = vadd.f32 %v1176_v7, %v1175_v5  ;;  %v1189_v14 = vrot.slane %v1188_v12, 4 }
 0x127   : > { %v1178_v15 = vrot.slane %v1177_v13, 2  ;;  %v1190_v16 = vadd.f32 %v1189_v14, %v1188_v12 }
 0x129   : > { %v1179_v17 = vadd.f32 %v1178_v15, %v1177_v13  ;;  %v1191_v19 = vrot.slane %v1190_v16, 2 }
 0x12b   : > { %v1180_v8 = vrot.slane %v1179_v17, 1  ;;  %v1192_v9 = vadd.f32 %v1191_v19, %v1190_v16 }
 0x12d   : > { %v1181_v20 = vadd.f32 %v1180_v8, %v1179_v17  ;;  %v1193_v21 = vrot.slane %v1192_v9, 1 }
 0x12f   : > { %1183 = vst.msk [vmem:[%s292_s16] sm:$0x1] %vm1182_vm9, %v1181_v20  ;;  %v1194_v22 = vadd.f32 %v1193_v21, %v1192_v9 }
 0x131   : > { %1195 = vst.msk [vmem:[%s292_s16 + $0x1] sm:$0x1] %vm1182_vm9, %v1194_v22 }
 0x132   : > { %1576 = shalt.err (!%p1573_p9)
}
 0x133   : > { %s1577_s11 = scalar_lea.hbm %s2012_s6, 32  ;;  %s1581_s15 = scalar_lea.hbm %s2070_s5, 256 }
 0x134   : > { %p1578_p10 = scmp.ne.s32.totalorder %s2012_s6, %s1577_s11  ;;  %p1582_p13 = scmp.lt.u32.totalorder %s2012_s6, %s2070_s5 }
 0x135   : > { %p1583_p0 = scmp.lt.u32.totalorder %s1581_s15, %s1577_s11  ;;  %p1585_p2 = scmp.lt.u32.totalorder %s1577_s11, %s2012_s6 }
 0x136   : > { %p1579_p11 = pnand %p1578_p10, %p1743_p5 }
 0x137   : > { %p1584_p1 = por %p1583_p0, %p1582_p13 }
 0x138   : > { %p1580_p12 = pneg %p1579_p11 }
 0x139   : > { %p1586_p3 = por %p1585_p2, %p1584_p1 }
 0x13b   : > { %p1587_p4 = pnand %p1586_p3, %p1580_p12 }
 0x13d   : > { %1590 = shalt.err (!%p1587_p4)
}
 0x13e   : > { %1492 = dma.vmem_to_hbm [thread:$0]  (%p1743_p5), %s2014_s17, 32, %s2012_s6, %s1204_s9  }
 0x13f PF: > { %p1498_p6 = scmp.ge.s32.totalorder %s1657_s25, 2  ;;  %s1246_s30 = sand.u32 1, %s1629_s18  }
 0x140   : > { %s1247_s10 = scalar_lea.sflag [#allocation3], %s1246_s30 }
 0x141   : > { %p1495_p8 = pnand %p1498_p6, %p1749_p7 }
 0x143   : > { %1624 = dma.done.wait (!%p1495_p8), %s1247_s10, 32  }
 0x144   : > { %1626 = vsyncadd (!%p1495_p8), %s1247_s10, 4294967264  ;;  %s19_s25 = sadd.s32 1, %s1657_s25   ;;  %s2077_s18 = smov %s1633_s19 }
 0x145   : > { %p16_p9 = scmp.ge.s32.totalorder %s19_s25, 10   ;;  %s2078_s19 = smov %s1637_s20 }
 0x146   : > { %s2079_s20 = smov %s1759_s13  ;;  %s2080_s21 = smov %s1649_s23 }
 0x147   : > { %s2081_s22 = smov %s1653_s24  ;;  %s2082_s23 = smov %s2085_s27 }
 0x148   : > { %s2083_s24 = smov %s2089_s28  ;;  %18 = sbr.rel (!%p16_p9) target bundleno = 5 (0x5), region = 93 }
 0x14f   :  { %1252 = vsyncpa [#allocation3], 1 }
 0x150   :  { %1254 = vsyncpa [#allocation3 + $0x1], 1 }

// kernel: tile.33
= control target key start
LH: loop header
LB: loop body
LE: loop exit
PB: predicated region body
PF: predicated region fallthrough
CT: control target
= control target key end

     0   :  { %s28_s0 = inlined_call_operand.vmem [shape: f32[8], index: 0, kind: input, shape index: {}]   ;;  %s29_s1 = inlined_call_operand.vmem [shape: f32[16,8], index: 1, kind: output, shape index: {}]  }
   0x1   :  { %v4_v0 = vld [vmem:[%s28_s0] ss:$0 sm:$0xff] }
   0x2   :  { %5 = vst [vmem:[%s29_s1] sm:$0xff] %v4_v0  ;;  %8 = vst [vmem:[%s29_s1 + $0x8] sm:$0xff] %v4_v0 }

// kernel: tile.34
= control target key start
LH: loop header
LB: loop body
LE: loop exit
PB: predicated region body
PF: predicated region fallthrough
CT: control target
= control target key end

     0   :  { %s131_s10 = smov 120   ;;  %s132_s11 = smov 104   ;;  %vm3_vm0 = vcmask 64512   ;;  %vm9_vm1 = vcmask 1048512   ;;  %vm15_vm2 = vcmask 982912   ;;  %vm21_vm3 = vcmask 917312   ;;  %s207_s0 = inlined_call_operand.vmem [shape: f32[16,8], index: 0, kind: input, shape index: {}]   ;;  %s208_s1 = inlined_call_operand.vmem [shape: f32[1,128], index: 1, kind: output, shape index: {}]  }
   0x1   :  { %v101_v0 = vld [vmem:[%s207_s0 + $0xf] sm:$0x1]   ;;  %v103_v1 = vld [vmem:[%s207_s0 + $0xd] sm:$0x1]   ;;  %v102_v2 = vld [vmem:[%s207_s0 + $0xe] sm:$0x1]  }
   0x2   :  { %7 = vrot.lane.b32.xlu0 %v101_v0, %s131_s10  ;;  %19 = vrot.lane.b32.xlu1 %v103_v1, %s132_s11  ;;  %v104_v3 = vld [vmem:[%s207_s0 + $0xc] sm:$0x1]   ;;  %s133_s16 = smov 112   ;;  %s134_s17 = smov 96   ;;  %v105_v4 = vld [vmem:[%s207_s0 + $0xb] sm:$0x1]  }
   0x3   :  { %v106_v5 = vld [vmem:[%s207_s0 + $0xa] sm:$0x1]   ;;  %v2_v6 = vld [vmem:[%s207_s0] sm:$0x1]   ;;  %s135_s24 = smov 88   ;;  %s136_s25 = smov 80  }
   0x4   :  { %4 = vst.msk [vmem:[#allocation0] sm:$0x1] %vm3_vm0, %v2_v6   ;;  %v107_v7 = vld [vmem:[%s207_s0 + $0x9] sm:$0x1]   ;;  %v108_v8 = vld [vmem:[%s207_s0 + $0x8] sm:$0x1]  }
   0x5   :  { %s137_s30 = smov 72   ;;  %s138_s2 = smov 64   ;;  %v109_v9 = vld [vmem:[%s207_s0 + $0x7] sm:$0x1]   ;;  %v110_v10 = vld [vmem:[%s207_s0 + $0x6] sm:$0x1]  }
   0x6   :  { %13 = vrot.lane.b32.xlu0 %v102_v2, %s133_s16  ;;  %25 = vrot.lane.b32.xlu1 %v104_v3, %s134_s17  ;;  %s139_s7 = smov 56   ;;  %s140_s8 = smov 48   ;;  %v111_v11 = vld [vmem:[%s207_s0 + $0x5] sm:$0x1]   ;;  %v112_v12 = vld [vmem:[%s207_s0 + $0x4] sm:$0x1]  }
   0x7   :  { %s141_s13 = smov 40   ;;  %s142_s14 = smov 32   ;;  %v113_v13 = vld [vmem:[%s207_s0 + $0x3] sm:$0x1]   ;;  %v114_v14 = vld [vmem:[%s207_s0 + $0x2] sm:$0x1]  }
   0x8   :  { %s143_s19 = smov 24   ;;  %s144_s20 = smov 16   ;;  %v115_v15 = vld [vmem:[%s207_s0 + $0x1] sm:$0x1]   ;;  %vm27_vm4 = vcmask 851712   ;;  %vm33_vm5 = vcmask 786112  }
   0x9   :  { %s145_s0 = smov 8   ;;  %vm39_vm6 = vcmask 720512   ;;  %vm45_vm7 = vcmask 654912   ;;  %vm51_vm8 = vcmask 589312   ;;  %vm57_vm9 = vcmask 523712  }
   0xa   :  { %31 = vrot.lane.b32.xlu0 %v105_v4, %s135_s24  ;;  %37 = vrot.lane.b32.xlu1 %v106_v5, %s136_s25  ;;  %vm63_vm10 = vcmask 458112   ;;  %vm69_vm11 = vcmask 392512   ;;  %vm75_vm12 = vcmask 326912   ;;  %vm81_vm13 = vcmask 261312  }
   0xb   :  { %vm87_vm14 = vcmask 195712   ;;  %vm93_vm15 = vcmask 130112  }
   0xe   :  { %43 = vrot.lane.b32.xlu0 %v107_v7, %s137_s30  ;;  %49 = vrot.lane.b32.xlu1 %v108_v8, %s138_s2 }
  0x12   :  { %55 = vrot.lane.b32.xlu0 %v109_v9, %s139_s7  ;;  %61 = vrot.lane.b32.xlu1 %v110_v10, %s140_s8 }
  0x16   :  { %67 = vrot.lane.b32.xlu0 %v111_v11, %s141_s13  ;;  %73 = vrot.lane.b32.xlu1 %v112_v12, %s142_s14 }
  0x1a   :  { %79 = vrot.lane.b32.xlu0 %v113_v13, %s143_s19  ;;  %85 = vrot.lane.b32.xlu1 %v114_v14, %s144_s20 }
  0x1e   :  { %91 = vrot.lane.b32.xlu0 %v115_v15, %s145_s0 }
  0x74   :  { %v8_v16 = vpop.permute.xlu0 %7   ;;  %v20_v17 = vpop.permute.xlu1 %19  }
  0x75   :  { %10 = vst.msk [vmem:[#allocation0] sm:$0x1] %vm9_vm1, %v8_v16  }
  0x78   :  { %v14_v18 = vpop.permute.xlu0 %13   ;;  %v26_v19 = vpop.permute.xlu1 %25  }
  0x79   :  { %16 = vst.msk [vmem:[#allocation0] sm:$0x1] %vm15_vm2, %v14_v18  }
  0x7a   :  { %22 = vst.msk [vmem:[#allocation0] sm:$0x1] %vm21_vm3, %v20_v17  }
  0x7b   :  { %28 = vst.msk [vmem:[#allocation0] sm:$0x1] %vm27_vm4, %v26_v19  }
  0x7c   :  { %v32_v20 = vpop.permute.xlu0 %31   ;;  %v38_v21 = vpop.permute.xlu1 %37  }
  0x7d   :  { %34 = vst.msk [vmem:[#allocation0] sm:$0x1] %vm33_vm5, %v32_v20  }
  0x7e   :  { %40 = vst.msk [vmem:[#allocation0] sm:$0x1] %vm39_vm6, %v38_v21  }
  0x80   :  { %v44_v22 = vpop.permute.xlu0 %43   ;;  %v50_v23 = vpop.permute.xlu1 %49  }
  0x81   :  { %46 = vst.msk [vmem:[#allocation0] sm:$0x1] %vm45_vm7, %v44_v22  }
  0x82   :  { %52 = vst.msk [vmem:[#allocation0] sm:$0x1] %vm51_vm8, %v50_v23  }
  0x84   :  { %v56_v24 = vpop.permute.xlu0 %55   ;;  %v62_v25 = vpop.permute.xlu1 %61  }
  0x85   :  { %58 = vst.msk [vmem:[#allocation0] sm:$0x1] %vm57_vm9, %v56_v24  }
  0x86   :  { %64 = vst.msk [vmem:[#allocation0] sm:$0x1] %vm63_vm10, %v62_v25  }
  0x88   :  { %v68_v26 = vpop.permute.xlu0 %67   ;;  %v74_v27 = vpop.permute.xlu1 %73  }
  0x89   :  { %70 = vst.msk [vmem:[#allocation0] sm:$0x1] %vm69_vm11, %v68_v26  }
  0x8a   :  { %76 = vst.msk [vmem:[#allocation0] sm:$0x1] %vm75_vm12, %v74_v27  }
  0x8c   :  { %v80_v28 = vpop.permute.xlu0 %79   ;;  %v86_v29 = vpop.permute.xlu1 %85  }
  0x8d   :  { %82 = vst.msk [vmem:[#allocation0] sm:$0x1] %vm81_vm13, %v80_v28  }
  0x8e   :  { %88 = vst.msk [vmem:[#allocation0] sm:$0x1] %vm87_vm14, %v86_v29  }
  0x90   :  { %v92_v30 = vpop.permute.xlu0 %91  }
  0x91   :  { %94 = vst.msk [vmem:[#allocation0] sm:$0x1] %vm93_vm15, %v92_v30  }
  0x98   :  { %v98_v31 = vld [vmem:[#allocation0] sm:$0x1] }
  0x99   :  { %100 = vst [vmem:[%s208_s1] sm:$0x1] %v98_v31 }

// kernel: _lambda_.23
= control target key start
LH: loop header
LB: loop body
LE: loop exit
PB: predicated region body
PF: predicated region fallthrough
CT: control target
= control target key end

     0   :  { %s238_s0 = inlined_call_operand.vmem [shape: bf16[64,128], index: 0, kind: input, shape index: {}]   ;;  %s239_s1 = inlined_call_operand.vmem [shape: f32[1,128], index: 1, kind: input, shape index: {}]   ;;  %s240_s2 = inlined_call_operand.vmem [shape: f32[1,128], index: 2, kind: input, shape index: {}]   ;;  %s241_s3 = inlined_call_operand.vmem [shape: bf16[64,128], index: 3, kind: output, shape index: {}]  }
   0x1   :  { %v147_v0 = vld [vmem:[%s238_s0] sm:$0xff]   ;;  %v182_v4 = vld [vmem:[%s238_s0 + $0x8] sm:$0xff]   ;;  %v183_v5 = vld [vmem:[%s238_s0 + $0x10] sm:$0xff]  }
   0x2   :  { %v128_v1 = vld [vmem:[%s239_s1] ss:$0 sm:$0xff]  ;;  %v148_v2 = vunpack.c.l.bf16 %v147_v0  ;;  %v149_v3 = vunpack.c.h.bf16 %v147_v0  ;;  %v184_v6 = vld [vmem:[%s238_s0 + $0x18] sm:$0xff]   ;;  %v152_v8 = vunpack.c.l.bf16 %v182_v4  ;;  %v153_v9 = vunpack.c.h.bf16 %v182_v4 }
   0x3   :  { %v129_v7 = vld [vmem:[%s240_s2] ss:$0 sm:$0xff]  ;;  %v156_v10 = vunpack.c.l.bf16 %v183_v5  ;;  %v157_v11 = vunpack.c.h.bf16 %v183_v5  ;;  %v160_v14 = vunpack.c.l.bf16 %v184_v6  ;;  %v161_v15 = vunpack.c.h.bf16 %v184_v6 }
   0x4   :  { %v37_v12 = vmul.f32 %v148_v2, %v128_v1  ;;  %v38_v13 = vmul.f32 %v149_v3, %v128_v1  ;;  %v39_v16 = vmul.f32 %v152_v8, %v128_v1  ;;  %v40_v17 = vmul.f32 %v153_v9, %v128_v1 }
   0x5   :  { %v41_v18 = vmul.f32 %v156_v10, %v128_v1  ;;  %v42_v19 = vmul.f32 %v157_v11, %v128_v1  ;;  %v43_v22 = vmul.f32 %v160_v14, %v128_v1  ;;  %v44_v23 = vmul.f32 %v161_v15, %v128_v1 }
   0x6   :  { %v52_v20 = vadd.f32 %v129_v7, %v37_v12  ;;  %v53_v21 = vadd.f32 %v129_v7, %v38_v13  ;;  %v54_v24 = vadd.f32 %v129_v7, %v39_v16  ;;  %v55_v25 = vadd.f32 %v129_v7, %v40_v17 }
   0x7   :  { %v56_v26 = vadd.f32 %v129_v7, %v41_v18  ;;  %v57_v27 = vadd.f32 %v129_v7, %v42_v19  ;;  %v58_v40 = vadd.f32 %v129_v7, %v43_v22  ;;  %v59_v41 = vadd.f32 %v129_v7, %v44_v23 }
   0x8   :  { %vm60_vm0 = vcmp.gt.f32.partialorder %v52_v20, 0.0  ;;  %vm61_vm1 = vcmp.gt.f32.partialorder %v53_v21, 0.0  ;;  %v68_v28 = vmul.f32 0.2, %v52_v20  ;;  %v69_v29 = vmul.f32 0.2, %v53_v21 }
   0x9   :  { %vm62_vm2 = vcmp.gt.f32.partialorder %v54_v24, 0.0  ;;  %vm63_vm3 = vcmp.gt.f32.partialorder %v55_v25, 0.0  ;;  %v70_v30 = vmul.f32 0.2, %v54_v24  ;;  %v71_v31 = vmul.f32 0.2, %v55_v25 }
   0xa   :  { %v76_v32 = vsel %vm60_vm0, %v52_v20, %v68_v28  ;;  %v77_v33 = vsel %vm61_vm1, %v53_v21, %v69_v29  ;;  %vm64_vm4 = vcmp.gt.f32.partialorder %v56_v26, 0.0  ;;  %vm65_vm5 = vcmp.gt.f32.partialorder %v57_v27, 0.0 }
   0xb   :  { %v165_v34 = vpack.c.bf16 %v77_v33, %v76_v32  ;;  %v78_v35 = vsel %vm62_vm2, %v54_v24, %v70_v30  ;;  %v79_v36 = vsel %vm63_vm3, %v55_v25, %v71_v31  ;;  %v72_v37 = vmul.f32 0.2, %v56_v26 }
   0xc   :  { %v170_v38 = vpack.c.bf16 %v79_v36, %v78_v35  ;;  %v73_v39 = vmul.f32 0.2, %v57_v27  ;;  %vm66_vm6 = vcmp.gt.f32.partialorder %v58_v40, 0.0  ;;  %vm67_vm7 = vcmp.gt.f32.partialorder %v59_v41, 0.0 }
   0xd   :  { %166 = vst [vmem:[%s241_s3] sm:$0xff] %v165_v34   ;;  %v80_v42 = vsel %vm64_vm4, %v56_v26, %v72_v37  ;;  %v74_v44 = vmul.f32 0.2, %v58_v40  ;;  %v75_v46 = vmul.f32 0.2, %v59_v41 }
   0xe   :  { %185 = vst [vmem:[%s241_s3 + $0x8] sm:$0xff] %v170_v38   ;;  %v81_v43 = vsel %vm65_vm5, %v57_v27, %v73_v39 }
   0xf   :  { %v175_v45 = vpack.c.bf16 %v81_v43, %v80_v42  ;;  %v82_v47 = vsel %vm66_vm6, %v58_v40, %v74_v44  ;;  %v83_v48 = vsel %vm67_vm7, %v59_v41, %v75_v46 }
  0x10   :  { %v180_v49 = vpack.c.bf16 %v83_v48, %v82_v47 }
  0x11   :  { %186 = vst [vmem:[%s241_s3 + $0x10] sm:$0xff] %v175_v45  }
  0x12   :  { %187 = vst [vmem:[%s241_s3 + $0x18] sm:$0xff] %v180_v49  }

// kernel: _lambda_.27
= control target key start
LH: loop header
LB: loop body
LE: loop exit
PB: predicated region body
PF: predicated region fallthrough
CT: control target
= control target key end

     0   :  { %s179_s0 = inlined_call_operand.vmem [shape: bf16[64,128], index: 0, kind: input, shape index: {}]   ;;  %s180_s1 = inlined_call_operand.vmem [shape: f32[1,128], index: 1, kind: input, shape index: {}]   ;;  %s181_s2 = inlined_call_operand.vmem [shape: f32[1,128], index: 2, kind: input, shape index: {}]   ;;  %s182_s3 = inlined_call_operand.vmem [shape: f32[64,128], index: 3, kind: output, shape index: {}]  }
   0x1   :  { %v99_v0 = vld [vmem:[%s179_s0] sm:$0xff]   ;;  %v114_v4 = vld [vmem:[%s179_s0 + $0x8] sm:$0xff]   ;;  %v115_v5 = vld [vmem:[%s179_s0 + $0x10] sm:$0xff]  }
   0x2   :  { %v96_v1 = vld [vmem:[%s180_s1] ss:$0 sm:$0xff]  ;;  %v100_v2 = vunpack.c.l.bf16 %v99_v0  ;;  %v101_v3 = vunpack.c.h.bf16 %v99_v0  ;;  %v116_v6 = vld [vmem:[%s179_s0 + $0x18] sm:$0xff]   ;;  %v104_v8 = vunpack.c.l.bf16 %v114_v4  ;;  %v105_v9 = vunpack.c.h.bf16 %v114_v4 }
   0x3   :  { %v97_v7 = vld [vmem:[%s181_s2] ss:$0 sm:$0xff]  ;;  %v108_v10 = vunpack.c.l.bf16 %v115_v5  ;;  %v109_v11 = vunpack.c.h.bf16 %v115_v5  ;;  %v112_v14 = vunpack.c.l.bf16 %v116_v6  ;;  %v113_v15 = vunpack.c.h.bf16 %v116_v6 }
   0x4   :  { %v37_v12 = vmul.f32 %v100_v2, %v96_v1  ;;  %v38_v13 = vmul.f32 %v101_v3, %v96_v1  ;;  %v39_v16 = vmul.f32 %v104_v8, %v96_v1  ;;  %v40_v17 = vmul.f32 %v105_v9, %v96_v1 }
   0x5   :  { %v41_v18 = vmul.f32 %v108_v10, %v96_v1  ;;  %v42_v19 = vmul.f32 %v109_v11, %v96_v1  ;;  %v43_v22 = vmul.f32 %v112_v14, %v96_v1  ;;  %v44_v23 = vmul.f32 %v113_v15, %v96_v1 }
   0x6   :  { %v52_v20 = vadd.f32 %v97_v7, %v37_v12  ;;  %v53_v21 = vadd.f32 %v97_v7, %v38_v13  ;;  %v54_v24 = vadd.f32 %v97_v7, %v39_v16  ;;  %v55_v25 = vadd.f32 %v97_v7, %v40_v17 }
   0x7   :  { %v56_v26 = vadd.f32 %v97_v7, %v41_v18  ;;  %v57_v27 = vadd.f32 %v97_v7, %v42_v19  ;;  %v58_v39 = vadd.f32 %v97_v7, %v43_v22  ;;  %v59_v40 = vadd.f32 %v97_v7, %v44_v23 }
   0x8   :  { %vm60_vm0 = vcmp.gt.f32.partialorder %v52_v20, 0.0  ;;  %v68_v28 = vmul.f32 0.2, %v52_v20  ;;  %vm61_vm1 = vcmp.gt.f32.partialorder %v53_v21, 0.0  ;;  %v69_v29 = vmul.f32 0.2, %v53_v21 }
   0x9   :  { %vm62_vm2 = vcmp.gt.f32.partialorder %v54_v24, 0.0  ;;  %v70_v30 = vmul.f32 0.2, %v54_v24  ;;  %vm63_vm3 = vcmp.gt.f32.partialorder %v55_v25, 0.0  ;;  %v71_v31 = vmul.f32 0.2, %v55_v25 }
   0xa   :  { %v76_v32 = vsel %vm60_vm0, %v52_v20, %v68_v28  ;;  %v77_v33 = vsel %vm61_vm1, %v53_v21, %v69_v29  ;;  %vm64_vm4 = vcmp.gt.f32.partialorder %v56_v26, 0.0  ;;  %v72_v34 = vmul.f32 0.2, %v56_v26 }
   0xb   :  { %84 = vst [vmem:[%s182_s3] sm:$0xff] %v76_v32  ;;  %85 = vst [vmem:[%s182_s3 + $0x8] sm:$0xff] %v77_v33  ;;  %v78_v35 = vsel %vm62_vm2, %v54_v24, %v70_v30  ;;  %v79_v36 = vsel %vm63_vm3, %v55_v25, %v71_v31  ;;  %vm65_vm5 = vcmp.gt.f32.partialorder %v57_v27, 0.0  ;;  %v73_v37 = vmul.f32 0.2, %v57_v27 }
   0xc   :  { %86 = vst [vmem:[%s182_s3 + $0x10] sm:$0xff] %v78_v35  ;;  %87 = vst [vmem:[%s182_s3 + $0x18] sm:$0xff] %v79_v36  ;;  %v80_v38 = vsel %vm64_vm4, %v56_v26, %v72_v34  ;;  %vm66_vm6 = vcmp.gt.f32.partialorder %v58_v39, 0.0  ;;  %v74_v42 = vmul.f32 0.2, %v58_v39  ;;  %vm67_vm7 = vcmp.gt.f32.partialorder %v59_v40, 0.0 }
   0xd   :  { %88 = vst [vmem:[%s182_s3 + $0x20] sm:$0xff] %v80_v38  ;;  %v81_v41 = vsel %vm65_vm5, %v57_v27, %v73_v37  ;;  %v75_v43 = vmul.f32 0.2, %v59_v40 }
   0xe   :  { %89 = vst [vmem:[%s182_s3 + $0x28] sm:$0xff] %v81_v41  ;;  %v82_v44 = vsel %vm66_vm6, %v58_v39, %v74_v42 }
   0xf   :  { %v83_v45 = vsel %vm67_vm7, %v59_v40, %v75_v43  ;;  %90 = vst [vmem:[%s182_s3 + $0x30] sm:$0xff] %v82_v44 }
  0x10   :  { %91 = vst [vmem:[%s182_s3 + $0x38] sm:$0xff] %v83_v45 }

// kernel: _lambda_.22
= control target key start
LH: loop header
LB: loop body
LE: loop exit
PB: predicated region body
PF: predicated region fallthrough
CT: control target
= control target key end

     0   :  { %s5494_s21 = smov 0   ;;  %s5496_s22 = smov 0   ;;  %s6634_s0 = inlined_call_operand.vmem [shape: bf16[20,10,10,8], index: 0, kind: input, shape index: {}, may-alias: {0,1,2}]   ;;  %s6635_s1 = inlined_call_operand.vmem [shape: bf16[20,10,10,8], index: 1, kind: input, shape index: {}, may-alias: {0,1,2}]   ;;  %s6636_s2 = inlined_call_operand.vmem [shape: bf16[20,10,10,8], index: 2, kind: input, shape index: {}, may-alias: {0,1,2}]   ;;  %s6637_s3 = inlined_call_operand.vmem [shape: f32[27,8,8], index: 3, kind: input, shape index: {}]   ;;  %s6638_s4 = inlined_call_operand.vmem [shape: f32[1,8], index: 4, kind: input, shape index: {}]   ;;  %s6639_s5 = inlined_call_operand.vmem [shape: bf16[16,64,8], index: 5, kind: output, shape index: {0}]   ;;  %s6640_s6 = inlined_call_operand.vmem [shape: f32[16,2,8], index: 6, kind: output, shape index: {1}]  }
   0x1   :  { %s5498_s23 = smov 0   ;;  %s5500_s24 = smov 0  }
   0x2   :  { %s5502_s25 = smov 0  }
   0x3 LB: > { %s26_s26 = sadd.s32 1, %s5449_s23  ;;  %s29_s27 = sadd.s32 1, %s5453_s24  ;;  %s5457_s25 = sphi %s5502_s25, %s17_s25   ;;  %s5453_s24 = sphi %s5500_s24, %s6725_s24   ;;  %s5449_s23 = sphi %s5498_s23, %s6724_s23   ;;  %s5445_s22 = sphi %s5496_s22, %s6723_s22   ;;  %s5441_s21 = sphi %s5494_s21, %s6722_s21  }
   0x4   : > { %p27_p0 = scmp.ge.s32.totalorder %s26_s26, 8  ;;  %p4273_p1 = scmp.ge.s32.totalorder %s5457_s25, 1 }
   0x5   : > { %p287_p2 = scmp.lt.s32.totalorder %s5457_s25, 17 }
   0x6   : > { %s6727_s26 = smov (%p27_p0, %s26_s26), 0  ;;  %s6729_s27 = smov (!%p27_p0, %s29_s27), %s5453_s24 }
   0x7   : > { %p288_p3 = pnand %p4273_p1, %p287_p2  ;;  %p31_p4 = scmp.ge.s32.totalorder %s6729_s27, 2 }
   0x9   : > { %s6731_s27 = smov (%p31_p4, %s6729_s27), 0  ;;  %291 = sbr.rel (%p288_p3) target bundleno = 485 (0x1e5), region = 40 }
  0x10   : > { %v4282_v0 = vld [vmem:[%s6637_s3 + $0x8] sm:$0xff]  ;;  %s343_s8 = smul.u32 10, %s5445_s22  ;;  %v5538_v2 = vld [vmem:[%s6637_s3] sm:$0xff]  ;;  %v5543_v3 = vld [vmem:[%s6637_s3 + $0x70] sm:$0xff]  ;;  %vm448_vm0 = vcmask 1046528   ;;  %vm475_vm1 = vcmask 64512  }
  0x11   : > { %v4398_v1 = vld [vmem:[%s6637_s3 + $0x68] sm:$0xff]  ;;  %4787 = vmatprep.subr.mxu1 %v4282_v0  ;;  %vm718_vm2 = vcmask 1045504   ;;  %v5626_v39 = vld [vmem:[%s6637_s3 + $0x10] sm:$0xff]  ;;  %v5646_v46 = vld [vmem:[%s6637_s3 + $0x78] sm:$0xff]  ;;  %vm4069_vm3 = vcmask 60416   ;;  %vm4099_vm4 = vcmask 57344  }
  0x12   : > { %4969 = vmatprep.subr.mxu0 %v4398_v1  ;;  %4788 = vmatpush3.msra.mxu1 %v4282_v0  ;;  %s5546_s13 = sadd.s32 %s5441_s21, %s343_s8 }
  0x13   : > { %4970 = vmatpush3.msra.mxu0 %v4398_v1  ;;  %p345_p5 = scmp.lt.s32.totalorder %s5546_s13, 19  ;;  %4801 = vmatprep.subr.mxu1 %v5538_v2  ;;  %s354_s14 = sadd.s32 1, %s5546_s13 }
  0x14   : > { %4983 = vmatprep.subr.mxu0 %v5543_v3  ;;  %p355_p6 = scmp.lt.s32.totalorder %s354_s14, 19  ;;  %s365_s18 = sadd.s32 2, %s5546_s13 }
  0x15   : > { %s346_s15 = scalar_select %p345_p5, %s5546_s13, 19 }
  0x16   : > { %s6733_s14 = smov (!%p355_p6, %s354_s14), 19  ;;  %p366_p7 = scmp.lt.s32.totalorder %s365_s18, 19 }
  0x17   : > { %s5375_s16 = smul.u32 80, %s346_s15 }
  0x18   : > { %s5376_s17 = smul.u32 80, %s6733_s14  ;;  %s6735_s18 = smov (!%p366_p7, %s365_s18), 19 }
  0x19   : > { %s5556_s20 = scalar_lea.vmem %s6634_s0, %s5375_s16  ;;  %s5377_s28 = smul.u32 80, %s6735_s18 }
  0x1a   : > { %v391_v4 = vld [vmem:[%s5556_s20] ss:$8 sps:$4 sm:$0xff]   ;;  %v5560_v5 = vld [vmem:[%s5556_s20 + $0x4] sm:$0x1]  ;;  %v5563_v6 = vld [vmem:[%s5556_s20 + $0xc] sm:$0x1]  ;;  %s5568_s30 = scalar_lea.vmem %s6635_s1, %s5376_s17 }
  0x1b   : > { %v5570_v7 = vunpack.c.l.bf16 %v391_v4  ;;  %v412_v8 = vunpack.c.l.bf16 %v5560_v5  ;;  %v5573_v9 = vunpack.c.h.bf16 %v391_v4  ;;  %v414_v10 = vunpack.c.l.bf16 %v5563_v6  ;;  %v1594_v11 = vld [vmem:[%s5568_s30 + $0x8] ss:$8 sps:$4 sm:$0xff]   ;;  %v5578_v12 = vld [vmem:[%s5568_s30 + $0xc] sm:$0x1]  ;;  %v1597_v13 = vld [vmem:[%s5568_s30 + $0x14] sm:$0x1]  ;;  %s5945_s10 = scalar_lea.vmem %s6636_s2, %s5377_s28 }
  0x1c   : > { %v5581_v14 = vunpack.c.l.bf16 %v1594_v11  ;;  %v1615_v15 = vunpack.c.l.bf16 %v5578_v12  ;;  %v5584_v16 = vunpack.c.h.bf16 %v1594_v11  ;;  %v1617_v17 = vunpack.c.l.bf16 %v1597_v13  ;;  %v395_v18 = vld [vmem:[%s5556_s20 + $0x10] ss:$8 sps:$4 sm:$0xff]   ;;  %v5588_v19 = vld [vmem:[%s5556_s20 + $0x14] sm:$0x1]  ;;  %v5591_v20 = vld [vmem:[%s5556_s20 + $0x1c] sm:$0x1] }
  0x1d   : > { %v449_v21 = vrot.slane %v5570_v7, 1  ;;  %v450_v22 = vrot.slane %v412_v8, 1  ;;  %v452_v23 = vrot.slane %v5573_v9, 1  ;;  %v453_v24 = vrot.slane %v414_v10, 1  ;;  %v1598_v25 = vld [vmem:[%s5568_s30 + $0x18] ss:$8 sps:$4 sm:$0xff]  }
  0x1e   : > { %v1782_v26 = vrot.slane %v5581_v14, 1  ;;  %v1783_v27 = vrot.slane %v1615_v15, 1  ;;  %v1785_v28 = vrot.slane %v5584_v16, 1  ;;  %v5605_v29 = vld [vmem:[%s5568_s30 + $0x1c] sm:$0x1]  ;;  %v1786_v32 = vrot.slane %v1617_v17, 1 }
  0x1f   : > { %v451_v30 = vsel %vm448_vm0, %v449_v21, %v450_v22  ;;  %v5609_v31 = vsel %vm448_vm0, %v452_v23, %v453_v24  ;;  %v1941_v33 = vrot.slane %v1617_v17, 2  ;;  %v5615_v35 = vunpack.c.l.bf16 %v395_v18  ;;  %v5621_v38 = vld [vmem:[%s5568_s30 + $0x24] sm:$0x1]  ;;  %v399_v44 = vld [vmem:[%s5556_s20 + $0x20] ss:$8 sps:$4 sm:$0xff]   ;;  %s4277_s14 = sshll.u32 %s5445_s22, 3 }
  0x20   : > { %4789 = vmatprep.mubr.msk.f32.mxu1 %vm475_vm1, %v451_v30  ;;  %v5613_v34 = vsel %vm448_vm0, %v1782_v26, %v1783_v27  ;;  %v416_v36 = vunpack.c.l.bf16 %v5588_v19  ;;  %v5618_v37 = vunpack.c.h.bf16 %v395_v18  ;;  %v5633_v40 = vsel %vm448_vm0, %v1785_v28, %v1786_v32  ;;  %v5641_v45 = vld [vmem:[%s5556_s20 + $0x24] sm:$0x1]  ;;  %v5663_v55 = vld [vmem:[%s5556_s20 + $0x2c] sm:$0x1]  ;;  %v403_v0 = vld [vmem:[%s5556_s20 + $0x30] ss:$8 sps:$4 sm:$0xff]  }
  0x21   : > { %6668 = vst [vmem:[#allocation2_spill] sm:$0xff] %v5613_v34  ;;  %4790 = vmatmul.mubr.msk.f32.vlgmr.msra.gmra.mrb[0].mxu1 %vm475_vm1, %v5609_v31  ;;  %4971 = vmatprep.mubr.msk.f32.mxu0 %vm475_vm1, %v5613_v34  ;;  %6669 = vst [vmem:[#allocation3_spill] sm:$0xff] %v5633_v40  ;;  %v418_v41 = vunpack.c.l.bf16 %v5591_v20  ;;  %v5636_v42 = vunpack.c.l.bf16 %v1598_v25  ;;  %v1619_v43 = vunpack.c.l.bf16 %v5605_v29  ;;  %v455_v47 = vrot.slane %v5615_v35, 1  ;;  %v5686_v1 = vld [vmem:[%s5556_s20 + $0x34] sm:$0x1]  ;;  %v4317_v20 = vld [vmem:[%s6637_s3 + $0x20] sm:$0xff] }
  0x22   : > { %4802 = vmatpush3.msra.mxu1 %v5538_v2  ;;  %4972 = vmatmul.mubr.msk.f32.vlgmr.msra.gmra.mrb[0].mxu0 %vm475_vm1, %v5633_v40  ;;  %v456_v48 = vrot.slane %v416_v36, 1  ;;  %v458_v49 = vrot.slane %v5618_v37, 1  ;;  %v5655_v50 = vunpack.c.h.bf16 %v1598_v25  ;;  %v1621_v54 = vunpack.c.l.bf16 %v5621_v38  ;;  %v5698_v13 = vld [vmem:[%s5556_s20 + $0x3c] sm:$0x1]  ;;  %v1602_v29 = vld [vmem:[%s5568_s30 + $0x28] ss:$8 sps:$4 sm:$0xff]  }
  0x23   : > { %4984 = vmatpush3.msra.mxu0 %v5543_v3  ;;  %v459_v51 = vrot.slane %v418_v41, 1  ;;  %v1788_v52 = vrot.slane %v5636_v42, 1  ;;  %v1789_v53 = vrot.slane %v1619_v43, 1  ;;  %4815 = vmatprep.subr.mxu1 %v5626_v39  ;;  %v5670_v58 = vunpack.c.l.bf16 %v399_v44  ;;  %v5730_v30 = vld [vmem:[%s5568_s30 + $0x2c] sm:$0x1] }
  0x24   : > { %v5667_v56 = vsel %vm448_vm0, %v455_v47, %v456_v48  ;;  %v1791_v57 = vrot.slane %v5655_v50, 1  ;;  %v420_v59 = vunpack.c.l.bf16 %v5641_v45  ;;  %4997 = vmatprep.subr.mxu0 %v5646_v46  ;;  %v1792_v62 = vrot.slane %v1621_v54, 1  ;;  %v5742_v47 = vld [vmem:[%s5568_s30 + $0x34] sm:$0x1]  ;;  %v4425_v48 = vld [vmem:[%s6637_s3 + $0x80] sm:$0xff] }
  0x25   : > { %4792 = vmatprep.mubr.msk.f32.mxu1 %vm475_vm1, %v5667_v56  ;;  %v5677_v60 = vsel %vm448_vm0, %v458_v49, %v459_v51  ;;  %v5680_v61 = vsel %vm448_vm0, %v1788_v52, %v1789_v53  ;;  %v5682_v63 = vunpack.c.h.bf16 %v399_v44  ;;  %v461_v2 = vrot.slane %v5670_v58, 1  ;;  %v1610_v19 = vld [vmem:[%s5568_s30 + $0x48] sm:$0xf]  ;;  %v6197_v34 = vld [vmem:[%s5945_s10 + $0x3c] sm:$0x1] }
  0x26   : > { %6670 = vst [vmem:[#allocation4_spill] sm:$0xff] %v5680_v61  ;;  %4793 = vmatmul.mubr.msk.f32.gmra.mrb[2].mxu1 %vm475_vm1, %v5677_v60  ;;  %4974 = vmatprep.mubr.msk.f32.mxu0 %vm475_vm1, %v5680_v61  ;;  %v462_v3 = vrot.slane %v420_v59, 1  ;;  %v422_v4 = vunpack.c.l.bf16 %v5663_v55  ;;  %v1937_v11 = vrot.slane %v5581_v14, 2  ;;  %v5701_v17 = vsel %vm448_vm0, %v1791_v57, %v1792_v62  ;;  %v1606_v57 = vld [vmem:[%s5568_s30 + $0x38] ss:$8 sps:$4 sm:$0xff]  }
  0x27   : > { %6671 = vst [vmem:[#allocation5_spill] sm:$0xff] %v5701_v17  ;;  %v464_v18 = vrot.slane %v5682_v63, 1  ;;  %v1938_v21 = vrot.slane %v1615_v15, 2  ;;  %v1940_v22 = vrot.slane %v5584_v16, 2  ;;  %4975 = vmatmul.mubr.msk.f32.gmra.mrb[2].mxu0 %vm475_vm1, %v5701_v17  ;;  %v5714_v25 = vunpack.c.l.bf16 %v403_v0 }
  0x28   : > { %v5710_v23 = vsel %vm448_vm0, %v461_v2, %v462_v3  ;;  %v465_v24 = vrot.slane %v422_v4, 1  ;;  %v424_v26 = vunpack.c.l.bf16 %v5686_v1  ;;  %v5725_v27 = vunpack.c.h.bf16 %v403_v0 }
  0x29   : > { %4795 = vmatprep.mubr.msk.f32.mxu1 %vm475_vm1, %v5710_v23  ;;  %v5720_v12 = vsel %vm718_vm2, %v1937_v11, %v1938_v21  ;;  %v5723_v15 = vsel %vm718_vm2, %v1940_v22, %v1941_v33  ;;  %v6643_v28 = vunpack.c.l.bf16 %v5698_v13  ;;  %v467_v38 = vrot.slane %v5714_v25, 1  ;;  %v5763_v11 = vld [vmem:[%s5568_s30 + $0x3c] sm:$0x1]  ;;  %v5778_v22 = vld [vmem:[%s5568_s30 + $0x44] sm:$0x1] }
  0x2a   : > { %6672 = vst [vmem:[#allocation6_spill] sm:$0xff] %v5720_v12  ;;  %6673 = vst [vmem:[#allocation7_spill] sm:$0xff] %v5723_v15  ;;  %v5733_v32 = vsel %vm448_vm0, %v464_v18, %v465_v24  ;;  %4985 = vmatprep.mubr.msk.f32.mxu0 %vm475_vm1, %v5720_v12  ;;  %v468_v33 = vrot.slane %v424_v26, 1  ;;  %v1943_v44 = vrot.slane %v5636_v42, 2  ;;  %v470_v49 = vrot.slane %v5725_v27, 1 }
  0x2b   : > { %4796 = vmatmul.mubr.msk.f32.gmra.mrb[4].mxu1 %vm475_vm1, %v5733_v32  ;;  %v471_v51 = vrot.slane %v6643_v28, 1  ;;  %v1944_v52 = vrot.slane %v1619_v43, 2  ;;  %v1946_v53 = vrot.slane %v5655_v50, 2  ;;  %4986 = vmatmul.mubr.msk.f32.vlgmr.msra.gmra.mrb[0].mxu0 %vm475_vm1, %v5723_v15  ;;  %v1947_v0 = vrot.slane %v1621_v54, 2 }
  0x2c   : > { %v5757_v62 = vsel %vm448_vm0, %v467_v38, %v468_v33  ;;  %v5759_v2 = vunpack.c.l.bf16 %v1602_v29  ;;  %v6642_v3 = vunpack.c.l.bf16 %v5730_v30  ;;  %4998 = vmatpush3.msra.mxu0 %v5646_v46  ;;  %v5774_v21 = vunpack.c.h.bf16 %v1602_v29 }
  0x2d   : > { %4798 = vmatprep.mubr.msk.f32.mxu1 %vm475_vm1, %v5757_v62  ;;  %v5769_v43 = vsel %vm448_vm0, %v470_v49, %v471_v51  ;;  %v5772_v18 = vsel %vm718_vm2, %v1943_v44, %v1944_v52  ;;  %v6641_v54 = vunpack.c.l.bf16 %v5742_v47  ;;  %v5783_v46 = vsel %vm718_vm2, %v1946_v53, %v1947_v0  ;;  %5011 = vmatprep.subr.mxu0 %v4425_v48 }
  0x2e   : > { %6674 = vst [vmem:[#allocation8_spill] sm:$0xff] %v5772_v18  ;;  %4988 = vmatprep.mubr.msk.f32.mxu0 %vm475_vm1, %v5772_v18  ;;  %6675 = vst [vmem:[#allocation9_spill] sm:$0xff] %v5783_v46  ;;  %v1949_v24 = vrot.slane %v5759_v2, 2  ;;  %v1950_v38 = vrot.slane %v6642_v3, 2  ;;  %v5788_v33 = vunpack.c.l.bf16 %v1606_v57  ;;  %v1952_v29 = vrot.slane %v5774_v21, 2 }
  0x2f   : > { %4799 = vmatmul.mubr.msk.f32.gmra.mrb[6].mxu1 %vm475_vm1, %v5769_v43  ;;  %v1953_v44 = vrot.slane %v6641_v54, 2  ;;  %v1627_v49 = vunpack.c.l.bf16 %v5763_v11  ;;  %v5796_v51 = vunpack.c.h.bf16 %v1606_v57  ;;  %4989 = vmatmul.mubr.msk.f32.gmra.mrb[2].mxu0 %vm475_vm1, %v5783_v46  ;;  %v1629_v0 = vunpack.c.l.bf16 %v5778_v22  ;;  %v2824_v11 = vld [vmem:[%s5945_s10 + $0x44] sm:$0x1] }
  0x30   : > { %4803 = vmatprep.mubr.msk.f32.mxu1 %vm475_vm1, %v5570_v7  ;;  %v5803_v52 = vsel %vm718_vm2, %v1949_v24, %v1950_v38  ;;  %v1955_v53 = vrot.slane %v5788_v33, 2  ;;  %v4308_v38 = vld [vmem:[%s6637_s3 + $0x18] sm:$0xff]  ;;  %v726_v6 = vrot.slane %v416_v36, 2  ;;  %v731_v36 = vrot.slane %v5670_v58, 2 }
  0x31   : > { %6676 = vst [vmem:[#allocation10_spill] sm:$0xff] %v5796_v51  ;;  %6677 = vst [vmem:[#allocation11_spill] sm:$0xff] %v5803_v52  ;;  %4991 = vmatprep.mubr.msk.f32.mxu0 %vm475_vm1, %v5803_v52  ;;  %v5810_v54 = vsel %vm718_vm2, %v1952_v29, %v1953_v44  ;;  %v1956_v57 = vrot.slane %v1627_v49, 2  ;;  %v2328_v3 = vrot.slane %v5796_v51, 2  ;;  %v2329_v28 = vrot.slane %v1629_v0, 2 }
  0x32   : > { %6678 = vst [vmem:[#allocation12_spill] sm:$0xff] %v5810_v54  ;;  %v720_v44 = vrot.slane %v412_v8, 2  ;;  %v725_v8 = vrot.slane %v5615_v35, 2  ;;  %v5897_v45 = vunpack.c.l.bf16 %v1610_v19  ;;  %v6680_v1 = vunpack.c.l.bf16 %v5698_v13  ;;  %v4443_v13 = vld [vmem:[%s6637_s3 + $0x90] sm:$0xff] }
  0x33   : > { %4804 = vmatmul.mubr.msk.f32.vlgmr.msra.gmra.mrb[0].mxu1 %vm475_vm1, %v5573_v9  ;;  %v5820_v24 = vsel %vm718_vm2, %v1955_v53, %v1956_v57  ;;  %4992 = vmatmul.mubr.msk.f32.gmra.mrb[4].mxu0 %vm475_vm1, %v5810_v54  ;;  %v5833_v29 = vsel %vm718_vm2, %v2328_v3, %v2329_v28  ;;  %v4434_v28 = vld [vmem:[%s6637_s3 + $0x88] sm:$0xff]  ;;  %v723_v3 = vrot.slane %v414_v10, 2  ;;  %v729_v53 = vrot.slane %v418_v41, 2 }
  0x34   : > { %6679 = vst [vmem:[#allocation13_spill] sm:$0xff] %v5820_v24  ;;  %4816 = vmatpush3.msra.mxu1 %v5626_v39  ;;  %4806 = vmatprep.mubr.msk.f32.mxu1 %vm475_vm1, %v5615_v35  ;;  %v719_v39 = vrot.slane %v5570_v7, 2  ;;  %v722_v7 = vrot.slane %v5573_v9, 2  ;;  %v732_v57 = vrot.slane %v420_v59, 2  ;;  %v734_v59 = vrot.slane %v5682_v63, 2 }
  0x35   : > { %4994 = vmatprep.mubr.msk.f32.mxu0 %vm475_vm1, %v5820_v24  ;;  %4829 = vmatprep.subr.mxu1 %v4308_v38  ;;  %v6682_v19 = vunpack.c.l.bf16 %v5742_v47  ;;  %v1800_v47 = vrot.slane %v5788_v33, 1 }
  0x36   : > { %v721_v5 = vsel %vm718_vm2, %v719_v39, %v720_v44  ;;  %v5871_v10 = vsel %vm718_vm2, %v722_v7, %v723_v3  ;;  %v5883_v39 = vsel %vm718_vm2, %v725_v8, %v726_v6  ;;  %v735_v44 = vrot.slane %v422_v4, 2 }
  0x37   : > { %4807 = vmatmul.mubr.msk.f32.gmra.mrb[2].mxu1 %vm475_vm1, %v5618_v37  ;;  %4995 = vmatmul.mubr.msk.f32.gmra.mrb[6].mxu0 %vm475_vm1, %v5833_v29  ;;  %v737_v3 = vrot.slane %v5714_v25, 2  ;;  %v738_v7 = vrot.slane %v424_v26, 2  ;;  %v740_v4 = vrot.slane %v5725_v27, 2  ;;  %v1794_v8 = vrot.slane %v5759_v2, 1 }
  0x38   : > { %4809 = vmatprep.mubr.msk.f32.mxu1 %vm475_vm1, %v5670_v58  ;;  %4999 = vmatprep.mubr.msk.f32.mxu0 %vm475_vm1, %v5584_v16  ;;  %v5920_v55 = vsel %vm718_vm2, %v734_v59, %v735_v44  ;;  %v6681_v6 = vunpack.c.l.bf16 %v5730_v30  ;;  %v1801_v59 = vrot.slane %v1627_v49, 1  ;;  %v2823_v44 = vld [vmem:[%s5945_s10 + $0x40] ss:$8 sps:$4 sm:$0xff]  }
  0x39   : > { %v5928_v26 = vsel %vm718_vm2, %v737_v3, %v738_v7  ;;  %v5972_v49 = vunpack.c.l.bf16 %v2823_v44 }
  0x3b   : > { %4810 = vmatmul.mubr.msk.f32.gmra.mrb[4].mxu1 %vm475_vm1, %v5682_v63  ;;  %5000 = vmatmul.mubr.msk.f32.vlgmr.msra.gmra.mrb[0].mxu0 %vm475_vm1, %v5636_v42 }
  0x3c   : > { %4812 = vmatprep.mubr.msk.f32.mxu1 %vm475_vm1, %v5714_v25  ;;  %5012 = vmatpush3.msra.mxu0 %v4425_v48  ;;  %v728_v48 = vrot.slane %v5618_v37, 2 }
  0x3d   : > { %5002 = vmatprep.mubr.msk.f32.mxu0 %vm475_vm1, %v5655_v50  ;;  %5025 = vmatprep.subr.mxu0 %v4434_v28 }
  0x3e   : > { %v5895_v41 = vsel %vm718_vm2, %v728_v48, %v729_v53  ;;  %v1795_v48 = vrot.slane %v6681_v6, 1  ;;  %v1797_v53 = vrot.slane %v5774_v21, 1  ;;  %v3423_v6 = vrot.slane %v5972_v49, 1 }
  0x3f   : > { %4813 = vmatmul.mubr.msk.f32.gmra.mrb[6].mxu1 %vm475_vm1, %v5725_v27  ;;  %5003 = vmatmul.mubr.msk.f32.gmra.mrb[2].mxu0 %vm475_vm1, %v5759_v2 }
  0x40   : > { %4817 = vmatprep.mubr.msk.f32.mxu1 %vm475_vm1, %v721_v5  ;;  %5005 = vmatprep.mubr.msk.f32.mxu0 %vm475_vm1, %v5774_v21  ;;  %v741_v5 = vrot.slane %v6680_v1, 2  ;;  %v5961_v3 = vsel %vm448_vm0, %v1794_v8, %v1795_v48  ;;  %v2567_v8 = vrot.slane %v5897_v45, 1  ;;  %v3543_v48 = vrot.slane %v5972_v49, 2 }
  0x41   : > { %6683 = vst [vmem:[#allocation14_spill] sm:$0xff] %v5961_v3 }
  0x42   : > { %v5952_v30 = vsel %vm718_vm2, %v740_v4, %v741_v5  ;;  %v2208_v4 = vrot.slane %v5796_v51, 1  ;;  %v2209_v5 = vrot.slane %v1629_v0, 1  ;;  %v2844_v0 = vunpack.c.l.bf16 %v2824_v11 }
  0x43   : > { %4818 = vmatmul.mubr.msk.f32.vlgmr.msra.gmra.mrb[0].mxu1 %vm475_vm1, %v5871_v10  ;;  %5006 = vmatmul.mubr.msk.f32.gmra.mrb[4].mxu0 %vm475_vm1, %v5788_v33  ;;  %v2687_v11 = vrot.slane %v5897_v45, 2 }
  0x44   : > { %4830 = vmatpush3.msra.mxu1 %v4308_v38  ;;  %4820 = vmatprep.mubr.msk.f32.mxu1 %vm475_vm1, %v5883_v39  ;;  %v5907_v38 = vsel %vm718_vm2, %v731_v36, %v732_v57  ;;  %v1798_v36 = vrot.slane %v6682_v19, 1  ;;  %v1611_v57 = vld [vmem:[%s5568_s30 + $0x4c] sm:$0x1]  ;;  %v3424_v19 = vrot.slane %v2844_v0, 1 }
  0x45   : > { %5008 = vmatprep.mubr.msk.f32.mxu0 %vm475_vm1, %v5796_v51  ;;  %4843 = vmatprep.subr.mxu1 %v4317_v20  ;;  %v1631_v7 = vunpack.c.l.bf16 %v1611_v57  ;;  %v2819_v51 = vld [vmem:[%s5945_s10 + $0x30] ss:$8 sps:$4 sm:$0xff]  }
  0x46   : > { %v5964_v1 = vsel %vm448_vm0, %v1797_v53, %v1798_v36  ;;  %v5987_v53 = vsel %vm448_vm0, %v2208_v4, %v2209_v5  ;;  %v3544_v36 = vrot.slane %v2844_v0, 2  ;;  %v4452_v5 = vld [vmem:[%s6637_s3 + $0x98] sm:$0xff]  ;;  %v6045_v0 = vld [vmem:[%s5945_s10 + $0x4c] sm:$0x1] }
  0x47   : > { %4821 = vmatmul.mubr.msk.f32.gmra.mrb[2].mxu1 %vm475_vm1, %v5895_v41  ;;  %5009 = vmatmul.mubr.msk.f32.gmra.mrb[6].mxu0 %vm475_vm1, %v5897_v45  ;;  %6684 = vst [vmem:[#allocation15_spill] sm:$0xff] %v5964_v1  ;;  %v2568_v22 = vrot.slane %v1631_v7, 1  ;;  %6686 = vst [vmem:[#allocation17_spill] sm:$0xff] %v5987_v53 }
  0x48   : > { %4823 = vmatprep.mubr.msk.f32.mxu1 %vm475_vm1, %v5907_v38  ;;  %5013 = vmatprep.mubr.msk.f32.mxu0 %vm475_vm1, %v5633_v40 }
  0x49   : > { %v2569_v57 = vsel %vm448_vm0, %v2567_v8, %v2568_v22  ;;  %v2688_v8 = vrot.slane %v1631_v7, 2  ;;  %v2807_v22 = vld [vmem:[%s5945_s10] ss:$8 sps:$4 sm:$0xff]  }
  0x4b   : > { %4824 = vmatmul.mubr.msk.f32.gmra.mrb[4].mxu1 %vm475_vm1, %v5920_v55  ;;  %5014 = vmatmul.mubr.msk.f32.vlgmr.msra.gmra.mrb[0].mxu0 %vm475_vm1, %v5680_v61  ;;  %v2689_v7 = vsel %vm718_vm2, %v2687_v11, %v2688_v8  ;;  %v6164_v61 = vld [vmem:[%s5945_s10 + $0x2c] sm:$0x1] }
  0x4c   : > { %4826 = vmatprep.mubr.msk.f32.mxu1 %vm475_vm1, %v5928_v26  ;;  %5026 = vmatpush3.msra.mxu0 %v4434_v28  ;;  %v5979_v28 = vsel %vm448_vm0, %v1800_v47, %v1801_v59  ;;  %v6002_v47 = vsel %vm448_vm0, %v3423_v6, %v3424_v19  ;;  %v6005_v59 = vsel %vm718_vm2, %v3543_v48, %v3544_v36  ;;  %v4335_v6 = vld [vmem:[%s6637_s3 + $0x30] sm:$0xff]  ;;  %v2846_v48 = vunpack.c.l.bf16 %v6045_v0 }
  0x4d   : > { %5016 = vmatprep.mubr.msk.f32.mxu0 %vm475_vm1, %v5701_v17  ;;  %5039 = vmatprep.subr.mxu0 %v4443_v13  ;;  %6685 = vst [vmem:[#allocation16_spill] sm:$0xff] %v5979_v28  ;;  %6687 = vst [vmem:[#allocation18_spill] sm:$0xff] %v6005_v59  ;;  %v6063_v19 = vunpack.c.l.bf16 %v2807_v22  ;;  %v2811_v36 = vld [vmem:[%s5945_s10 + $0x10] ss:$8 sps:$4 sm:$0xff]  }
  0x4e   : > { %v6082_v0 = vunpack.c.l.bf16 %v2811_v36 }
  0x4f   : > { %4827 = vmatmul.mubr.msk.f32.gmra.mrb[6].mxu1 %vm475_vm1, %v5952_v30  ;;  %5017 = vmatmul.mubr.msk.f32.gmra.mrb[2].mxu0 %vm475_vm1, %v5961_v3 }
  0x50   : > { %4831 = vmatprep.mubr.msk.f32.mxu1 %vm475_vm1, %v5573_v9  ;;  %5019 = vmatprep.mubr.msk.f32.mxu0 %vm475_vm1, %v5964_v1  ;;  %v4326_v9 = vld [vmem:[%s6637_s3 + $0x28] sm:$0xff] }
  0x53   : > { %4832 = vmatmul.mubr.msk.f32.vlgmr.msra.gmra.mrb[0].mxu1 %vm475_vm1, %v5615_v35  ;;  %5020 = vmatmul.mubr.msk.f32.gmra.mrb[4].mxu0 %vm475_vm1, %v5979_v28  ;;  %v3903_v28 = vrot.slane %v2846_v48, 2 }
  0x54   : > { %4844 = vmatpush3.msra.mxu1 %v4317_v20  ;;  %4834 = vmatprep.mubr.msk.f32.mxu1 %vm475_vm1, %v5618_v37  ;;  %v6013_v20 = vld [vmem:[%s5556_s20 + $0x40] ss:$8 sps:$4 sm:$0xff]  }
  0x55   : > { %5022 = vmatprep.mubr.msk.f32.mxu0 %vm475_vm1, %v5987_v53  ;;  %4857 = vmatprep.subr.mxu1 %v4326_v9  ;;  %v6020_v4 = vunpack.c.l.bf16 %v6013_v20 }
  0x57   : > { %4835 = vmatmul.mubr.msk.f32.gmra.mrb[2].mxu1 %vm475_vm1, %v5670_v58  ;;  %5023 = vmatmul.mubr.msk.f32.gmra.mrb[6].mxu0 %vm475_vm1, %v2569_v57  ;;  %v993_v11 = vrot.slane %v6020_v4, 1 }
  0x58   : > { %4837 = vmatprep.mubr.msk.f32.mxu1 %vm475_vm1, %v5682_v63  ;;  %5027 = vmatprep.mubr.msk.f32.mxu0 %vm475_vm1, %v5723_v15 }
  0x5b   : > { %4838 = vmatmul.mubr.msk.f32.gmra.mrb[4].mxu1 %vm475_vm1, %v5714_v25  ;;  %5028 = vmatmul.mubr.msk.f32.vlgmr.msra.gmra.mrb[0].mxu0 %vm475_vm1, %v5772_v18  ;;  %v6135_v18 = vld [vmem:[%s5945_s10 + $0x1c] sm:$0x1] }
  0x5c   : > { %4840 = vmatprep.mubr.msk.f32.mxu1 %vm475_vm1, %v5725_v27  ;;  %5040 = vmatpush3.msra.mxu0 %v4443_v13  ;;  %v6041_v13 = vld [vmem:[%s5556_s20 + $0x44] sm:$0x1] }
  0x5d   : > { %5030 = vmatprep.mubr.msk.f32.mxu0 %vm475_vm1, %v5783_v46  ;;  %5053 = vmatprep.subr.mxu0 %v4452_v5  ;;  %v6644_v45 = vunpack.c.l.bf16 %v6041_v13 }
  0x5f   : > { %4841 = vmatmul.mubr.msk.f32.gmra.mrb[6].mxu1 %vm475_vm1, %v6020_v4  ;;  %5031 = vmatmul.mubr.msk.f32.gmra.mrb[2].mxu0 %vm475_vm1, %v5803_v52  ;;  %v994_v8 = vrot.slane %v6644_v45, 1  ;;  %v6102_v45 = vunpack.c.h.bf16 %v2811_v36  ;;  %v6117_v36 = vld [vmem:[%s5945_s10 + $0x14] sm:$0x1] }
  0x60   : > { %4845 = vmatprep.mubr.msk.f32.mxu1 %vm475_vm1, %v5609_v31  ;;  %5033 = vmatprep.mubr.msk.f32.mxu0 %vm475_vm1, %v5810_v54  ;;  %v6052_v31 = vunpack.c.h.bf16 %v2823_v44  ;;  %v6691_v3 = vunpack.c.l.bf16 %v6117_v36 }
  0x61   : > { %v3003_v12 = vrot.slane %v6102_v45, 1 }
  0x62   : > { %6688 = vst [vmem:[#allocation19_spill] sm:$0xff] %v6052_v31  ;;  %v3782_v44 = vrot.slane %v6052_v31, 1  ;;  %v3001_v17 = vrot.slane %v6691_v3, 1  ;;  %v6693_v3 = vunpack.c.l.bf16 %v6041_v13 }
  0x63   : > { %4846 = vmatmul.mubr.msk.f32.vlgmr.msra.gmra.mrb[0].mxu1 %vm475_vm1, %v5667_v56  ;;  %5034 = vmatmul.mubr.msk.f32.gmra.mrb[4].mxu0 %vm475_vm1, %v5820_v24  ;;  %v6112_v24 = vld [vmem:[%s5945_s10 + $0xc] sm:$0x1] }
  0x64   : > { %4858 = vmatpush3.msra.mxu1 %v4326_v9  ;;  %4848 = vmatprep.mubr.msk.f32.mxu1 %vm475_vm1, %v5677_v60  ;;  %v3783_v9 = vrot.slane %v2846_v48, 1 }
  0x65   : > { %5036 = vmatprep.mubr.msk.f32.mxu0 %vm475_vm1, %v5833_v29  ;;  %4871 = vmatprep.subr.mxu1 %v4335_v6  ;;  %v6075_v29 = vunpack.c.h.bf16 %v2807_v22  ;;  %v6093_v22 = vld [vmem:[%s6637_s3 + $0xa0] sm:$0xff] }
  0x66   : > { %v6070_v57 = vsel %vm448_vm0, %v3782_v44, %v3783_v9  ;;  %v2815_v44 = vld [vmem:[%s5945_s10 + $0x20] ss:$8 sps:$4 sm:$0xff]   ;;  %v6100_v9 = vsel %vm448_vm0, %v993_v11, %v994_v8  ;;  %v6127_v11 = vunpack.c.l.bf16 %v2819_v51  ;;  %v6663_v8 = vunpack.c.l.bf16 %v6112_v24 }
  0x67   : > { %4849 = vmatmul.mubr.msk.f32.gmra.mrb[2].mxu1 %vm475_vm1, %v5710_v23  ;;  %6689 = vst [vmem:[#allocation20_spill] sm:$0xff] %v6070_v57  ;;  %5037 = vmatmul.mubr.msk.f32.gmra.mrb[6].mxu0 %vm475_vm1, %v2689_v7  ;;  %v6088_v7 = vld [vmem:[%s5945_s10 + $0x4] sm:$0x1]  ;;  %v6106_v53 = vunpack.c.l.bf16 %v2815_v44  ;;  %v2994_v57 = vrot.slane %v6063_v19, 1  ;;  %v2997_v46 = vrot.slane %v6075_v29, 1 }
  0x68   : > { %4851 = vmatprep.mubr.msk.f32.mxu1 %vm475_vm1, %v5733_v32  ;;  %5041 = vmatprep.mubr.msk.f32.mxu0 %vm475_vm1, %v6063_v19  ;;  %v6690_v54 = vunpack.c.l.bf16 %v6088_v7  ;;  %v2998_v15 = vrot.slane %v6663_v8, 1  ;;  %v6169_v8 = vld [vmem:[%s5945_s10 + $0x34] sm:$0x1] }
  0x69   : > { %v3006_v40 = vrot.slane %v6106_v53, 1 }
  0x6a   : > { %v2995_v52 = vrot.slane %v6690_v54, 1  ;;  %v6147_v54 = vunpack.c.h.bf16 %v2819_v51  ;;  %v3000_v51 = vrot.slane %v6082_v0, 1  ;;  %v6183_v59 = vsel %vm448_vm0, %v2997_v46, %v2998_v15  ;;  %v4470_v15 = vld [vmem:[%s6637_s3 + $0xa8] sm:$0xff] }
  0x6b   : > { %4852 = vmatmul.mubr.msk.f32.gmra.mrb[4].mxu1 %vm475_vm1, %v5757_v62  ;;  %5042 = vmatmul.mubr.msk.f32.vlgmr.msra.gmra.mrb[0].mxu0 %vm475_vm1, %v6075_v29 }
  0x6c   : > { %4854 = vmatprep.mubr.msk.f32.mxu1 %vm475_vm1, %v5769_v43  ;;  %5054 = vmatpush3.msra.mxu0 %v4452_v5  ;;  %v6123_v5 = vunpack.c.h.bf16 %v2815_v44  ;;  %v6143_v44 = vld [vmem:[%s5945_s10 + $0x24] sm:$0x1]  ;;  %v2996_v1 = vsel %vm448_vm0, %v2994_v57, %v2995_v52  ;;  %v1113_v52 = vrot.slane %v6020_v4, 2  ;;  %v1114_v57 = vrot.slane %v6693_v3, 2 }
  0x6d   : > { %5044 = vmatprep.mubr.msk.f32.mxu0 %vm475_vm1, %v6082_v0  ;;  %5067 = vmatprep.subr.mxu0 %v6093_v22  ;;  %v6695_v13 = vunpack.c.l.bf16 %v6143_v44 }
  0x6f   : > { %4855 = vmatmul.mubr.msk.f32.gmra.mrb[6].mxu1 %vm475_vm1, %v6100_v9  ;;  %5045 = vmatmul.mubr.msk.f32.gmra.mrb[2].mxu0 %vm475_vm1, %v6102_v45  ;;  %v3007_v3 = vrot.slane %v6695_v13, 1 }
  0x70   : > { %4859 = vmatprep.mubr.msk.f32.mxu1 %vm475_vm1, %v5871_v10  ;;  %5047 = vmatprep.mubr.msk.f32.mxu0 %vm475_vm1, %v6106_v53  ;;  %v4344_v10 = vld [vmem:[%s6637_s3 + $0x38] sm:$0xff] }
  0x71   : > { %v6222_v13 = vsel %vm448_vm0, %v3006_v40, %v3007_v3  ;;  %v3015_v40 = vrot.slane %v6147_v54, 1  ;;  %v6696_v3 = vunpack.c.l.bf16 %v6088_v7  ;;  %v3152_v7 = vrot.slane %v6075_v29, 2 }
  0x73   : > { %4860 = vmatmul.mubr.msk.f32.vlgmr.msra.gmra.mrb[0].mxu1 %vm475_vm1, %v5883_v39  ;;  %5048 = vmatmul.mubr.msk.f32.gmra.mrb[4].mxu0 %vm475_vm1, %v6123_v5 }
  0x74   : > { %4872 = vmatpush3.msra.mxu1 %v4335_v6  ;;  %4862 = vmatprep.mubr.msk.f32.mxu1 %vm475_vm1, %v5895_v41  ;;  %v3902_v6 = vrot.slane %v6052_v31, 2  ;;  %v6190_v31 = vsel %vm448_vm0, %v3000_v51, %v3001_v17  ;;  %v6209_v17 = vsel %vm718_vm2, %v1113_v52, %v1114_v57  ;;  %v3012_v52 = vrot.slane %v6127_v11, 1 }
  0x75   : > { %5050 = vmatprep.mubr.msk.f32.mxu0 %vm475_vm1, %v6127_v11  ;;  %4885 = vmatprep.subr.mxu1 %v4344_v10 }
  0x76   : > { %v6172_v48 = vsel %vm718_vm2, %v3902_v6, %v3903_v28  ;;  %v6694_v28 = vunpack.c.l.bf16 %v6135_v18 }
  0x77   : > { %4863 = vmatmul.mubr.msk.f32.gmra.mrb[2].mxu1 %vm475_vm1, %v5907_v38  ;;  %6692 = vst [vmem:[#allocation21_spill] sm:$0xff] %v6172_v48  ;;  %5051 = vmatmul.mubr.msk.f32.gmra.mrb[6].mxu0 %vm475_vm1, %v6147_v54  ;;  %v6667_v48 = vunpack.c.l.bf16 %v6164_v61 }
  0x78   : > { %4865 = vmatprep.mubr.msk.f32.mxu1 %vm475_vm1, %v5920_v55  ;;  %5055 = vmatprep.mubr.msk.f32.mxu0 %vm475_vm1, %v2996_v1  ;;  %v3004_v6 = vrot.slane %v6694_v28, 1  ;;  %v2840_v1 = vunpack.c.l.bf16 %v6169_v8  ;;  %v3009_v8 = vrot.slane %v6123_v5, 1  ;;  %v2842_v28 = vunpack.c.l.bf16 %v6197_v34 }
  0x79   : > { %v3010_v51 = vrot.slane %v6667_v48, 1  ;;  %v3150_v48 = vrot.slane %v6696_v3, 2  ;;  %v4479_v3 = vld [vmem:[%s6637_s3 + $0xb0] sm:$0xff] }
  0x7a   : > { %v6215_v46 = vsel %vm448_vm0, %v3003_v12, %v3004_v6  ;;  %v3013_v57 = vrot.slane %v2840_v1, 1  ;;  %v3016_v12 = vrot.slane %v2842_v28, 1  ;;  %v3149_v6 = vrot.slane %v6063_v19, 2 }
  0x7b   : > { %4866 = vmatmul.mubr.msk.f32.gmra.mrb[4].mxu1 %vm475_vm1, %v5928_v26  ;;  %5056 = vmatmul.mubr.msk.f32.vlgmr.msra.gmra.mrb[0].mxu0 %vm475_vm1, %v6183_v59  ;;  %v6234_v34 = vsel %vm448_vm0, %v3009_v8, %v3010_v51 }
  0x7c   : > { %4868 = vmatprep.mubr.msk.f32.mxu1 %vm475_vm1, %v5952_v30  ;;  %5068 = vmatpush3.msra.mxu0 %v6093_v22  ;;  %v6238_v22 = vsel %vm448_vm0, %v3012_v52, %v3013_v57  ;;  %v6255_v19 = vsel %vm448_vm0, %v3015_v40, %v3016_v12  ;;  %v3151_v51 = vsel %vm718_vm2, %v3149_v6, %v3150_v48  ;;  %v6698_v52 = vunpack.c.l.bf16 %v6117_v36 }
  0x7d   : > { %5058 = vmatprep.mubr.msk.f32.mxu0 %vm475_vm1, %v6190_v31  ;;  %5081 = vmatprep.subr.mxu0 %v4470_v15  ;;  %v6699_v36 = vunpack.c.l.bf16 %v6135_v18  ;;  %v6700_v12 = vunpack.c.l.bf16 %v6143_v44  ;;  %v3164_v18 = vrot.slane %v6123_v5, 2 }
  0x7e   : > { %v3156_v57 = vrot.slane %v6698_v52, 2  ;;  %v4506_v52 = vld [vmem:[%s6637_s3 + $0xc8] sm:$0xff] }
  0x7f   : > { %4869 = vmatmul.mubr.msk.f32.gmra.mrb[6].mxu1 %vm475_vm1, %v6209_v17  ;;  %5059 = vmatmul.mubr.msk.f32.gmra.mrb[2].mxu0 %vm475_vm1, %v6215_v46  ;;  %v3159_v48 = vrot.slane %v6699_v36, 2  ;;  %v3162_v6 = vrot.slane %v6700_v12, 2  ;;  %v6703_v36 = vld [vmem:[#allocation3_spill] sm:$0xff]  ;;  %v6706_v12 = vld [vmem:[#allocation5_spill] sm:$0xff] }
  0x80   : > { %4873 = vmatprep.mubr.msk.f32.mxu1 %vm475_vm1, %v5615_v35  ;;  %5061 = vmatprep.mubr.msk.f32.mxu0 %vm475_vm1, %v6222_v13  ;;  %v4353_v35 = vld [vmem:[%s6637_s3 + $0x40] sm:$0xff] }
  0x83   : > { %4874 = vmatmul.mubr.msk.f32.vlgmr.msra.gmra.mrb[0].mxu1 %vm475_vm1, %v5618_v37  ;;  %5062 = vmatmul.mubr.msk.f32.gmra.mrb[4].mxu0 %vm475_vm1, %v6234_v34  ;;  %v6697_v37 = vunpack.c.l.bf16 %v6112_v24  ;;  %v3158_v24 = vrot.slane %v6102_v45, 2 }
  0x84   : > { %4886 = vmatpush3.msra.mxu1 %v4344_v10  ;;  %4876 = vmatprep.mubr.msk.f32.mxu1 %vm475_vm1, %v5670_v58  ;;  %v3155_v10 = vrot.slane %v6082_v0, 2 }
  0x85   : > { %5064 = vmatprep.mubr.msk.f32.mxu0 %vm475_vm1, %v6238_v22  ;;  %v3153_v8 = vrot.slane %v6697_v37, 2  ;;  %4899 = vmatprep.subr.mxu1 %v4353_v35  ;;  %v3167_v37 = vrot.slane %v6127_v11, 2 }
  0x86   : > { %v6278_v40 = vsel %vm718_vm2, %v3155_v10, %v3156_v57 }
  0x87   : > { %4877 = vmatmul.mubr.msk.f32.gmra.mrb[2].mxu1 %vm475_vm1, %v5682_v63  ;;  %5065 = vmatmul.mubr.msk.f32.gmra.mrb[6].mxu0 %vm475_vm1, %v6255_v19  ;;  %v6272_v58 = vsel %vm718_vm2, %v3152_v7, %v3153_v8  ;;  %v3161_v63 = vrot.slane %v6106_v53, 2  ;;  %v3168_v8 = vrot.slane %v2840_v1, 2  ;;  %v410_v1 = vld [vmem:[%s5556_s20 + $0x4c] sm:$0x1]  ;;  %s375_s20 = sadd.s32 %s5441_s21, %s4277_s14 }
  0x88   : > { %4879 = vmatprep.mubr.msk.f32.mxu1 %vm475_vm1, %v5714_v25  ;;  %5069 = vmatprep.mubr.msk.f32.mxu0 %vm475_vm1, %v3151_v51  ;;  %v6286_v25 = vunpack.c.h.bf16 %v6013_v20  ;;  %v6701_v20 = vunpack.c.l.bf16 %v6164_v61  ;;  %v430_v10 = vunpack.c.l.bf16 %v410_v1  ;;  %p376_p8 = scmp.lt.s32.totalorder %s375_s20, 15 }
  0x89   : > { %v6304_v7 = vsel %vm718_vm2, %v3161_v63, %v3162_v6  ;;  %v6321_v51 = vsel %vm718_vm2, %v3167_v37, %v3168_v8  ;;  %v6705_v63 = vld [vmem:[#allocation18_spill] sm:$0xff]  ;;  %v6712_v37 = vld [vmem:[#allocation8_spill] sm:$0xff]  ;;  %v6714_v8 = vld [vmem:[#allocation9_spill] sm:$0xff] }
  0x8a   : > { %v3165_v44 = vrot.slane %v6701_v20, 2  ;;  %v6708_v20 = vld [vmem:[#allocation15_spill] sm:$0xff]  ;;  %s6737_s20 = smov (!%p376_p8, %s375_s20), 15 }
  0x8b   : > { %4880 = vmatmul.mubr.msk.f32.gmra.mrb[4].mxu1 %vm475_vm1, %v5725_v27  ;;  %5070 = vmatmul.mubr.msk.f32.vlgmr.msra.gmra.mrb[0].mxu0 %vm475_vm1, %v6272_v58  ;;  %v6298_v27 = vsel %vm718_vm2, %v3158_v24, %v3159_v48  ;;  %v4389_v24 = vld [vmem:[%s6637_s3 + $0x60] sm:$0xff]  ;;  %v6704_v48 = vld [vmem:[#allocation4_spill] sm:$0xff]  ;;  %s4535_s17 = sshll.u32 %s6737_s20, 5  ;;  %s4281_s13 = sshll.u32 %s6737_s20, 1 }
  0x8c   : > { %4882 = vmatprep.mubr.msk.f32.mxu1 %vm475_vm1, %v6020_v4  ;;  %5082 = vmatpush3.msra.mxu0 %v4470_v15  ;;  %v6316_v61 = vsel %vm718_vm2, %v3164_v18, %v3165_v44  ;;  %v3170_v4 = vrot.slane %v6147_v54, 2  ;;  %v3171_v15 = vrot.slane %v2842_v28, 2  ;;  %v4515_v18 = vld [vmem:[%s6637_s3 + $0xd0] sm:$0xff]  ;;  %s6574_s18 = scalar_lea.vmem %s6639_s5, %s4535_s17 }
  0x8d   : > { %5072 = vmatprep.mubr.msk.f32.mxu0 %vm475_vm1, %v6278_v40  ;;  %5095 = vmatprep.subr.mxu0 %v4479_v3  ;;  %v6709_v44 = vld [vmem:[#allocation16_spill] sm:$0xff] }
  0x8e   : > { %v6335_v28 = vsel %vm718_vm2, %v3170_v4, %v3171_v15  ;;  %v6717_v4 = vld [vmem:[#allocation13_spill] sm:$0xff] }
  0x8f   : > { %4883 = vmatmul.mubr.msk.f32.gmra.mrb[6].mxu1 %vm475_vm1, %v6286_v25  ;;  %5073 = vmatmul.mubr.msk.f32.gmra.mrb[2].mxu0 %vm475_vm1, %v6298_v27 }
  0x90   : > { %4887 = vmatprep.mubr.msk.f32.mxu1 %vm475_vm1, %v5667_v56  ;;  %5075 = vmatprep.mubr.msk.f32.mxu0 %vm475_vm1, %v6304_v7  ;;  %v4362_v56 = vld [vmem:[%s6637_s3 + $0x48] sm:$0xff] }
  0x93   : > { %4888 = vmatmul.mubr.msk.f32.vlgmr.msra.gmra.mrb[0].mxu1 %vm475_vm1, %v5677_v60  ;;  %5076 = vmatmul.mubr.msk.f32.gmra.mrb[4].mxu0 %vm475_vm1, %v6316_v61  ;;  %v1352_v60 = vrot.slane %v6286_v25, 1 }
  0x94   : > { %4900 = vmatpush3.msra.mxu1 %v4353_v35  ;;  %4890 = vmatprep.mubr.msk.f32.mxu1 %vm475_vm1, %v5710_v23  ;;  %v1353_v35 = vrot.slane %v430_v10, 1  ;;  %v4488_v23 = vld [vmem:[%s6637_s3 + $0xb8] sm:$0xff] }
  0x95   : > { %5078 = vmatprep.mubr.msk.f32.mxu0 %vm475_vm1, %v6321_v51  ;;  %4913 = vmatprep.subr.mxu1 %v4362_v56 }
  0x97   : > { %4891 = vmatmul.mubr.msk.f32.gmra.mrb[2].mxu1 %vm475_vm1, %v5733_v32  ;;  %5079 = vmatmul.mubr.msk.f32.gmra.mrb[6].mxu0 %vm475_vm1, %v6335_v28  ;;  %v1354_v32 = vsel %vm448_vm0, %v1352_v60, %v1353_v35 }
  0x98   : > { %4893 = vmatprep.mubr.msk.f32.mxu1 %vm475_vm1, %v5757_v62  ;;  %5083 = vmatprep.mubr.msk.f32.mxu0 %vm475_vm1, %v6075_v29  ;;  %v4371_v62 = vld [vmem:[%s6637_s3 + $0x50] sm:$0xff] }
  0x9b   : > { %4894 = vmatmul.mubr.msk.f32.gmra.mrb[4].mxu1 %vm475_vm1, %v5769_v43  ;;  %5084 = vmatmul.mubr.msk.f32.vlgmr.msra.gmra.mrb[0].mxu0 %vm475_vm1, %v6082_v0  ;;  %v1472_v43 = vrot.slane %v6286_v25, 2 }
  0x9c   : > { %4896 = vmatprep.mubr.msk.f32.mxu1 %vm475_vm1, %v6100_v9  ;;  %5096 = vmatpush3.msra.mxu0 %v4479_v3  ;;  %v6707_v3 = vld [vmem:[#allocation14_spill] sm:$0xff] }
  0x9d   : > { %5086 = vmatprep.mubr.msk.f32.mxu0 %vm475_vm1, %v6102_v45  ;;  %5109 = vmatprep.subr.mxu0 %v4488_v23 }
  0x9f   : > { %4897 = vmatmul.mubr.msk.f32.gmra.mrb[6].mxu1 %vm475_vm1, %v1354_v32  ;;  %5087 = vmatmul.mubr.msk.f32.gmra.mrb[2].mxu0 %vm475_vm1, %v6106_v53 }
  0xa0   : > { %4901 = vmatprep.mubr.msk.f32.mxu1 %vm475_vm1, %v5883_v39  ;;  %5089 = vmatprep.mubr.msk.f32.mxu0 %vm475_vm1, %v6123_v5  ;;  %v1473_v39 = vrot.slane %v430_v10, 2 }
  0xa3   : > { %4902 = vmatmul.mubr.msk.f32.vlgmr.msra.gmra.mrb[0].mxu1 %vm475_vm1, %v5895_v41  ;;  %5090 = vmatmul.mubr.msk.f32.gmra.mrb[4].mxu0 %vm475_vm1, %v6127_v11  ;;  %v1592_v41 = vld [vmem:[%s5568_s30] sm:$0xf] }
  0xa4   : > { %4914 = vmatpush3.msra.mxu1 %v4362_v56  ;;  %4904 = vmatprep.mubr.msk.f32.mxu1 %vm475_vm1, %v5907_v38  ;;  %v4497_v38 = vld [vmem:[%s6637_s3 + $0xc0] sm:$0xff] }
  0xa5   : > { %5092 = vmatprep.mubr.msk.f32.mxu0 %vm475_vm1, %v6147_v54  ;;  %4927 = vmatprep.subr.mxu1 %v4371_v62 }
  0xa7   : > { %4905 = vmatmul.mubr.msk.f32.gmra.mrb[2].mxu1 %vm475_vm1, %v5920_v55  ;;  %5093 = vmatmul.mubr.msk.f32.gmra.mrb[6].mxu0 %vm475_vm1, %v5972_v49  ;;  %v1474_v55 = vsel %vm718_vm2, %v1472_v43, %v1473_v39 }
  0xa8   : > { %4907 = vmatprep.mubr.msk.f32.mxu1 %vm475_vm1, %v5928_v26  ;;  %5097 = vmatprep.mubr.msk.f32.mxu0 %vm475_vm1, %v6183_v59  ;;  %v1612_v26 = vunpack.c.l.bf16 %v1592_v41  ;;  %v4380_v59 = vld [vmem:[%s6637_s3 + $0x58] sm:$0xff] }
  0xaa   : > { %v1779_v9 = vrot.slane %v1612_v26, 1  ;;  %v1934_v6 = vrot.slane %v1612_v26, 2 }
  0xab   : > { %4908 = vmatmul.mubr.msk.f32.gmra.mrb[4].mxu1 %vm475_vm1, %v5952_v30  ;;  %5098 = vmatmul.mubr.msk.f32.vlgmr.msra.gmra.mrb[0].mxu0 %vm475_vm1, %v6190_v31  ;;  %v1593_v30 = vld [vmem:[%s5568_s30 + $0x4] sm:$0x1]  ;;  %s388_s30 = scalar_lea.vmem %s6640_s6, %s4281_s13 }
  0xac   : > { %4910 = vmatprep.mubr.msk.f32.mxu1 %vm475_vm1, %v6209_v17  ;;  %5110 = vmatpush3.msra.mxu0 %v4488_v23  ;;  %v1613_v29 = vunpack.c.l.bf16 %v1593_v30 }
  0xad   : > { %5100 = vmatprep.mubr.msk.f32.mxu0 %vm475_vm1, %v6215_v46  ;;  %5123 = vmatprep.subr.mxu0 %v4497_v38 }
  0xae   : > { %v1780_v17 = vrot.slane %v1613_v29, 1  ;;  %v1935_v25 = vrot.slane %v1613_v29, 2 }
  0xaf   : > { %4911 = vmatmul.mubr.msk.f32.gmra.mrb[6].mxu1 %vm475_vm1, %v1474_v55  ;;  %5101 = vmatmul.mubr.msk.f32.gmra.mrb[2].mxu0 %vm475_vm1, %v6222_v13 }
  0xb0   : > { %4915 = vmatprep.mubr.msk.f32.mxu1 %vm475_vm1, %v1612_v26  ;;  %5103 = vmatprep.mubr.msk.f32.mxu0 %vm475_vm1, %v6234_v34  ;;  %v1781_v57 = vsel %vm448_vm0, %v1779_v9, %v1780_v17 }
  0xb3   : > { %4916 = vmatmul.mubr.msk.f32.vlgmr.msra.gmra.mrb[0].mxu1 %vm475_vm1, %v5581_v14  ;;  %5104 = vmatmul.mubr.msk.f32.gmra.mrb[4].mxu0 %vm475_vm1, %v6238_v22 }
  0xb4   : > { %4928 = vmatpush3.msra.mxu1 %v4371_v62  ;;  %4918 = vmatprep.mubr.msk.f32.mxu1 %vm475_vm1, %v5584_v16 }
  0xb5   : > { %5106 = vmatprep.mubr.msk.f32.mxu0 %vm475_vm1, %v6255_v19  ;;  %4941 = vmatprep.subr.mxu1 %v4380_v59 }
  0xb7   : > { %4919 = vmatmul.mubr.msk.f32.gmra.mrb[2].mxu1 %vm475_vm1, %v5636_v42  ;;  %5107 = vmatmul.mubr.msk.f32.gmra.mrb[6].mxu0 %vm475_vm1, %v6002_v47 }
  0xb8   : > { %4921 = vmatprep.mubr.msk.f32.mxu1 %vm475_vm1, %v5655_v50  ;;  %5111 = vmatprep.mubr.msk.f32.mxu0 %vm475_vm1, %v6272_v58  ;;  %v6702_v58 = vld [vmem:[#allocation2_spill] sm:$0xff] }
  0xbb   : > { %4922 = vmatmul.mubr.msk.f32.gmra.mrb[4].mxu1 %vm475_vm1, %v5759_v2  ;;  %5112 = vmatmul.mubr.msk.f32.vlgmr.msra.gmra.mrb[0].mxu0 %vm475_vm1, %v6278_v40 }
  0xbc   : > { %4924 = vmatprep.mubr.msk.f32.mxu1 %vm475_vm1, %v5774_v21  ;;  %5124 = vmatpush3.msra.mxu0 %v4497_v38 }
  0xbd   : > { %5114 = vmatprep.mubr.msk.f32.mxu0 %vm475_vm1, %v6298_v27  ;;  %5137 = vmatprep.subr.mxu0 %v4506_v52 }
  0xbf   : > { %4925 = vmatmul.mubr.msk.f32.gmra.mrb[6].mxu1 %vm475_vm1, %v5788_v33  ;;  %5115 = vmatmul.mubr.msk.f32.gmra.mrb[2].mxu0 %vm475_vm1, %v6304_v7 }
  0xc0   : > { %4929 = vmatprep.mubr.msk.f32.mxu1 %vm475_vm1, %v1781_v57  ;;  %5117 = vmatprep.mubr.msk.f32.mxu0 %vm475_vm1, %v6316_v61 }
  0xc3   : > { %4930 = vmatmul.mubr.msk.f32.vlgmr.msra.gmra.mrb[0].mxu1 %vm475_vm1, %v6702_v58  ;;  %5118 = vmatmul.mubr.msk.f32.gmra.mrb[4].mxu0 %vm475_vm1, %v6321_v51 }
  0xc4   : > { %4942 = vmatpush3.msra.mxu1 %v4380_v59  ;;  %4932 = vmatprep.mubr.msk.f32.mxu1 %vm475_vm1, %v6703_v36 }
  0xc5   : > { %5120 = vmatprep.mubr.msk.f32.mxu0 %vm475_vm1, %v6335_v28  ;;  %4955 = vmatprep.subr.mxu1 %v4389_v24 }
  0xc7   : > { %4933 = vmatmul.mubr.msk.f32.gmra.mrb[2].mxu1 %vm475_vm1, %v6704_v48  ;;  %5121 = vmatmul.mubr.msk.f32.gmra.mrb[6].mxu0 %vm475_vm1, %v6705_v63 }
  0xc8   : > { %4935 = vmatprep.mubr.msk.f32.mxu1 %vm475_vm1, %v6706_v12  ;;  %5125 = vmatprep.mubr.msk.f32.mxu0 %vm475_vm1, %v6082_v0  ;;  %v1936_v0 = vsel %vm718_vm2, %v1934_v6, %v1935_v25 }
  0xcb   : > { %4936 = vmatmul.mubr.msk.f32.gmra.mrb[4].mxu1 %vm475_vm1, %v6707_v3  ;;  %5126 = vmatmul.mubr.msk.f32.vlgmr.msra.gmra.mrb[0].mxu0 %vm475_vm1, %v6102_v45  ;;  %v6710_v45 = vld [vmem:[#allocation6_spill] sm:$0xff] }
  0xcc   : > { %4938 = vmatprep.mubr.msk.f32.mxu1 %vm475_vm1, %v6708_v20  ;;  %5138 = vmatpush3.msra.mxu0 %v4506_v52 }
  0xcd   : > { %5128 = vmatprep.mubr.msk.f32.mxu0 %vm475_vm1, %v6106_v53  ;;  %5151 = vmatprep.subr.mxu0 %v4515_v18  ;;  %v6711_v53 = vld [vmem:[#allocation7_spill] sm:$0xff] }
  0xcf   : > { %4939 = vmatmul.mubr.msk.f32.gmra.mrb[6].mxu1 %vm475_vm1, %v6709_v44  ;;  %5129 = vmatmul.mubr.msk.f32.gmra.mrb[2].mxu0 %vm475_vm1, %v6123_v5  ;;  %v5418_v5 = vld [vmem:[%s6637_s3 + $0x68] sm:$0xff] }
  0xd0   : > { %4943 = vmatprep.mubr.msk.f32.mxu1 %vm475_vm1, %v1936_v0  ;;  %5131 = vmatprep.mubr.msk.f32.mxu0 %vm475_vm1, %v6127_v11  ;;  %v6713_v11 = vld [vmem:[#allocation19_spill] sm:$0xff] }
  0xd3   : > { %4944 = vmatmul.mubr.msk.f32.vlgmr.msra.gmra.mrb[0].mxu1 %vm475_vm1, %v6710_v45  ;;  %5132 = vmatmul.mubr.msk.f32.gmra.mrb[4].mxu0 %vm475_vm1, %v6147_v54  ;;  %v6715_v54 = vld [vmem:[#allocation11_spill] sm:$0xff] }
  0xd4   : > { %4956 = vmatpush3.msra.mxu1 %v4389_v24  ;;  %4946 = vmatprep.mubr.msk.f32.mxu1 %vm475_vm1, %v6711_v53 }
  0xd5   : > { %5134 = vmatprep.mubr.msk.f32.mxu0 %vm475_vm1, %v5972_v49  ;;  %5165 = vmatprep.subr.mxu1 %v5418_v5  ;;  %v6716_v49 = vld [vmem:[#allocation12_spill] sm:$0xff] }
  0xd7   : > { %4947 = vmatmul.mubr.msk.f32.gmra.mrb[2].mxu1 %vm475_vm1, %v6712_v37  ;;  %5135 = vmatmul.mubr.msk.f32.gmra.mrb[6].mxu0 %vm475_vm1, %v6713_v11 }
  0xd8   : > { %4949 = vmatprep.mubr.msk.f32.mxu1 %vm475_vm1, %v6714_v8  ;;  %5139 = vmatprep.mubr.msk.f32.mxu0 %vm475_vm1, %v6190_v31 }
  0xdb   : > { %4950 = vmatmul.mubr.msk.f32.gmra.mrb[4].mxu1 %vm475_vm1, %v6715_v54  ;;  %5140 = vmatmul.mubr.msk.f32.vlgmr.msra.gmra.mrb[0].mxu0 %vm475_vm1, %v6215_v46  ;;  %v6567_v46 = vld [vmem:[%s6638_s4] ss:$0 sm:$0xff] }
  0xdc   : > { %4952 = vmatprep.mubr.msk.f32.mxu1 %vm475_vm1, %v6716_v49  ;;  %5152 = vmatpush3.msra.mxu0 %v4515_v18 }
  0xdd   : > { %5142 = vmatprep.mubr.msk.f32.mxu0 %vm475_vm1, %v6222_v13 }
  0xdf   : > { %4953 = vmatmul.mubr.msk.f32.gmra.mrb[6].mxu1 %vm475_vm1, %v6717_v4  ;;  %5143 = vmatmul.mubr.msk.f32.gmra.mrb[2].mxu0 %vm475_vm1, %v6234_v34 }
  0xe0   : > { %4957 = vmatprep.mubr.msk.f32.mxu1 %vm475_vm1, %v5581_v14  ;;  %5145 = vmatprep.mubr.msk.f32.mxu0 %vm475_vm1, %v6238_v22  ;;  %v6718_v14 = vld [vmem:[#allocation20_spill] sm:$0xff] }
  0xe3   : > { %4958 = vmatmul.mubr.msk.f32.vlgmr.msra.gmra.mrb[0].mxu1 %vm475_vm1, %v5584_v16  ;;  %5146 = vmatmul.mubr.msk.f32.gmra.mrb[4].mxu0 %vm475_vm1, %v6255_v19  ;;  %v6719_v16 = vld [vmem:[#allocation10_spill] sm:$0xff] }
  0xe4   : > { %5166 = vmatpush3.msra.mxu1 %v5418_v5  ;;  %4960 = vmatprep.mubr.msk.f32.mxu1 %vm475_vm1, %v5636_v42  ;;  %v6720_v42 = vld [vmem:[#allocation17_spill] sm:$0xff] }
  0xe5   : > { %5148 = vmatprep.mubr.msk.f32.mxu0 %vm475_vm1, %v6002_v47 }
  0xe7   : > { %4961 = vmatmul.mubr.msk.f32.gmra.mrb[2].mxu1 %vm475_vm1, %v5655_v50  ;;  %5149 = vmatmul.mubr.msk.f32.gmra.mrb[6].mxu0 %vm475_vm1, %v6718_v14  ;;  %v6721_v50 = vld [vmem:[#allocation21_spill] sm:$0xff] }
  0xe8   : > { %4963 = vmatprep.mubr.msk.f32.mxu1 %vm475_vm1, %v5759_v2  ;;  %5153 = vmatprep.mubr.msk.f32.mxu0 %vm475_vm1, %v6278_v40 }
  0xeb   : > { %4964 = vmatmul.mubr.msk.f32.gmra.mrb[4].mxu1 %vm475_vm1, %v5774_v21  ;;  %5154 = vmatmul.mubr.msk.f32.vlgmr.msra.gmra.mrb[0].mxu0 %vm475_vm1, %v6298_v27 }
  0xec   : > { %4966 = vmatprep.mubr.msk.f32.mxu1 %vm475_vm1, %v5788_v33  ;;  %5156 = vmatprep.mubr.msk.f32.mxu0 %vm475_vm1, %v6304_v7 }
  0xef   : > { %4967 = vmatmul.mubr.msk.f32.gmra.mrb[6].mxu1 %vm475_vm1, %v6719_v16  ;;  %5157 = vmatmul.mubr.msk.f32.gmra.mrb[2].mxu0 %vm475_vm1, %v6316_v61 }
  0xf0   : > { %4977 = vmatprep.mubr.msk.f32.mxu1 %vm475_vm1, %v6707_v3  ;;  %5159 = vmatprep.mubr.msk.f32.mxu0 %vm475_vm1, %v6321_v51 }
  0xf3   : > { %4978 = vmatmul.mubr.msk.f32.vlgmr.msra.gmra.mrb[4].mxu1 %vm475_vm1, %v6708_v20  ;;  %5160 = vmatmul.mubr.msk.f32.gmra.mrb[4].mxu0 %vm475_vm1, %v6335_v28 }
  0xf4   : > { %4980 = vmatprep.mubr.msk.f32.mxu1 %vm475_vm1, %v6709_v44  ;;  %5162 = vmatprep.mubr.msk.f32.mxu0 %vm475_vm1, %v6705_v63 }
  0xf7   : > { %4981 = vmatmul.mubr.msk.f32.gmra.mrb[6].mxu1 %vm475_vm1, %v6720_v42  ;;  %5163 = vmatmul.mubr.msk.f32.gmra.mrb[6].mxu0 %vm475_vm1, %v6721_v50 }
 0x1b6   : > { %v4959_v2 = vpop.f32.mrb[0].mxu1 }
 0x1b7   : > { %v2160_v21 = vpop.f32.mrb[1].mxu1 }
 0x1ba   : > { %v4962_v33 = vpop.f32.mrb[2].mxu1 }
 0x1bb   : > { %v2170_v47 = vpop.f32.mrb[3].mxu1 }
 0x1be   : > { %v5155_v31 = vpop.f32.mrb[0].mxu0 }
 0x1bf   : > { %v5167_v13 = vadd.f32 %v5155_v31, %v4959_v2  ;;  %v3975_v34 = vpop.f32.mrb[1].mxu0 }
 0x1c0   : > { %v5168_v22 = vadd.f32 %v3975_v34, %v2160_v21 }
 0x1c1   : > { %v4030_v19 = vadd.f32 %v5167_v13, %v6567_v46 }
 0x1c2   : > { %v4029_v40 = vadd.f32 %v5168_v22, %v6567_v46  ;;  %v5158_v27 = vpop.f32.mrb[2].mxu0 }
 0x1c3   : > { %v4537_v7 = vpack.c.bf16 %v4030_v19, %v4030_v19  ;;  %v4079_v61 = vsel %vm475_vm1, %v4030_v19, 0.0  ;;  %v4102_v15 = vmul.f32 %v4030_v19, %v4030_v19  ;;  %v5169_v1 = vadd.f32 %v5158_v27, %v4962_v33  ;;  %v3985_v51 = vpop.f32.mrb[3].mxu0 }
 0x1c4   : > { %v4536_v56 = vpack.c.bf16 %v4029_v40, %v4029_v40  ;;  %v4078_v10 = vsel %vm475_vm1, %v4029_v40, 0.0  ;;  %v4101_v28 = vmul.f32 %v4029_v40, %v4029_v40  ;;  %v5170_v60 = vadd.f32 %v3985_v51, %v2170_v47 }
 0x1c5   : > { %4071 = vst.msk [vmem:[%s6574_s18 + $0x4] sm:$0xf] %vm4069_vm3, %v4537_v7  ;;  %v4110_v35 = vsel %vm475_vm1, %v4102_v15, 0.0  ;;  %v4080_v23 = vadd.f32 %v4079_v61, %v4078_v10  ;;  %v4032_v32 = vadd.f32 %v5169_v1, %v6567_v46 }
 0x1c6   : > { %v4979_v62 = vpop.f32.mrb[4].mxu1  ;;  %4070 = vst.msk [vmem:[%s6574_s18] sm:$0xf] %vm4069_vm3, %v4536_v56  ;;  %v4109_v43 = vsel %vm475_vm1, %v4101_v28, 0.0  ;;  %v4031_v39 = vadd.f32 %v5170_v60, %v6567_v46  ;;  %v5161_v38 = vpop.f32.mrb[4].mxu0 }
 0x1c7   : > { %v2301_v41 = vpop.f32.mrb[5].mxu1  ;;  %v4111_v55 = vadd.f32 %v4110_v35, %v4109_v43  ;;  %v4539_v26 = vpack.c.bf16 %v4032_v32, %v4032_v32  ;;  %v4104_v30 = vmul.f32 %v4032_v32, %v4032_v32  ;;  %v3995_v59 = vpop.f32.mrb[5].mxu0  ;;  %v5171_v52 = vadd.f32 %v5161_v38, %v4979_v62 }
 0x1c8   : > { %v4538_v29 = vpack.c.bf16 %v4031_v39, %v4031_v39  ;;  %v4081_v9 = vsel %vm475_vm1, %v4031_v39, 0.0  ;;  %v4103_v17 = vmul.f32 %v4031_v39, %v4031_v39  ;;  %v5172_v58 = vadd.f32 %v3995_v59, %v2301_v41 }
 0x1c9   : > { %4073 = vst.msk [vmem:[%s6574_s18 + $0xc] sm:$0xf] %vm4069_vm3, %v4539_v26  ;;  %v4082_v57 = vadd.f32 %v4081_v9, %v4080_v23  ;;  %v4083_v36 = vsel %vm475_vm1, %v4032_v32, 0.0  ;;  %v4034_v63 = vadd.f32 %v5171_v52, %v6567_v46  ;;  %v4114_v44 = vsel %vm475_vm1, %v4104_v30, 0.0 }
 0x1ca   : > { %v4982_v24 = vpop.f32.mrb[6].mxu1  ;;  %4072 = vst.msk [vmem:[%s6574_s18 + $0x8] sm:$0xf] %vm4069_vm3, %v4538_v29  ;;  %v4112_v48 = vsel %vm475_vm1, %v4103_v17, 0.0  ;;  %v5164_v6 = vpop.f32.mrb[6].mxu0  ;;  %v4033_v3 = vadd.f32 %v5172_v58, %v6567_v46 }
 0x1cb   : > { %v2311_v12 = vpop.f32.mrb[7].mxu1  ;;  %v4113_v25 = vadd.f32 %v4112_v48, %v4111_v55  ;;  %v4084_v18 = vadd.f32 %v4083_v36, %v4082_v57  ;;  %v5173_v20 = vadd.f32 %v5164_v6, %v4982_v24  ;;  %v4005_v0 = vpop.f32.mrb[7].mxu0  ;;  %v4541_v45 = vpack.c.bf16 %v4034_v63, %v4034_v63 }
 0x1cc   : > { %v4106_v53 = vmul.f32 %v4034_v63, %v4034_v63  ;;  %v5174_v5 = vadd.f32 %v4005_v0, %v2311_v12  ;;  %v4540_v37 = vpack.c.bf16 %v4033_v3, %v4033_v3  ;;  %v4085_v11 = vsel %vm475_vm1, %v4033_v3, 0.0 }
 0x1cd   : > { %v4105_v8 = vmul.f32 %v4033_v3, %v4033_v3  ;;  %v4115_v54 = vadd.f32 %v4114_v44, %v4113_v25  ;;  %4075 = vst.msk [vmem:[%s6574_s18 + $0x14] sm:$0xf] %vm4069_vm3, %v4541_v45  ;;  %v4086_v49 = vadd.f32 %v4085_v11, %v4084_v18  ;;  %v4036_v4 = vadd.f32 %v5173_v20, %v6567_v46 }
 0x1ce   : > { %v4035_v14 = vadd.f32 %v5174_v5, %v6567_v46  ;;  %v4087_v16 = vsel %vm475_vm1, %v4034_v63, 0.0  ;;  %4074 = vst.msk [vmem:[%s6574_s18 + $0x10] sm:$0xf] %vm4069_vm3, %v4540_v37  ;;  %v4118_v50 = vsel %vm475_vm1, %v4106_v53, 0.0 }
 0x1cf   : > { %v4116_v42 = vsel %vm475_vm1, %v4105_v8, 0.0  ;;  %v4543_v21 = vpack.c.bf16 %v4036_v4, %v4036_v4  ;;  %v4108_v33 = vmul.f32 %v4036_v4, %v4036_v4  ;;  %v4088_v31 = vadd.f32 %v4087_v16, %v4086_v49 }
 0x1d0   : > { %v4117_v2 = vadd.f32 %v4116_v42, %v4115_v54  ;;  %v4542_v47 = vpack.c.bf16 %v4035_v14, %v4035_v14  ;;  %v4089_v13 = vsel %vm475_vm1, %v4035_v14, 0.0  ;;  %v4107_v34 = vmul.f32 %v4035_v14, %v4035_v14 }
 0x1d1   : > { %4077 = vst.msk [vmem:[%s6574_s18 + $0x1c] sm:$0xf] %vm4069_vm3, %v4543_v21  ;;  %v4090_v22 = vadd.f32 %v4089_v13, %v4088_v31  ;;  %v4091_v40 = vsel %vm475_vm1, %v4036_v4, 0.0  ;;  %v4122_v7 = vsel %vm475_vm1, %v4108_v33, 0.0 }
 0x1d2   : > { %v4119_v46 = vadd.f32 %v4118_v50, %v4117_v2  ;;  %4076 = vst.msk [vmem:[%s6574_s18 + $0x18] sm:$0xf] %vm4069_vm3, %v4542_v47  ;;  %v4120_v19 = vsel %vm475_vm1, %v4107_v34, 0.0 }
 0x1d3   : > { %v4092_v61 = vadd.f32 %v4091_v40, %v4090_v22 }
 0x1d4   : > { %v4121_v27 = vadd.f32 %v4120_v19, %v4119_v46 }
 0x1d5   : > { %v4093_v1 = vrot.slane %v4092_v61, 4 }
 0x1d6   : > { %v4123_v15 = vadd.f32 %v4122_v7, %v4121_v27 }
 0x1d7   : > { %v4094_v56 = vadd.f32 %v4093_v1, %v4092_v61 }
 0x1d8   : > { %v4124_v51 = vrot.slane %v4123_v15, 4 }
 0x1d9   : > { %v4095_v28 = vrot.slane %v4094_v56, 2 }
 0x1da   : > { %v4125_v10 = vadd.f32 %v4124_v51, %v4123_v15 }
 0x1db   : > { %v4096_v35 = vadd.f32 %v4095_v28, %v4094_v56 }
 0x1dc   : > { %v4126_v60 = vrot.slane %v4125_v10, 2 }
 0x1dd   : > { %v4097_v32 = vrot.slane %v4096_v35, 1 }
 0x1de   : > { %v4127_v23 = vadd.f32 %v4126_v60, %v4125_v10 }
 0x1df   : > { %v4098_v43 = vadd.f32 %v4097_v32, %v4096_v35 }
 0x1e0   : > { %v4128_v62 = vrot.slane %v4127_v23, 1 }
 0x1e1   : > { %4100 = vst.msk [vmem:[%s388_s30] sm:$0x1] %vm4099_vm4, %v4098_v43 }
 0x1e2   : > { %v4129_v39 = vadd.f32 %v4128_v62, %v4127_v23 }
 0x1e4   : > { %4130 = vst.msk [vmem:[%s388_s30 + $0x1] sm:$0x1] %vm4099_vm4, %v4129_v39 }
 0x1e5 PF: > { %s17_s25 = sadd.s32 1, %s5457_s25   ;;  %s6722_s21 = smov %s5449_s23 }
 0x1e6   : > { %p14_p9 = scmp.ge.s32.totalorder %s17_s25, 18   ;;  %s6723_s22 = smov %s5453_s24 }
 0x1e7   : > { %s6724_s23 = smov %s6727_s26  ;;  %s6725_s24 = smov %s6731_s27 }
 0x1e8   :  { %16 = sbr.rel (!%p14_p9) target bundleno = 3 (0x3), region = 114 }

</bundles_post_ra>
